<compile_context>
chip_gen: v7x
topology: tpu7x:2x2x1
jax: 0.10.0
libtpu: 0.0.40
codegen_flags: <defaults>
</compile_context>

<pallas_src>
import functools
import inspect

import jax
import jax.numpy as jnp
from jax import lax
from jax.experimental import pallas as pl
from jax.experimental.pallas import tpu as pltpu


_BN_EPS = 1e-5

LAYER_CFG = lambda cin, cout: [  # (in, out, ksize, pad)
    (cin, cout, 1, 0),
    (cout, cin, 3, 1),
    (cin, cout, 1, 0),
    (cout, cin, 3, 1),
    (cin, cout, 1, 0),
]


def _round_up(x, m):
    return (x + m - 1) // m * m


def _const_spec_kwargs():
    """Single-buffer operands whose index_map is constant across the grid
    (weights / biases / mask): default 2-deep buffering would only double
    their VMEM footprint for zero benefit."""
    try:
        if "pipeline_mode" in inspect.signature(pl.BlockSpec).parameters:
            return {"pipeline_mode": pl.Buffered(1)}
    except Exception:
        pass
    return {}


def _pick_vmem_limit_bytes():
    """~85% of physical per-core VMEM, capped at 110 MiB: ~54 MiB on v7x
    (64 MiB physical), ~109 MiB on v5e/v6e (128 MiB physical). Returns None
    (Mosaic default) if the hardware query is unavailable."""
    try:
        cap = int(pltpu.get_tpu_info().vmem_capacity_bytes)
    except Exception:
        return None
    return min(cap * 85 // 100, 110 * 1024 * 1024)


# ----------------------------------------------------------------------------
# Fused kernel: 5x (conv + folded-BN bias + LeakyReLU), activations in VMEM
# ----------------------------------------------------------------------------
def conv_set_kernel(x_ref, mask_ref,
                    w1_ref, b1_ref, w2_ref, b2_ref, w3_ref, b3_ref,
                    w4_ref, b4_ref, w5_ref, b5_ref,
                    o_ref,
                    bufm_ref, bufp_ref,
                    *, Wp, rows, margin, c1p):
    # x_ref:    (1, rows, c0p)  input image in padded-spatial row layout
    # mask_ref: (rows, 1)       1.0 on valid pixels, 0.0 on pad ring / filler
    # wK_ref:   folded conv weights (BN scale folded in), taps stacked on rows
    # bK_ref:   (1, cK)         folded conv-bias + BN bias (f32)
    # o_ref:    (1, rows, c1p)  output (compute dtype)
    # bufm_ref: (>= rows+2*margin, c1p)  halo-extended activation (feeds 3x3)
    # bufp_ref: (rows, c0p)              3x3 outputs (feed the 1x1 layers)
    cdt = bufm_ref.dtype
    f32 = jnp.float32
    mask = mask_ref[...]                                 # (rows, 1) f32

    def lrelu(y):
        # LeakyReLU(0.1): slope < 1, so max(y, 0.1*y) == leaky_relu(y)
        # (2 VALU ops instead of cmp+mul+select).
        return jnp.maximum(y, 0.1 * y)

    # Zero the halo margins so the shifted 3x3 reads at border rows see zeros.
    # Done every grid step (cheap: 2*margin rows) because VMEM scratch is
    # uninitialized and, under a megacore "parallel" split, not every core
    # starts at program_id == 0.
    zm = jnp.zeros((margin, c1p), cdt)
    bufm_ref[0:margin, :] = zm
    bufm_ref[margin + rows:margin + rows + margin, :] = zm

    def conv1x1_masked(src, w_ref, b_ref):
        y = jnp.dot(src, w_ref[...], preferred_element_type=f32) + b_ref[...]
        return lrelu(y) * mask                           # keep zero-pad ring == 0

    def conv3x3(w_ref, b_ref):
        # 3x3 conv as 9 accumulated shifted dots over the halo-extended buffer
        # (no materialized im2col / cols scratch, no extra copy passes).
        acc = None
        for kh in range(3):
            for kw in range(3):
                tap = kh * 3 + kw
                off = margin + (kh - 1) * Wp + (kw - 1)  # static offset
                part = jnp.dot(bufm_ref[off:off + rows, :],
                               w_ref[tap * c1p:(tap + 1) * c1p, :],
                               preferred_element_type=f32)
                acc = part if acc is None else acc + part
        return lrelu(acc + b_ref[...])

    # ---- layer 1: 1x1 conv + LeakyReLU (masked) -----------------------------
    bufm_ref[margin:margin + rows, :] = (
        conv1x1_masked(x_ref[0], w1_ref, b1_ref).astype(cdt))

    # ---- layer 2: 3x3 conv ---------------------------------------------------
    bufp_ref[...] = conv3x3(w2_ref, b2_ref).astype(cdt)

    # ---- layer 3: 1x1 conv (masked) ------------------------------------------
    bufm_ref[margin:margin + rows, :] = (
        conv1x1_masked(bufp_ref[...], w3_ref, b3_ref).astype(cdt))

    # ---- layer 4: 3x3 conv ---------------------------------------------------
    bufp_ref[...] = conv3x3(w4_ref, b4_ref).astype(cdt)

    # ---- layer 5: 1x1 conv -> output (pad ring sliced away in the wrapper) ---
    y = jnp.dot(bufp_ref[...], w5_ref[...], preferred_element_type=f32) + b5_ref[...]
    o_ref[0] = lrelu(y).astype(o_ref.dtype)


# ----------------------------------------------------------------------------
# Wrapper: layout glue + BN folding + pallas_call
# ----------------------------------------------------------------------------
def _fold_bn(p):
    scale = p["gamma"] / jnp.sqrt(p["var"] + _BN_EPS)          # (co,)
    w = p["w"] * scale[:, None, None, None]                    # (co,ci,k,k)
    b = (p["b"] - p["mean"]) * scale + p["beta"]               # (co,)
    return w, b


def _pack_weight(w, ci_p, co_p, compute_dtype):
    # (co, ci, kh, kw) torch layout -> (kh*kw*ci_p, co_p), zero-padded channels
    co, ci, kh, kw = w.shape
    wt = jnp.transpose(w, (2, 3, 1, 0))                        # (kh,kw,ci,co)
    wt = jnp.pad(wt, ((0, 0), (0, 0), (0, ci_p - ci), (0, co_p - co)))
    return wt.reshape(kh * kw * ci_p, co_p).astype(compute_dtype)


def _pack_bias(b, co_p):
    return jnp.pad(b, (0, co_p - b.shape[0])).reshape(1, co_p).astype(jnp.float32)


@functools.partial(jax.jit, static_argnums=(2, 3, 4))
def convolutional_set_layer(x_nchw, params, in_channel, out_channel,
                            compute_dtype=jnp.float32):
    N, Cin, H, W = x_nchw.shape
    Hp, Wp = H + 2, W + 2

    # Sublane packing multiple for the compute dtype (8 f32 / 16 bf16 / 32 i8):
    # keeps every packed VMEM buffer and the matmul M dim unmasked.
    sub = 8 * (4 // jnp.dtype(compute_dtype).itemsize)
    rows = _round_up(Hp * Wp, sub)      # flattened padded-spatial length
    margin = Wp + 1                     # halo: all 3x3 shifts become static slices
    c0p = _round_up(in_channel, 128)    # lane-dense channel padding
    c1p = _round_up(out_channel, 128)

    # --- layout glue (done once by XLA): NCHW -> zero-padded NHWC rows -------
    x = jnp.transpose(x_nchw, (0, 2, 3, 1))                    # (N,H,W,Cin)
    x = jnp.pad(x, ((0, 0), (1, 1), (1, 1), (0, 0)))           # spatial zero pad
    x = x.reshape(N, Hp * Wp, Cin)
    x = jnp.pad(x, ((0, 0), (0, rows - Hp * Wp), (0, c0p - Cin)))
    x = x.astype(compute_dtype)

    # valid-pixel mask in padded coordinates (zeros on conv pad ring + filler)
    hh, ww = jnp.meshgrid(jnp.arange(Hp), jnp.arange(Wp), indexing="ij")
    mask = ((hh >= 1) & (hh <= H) & (ww >= 1) & (ww <= W)).astype(jnp.float32)
    mask = jnp.pad(mask.reshape(Hp * Wp, 1), ((0, rows - Hp * Wp), (0, 0)))

    # --- fold BN into weights/bias, pad channels, flatten taps ---------------
    packed = []
    for p, (ci, co, k, _) in zip(params, LAYER_CFG(in_channel, out_channel)):
        w, b = _fold_bn(p)
        cip = c0p if ci == in_channel else c1p
        cop = c0p if co == in_channel else c1p
        packed += [_pack_weight(w, cip, cop, compute_dtype), _pack_bias(b, cop)]

    kernel = functools.partial(conv_set_kernel, Wp=Wp, rows=rows,
                               margin=margin, c1p=c1p)

    # Constant-index blocks (fetched once, revisited): single-buffer them.
    const_kw = _const_spec_kwargs()
    weight_specs = [pl.BlockSpec(arr.shape, lambda n: (0, 0), **const_kw)
                    for arr in packed]

    cp_kwargs = dict(dimension_semantics=("parallel",))
    vmem_limit = _pick_vmem_limit_bytes()
    if vmem_limit is not None:
        cp_kwargs["vmem_limit_bytes"] = vmem_limit

    out = pl.pallas_call(
        kernel,
        out_shape=jax.ShapeDtypeStruct((N, rows, c1p), compute_dtype),
        grid_spec=pltpu.PrefetchScalarGridSpec(
            num_scalar_prefetch=0,
            grid=(N,),
            in_specs=[
                pl.BlockSpec((1, rows, c0p), lambda n: (n, 0, 0)),        # x
                pl.BlockSpec((rows, 1), lambda n: (0, 0), **const_kw),    # mask
            ] + weight_specs,
            out_specs=pl.BlockSpec((1, rows, c1p), lambda n: (n, 0, 0)),
            scratch_shapes=[
                pltpu.VMEM((_round_up(rows + 2 * margin, sub), c1p), compute_dtype),
                pltpu.VMEM((rows, c0p), compute_dtype),
            ],
        ),
        compiler_params=pltpu.CompilerParams(**cp_kwargs),
    )(x, mask, *packed)

    # --- glue back: drop spatial/channel padding, NHWC -> NCHW, cast ---------
    out = out[:, :Hp * Wp, :out_channel].reshape(N, Hp, Wp, out_channel)
    out = out[:, 1:H + 1, 1:W + 1, :]
    return jnp.transpose(out, (0, 3, 1, 2)).astype(x_nchw.dtype)


# ----------------------------------------------------------------------------
# Parameter init + pure-JAX reference (mirrors PyTorch eval-mode forward)
# ----------------------------------------------------------------------------
def init_params(key, in_channel, out_channel):
    params = []
    for (ci, co, k, _) in LAYER_CFG(in_channel, out_channel):
        key, k1, k2, k3, k4, k5, k6 = jax.random.split(key, 7)
        fan_in = ci * k * k
        params.append(dict(
            w=jax.random.normal(k1, (co, ci, k, k), jnp.float32) / jnp.sqrt(fan_in),
            b=0.1 * jax.random.normal(k2, (co,), jnp.float32),
            gamma=1.0 + 0.1 * jax.random.normal(k3, (co,), jnp.float32),
            beta=0.1 * jax.random.normal(k4, (co,), jnp.float32),
            mean=0.1 * jax.random.normal(k5, (co,), jnp.float32),
            var=1.0 + 0.1 * jnp.abs(jax.random.normal(k6, (co,), jnp.float32)),
        ))
    return params


def reference_forward(x_nchw, params, in_channel, out_channel):
    x = x_nchw
    for p, (_, _, k, pad) in zip(params, LAYER_CFG(in_channel, out_channel)):
        y = lax.conv_general_dilated(
            x, p["w"], window_strides=(1, 1), padding=[(pad, pad), (pad, pad)],
            dimension_numbers=("NCHW", "OIHW", "NCHW"))
        y = y + p["b"][None, :, None, None]
        y = (y - p["mean"][None, :, None, None]) / jnp.sqrt(
            p["var"][None, :, None, None] + _BN_EPS)
        y = y * p["gamma"][None, :, None, None] + p["beta"][None, :, None, None]
        x = jnp.where(y > 0, y, 0.1 * y)
    return x


if __name__ == "__main__":
    in_channel, out_channel = 4, 8
    N, H, W = 2, 16, 16

    key = jax.random.PRNGKey(0)
    kx, kp = jax.random.split(key)
    x = jax.random.normal(kx, (N, in_channel, H, W), jnp.float32)
    params = init_params(kp, in_channel, out_channel)

    ref = reference_forward(x, params, in_channel, out_channel)

    # float32 path: strict validation against the PyTorch-style reference.
    out = convolutional_set_layer(x, params, in_channel, out_channel, jnp.float32)
    out = jax.block_until_ready(out)
    assert out.shape == (N, out_channel, H, W), out.shape
    err32 = float(jnp.max(jnp.abs(out - ref)))
    assert err32 < 1e-3, err32

    # bfloat16 MXU path (v6e/v7x production setting): sanity check only, since
    # bf16 activations + bf16 output over 5 layers drift from the f32 reference.
    out_bf16 = convolutional_set_layer(x, params, in_channel, out_channel,
                                       jnp.bfloat16)
    out_bf16 = jax.block_until_ready(out_bf16)
    assert out_bf16.shape == (N, out_channel, H, W), out_bf16.shape
    err16 = float(jnp.max(jnp.abs(out_bf16 - ref)))
    assert err16 < 0.5, err16

    print("KERNEL_OK")
</pallas_src>

<mosaic_0001>
module attributes {stable_mosaic.version = 11 : i64} {
  func.func @conv_set_kernel(%arg0: i32, %arg1: memref<1x328x128xf32, #tpu.memory_space<vmem>>, %arg2: memref<328x1xf32, #tpu.memory_space<vmem>>, %arg3: memref<128x128xf32, #tpu.memory_space<vmem>>, %arg4: memref<1x128xf32, #tpu.memory_space<vmem>>, %arg5: memref<1152x128xf32, #tpu.memory_space<vmem>>, %arg6: memref<1x128xf32, #tpu.memory_space<vmem>>, %arg7: memref<128x128xf32, #tpu.memory_space<vmem>>, %arg8: memref<1x128xf32, #tpu.memory_space<vmem>>, %arg9: memref<1152x128xf32, #tpu.memory_space<vmem>>, %arg10: memref<1x128xf32, #tpu.memory_space<vmem>>, %arg11: memref<128x128xf32, #tpu.memory_space<vmem>>, %arg12: memref<1x128xf32, #tpu.memory_space<vmem>>, %arg13: memref<1x328x128xf32, #tpu.memory_space<vmem>>, %arg14: memref<368x128xf32, #tpu.memory_space<vmem>>, %arg15: memref<328x128xf32, #tpu.memory_space<vmem>>) attributes {dimension_semantics = [#tpu.dimension_semantics<parallel>], iteration_bounds = array<i64: 2>, scalar_prefetch = 0 : i64, scratch_operands = 2 : i64, tpu.core_type = #tpu.core_type<tc>, window_params = [{transform_indices = @transform_0, window_bounds = array<i64: 1, 328, 128>}, {pipeline_mode = #tpu.pipeline_mode<synchronous>, transform_indices = @transform_1, window_bounds = array<i64: 328, 1>}, {pipeline_mode = #tpu.pipeline_mode<synchronous>, transform_indices = @transform_2, window_bounds = array<i64: 128, 128>}, {pipeline_mode = #tpu.pipeline_mode<synchronous>, transform_indices = @transform_3, window_bounds = array<i64: 1, 128>}, {pipeline_mode = #tpu.pipeline_mode<synchronous>, transform_indices = @transform_4, window_bounds = array<i64: 1152, 128>}, {pipeline_mode = #tpu.pipeline_mode<synchronous>, transform_indices = @transform_5, window_bounds = array<i64: 1, 128>}, {pipeline_mode = #tpu.pipeline_mode<synchronous>, transform_indices = @transform_6, window_bounds = array<i64: 128, 128>}, {pipeline_mode = #tpu.pipeline_mode<synchronous>, transform_indices = @transform_7, window_bounds = array<i64: 1, 128>}, {pipeline_mode = #tpu.pipeline_mode<synchronous>, transform_indices = @transform_8, window_bounds = array<i64: 1152, 128>}, {pipeline_mode = #tpu.pipeline_mode<synchronous>, transform_indices = @transform_9, window_bounds = array<i64: 1, 128>}, {pipeline_mode = #tpu.pipeline_mode<synchronous>, transform_indices = @transform_10, window_bounds = array<i64: 128, 128>}, {pipeline_mode = #tpu.pipeline_mode<synchronous>, transform_indices = @transform_11, window_bounds = array<i64: 1, 128>}, {transform_indices = @transform_12, window_bounds = array<i64: 1, 328, 128>}]} {
    %c0 = arith.constant 0 : index
    %c0_0 = arith.constant 0 : index
    %0 = vector.load %arg2[%c0, %c0_0] : memref<328x1xf32, #tpu.memory_space<vmem>>, vector<328x1xf32>
    %cst = arith.constant 0.000000e+00 : f32
    %1 = vector.broadcast %cst : f32 to vector<19x128xf32>
    %c0_1 = arith.constant 0 : index
    %c0_2 = arith.constant 0 : index
    %2 = vector.load %arg14[%c0_1, %c0_2] : memref<368x128xf32, #tpu.memory_space<vmem>>, vector<19x128xf32>
    tpu.vector_store %arg14[%c0_1, %c0_2], %1 {strides = array<i32>} : memref<368x128xf32, #tpu.memory_space<vmem>>, vector<19x128xf32>,
    %c347 = arith.constant 347 : index
    %c0_3 = arith.constant 0 : index
    %3 = vector.load %arg14[%c347, %c0_3] : memref<368x128xf32, #tpu.memory_space<vmem>>, vector<19x128xf32>
    tpu.vector_store %arg14[%c347, %c0_3], %1 {strides = array<i32>} : memref<368x128xf32, #tpu.memory_space<vmem>>, vector<19x128xf32>,
    %c0_4 = arith.constant 0 : index
    %c0_5 = arith.constant 0 : index
    %c0_6 = arith.constant 0 : index
    %4 = vector.load %arg1[%c0_4, %c0_5, %c0_6] : memref<1x328x128xf32, #tpu.memory_space<vmem>>, vector<1x328x128xf32>
    %5 = vector.shape_cast %4 : vector<1x328x128xf32> to vector<328x128xf32>
    %c0_7 = arith.constant 0 : index
    %c0_8 = arith.constant 0 : index
    %6 = vector.load %arg3[%c0_7, %c0_8] : memref<128x128xf32, #tpu.memory_space<vmem>>, vector<128x128xf32>
    %cst_9 = arith.constant dense<0.000000e+00> : vector<328x128xf32>
    %7 = tpu.matmul %5, %6, %cst_9 {dimension_numbers = #tpu.dot_dimension_numbers<[1], [0], [0], [1], [0, 0, 1, 1], [], []>} : vector<328x128xf32>, vector<128x128xf32>, vector<328x128xf32> -> vector<328x128xf32>
    %c0_10 = arith.constant 0 : index
    %c0_11 = arith.constant 0 : index
    %8 = vector.load %arg4[%c0_10, %c0_11] : memref<1x128xf32, #tpu.memory_space<vmem>>, vector<1x128xf32>
    %9 = vector.broadcast %8 : vector<1x128xf32> to vector<328x128xf32>
    %10 = arith.addf %7, %9 : vector<328x128xf32>
    %cst_12 = arith.constant 1.000000e-01 : f32
    %11 = vector.broadcast %cst_12 : f32 to vector<328x128xf32>
    %12 = arith.mulf %11, %10 : vector<328x128xf32>
    %13 = arith.maximumf %10, %12 : vector<328x128xf32>
    %14 = vector.broadcast %0 : vector<328x1xf32> to vector<328x128xf32>
    %15 = arith.mulf %13, %14 : vector<328x128xf32>
    %c19 = arith.constant 19 : index
    %c0_13 = arith.constant 0 : index
    %16 = vector.load %arg14[%c19, %c0_13] : memref<368x128xf32, #tpu.memory_space<vmem>>, vector<328x128xf32>
    tpu.vector_store %arg14[%c19, %c0_13], %15 {strides = array<i32>} : memref<368x128xf32, #tpu.memory_space<vmem>>, vector<328x128xf32>,
    %c0_14 = arith.constant 0 : index
    %c0_15 = arith.constant 0 : index
    %17 = vector.load %arg14[%c0_14, %c0_15] : memref<368x128xf32, #tpu.memory_space<vmem>>, vector<328x128xf32>
    %c0_16 = arith.constant 0 : index
    %c0_17 = arith.constant 0 : index
    %18 = vector.load %arg5[%c0_16, %c0_17] : memref<1152x128xf32, #tpu.memory_space<vmem>>, vector<128x128xf32>
    %cst_18 = arith.constant dense<0.000000e+00> : vector<328x128xf32>
    %19 = tpu.matmul %17, %18, %cst_18 {dimension_numbers = #tpu.dot_dimension_numbers<[1], [0], [0], [1], [0, 0, 1, 1], [], []>} : vector<328x128xf32>, vector<128x128xf32>, vector<328x128xf32> -> vector<328x128xf32>
    %c1 = arith.constant 1 : index
    %c0_19 = arith.constant 0 : index
    %20 = vector.load %arg14[%c1, %c0_19] : memref<368x128xf32, #tpu.memory_space<vmem>>, vector<328x128xf32>
    %c128 = arith.constant 128 : index
    %c0_20 = arith.constant 0 : index
    %21 = vector.load %arg5[%c128, %c0_20] : memref<1152x128xf32, #tpu.memory_space<vmem>>, vector<128x128xf32>
    %cst_21 = arith.constant dense<0.000000e+00> : vector<328x128xf32>
    %22 = tpu.matmul %20, %21, %cst_21 {dimension_numbers = #tpu.dot_dimension_numbers<[1], [0], [0], [1], [0, 0, 1, 1], [], []>} : vector<328x128xf32>, vector<128x128xf32>, vector<328x128xf32> -> vector<328x128xf32>
    %23 = arith.addf %19, %22 : vector<328x128xf32>
    %c2 = arith.constant 2 : index
    %c0_22 = arith.constant 0 : index
    %24 = vector.load %arg14[%c2, %c0_22] : memref<368x128xf32, #tpu.memory_space<vmem>>, vector<328x128xf32>
    %c256 = arith.constant 256 : index
    %c0_23 = arith.constant 0 : index
    %25 = vector.load %arg5[%c256, %c0_23] : memref<1152x128xf32, #tpu.memory_space<vmem>>, vector<128x128xf32>
    %cst_24 = arith.constant dense<0.000000e+00> : vector<328x128xf32>
    %26 = tpu.matmul %24, %25, %cst_24 {dimension_numbers = #tpu.dot_dimension_numbers<[1], [0], [0], [1], [0, 0, 1, 1], [], []>} : vector<328x128xf32>, vector<128x128xf32>, vector<328x128xf32> -> vector<328x128xf32>
    %27 = arith.addf %23, %26 : vector<328x128xf32>
    %c18 = arith.constant 18 : index
    %c0_25 = arith.constant 0 : index
    %28 = vector.load %arg14[%c18, %c0_25] : memref<368x128xf32, #tpu.memory_space<vmem>>, vector<328x128xf32>
    %c384 = arith.constant 384 : index
    %c0_26 = arith.constant 0 : index
    %29 = vector.load %arg5[%c384, %c0_26] : memref<1152x128xf32, #tpu.memory_space<vmem>>, vector<128x128xf32>
    %cst_27 = arith.constant dense<0.000000e+00> : vector<328x128xf32>
    %30 = tpu.matmul %28, %29, %cst_27 {dimension_numbers = #tpu.dot_dimension_numbers<[1], [0], [0], [1], [0, 0, 1, 1], [], []>} : vector<328x128xf32>, vector<128x128xf32>, vector<328x128xf32> -> vector<328x128xf32>
    %31 = arith.addf %27, %30 : vector<328x128xf32>
    %c19_28 = arith.constant 19 : index
    %c0_29 = arith.constant 0 : index
    %32 = vector.load %arg14[%c19_28, %c0_29] : memref<368x128xf32, #tpu.memory_space<vmem>>, vector<328x128xf32>
    %c512 = arith.constant 512 : index
    %c0_30 = arith.constant 0 : index
    %33 = vector.load %arg5[%c512, %c0_30] : memref<1152x128xf32, #tpu.memory_space<vmem>>, vector<128x128xf32>
    %cst_31 = arith.constant dense<0.000000e+00> : vector<328x128xf32>
    %34 = tpu.matmul %32, %33, %cst_31 {dimension_numbers = #tpu.dot_dimension_numbers<[1], [0], [0], [1], [0, 0, 1, 1], [], []>} : vector<328x128xf32>, vector<128x128xf32>, vector<328x128xf32> -> vector<328x128xf32>
    %35 = arith.addf %31, %34 : vector<328x128xf32>
    %c20 = arith.constant 20 : index
    %c0_32 = arith.constant 0 : index
    %36 = vector.load %arg14[%c20, %c0_32] : memref<368x128xf32, #tpu.memory_space<vmem>>, vector<328x128xf32>
    %c640 = arith.constant 640 : index
    %c0_33 = arith.constant 0 : index
    %37 = vector.load %arg5[%c640, %c0_33] : memref<1152x128xf32, #tpu.memory_space<vmem>>, vector<128x128xf32>
    %cst_34 = arith.constant dense<0.000000e+00> : vector<328x128xf32>
    %38 = tpu.matmul %36, %37, %cst_34 {dimension_numbers = #tpu.dot_dimension_numbers<[1], [0], [0], [1], [0, 0, 1, 1], [], []>} : vector<328x128xf32>, vector<128x128xf32>, vector<328x128xf32> -> vector<328x128xf32>
    %39 = arith.addf %35, %38 : vector<328x128xf32>
    %c36 = arith.constant 36 : index
    %c0_35 = arith.constant 0 : index
    %40 = vector.load %arg14[%c36, %c0_35] : memref<368x128xf32, #tpu.memory_space<vmem>>, vector<328x128xf32>
    %c768 = arith.constant 768 : index
    %c0_36 = arith.constant 0 : index
    %41 = vector.load %arg5[%c768, %c0_36] : memref<1152x128xf32, #tpu.memory_space<vmem>>, vector<128x128xf32>
    %cst_37 = arith.constant dense<0.000000e+00> : vector<328x128xf32>
    %42 = tpu.matmul %40, %41, %cst_37 {dimension_numbers = #tpu.dot_dimension_numbers<[1], [0], [0], [1], [0, 0, 1, 1], [], []>} : vector<328x128xf32>, vector<128x128xf32>, vector<328x128xf32> -> vector<328x128xf32>
    %43 = arith.addf %39, %42 : vector<328x128xf32>
    %c37 = arith.constant 37 : index
    %c0_38 = arith.constant 0 : index
    %44 = vector.load %arg14[%c37, %c0_38] : memref<368x128xf32, #tpu.memory_space<vmem>>, vector<328x128xf32>
    %c896 = arith.constant 896 : index
    %c0_39 = arith.constant 0 : index
    %45 = vector.load %arg5[%c896, %c0_39] : memref<1152x128xf32, #tpu.memory_space<vmem>>, vector<128x128xf32>
    %cst_40 = arith.constant dense<0.000000e+00> : vector<328x128xf32>
    %46 = tpu.matmul %44, %45, %cst_40 {dimension_numbers = #tpu.dot_dimension_numbers<[1], [0], [0], [1], [0, 0, 1, 1], [], []>} : vector<328x128xf32>, vector<128x128xf32>, vector<328x128xf32> -> vector<328x128xf32>
    %47 = arith.addf %43, %46 : vector<328x128xf32>
    %c38 = arith.constant 38 : index
    %c0_41 = arith.constant 0 : index
    %48 = vector.load %arg14[%c38, %c0_41] : memref<368x128xf32, #tpu.memory_space<vmem>>, vector<328x128xf32>
    %c1024 = arith.constant 1024 : index
    %c0_42 = arith.constant 0 : index
    %49 = vector.load %arg5[%c1024, %c0_42] : memref<1152x128xf32, #tpu.memory_space<vmem>>, vector<128x128xf32>
    %cst_43 = arith.constant dense<0.000000e+00> : vector<328x128xf32>
    %50 = tpu.matmul %48, %49, %cst_43 {dimension_numbers = #tpu.dot_dimension_numbers<[1], [0], [0], [1], [0, 0, 1, 1], [], []>} : vector<328x128xf32>, vector<128x128xf32>, vector<328x128xf32> -> vector<328x128xf32>
    %51 = arith.addf %47, %50 : vector<328x128xf32>
    %c0_44 = arith.constant 0 : index
    %c0_45 = arith.constant 0 : index
    %52 = vector.load %arg6[%c0_44, %c0_45] : memref<1x128xf32, #tpu.memory_space<vmem>>, vector<1x128xf32>
    %53 = vector.broadcast %52 : vector<1x128xf32> to vector<328x128xf32>
    %54 = arith.addf %51, %53 : vector<328x128xf32>
    %cst_46 = arith.constant 1.000000e-01 : f32
    %55 = vector.broadcast %cst_46 : f32 to vector<328x128xf32>
    %56 = arith.mulf %55, %54 : vector<328x128xf32>
    %57 = arith.maximumf %54, %56 : vector<328x128xf32>
    %c0_47 = arith.constant 0 : index
    %c0_48 = arith.constant 0 : index
    %58 = vector.load %arg15[%c0_47, %c0_48] : memref<328x128xf32, #tpu.memory_space<vmem>>, vector<328x128xf32>
    tpu.vector_store %arg15[%c0_47, %c0_48], %57 {strides = array<i32>} : memref<328x128xf32, #tpu.memory_space<vmem>>, vector<328x128xf32>,
    %c0_49 = arith.constant 0 : index
    %c0_50 = arith.constant 0 : index
    %59 = vector.load %arg15[%c0_49, %c0_50] : memref<328x128xf32, #tpu.memory_space<vmem>>, vector<328x128xf32>
    %c0_51 = arith.constant 0 : index
    %c0_52 = arith.constant 0 : index
    %60 = vector.load %arg7[%c0_51, %c0_52] : memref<128x128xf32, #tpu.memory_space<vmem>>, vector<128x128xf32>
    %cst_53 = arith.constant dense<0.000000e+00> : vector<328x128xf32>
    %61 = tpu.matmul %59, %60, %cst_53 {dimension_numbers = #tpu.dot_dimension_numbers<[1], [0], [0], [1], [0, 0, 1, 1], [], []>} : vector<328x128xf32>, vector<128x128xf32>, vector<328x128xf32> -> vector<328x128xf32>
    %c0_54 = arith.constant 0 : index
    %c0_55 = arith.constant 0 : index
    %62 = vector.load %arg8[%c0_54, %c0_55] : memref<1x128xf32, #tpu.memory_space<vmem>>, vector<1x128xf32>
    %63 = vector.broadcast %62 : vector<1x128xf32> to vector<328x128xf32>
    %64 = arith.addf %61, %63 : vector<328x128xf32>
    %cst_56 = arith.constant 1.000000e-01 : f32
    %65 = vector.broadcast %cst_56 : f32 to vector<328x128xf32>
    %66 = arith.mulf %65, %64 : vector<328x128xf32>
    %67 = arith.maximumf %64, %66 : vector<328x128xf32>
    %68 = vector.broadcast %0 : vector<328x1xf32> to vector<328x128xf32>
    %69 = arith.mulf %67, %68 : vector<328x128xf32>
    %c19_57 = arith.constant 19 : index
    %c0_58 = arith.constant 0 : index
    %70 = vector.load %arg14[%c19_57, %c0_58] : memref<368x128xf32, #tpu.memory_space<vmem>>, vector<328x128xf32>
    tpu.vector_store %arg14[%c19_57, %c0_58], %69 {strides = array<i32>} : memref<368x128xf32, #tpu.memory_space<vmem>>, vector<328x128xf32>,
    %c0_59 = arith.constant 0 : index
    %c0_60 = arith.constant 0 : index
    %71 = vector.load %arg14[%c0_59, %c0_60] : memref<368x128xf32, #tpu.memory_space<vmem>>, vector<328x128xf32>
    %c0_61 = arith.constant 0 : index
    %c0_62 = arith.constant 0 : index
    %72 = vector.load %arg9[%c0_61, %c0_62] : memref<1152x128xf32, #tpu.memory_space<vmem>>, vector<128x128xf32>
    %cst_63 = arith.constant dense<0.000000e+00> : vector<328x128xf32>
    %73 = tpu.matmul %71, %72, %cst_63 {dimension_numbers = #tpu.dot_dimension_numbers<[1], [0], [0], [1], [0, 0, 1, 1], [], []>} : vector<328x128xf32>, vector<128x128xf32>, vector<328x128xf32> -> vector<328x128xf32>
    %c1_64 = arith.constant 1 : index
    %c0_65 = arith.constant 0 : index
    %74 = vector.load %arg14[%c1_64, %c0_65] : memref<368x128xf32, #tpu.memory_space<vmem>>, vector<328x128xf32>
    %c128_66 = arith.constant 128 : index
    %c0_67 = arith.constant 0 : index
    %75 = vector.load %arg9[%c128_66, %c0_67] : memref<1152x128xf32, #tpu.memory_space<vmem>>, vector<128x128xf32>
    %cst_68 = arith.constant dense<0.000000e+00> : vector<328x128xf32>
    %76 = tpu.matmul %74, %75, %cst_68 {dimension_numbers = #tpu.dot_dimension_numbers<[1], [0], [0], [1], [0, 0, 1, 1], [], []>} : vector<328x128xf32>, vector<128x128xf32>, vector<328x128xf32> -> vector<328x128xf32>
    %77 = arith.addf %73, %76 : vector<328x128xf32>
    %c2_69 = arith.constant 2 : index
    %c0_70 = arith.constant 0 : index
    %78 = vector.load %arg14[%c2_69, %c0_70] : memref<368x128xf32, #tpu.memory_space<vmem>>, vector<328x128xf32>
    %c256_71 = arith.constant 256 : index
    %c0_72 = arith.constant 0 : index
    %79 = vector.load %arg9[%c256_71, %c0_72] : memref<1152x128xf32, #tpu.memory_space<vmem>>, vector<128x128xf32>
    %cst_73 = arith.constant dense<0.000000e+00> : vector<328x128xf32>
    %80 = tpu.matmul %78, %79, %cst_73 {dimension_numbers = #tpu.dot_dimension_numbers<[1], [0], [0], [1], [0, 0, 1, 1], [], []>} : vector<328x128xf32>, vector<128x128xf32>, vector<328x128xf32> -> vector<328x128xf32>
    %81 = arith.addf %77, %80 : vector<328x128xf32>
    %c18_74 = arith.constant 18 : index
    %c0_75 = arith.constant 0 : index
    %82 = vector.load %arg14[%c18_74, %c0_75] : memref<368x128xf32, #tpu.memory_space<vmem>>, vector<328x128xf32>
    %c384_76 = arith.constant 384 : index
    %c0_77 = arith.constant 0 : index
    %83 = vector.load %arg9[%c384_76, %c0_77] : memref<1152x128xf32, #tpu.memory_space<vmem>>, vector<128x128xf32>
    %cst_78 = arith.constant dense<0.000000e+00> : vector<328x128xf32>
    %84 = tpu.matmul %82, %83, %cst_78 {dimension_numbers = #tpu.dot_dimension_numbers<[1], [0], [0], [1], [0, 0, 1, 1], [], []>} : vector<328x128xf32>, vector<128x128xf32>, vector<328x128xf32> -> vector<328x128xf32>
    %85 = arith.addf %81, %84 : vector<328x128xf32>
    %c19_79 = arith.constant 19 : index
    %c0_80 = arith.constant 0 : index
    %86 = vector.load %arg14[%c19_79, %c0_80] : memref<368x128xf32, #tpu.memory_space<vmem>>, vector<328x128xf32>
    %c512_81 = arith.constant 512 : index
    %c0_82 = arith.constant 0 : index
    %87 = vector.load %arg9[%c512_81, %c0_82] : memref<1152x128xf32, #tpu.memory_space<vmem>>, vector<128x128xf32>
    %cst_83 = arith.constant dense<0.000000e+00> : vector<328x128xf32>
    %88 = tpu.matmul %86, %87, %cst_83 {dimension_numbers = #tpu.dot_dimension_numbers<[1], [0], [0], [1], [0, 0, 1, 1], [], []>} : vector<328x128xf32>, vector<128x128xf32>, vector<328x128xf32> -> vector<328x128xf32>
    %89 = arith.addf %85, %88 : vector<328x128xf32>
    %c20_84 = arith.constant 20 : index
    %c0_85 = arith.constant 0 : index
    %90 = vector.load %arg14[%c20_84, %c0_85] : memref<368x128xf32, #tpu.memory_space<vmem>>, vector<328x128xf32>
    %c640_86 = arith.constant 640 : index
    %c0_87 = arith.constant 0 : index
    %91 = vector.load %arg9[%c640_86, %c0_87] : memref<1152x128xf32, #tpu.memory_space<vmem>>, vector<128x128xf32>
    %cst_88 = arith.constant dense<0.000000e+00> : vector<328x128xf32>
    %92 = tpu.matmul %90, %91, %cst_88 {dimension_numbers = #tpu.dot_dimension_numbers<[1], [0], [0], [1], [0, 0, 1, 1], [], []>} : vector<328x128xf32>, vector<128x128xf32>, vector<328x128xf32> -> vector<328x128xf32>
    %93 = arith.addf %89, %92 : vector<328x128xf32>
    %c36_89 = arith.constant 36 : index
    %c0_90 = arith.constant 0 : index
    %94 = vector.load %arg14[%c36_89, %c0_90] : memref<368x128xf32, #tpu.memory_space<vmem>>, vector<328x128xf32>
    %c768_91 = arith.constant 768 : index
    %c0_92 = arith.constant 0 : index
    %95 = vector.load %arg9[%c768_91, %c0_92] : memref<1152x128xf32, #tpu.memory_space<vmem>>, vector<128x128xf32>
    %cst_93 = arith.constant dense<0.000000e+00> : vector<328x128xf32>
    %96 = tpu.matmul %94, %95, %cst_93 {dimension_numbers = #tpu.dot_dimension_numbers<[1], [0], [0], [1], [0, 0, 1, 1], [], []>} : vector<328x128xf32>, vector<128x128xf32>, vector<328x128xf32> -> vector<328x128xf32>
    %97 = arith.addf %93, %96 : vector<328x128xf32>
    %c37_94 = arith.constant 37 : index
    %c0_95 = arith.constant 0 : index
    %98 = vector.load %arg14[%c37_94, %c0_95] : memref<368x128xf32, #tpu.memory_space<vmem>>, vector<328x128xf32>
    %c896_96 = arith.constant 896 : index
    %c0_97 = arith.constant 0 : index
    %99 = vector.load %arg9[%c896_96, %c0_97] : memref<1152x128xf32, #tpu.memory_space<vmem>>, vector<128x128xf32>
    %cst_98 = arith.constant dense<0.000000e+00> : vector<328x128xf32>
    %100 = tpu.matmul %98, %99, %cst_98 {dimension_numbers = #tpu.dot_dimension_numbers<[1], [0], [0], [1], [0, 0, 1, 1], [], []>} : vector<328x128xf32>, vector<128x128xf32>, vector<328x128xf32> -> vector<328x128xf32>
    %101 = arith.addf %97, %100 : vector<328x128xf32>
    %c38_99 = arith.constant 38 : index
    %c0_100 = arith.constant 0 : index
    %102 = vector.load %arg14[%c38_99, %c0_100] : memref<368x128xf32, #tpu.memory_space<vmem>>, vector<328x128xf32>
    %c1024_101 = arith.constant 1024 : index
    %c0_102 = arith.constant 0 : index
    %103 = vector.load %arg9[%c1024_101, %c0_102] : memref<1152x128xf32, #tpu.memory_space<vmem>>, vector<128x128xf32>
    %cst_103 = arith.constant dense<0.000000e+00> : vector<328x128xf32>
    %104 = tpu.matmul %102, %103, %cst_103 {dimension_numbers = #tpu.dot_dimension_numbers<[1], [0], [0], [1], [0, 0, 1, 1], [], []>} : vector<328x128xf32>, vector<128x128xf32>, vector<328x128xf32> -> vector<328x128xf32>
    %105 = arith.addf %101, %104 : vector<328x128xf32>
    %c0_104 = arith.constant 0 : index
    %c0_105 = arith.constant 0 : index
    %106 = vector.load %arg10[%c0_104, %c0_105] : memref<1x128xf32, #tpu.memory_space<vmem>>, vector<1x128xf32>
    %107 = vector.broadcast %106 : vector<1x128xf32> to vector<328x128xf32>
    %108 = arith.addf %105, %107 : vector<328x128xf32>
    %cst_106 = arith.constant 1.000000e-01 : f32
    %109 = vector.broadcast %cst_106 : f32 to vector<328x128xf32>
    %110 = arith.mulf %109, %108 : vector<328x128xf32>
    %111 = arith.maximumf %108, %110 : vector<328x128xf32>
    %c0_107 = arith.constant 0 : index
    %c0_108 = arith.constant 0 : index
    %112 = vector.load %arg15[%c0_107, %c0_108] : memref<328x128xf32, #tpu.memory_space<vmem>>, vector<328x128xf32>
    tpu.vector_store %arg15[%c0_107, %c0_108], %111 {strides = array<i32>} : memref<328x128xf32, #tpu.memory_space<vmem>>, vector<328x128xf32>,
    %c0_109 = arith.constant 0 : index
    %c0_110 = arith.constant 0 : index
    %113 = vector.load %arg15[%c0_109, %c0_110] : memref<328x128xf32, #tpu.memory_space<vmem>>, vector<328x128xf32>
    %c0_111 = arith.constant 0 : index
    %c0_112 = arith.constant 0 : index
    %114 = vector.load %arg11[%c0_111, %c0_112] : memref<128x128xf32, #tpu.memory_space<vmem>>, vector<128x128xf32>
    %cst_113 = arith.constant dense<0.000000e+00> : vector<328x128xf32>
    %115 = tpu.matmul %113, %114, %cst_113 {dimension_numbers = #tpu.dot_dimension_numbers<[1], [0], [0], [1], [0, 0, 1, 1], [], []>} : vector<328x128xf32>, vector<128x128xf32>, vector<328x128xf32> -> vector<328x128xf32>
    %c0_114 = arith.constant 0 : index
    %c0_115 = arith.constant 0 : index
    %116 = vector.load %arg12[%c0_114, %c0_115] : memref<1x128xf32, #tpu.memory_space<vmem>>, vector<1x128xf32>
    %117 = vector.broadcast %116 : vector<1x128xf32> to vector<328x128xf32>
    %118 = arith.addf %115, %117 : vector<328x128xf32>
    %cst_116 = arith.constant 1.000000e-01 : f32
    %119 = vector.broadcast %cst_116 : f32 to vector<328x128xf32>
    %120 = arith.mulf %119, %118 : vector<328x128xf32>
    %121 = arith.maximumf %118, %120 : vector<328x128xf32>
    %c0_117 = arith.constant 0 : index
    %c0_118 = arith.constant 0 : index
    %c0_119 = arith.constant 0 : index
    %122 = vector.load %arg13[%c0_117, %c0_118, %c0_119] : memref<1x328x128xf32, #tpu.memory_space<vmem>>, vector<1x328x128xf32>
    %123 = vector.shape_cast %122 : vector<1x328x128xf32> to vector<328x128xf32>
    %124 = vector.shape_cast %121 : vector<328x128xf32> to vector<1x328x128xf32>
    tpu.vector_store %arg13[%c0_117, %c0_118, %c0_119], %124 {strides = array<i32>} : memref<1x328x128xf32, #tpu.memory_space<vmem>>, vector<1x328x128xf32>,
    return
  }
  func.func @transform_0(%arg0: i32) -> (i32, i32, i32) {
    %c0_i32 = arith.constant 0 : i32
    %c0_i32_0 = arith.constant 0 : i32
    %c0_i32_1 = arith.constant 0 : i32
    return %arg0, %c0_i32, %c0_i32_0 : i32, i32, i32
  }
  func.func @transform_1(%arg0: i32) -> (i32, i32) {
    %c0_i32 = arith.constant 0 : i32
    %c0_i32_0 = arith.constant 0 : i32
    %c0_i32_1 = arith.constant 0 : i32
    return %c0_i32, %c0_i32_0 : i32, i32
  }
  func.func @transform_2(%arg0: i32) -> (i32, i32) {
    %c0_i32 = arith.constant 0 : i32
    %c0_i32_0 = arith.constant 0 : i32
    %c0_i32_1 = arith.constant 0 : i32
    return %c0_i32, %c0_i32_0 : i32, i32
  }
  func.func @transform_3(%arg0: i32) -> (i32, i32) {
    %c0_i32 = arith.constant 0 : i32
    %c0_i32_0 = arith.constant 0 : i32
    %c0_i32_1 = arith.constant 0 : i32
    return %c0_i32, %c0_i32_0 : i32, i32
  }
  func.func @transform_4(%arg0: i32) -> (i32, i32) {
    %c0_i32 = arith.constant 0 : i32
    %c0_i32_0 = arith.constant 0 : i32
    %c0_i32_1 = arith.constant 0 : i32
    return %c0_i32, %c0_i32_0 : i32, i32
  }
  func.func @transform_5(%arg0: i32) -> (i32, i32) {
    %c0_i32 = arith.constant 0 : i32
    %c0_i32_0 = arith.constant 0 : i32
    %c0_i32_1 = arith.constant 0 : i32
    return %c0_i32, %c0_i32_0 : i32, i32
  }
  func.func @transform_6(%arg0: i32) -> (i32, i32) {
    %c0_i32 = arith.constant 0 : i32
    %c0_i32_0 = arith.constant 0 : i32
    %c0_i32_1 = arith.constant 0 : i32
    return %c0_i32, %c0_i32_0 : i32, i32
  }
  func.func @transform_7(%arg0: i32) -> (i32, i32) {
    %c0_i32 = arith.constant 0 : i32
    %c0_i32_0 = arith.constant 0 : i32
    %c0_i32_1 = arith.constant 0 : i32
    return %c0_i32, %c0_i32_0 : i32, i32
  }
  func.func @transform_8(%arg0: i32) -> (i32, i32) {
    %c0_i32 = arith.constant 0 : i32
    %c0_i32_0 = arith.constant 0 : i32
    %c0_i32_1 = arith.constant 0 : i32
    return %c0_i32, %c0_i32_0 : i32, i32
  }
  func.func @transform_9(%arg0: i32) -> (i32, i32) {
    %c0_i32 = arith.constant 0 : i32
    %c0_i32_0 = arith.constant 0 : i32
    %c0_i32_1 = arith.constant 0 : i32
    return %c0_i32, %c0_i32_0 : i32, i32
  }
  func.func @transform_10(%arg0: i32) -> (i32, i32) {
    %c0_i32 = arith.constant 0 : i32
    %c0_i32_0 = arith.constant 0 : i32
    %c0_i32_1 = arith.constant 0 : i32
    return %c0_i32, %c0_i32_0 : i32, i32
  }
  func.func @transform_11(%arg0: i32) -> (i32, i32) {
    %c0_i32 = arith.constant 0 : i32
    %c0_i32_0 = arith.constant 0 : i32
    %c0_i32_1 = arith.constant 0 : i32
    return %c0_i32, %c0_i32_0 : i32, i32
  }
  func.func @transform_12(%arg0: i32) -> (i32, i32, i32) {
    %c0_i32 = arith.constant 0 : i32
    %c0_i32_0 = arith.constant 0 : i32
    %c0_i32_1 = arith.constant 0 : i32
    return %arg0, %c0_i32, %c0_i32_0 : i32, i32, i32
  }
}

</mosaic_0001>

<bundles_post_ra>
// kernel: convolutional_set_layer.1
= control target key start
LH: loop header
LB: loop body
LE: loop exit
PB: predicated region body
PF: predicated region fallthrough
CT: control target
= control target key end

     0   :  { %s14073_s21 = smov 0   ;;  %s18657_s0 = inlined_call_operand.vmem [shape: f32[2,328,128], index: 0, kind: input, shape index: {}]   ;;  %s18658_s1 = inlined_call_operand.vmem [shape: f32[328,1], index: 1, kind: input, shape index: {}]   ;;  %s18659_s2 = inlined_call_operand.vmem [shape: f32[128,128], index: 2, kind: input, shape index: {}]   ;;  %s18660_s3 = inlined_call_operand.vmem [shape: f32[1,128], index: 3, kind: input, shape index: {}]   ;;  %s18661_s4 = inlined_call_operand.vmem [shape: f32[1152,128], index: 4, kind: input, shape index: {}]   ;;  %s18662_s5 = inlined_call_operand.vmem [shape: f32[1,128], index: 5, kind: input, shape index: {}]   ;;  %s18663_s6 = inlined_call_operand.vmem [shape: f32[128,128], index: 6, kind: input, shape index: {}]   ;;  %s18664_s7 = inlined_call_operand.vmem [shape: f32[1,128], index: 7, kind: input, shape index: {}]   ;;  %s18665_s8 = inlined_call_operand.vmem [shape: f32[1152,128], index: 8, kind: input, shape index: {}]   ;;  %s18666_s9 = inlined_call_operand.vmem [shape: f32[1,128], index: 9, kind: input, shape index: {}]   ;;  %s18667_s10 = inlined_call_operand.vmem [shape: f32[128,128], index: 10, kind: input, shape index: {}]   ;;  %s18668_s11 = inlined_call_operand.vmem [shape: f32[1,128], index: 11, kind: input, shape index: {}]   ;;  %s18669_s12 = inlined_call_operand.vmem [shape: f32[2,328,128], index: 12, kind: output, shape index: {}]  }
   0x1 LB: > { %s8976_s22 = sadd.s32 4294967295, %s14002_s21   ;;  %p8980_p0 = scmp.ge.s32.totalorder %s14002_s21, 1  ;;  %s14002_s21 = sphi %s14073_s21, %s22_s21  }
   0x2   : > { %p362_p1 = scmp.lt.s32.totalorder %s14002_s21, 3 }
   0x4   : > { %p363_p2 = pnand %p8980_p0, %p362_p1 }
   0x6   : > { %366 = sbr.rel (%p363_p2) target bundleno = 2619 (0xa3b), region = 68 }
   0xd   : > { %v502_v0 = vld [vmem:[%s18659_s2] sm:$0xff]  ;;  %v503_v1 = vld [vmem:[%s18659_s2 + $0x8] sm:$0xff]  ;;  %v504_v2 = vld [vmem:[%s18659_s2 + $0x10] sm:$0xff]  ;;  %v18670_v3 = vmov 0.0|0.0   ;;  %v14005_v6 = vmov 0.0   ;;  %vm14006_vm0 = vmmov 0  }
   0xe   : > { %13442 = vmatprep.subr.bf16.mxu0 %v18670_v3  ;;  %13946 = vmatprep.subr.bf16.mxu1 %v18670_v3  ;;  %v13443_v4 = vpack.c.bf16 %v503_v1, %v502_v0  ;;  %v505_v5 = vld [vmem:[%s18659_s2 + $0x18] sm:$0xff]  ;;  %455 = vst [vmem:[#allocation2] sm:$0xff] %v14005_v6  ;;  %456 = vst [vmem:[#allocation2 + $0x8] sm:$0xff] %v14005_v6  ;;  %v506_v8 = vld [vmem:[%s18659_s2 + $0x20] sm:$0xff]  ;;  %v14007_v10 = vmov 0   ;;  %p404_p3 = scmp.lt.s32.totalorder %s8976_s22, 1 }
   0xf   : > { %457 = vst [vmem:[#allocation2 + $0x10] sm:$0x7] %v14005_v6  ;;  %458 = vst [vmem:[#allocation2 + $0x15b] sm:$0xff] %v14005_v6  ;;  %10219 = vmatprep.mubr.msk.f32.mxu0 %vm14006_vm0, %v14005_v6  ;;  %10282 = vmatprep.mubr.msk.f32.mxu1 %vm14006_vm0, %v14005_v6  ;;  %v13446_v7 = vpack.c.bf16 %v505_v5, %v504_v2  ;;  %v507_v9 = vld [vmem:[%s18659_s2 + $0x28] sm:$0xff]  ;;  %v414_v11 = vld [vmem:[%s18658_s1] sm:$0xff] }
  0x10   : > { %459 = vst [vmem:[#allocation2 + $0x163] sm:$0xff] %v14005_v6  ;;  %460 = vst [vmem:[#allocation2 + $0x16b] sm:$0x7] %v14005_v6  ;;  %13444 = vmatpush3.bf16.msra.mxu0 %v13443_v4  ;;  %13954 = vmatpush3.bf16.msra.mxu1 %v13443_v4  ;;  %v416_v12 = vld [vmem:[%s18658_s1 + $0x10] sm:$0xff]  ;;  %v13449_v13 = vpack.c.bf16 %v507_v9, %v506_v8  ;;  %v415_v14 = vld [vmem:[%s18658_s1 + $0x8] sm:$0xff]  ;;  %s18785_s22 = smov (!%p404_p3, %s8976_s22), 1 }
  0x11   : > { %13445 = vmatprep.subr.bf16.mxu0 %v18670_v3  ;;  %13947 = vmatprep.subr.bf16.mxu1 %v18670_v3  ;;  %v508_v15 = vld [vmem:[%s18659_s2 + $0x30] sm:$0xff]  ;;  %v509_v16 = vld [vmem:[%s18659_s2 + $0x38] sm:$0xff]  ;;  %v418_v19 = vld [vmem:[%s18658_s1 + $0x20] sm:$0xff]  ;;  %s13962_s29 = smul.u32 328, %s18785_s22 }
  0x12   : > { %13975 = vset.pattern.permute.xlu0 %v14007_v10  ;;  %13976 = vset.pattern.permute.xlu1 %v14007_v10  ;;  %v417_v17 = vld [vmem:[%s18658_s1 + $0x18] sm:$0xff]  ;;  %v13452_v18 = vpack.c.bf16 %v509_v16, %v508_v15  ;;  %v510_v20 = vld [vmem:[%s18659_s2 + $0x40] sm:$0xff]  ;;  %v511_v21 = vld [vmem:[%s18659_s2 + $0x48] sm:$0xff] }
  0x13   : > { %879 = vperm.xlu0 %13975, %v414_v11   ;;  %889 = vperm.xlu1 %13976, %v416_v12   ;;  %v419_v22 = vld [vmem:[%s18658_s1 + $0x28] sm:$0xff]  ;;  %v13455_v23 = vpack.c.bf16 %v511_v21, %v510_v20  ;;  %v420_v24 = vld [vmem:[%s18658_s1 + $0x30] sm:$0xff]  ;;  %v513_v26 = vld [vmem:[%s18659_s2 + $0x58] sm:$0xff]  ;;  %s14206_s18 = scalar_lea.vmem %s18657_s0, %s13962_s29  ;;  %s18571_s16 = scalar_lea.vmem %s18669_s12, %s13962_s29 }
  0x14   : > { %13447 = vmatpush3.bf16.msra.mxu0 %v13446_v7  ;;  %13955 = vmatpush3.bf16.msra.mxu1 %v13446_v7  ;;  %v512_v25 = vld [vmem:[%s18659_s2 + $0x50] sm:$0xff]  ;;  %v421_v27 = vld [vmem:[%s18658_s1 + $0x38] sm:$0xff]  ;;  %v422_v29 = vld [vmem:[%s18658_s1 + $0x40] sm:$0xff] }
  0x15   : > { %13448 = vmatprep.subr.bf16.mxu0 %v18670_v3  ;;  %13948 = vmatprep.subr.bf16.mxu1 %v18670_v3  ;;  %v13458_v28 = vpack.c.bf16 %v513_v26, %v512_v25  ;;  %v514_v30 = vld [vmem:[%s18659_s2 + $0x60] sm:$0xff]  ;;  %v515_v31 = vld [vmem:[%s18659_s2 + $0x68] sm:$0xff]  ;;  %v424_v34 = vld [vmem:[%s18658_s1 + $0x50] sm:$0xff] }
  0x16   : > { %v423_v32 = vld [vmem:[%s18658_s1 + $0x48] sm:$0xff]  ;;  %v13461_v33 = vpack.c.bf16 %v515_v31, %v514_v30  ;;  %v516_v35 = vld [vmem:[%s18659_s2 + $0x70] sm:$0xff]  ;;  %v517_v36 = vld [vmem:[%s18659_s2 + $0x78] sm:$0xff] }
  0x17   : > { %884 = vperm.xlu0 %13975, %v415_v14   ;;  %894 = vperm.xlu1 %13976, %v417_v17   ;;  %v425_v37 = vld [vmem:[%s18658_s1 + $0x58] sm:$0xff]  ;;  %v13464_v38 = vpack.c.bf16 %v517_v36, %v516_v35  ;;  %v426_v39 = vld [vmem:[%s18658_s1 + $0x60] sm:$0xff]  ;;  %v427_v40 = vld [vmem:[%s18658_s1 + $0x68] sm:$0xff] }
  0x18   : > { %13450 = vmatpush3.bf16.msra.mxu0 %v13449_v13  ;;  %13956 = vmatpush3.bf16.msra.mxu1 %v13449_v13  ;;  %v461_v41 = vld [vmem:[%s14206_s18] sm:$0xff]  ;;  %v482_v42 = vld [vmem:[%s14206_s18 + $0xa8] sm:$0xff]  ;;  %v428_v43 = vld [vmem:[%s18658_s1 + $0x70] sm:$0xff] }
  0x19   : > { %13451 = vmatprep.subr.bf16.mxu0 %v18670_v3  ;;  %13949 = vmatprep.subr.bf16.mxu1 %v18670_v3  ;;  %v1262_v44 = vld [vmem:[%s18661_s4 + $0x80] sm:$0xff]  ;;  %v1263_v45 = vld [vmem:[%s18661_s4 + $0x88] sm:$0xff]  ;;  %v1264_v46 = vld [vmem:[%s18661_s4 + $0x90] sm:$0xff] }
  0x1a   : > { %v1265_v47 = vld [vmem:[%s18661_s4 + $0x98] sm:$0xff]  ;;  %v13467_v49 = vpack.c.bf16 %v1263_v45, %v1262_v44  ;;  %v462_v50 = vld [vmem:[%s14206_s18 + $0x8] sm:$0xff]  ;;  %v483_v51 = vld [vmem:[%s14206_s18 + $0xb0] sm:$0xff] }
  0x1b   : > { %899 = vperm.xlu0 %13975, %v418_v19   ;;  %904 = vperm.xlu1 %13976, %v419_v22   ;;  %v429_v48 = vld [vmem:[%s18658_s1 + $0x78] sm:$0xff]  ;;  %v13470_v52 = vpack.c.bf16 %v1265_v47, %v1264_v46  ;;  %v430_v53 = vld [vmem:[%s18658_s1 + $0x80] sm:$0xff]  ;;  %v1267_v55 = vld [vmem:[%s18661_s4 + $0xa8] sm:$0xff] }
  0x1c   : > { %13453 = vmatpush3.bf16.msra.mxu0 %v13452_v18  ;;  %13957 = vmatpush3.bf16.msra.mxu1 %v13452_v18  ;;  %v1266_v54 = vld [vmem:[%s18661_s4 + $0xa0] sm:$0xff]  ;;  %v431_v56 = vld [vmem:[%s18658_s1 + $0x88] sm:$0xff]  ;;  %v463_v57 = vld [vmem:[%s14206_s18 + $0x10] sm:$0xff] }
  0x1d   : > { %13454 = vmatprep.subr.bf16.mxu0 %v18670_v3  ;;  %13950 = vmatprep.subr.bf16.mxu1 %v18670_v3  ;;  %v484_v58 = vld [vmem:[%s14206_s18 + $0xb8] sm:$0xff]  ;;  %v13473_v59 = vpack.c.bf16 %v1267_v55, %v1266_v54  ;;  %v432_v60 = vld [vmem:[%s18658_s1 + $0x90] sm:$0xff]  ;;  %v485_v1 = vld [vmem:[%s14206_s18 + $0xc0] sm:$0xff] }
  0x1e   : > { %v1268_v61 = vld [vmem:[%s18661_s4 + $0xb0] sm:$0xff]  ;;  %v1269_v62 = vld [vmem:[%s18661_s4 + $0xb8] sm:$0xff]  ;;  %v434_v4 = vld [vmem:[%s18658_s1 + $0xa0] sm:$0xff] }
  0x1f   : > { %909 = vperm.xlu0 %13975, %v420_v24   ;;  %914 = vperm.xlu1 %13976, %v421_v27   ;;  %v433_v63 = vld [vmem:[%s18658_s1 + $0x98] sm:$0xff]  ;;  %v13476_v2 = vpack.c.bf16 %v1269_v62, %v1268_v61  ;;  %v465_v5 = vld [vmem:[%s14206_s18 + $0x20] sm:$0xff]  ;;  %v435_v7 = vld [vmem:[%s18658_s1 + $0xa8] sm:$0xff] }
  0x20   : > { %13456 = vmatpush3.bf16.msra.mxu0 %v13455_v23  ;;  %13958 = vmatpush3.bf16.msra.mxu1 %v13455_v23  ;;  %v464_v0 = vld [vmem:[%s14206_s18 + $0x18] sm:$0xff]  ;;  %v486_v8 = vld [vmem:[%s14206_s18 + $0xc8] sm:$0xff]  ;;  %v1270_v9 = vld [vmem:[%s18661_s4 + $0xc0] sm:$0xff] }
  0x21   : > { %13457 = vmatprep.subr.bf16.mxu0 %v18670_v3  ;;  %13951 = vmatprep.subr.bf16.mxu1 %v18670_v3  ;;  %v1271_v10 = vld [vmem:[%s18661_s4 + $0xc8] sm:$0xff]  ;;  %v436_v12 = vld [vmem:[%s18658_s1 + $0xb0] sm:$0xff]  ;;  %v437_v13 = vld [vmem:[%s18658_s1 + $0xb8] sm:$0xff] }
  0x22   : > { %v13479_v11 = vpack.c.bf16 %v1271_v10, %v1270_v9  ;;  %v466_v14 = vld [vmem:[%s14206_s18 + $0x28] sm:$0xff]  ;;  %v487_v15 = vld [vmem:[%s14206_s18 + $0xd0] sm:$0xff]  ;;  %v438_v16 = vld [vmem:[%s18658_s1 + $0xc0] sm:$0xff] }
  0x23   : > { %919 = vperm.xlu0 %13975, %v422_v29   ;;  %924 = vperm.xlu1 %13976, %v423_v32   ;;  %v439_v17 = vld [vmem:[%s18658_s1 + $0xc8] sm:$0xff]  ;;  %v467_v18 = vld [vmem:[%s14206_s18 + $0x30] sm:$0xff]  ;;  %v488_v19 = vld [vmem:[%s14206_s18 + $0xd8] sm:$0xff] }
  0x24   : > { %13459 = vmatpush3.bf16.msra.mxu0 %v13458_v28  ;;  %13959 = vmatpush3.bf16.msra.mxu1 %v13458_v28  ;;  %v440_v20 = vld [vmem:[%s18658_s1 + $0xd0] sm:$0xff]  ;;  %v468_v21 = vld [vmem:[%s14206_s18 + $0x38] sm:$0xff]  ;;  %v489_v22 = vld [vmem:[%s14206_s18 + $0xe0] sm:$0xff] }
  0x25   : > { %13460 = vmatprep.subr.bf16.mxu0 %v18670_v3  ;;  %13952 = vmatprep.subr.bf16.mxu1 %v18670_v3  ;;  %v441_v23 = vld [vmem:[%s18658_s1 + $0xd8] sm:$0xff]  ;;  %v1205_v24 = vld [vmem:[%s18661_s4] sm:$0xff]  ;;  %v1206_v25 = vld [vmem:[%s18661_s4 + $0x8] sm:$0xff] }
  0x26   : > { %v1272_v26 = vld [vmem:[%s18661_s4 + $0xd0] sm:$0xff]  ;;  %v13491_v27 = vpack.c.bf16 %v1206_v25, %v1205_v24  ;;  %v1273_v28 = vld [vmem:[%s18661_s4 + $0xd8] sm:$0xff]  ;;  %v442_v29 = vld [vmem:[%s18658_s1 + $0xe0] sm:$0xff] }
  0x27   : > { %929 = vperm.xlu0 %13975, %v424_v34   ;;  %934 = vperm.xlu1 %13976, %v425_v37   ;;  %v13482_v30 = vpack.c.bf16 %v1273_v28, %v1272_v26  ;;  %v469_v31 = vld [vmem:[%s14206_s18 + $0x40] sm:$0xff]  ;;  %v443_v32 = vld [vmem:[%s18658_s1 + $0xe8] sm:$0xff]  ;;  %v1207_v34 = vld [vmem:[%s18661_s4 + $0x10] sm:$0xff] }
  0x28   : > { %13462 = vmatpush3.bf16.msra.mxu0 %v13461_v33  ;;  %13960 = vmatpush3.bf16.msra.mxu1 %v13461_v33  ;;  %v490_v33 = vld [vmem:[%s14206_s18 + $0xe8] sm:$0xff]  ;;  %v1208_v35 = vld [vmem:[%s18661_s4 + $0x18] sm:$0xff]  ;;  %v444_v36 = vld [vmem:[%s18658_s1 + $0xf0] sm:$0xff] }
  0x29   : > { %13463 = vmatprep.subr.bf16.mxu0 %v18670_v3  ;;  %13953 = vmatprep.subr.bf16.mxu1 %v18670_v3  ;;  %v13494_v37 = vpack.c.bf16 %v1208_v35, %v1207_v34  ;;  %v447_v45 = vld [vmem:[%s18658_s1 + $0x108] sm:$0xff]  ;;  %v1274_v46 = vld [vmem:[%s18661_s4 + $0xe0] sm:$0xff]  ;;  %v1212_v54 = vld [vmem:[%s18661_s4 + $0x38] sm:$0xff] }
  0x2a   : > { %v1275_v47 = vld [vmem:[%s18661_s4 + $0xe8] sm:$0xff]  ;;  %v472_v55 = vld [vmem:[%s14206_s18 + $0x58] sm:$0xff]  ;;  %v473_v62 = vld [vmem:[%s14206_s18 + $0x60] sm:$0xff] }
  0x2b   : > { %939 = vperm.xlu0 %13975, %v426_v39   ;;  %944 = vperm.xlu1 %13976, %v427_v40   ;;  %v445_v39 = vld [vmem:[%s18658_s1 + $0xf8] sm:$0xff]  ;;  %v491_v40 = vld [vmem:[%s14206_s18 + $0xf0] sm:$0xff]  ;;  %v1214_v61 = vld [vmem:[%s18661_s4 + $0x48] sm:$0xff] }
  0x2c   : > { %13465 = vmatpush3.bf16.msra.mxu0 %v13464_v38  ;;  %13961 = vmatpush3.bf16.msra.mxu1 %v13464_v38  ;;  %v470_v38 = vld [vmem:[%s14206_s18 + $0x48] sm:$0xff]  ;;  %v454_v9 = vld [vmem:[%s18658_s1 + $0x140] sm:$0xff]  ;;  %v480_v24 = vld [vmem:[%s14206_s18 + $0x98] sm:$0xff] }
  0x2d   : > { %13466 = vmatprep.subr.bf16.mxu1 %v18670_v3  ;;  %13490 = vmatprep.subr.bf16.mxu0 %v18670_v3  ;;  %v501_v25 = vld [vmem:[%s14206_s18 + $0x140] sm:$0xff]  ;;  %v1218_v28 = vld [vmem:[%s18661_s4 + $0x68] sm:$0xff] }
  0x2e   : > { %v481_v26 = vld [vmem:[%s14206_s18 + $0xa0] sm:$0xff]  ;;  %v1222_v34 = vld [vmem:[#allocation2 + $0x9] sm:$0xff] }
  0x2f   : > { %10220 = vmatmul.mubr.f32.vlgmr.msra.gmra.mrb[0].mxu0 %v461_v41  ;;  %10283 = vmatmul.mubr.f32.vlgmr.msra.gmra.mrb[0].mxu1 %v482_v42  ;;  %v1209_v41 = vld [vmem:[%s18661_s4 + $0x20] sm:$0xff]  ;;  %v1210_v42 = vld [vmem:[%s18661_s4 + $0x28] sm:$0xff] }
  0x30   : > { %10222 = vmatprep.mubr.msk.f32.mxu0 %vm14006_vm0, %v14005_v6  ;;  %10285 = vmatprep.mubr.msk.f32.mxu1 %vm14006_vm0, %v14005_v6  ;;  %v13497_v44 = vpack.c.bf16 %v1210_v42, %v1209_v41  ;;  %v1859_v35 = vld [vmem:[%s18661_s4 + $0x100] sm:$0xff]  ;;  %v1864_v42 = vld [vmem:[%s18661_s4 + $0x128] sm:$0xff] }
  0x31   : > { %949 = vperm.xlu0 %13975, %v428_v43   ;;  %13468 = vmatpush3.bf16.msra.mxu1 %v13467_v49  ;;  %v446_v43 = vld [vmem:[%s18658_s1 + $0x100] sm:$0xff]  ;;  %v492_v49 = vld [vmem:[%s14206_s18 + $0xf8] sm:$0xff] }
  0x32   : > { %954 = vperm.xlu1 %13976, %v429_v48   ;;  %13469 = vmatprep.subr.bf16.mxu1 %v18670_v3  ;;  %v471_v48 = vld [vmem:[%s14206_s18 + $0x50] sm:$0xff]  ;;  %v1863_v41 = vld [vmem:[%s18661_s4 + $0x120] sm:$0xff] }
  0x33   : > { %10223 = vmatmul.mubr.f32.gmra.mrb[2].mxu0 %v462_v50  ;;  %10286 = vmatmul.mubr.f32.gmra.mrb[2].mxu1 %v483_v51  ;;  %v448_v50 = vld [vmem:[%s18658_s1 + $0x110] sm:$0xff]  ;;  %v13485_v51 = vpack.c.bf16 %v1275_v47, %v1274_v46 }
  0x34   : > { %10225 = vmatprep.mubr.msk.f32.mxu0 %vm14006_vm0, %v14005_v6  ;;  %10288 = vmatprep.mubr.msk.f32.mxu1 %vm14006_vm0, %v14005_v6  ;;  %v1865_v47 = vld [vmem:[%s18661_s4 + $0x130] sm:$0xff] }
  0x35   : > { %959 = vperm.xlu0 %13975, %v430_v53   ;;  %13471 = vmatpush3.bf16.msra.mxu1 %v13470_v52  ;;  %v449_v52 = vld [vmem:[%s18658_s1 + $0x118] sm:$0xff]  ;;  %v1211_v53 = vld [vmem:[%s18661_s4 + $0x30] sm:$0xff] }
  0x36   : > { %964 = vperm.xlu1 %13976, %v431_v56   ;;  %13472 = vmatprep.subr.bf16.mxu1 %v18670_v3  ;;  %v493_v56 = vld [vmem:[%s14206_s18 + $0x100] sm:$0xff] }
  0x37   : > { %10226 = vmatmul.mubr.f32.gmra.mrb[4].mxu0 %v463_v57  ;;  %10289 = vmatmul.mubr.f32.gmra.mrb[4].mxu1 %v484_v58  ;;  %v450_v57 = vld [vmem:[%s18658_s1 + $0x120] sm:$0xff]  ;;  %v13500_v58 = vpack.c.bf16 %v1212_v54, %v1211_v53 }
  0x38   : > { %10228 = vmatprep.mubr.msk.f32.mxu0 %vm14006_vm0, %v14005_v6  ;;  %10291 = vmatprep.mubr.msk.f32.mxu1 %vm14006_vm0, %v14005_v6  ;;  %v1867_v54 = vld [vmem:[%s18661_s4 + $0x140] sm:$0xff] }
  0x39   : > { %969 = vperm.xlu0 %13975, %v432_v60   ;;  %13474 = vmatpush3.bf16.msra.mxu1 %v13473_v59  ;;  %v451_v59 = vld [vmem:[%s18658_s1 + $0x128] sm:$0xff]  ;;  %v1213_v60 = vld [vmem:[%s18661_s4 + $0x40] sm:$0xff] }
  0x3a   : > { %974 = vperm.xlu1 %13976, %v433_v63   ;;  %13475 = vmatprep.subr.bf16.mxu1 %v18670_v3  ;;  %v494_v63 = vld [vmem:[%s14206_s18 + $0x108] sm:$0xff] }
  0x3b   : > { %10229 = vmatmul.mubr.f32.gmra.mrb[6].mxu0 %v464_v0  ;;  %10292 = vmatmul.mubr.f32.gmra.mrb[6].mxu1 %v485_v1  ;;  %v452_v0 = vld [vmem:[%s18658_s1 + $0x130] sm:$0xff]  ;;  %v13503_v1 = vpack.c.bf16 %v1214_v61, %v1213_v60 }
  0x3c   : > { %10231 = vmatprep.mubr.msk.f32.mxu0 %vm14006_vm0, %v14005_v6  ;;  %10294 = vmatprep.mubr.msk.f32.mxu1 %vm14006_vm0, %v14005_v6 }
  0x3d   : > { %979 = vperm.xlu0 %13975, %v434_v4   ;;  %13477 = vmatpush3.bf16.msra.mxu1 %v13476_v2  ;;  %v453_v2 = vld [vmem:[%s18658_s1 + $0x138] sm:$0xff]  ;;  %v1215_v4 = vld [vmem:[%s18661_s4 + $0x50] sm:$0xff] }
  0x3e   : > { %984 = vperm.xlu1 %13976, %v435_v7   ;;  %13478 = vmatprep.subr.bf16.mxu1 %v18670_v3  ;;  %v474_v7 = vld [vmem:[%s14206_s18 + $0x68] sm:$0xff] }
  0x3f   : > { %10232 = vmatmul.mubr.f32.gmra.mrb[8].mxu0 %v465_v5  ;;  %10295 = vmatmul.mubr.f32.gmra.mrb[8].mxu1 %v486_v8  ;;  %v1216_v5 = vld [vmem:[%s18661_s4 + $0x58] sm:$0xff]  ;;  %v495_v8 = vld [vmem:[%s14206_s18 + $0x110] sm:$0xff] }
  0x40   : > { %10234 = vmatprep.mubr.msk.f32.mxu0 %vm14006_vm0, %v14005_v6  ;;  %10297 = vmatprep.mubr.msk.f32.mxu1 %vm14006_vm0, %v14005_v6  ;;  %v13506_v10 = vpack.c.bf16 %v1216_v5, %v1215_v4 }
  0x41   : > { %989 = vperm.xlu0 %13975, %v436_v12   ;;  %13480 = vmatpush3.bf16.msra.mxu1 %v13479_v11  ;;  %v1276_v11 = vld [vmem:[%s18661_s4 + $0xf0] sm:$0xff]  ;;  %v1277_v12 = vld [vmem:[%s18661_s4 + $0xf8] sm:$0xff] }
  0x42   : > { %994 = vperm.xlu1 %13976, %v437_v13   ;;  %13481 = vmatprep.subr.bf16.mxu1 %v18670_v3  ;;  %v475_v13 = vld [vmem:[%s14206_s18 + $0x70] sm:$0xff] }
  0x43   : > { %10235 = vmatmul.mubr.f32.gmra.mrb[10].mxu0 %v466_v14  ;;  %10298 = vmatmul.mubr.f32.gmra.mrb[10].mxu1 %v487_v15  ;;  %v496_v14 = vld [vmem:[%s14206_s18 + $0x118] sm:$0xff]  ;;  %v13488_v15 = vpack.c.bf16 %v1277_v12, %v1276_v11 }
  0x44   : > { %10237 = vmatprep.mubr.msk.f32.mxu0 %vm14006_vm0, %v14005_v6  ;;  %10300 = vmatprep.mubr.msk.f32.mxu1 %vm14006_vm0, %v14005_v6 }
  0x45   : > { %999 = vperm.xlu0 %13975, %v438_v16   ;;  %13492 = vmatpush3.bf16.msra.mxu0 %v13491_v27  ;;  %v476_v16 = vld [vmem:[%s14206_s18 + $0x78] sm:$0xff]  ;;  %v1217_v27 = vld [vmem:[%s18661_s4 + $0x60] sm:$0xff] }
  0x46   : > { %1004 = vperm.xlu1 %13976, %v439_v17   ;;  %13483 = vmatpush3.bf16.msra.mxu1 %v13482_v30  ;;  %v497_v17 = vld [vmem:[%s14206_s18 + $0x120] sm:$0xff]  ;;  %v1219_v30 = vld [vmem:[%s18661_s4 + $0x70] sm:$0xff] }
  0x47   : > { %10238 = vmatmul.mubr.f32.gmra.mrb[12].mxu0 %v467_v18  ;;  %10301 = vmatmul.mubr.f32.gmra.mrb[12].mxu1 %v488_v19  ;;  %v477_v18 = vld [vmem:[%s14206_s18 + $0x80] sm:$0xff]  ;;  %v498_v19 = vld [vmem:[%s14206_s18 + $0x128] sm:$0xff] }
  0x48   : > { %10240 = vmatprep.mubr.msk.f32.mxu0 %vm14006_vm0, %v14005_v6  ;;  %10303 = vmatprep.mubr.msk.f32.mxu1 %vm14006_vm0, %v14005_v6 }
  0x49   : > { %1009 = vperm.xlu0 %13975, %v440_v20   ;;  %13493 = vmatprep.subr.bf16.mxu0 %v18670_v3  ;;  %v478_v20 = vld [vmem:[%s14206_s18 + $0x88] sm:$0xff] }
  0x4a   : > { %1014 = vperm.xlu1 %13976, %v441_v23   ;;  %13495 = vmatpush3.bf16.msra.mxu0 %v13494_v37  ;;  %v500_v23 = vld [vmem:[%s14206_s18 + $0x138] sm:$0xff] }
  0x4b   : > { %10241 = vmatmul.mubr.f32.gmra.mrb[14].mxu0 %v468_v21  ;;  %10304 = vmatmul.mubr.f32.gmra.mrb[14].mxu1 %v489_v22  ;;  %v499_v21 = vld [vmem:[%s14206_s18 + $0x130] sm:$0xff] }
  0x4c   : > { %10243 = vmatprep.mubr.msk.f32.mxu0 %vm14006_vm0, %v14005_v6  ;;  %10306 = vmatprep.mubr.msk.f32.mxu1 %vm14006_vm0, %v14005_v6  ;;  %v479_v22 = vld [vmem:[%s14206_s18 + $0x90] sm:$0xff] }
  0x4d   : > { %1019 = vperm.xlu0 %13975, %v442_v29   ;;  %13496 = vmatprep.subr.bf16.mxu0 %v18670_v3  ;;  %v13509_v29 = vpack.c.bf16 %v1218_v28, %v1217_v27 }
  0x4e   : > { %1024 = vperm.xlu1 %13976, %v443_v32   ;;  %13498 = vmatpush3.bf16.msra.mxu0 %v13497_v44 }
  0x4f   : > { %10244 = vmatmul.mubr.f32.gmra.mrb[16].mxu0 %v469_v31  ;;  %10307 = vmatmul.mubr.f32.gmra.mrb[16].mxu1 %v490_v33  ;;  %v1220_v31 = vld [vmem:[%s18661_s4 + $0x78] sm:$0xff]  ;;  %v1221_v33 = vld [vmem:[#allocation2 + $0x1] sm:$0xff] }
  0x50   : > { %10246 = vmatprep.mubr.msk.f32.mxu0 %vm14006_vm0, %v14005_v6  ;;  %10309 = vmatprep.mubr.msk.f32.mxu1 %vm14006_vm0, %v14005_v6  ;;  %v13512_v32 = vpack.c.bf16 %v1220_v31, %v1219_v30 }
  0x51   : > { %1029 = vperm.xlu0 %13975, %v444_v36   ;;  %13484 = vmatprep.subr.bf16.mxu1 %v18670_v3  ;;  %v1860_v36 = vld [vmem:[%s18661_s4 + $0x108] sm:$0xff] }
  0x52   : > { %1034 = vperm.xlu1 %13976, %v445_v39   ;;  %13486 = vmatpush3.bf16.msra.mxu1 %v13485_v51  ;;  %v13515_v37 = vpack.c.bf16 %v1860_v36, %v1859_v35  ;;  %v1862_v39 = vld [vmem:[%s18661_s4 + $0x118] sm:$0xff] }
  0x53   : > { %10247 = vmatmul.mubr.f32.gmra.mrb[18].mxu0 %v470_v38  ;;  %10310 = vmatmul.mubr.f32.gmra.mrb[18].mxu1 %v491_v40  ;;  %v1861_v38 = vld [vmem:[%s18661_s4 + $0x110] sm:$0xff] }
  0x54   : > { %10249 = vmatprep.mubr.msk.f32.mxu0 %vm14006_vm0, %v14005_v6  ;;  %10312 = vmatprep.mubr.msk.f32.mxu1 %vm14006_vm0, %v14005_v6  ;;  %v13518_v40 = vpack.c.bf16 %v1862_v39, %v1861_v38 }
  0x55   : > { %1039 = vperm.xlu0 %13975, %v446_v43   ;;  %13499 = vmatprep.subr.bf16.mxu0 %v18670_v3  ;;  %v13521_v43 = vpack.c.bf16 %v1864_v42, %v1863_v41 }
  0x56   : > { %1044 = vperm.xlu1 %13976, %v447_v45   ;;  %13501 = vmatpush3.bf16.msra.mxu0 %v13500_v58 }
  0x57   : > { %10250 = vmatmul.mubr.f32.gmra.mrb[20].mxu0 %v471_v48  ;;  %10313 = vmatmul.mubr.f32.gmra.mrb[20].mxu1 %v492_v49  ;;  %v1866_v48 = vld [vmem:[%s18661_s4 + $0x138] sm:$0xff] }
  0x58   : > { %10252 = vmatprep.mubr.msk.f32.mxu0 %vm14006_vm0, %v14005_v6  ;;  %10315 = vmatprep.mubr.msk.f32.mxu1 %vm14006_vm0, %v14005_v6  ;;  %v13524_v49 = vpack.c.bf16 %v1866_v48, %v1865_v47 }
  0x59   : > { %1049 = vperm.xlu0 %13975, %v448_v50   ;;  %13502 = vmatprep.subr.bf16.mxu0 %v18670_v3 }
  0x5a   : > { %1054 = vperm.xlu1 %13976, %v449_v52   ;;  %13504 = vmatpush3.bf16.msra.mxu0 %v13503_v1  ;;  %v1870_v1 = vld [vmem:[%s18661_s4 + $0x158] sm:$0xff] }
  0x5b   : > { %10253 = vmatmul.mubr.f32.gmra.mrb[22].mxu0 %v472_v55  ;;  %10316 = vmatmul.mubr.f32.gmra.mrb[22].mxu1 %v493_v56  ;;  %v1868_v55 = vld [vmem:[%s18661_s4 + $0x148] sm:$0xff] }
  0x5c   : > { %10255 = vmatprep.mubr.msk.f32.mxu0 %vm14006_vm0, %v14005_v6  ;;  %10318 = vmatprep.mubr.msk.f32.mxu1 %vm14006_vm0, %v14005_v6 }
  0x5d   : > { %1059 = vperm.xlu0 %13975, %v450_v57   ;;  %13505 = vmatprep.subr.bf16.mxu0 %v18670_v3  ;;  %v13527_v57 = vpack.c.bf16 %v1868_v55, %v1867_v54 }
  0x5e   : > { %1064 = vperm.xlu1 %13976, %v451_v59   ;;  %13487 = vmatprep.subr.bf16.mxu1 %v18670_v3 }
  0x5f   : > { %10256 = vmatmul.mubr.f32.gmra.mrb[24].mxu0 %v473_v62  ;;  %10319 = vmatmul.mubr.f32.gmra.mrb[24].mxu1 %v494_v63 }
  0x60   : > { %10258 = vmatprep.mubr.msk.f32.mxu0 %vm14006_vm0, %v14005_v6  ;;  %10321 = vmatprep.mubr.msk.f32.mxu1 %vm14006_vm0, %v14005_v6 }
  0x61   : > { %1069 = vperm.xlu0 %13975, %v452_v0   ;;  %13507 = vmatpush3.bf16.msra.mxu0 %v13506_v10  ;;  %v1869_v0 = vld [vmem:[%s18661_s4 + $0x150] sm:$0xff]  ;;  %v14622_v10 = vld [vmem:[%s18660_s3] ss:$0 sm:$0xff] }
  0x62   : > { %1074 = vperm.xlu1 %13976, %v453_v2   ;;  %13489 = vmatpush3.bf16.msra.mxu1 %v13488_v15  ;;  %v13530_v2 = vpack.c.bf16 %v1870_v1, %v1869_v0 }
  0x63   : > { %10259 = vmatmul.mubr.f32.gmra.mrb[26].mxu0 %v474_v7  ;;  %10322 = vmatmul.mubr.f32.gmra.mrb[26].mxu1 %v495_v8 }
  0x64   : > { %10261 = vmatprep.mubr.msk.f32.mxu0 %vm14006_vm0, %v14005_v6  ;;  %10324 = vmatprep.mubr.msk.f32.mxu1 %vm14006_vm0, %v14005_v6 }
  0x65   : > { %1079 = vperm.xlu0 %13975, %v454_v9   ;;  %13508 = vmatprep.subr.bf16.mxu0 %v18670_v3 }
  0x66   : > { %13514 = vmatprep.subr.bf16.mxu1 %v18670_v3  ;;  %13510 = vmatpush3.bf16.msra.mxu0 %v13509_v29 }
  0x67   : > { %10262 = vmatmul.mubr.f32.gmra.mrb[28].mxu0 %v475_v13  ;;  %10325 = vmatmul.mubr.f32.gmra.mrb[28].mxu1 %v496_v14 }
  0x68   : > { %10264 = vmatprep.mubr.msk.f32.mxu0 %vm14006_vm0, %v14005_v6  ;;  %10327 = vmatprep.mubr.msk.f32.mxu1 %vm14006_vm0, %v14005_v6 }
  0x69   : > { %13511 = vmatprep.subr.bf16.mxu0 %v18670_v3 }
  0x6a   : > { %13513 = vmatpush3.bf16.msra.mxu0 %v13512_v32 }
  0x6b   : > { %10265 = vmatmul.mubr.f32.gmra.mrb[30].mxu0 %v476_v16  ;;  %10328 = vmatmul.mubr.f32.gmra.mrb[30].mxu1 %v497_v17 }
  0x6c   : > { %10267 = vmatprep.mubr.msk.f32.mxu0 %vm14006_vm0, %v14005_v6  ;;  %10330 = vmatprep.mubr.msk.f32.mxu1 %vm14006_vm0, %v14005_v6 }
  0x6d   : > { %13538 = vmatprep.subr.bf16.mxu0 %v18670_v3 }
  0x6f   : > { %10268 = vmatmul.mubr.f32.gmra.mrb[32].mxu0 %v477_v18  ;;  %10331 = vmatmul.mubr.f32.gmra.mrb[32].mxu1 %v498_v19 }
  0x70   : > { %10270 = vmatprep.mubr.msk.f32.mxu0 %vm14006_vm0, %v14005_v6  ;;  %10333 = vmatprep.mubr.msk.f32.mxu1 %vm14006_vm0, %v14005_v6 }
  0x73   : > { %10271 = vmatmul.mubr.f32.gmra.mrb[34].mxu0 %v478_v20  ;;  %10334 = vmatmul.mubr.f32.gmra.mrb[34].mxu1 %v499_v21  ;;  %v1871_v21 = vld [vmem:[%s18661_s4 + $0x160] sm:$0xff] }
  0x74   : > { %10273 = vmatprep.mubr.msk.f32.mxu0 %vm14006_vm0, %v14005_v6  ;;  %10336 = vmatprep.mubr.msk.f32.mxu1 %vm14006_vm0, %v14005_v6 }
  0x77   : > { %10274 = vmatmul.mubr.f32.gmra.mrb[36].mxu0 %v479_v22  ;;  %10337 = vmatmul.mubr.f32.gmra.mrb[36].mxu1 %v500_v23  ;;  %v1872_v22 = vld [vmem:[%s18661_s4 + $0x168] sm:$0xff] }
  0x78   : > { %10276 = vmatprep.mubr.msk.f32.mxu0 %vm14006_vm0, %v14005_v6  ;;  %10339 = vmatprep.mubr.msk.f32.mxu1 %vm14006_vm0, %v14005_v6 }
  0x7b   : > { %10277 = vmatmul.mubr.f32.gmra.mrb[38].mxu0 %v480_v24  ;;  %10340 = vmatmul.mubr.f32.gmra.mrb[38].mxu1 %v501_v25  ;;  %v13533_v25 = vpack.c.bf16 %v1872_v22, %v1871_v21 }
  0x7c   : > { %10279 = vmatprep.mubr.msk.f32.mxu0 %vm14006_vm0, %v14005_v6  ;;  %10374 = vmatprep.mubr.msk.f32.mxu1 %vm14006_vm0, %v14005_v6 }
  0x7f   : > { %10280 = vmatmul.mubr.f32.gmra.mrb[40].mxu0 %v481_v26  ;;  %10375 = vmatmul.mubr.f32.vlgmr.msra.gmra.mrb[40].mxu1 %v1221_v33 }
  0x80   : > { %10529 = vmatprep.mubr.msk.f32.mxu0 %vm14006_vm0, %v14005_v6  ;;  %10377 = vmatprep.mubr.msk.f32.mxu1 %vm14006_vm0, %v14005_v6 }
  0x81   : > { %13516 = vmatpush3.bf16.msra.mxu1 %v13515_v37 }
  0x82   : > { %13517 = vmatprep.subr.bf16.mxu1 %v18670_v3 }
  0x83   : > { %10530 = vmatmul.mubr.f32.vlgmr.msra.gmra.mrb[42].mxu0 %v14005_v6  ;;  %10378 = vmatmul.mubr.f32.gmra.mrb[42].mxu1 %v1222_v34 }
  0x84   : > { %10532 = vmatprep.mubr.msk.f32.mxu0 %vm14006_vm0, %v14005_v6  ;;  %10380 = vmatprep.mubr.msk.f32.mxu1 %vm14006_vm0, %v14005_v6 }
  0x85   : > { %13519 = vmatpush3.bf16.msra.mxu1 %v13518_v40 }
  0x86   : > { %13520 = vmatprep.subr.bf16.mxu1 %v18670_v3 }
  0x87   : > { %10533 = vmatmul.mubr.f32.gmra.mrb[44].mxu0 %v14005_v6 }
  0x88   : > { %10535 = vmatprep.mubr.msk.f32.mxu0 %vm14006_vm0, %v14005_v6 }
  0x89   : > { %13522 = vmatpush3.bf16.msra.mxu1 %v13521_v43 }
  0x8a   : > { %13523 = vmatprep.subr.bf16.mxu1 %v18670_v3 }
  0x8d   : > { %13525 = vmatpush3.bf16.msra.mxu1 %v13524_v49 }
  0x8e   : > { %13526 = vmatprep.subr.bf16.mxu1 %v18670_v3 }
  0x91   : > { %13528 = vmatpush3.bf16.msra.mxu1 %v13527_v57 }
  0x92   : > { %v14560_v44 = vpop.permute.xlu0 %879  ;;  %v14562_v45 = vpop.permute.xlu1 %889  ;;  %13529 = vmatprep.subr.bf16.mxu1 %v18670_v3 }
  0x95   : > { %13531 = vmatpush3.bf16.msra.mxu1 %v13530_v2  ;;  %v2227_v2 = vld [vmem:[%s18661_s4 + $0x180] sm:$0xff] }
  0x96   : > { %v14564_v46 = vpop.permute.xlu0 %884  ;;  %v14572_v50 = vpop.permute.xlu1 %894  ;;  %13532 = vmatprep.subr.bf16.mxu1 %v18670_v3 }
  0x99   : > { %13534 = vmatpush3.bf16.msra.mxu1 %v13533_v25 }
  0x9a   : > { %v14575_v51 = vpop.permute.xlu0 %899  ;;  %v14577_v52 = vpop.permute.xlu1 %904  ;;  %13535 = vmatprep.subr.bf16.mxu1 %v18670_v3 }
  0x9b   : > { %18709 = vst [vmem:[#allocation4_spill] sm:$0xff] %v14575_v51  ;;  %18710 = vst [vmem:[#allocation5_spill] sm:$0xff] %v14577_v52 }
  0x9e   : > { %v14579_v53 = vpop.permute.xlu0 %909  ;;  %v14587_v56 = vpop.permute.xlu1 %914 }
  0x9f   : > { %18711 = vst [vmem:[#allocation6_spill] sm:$0xff] %v14579_v53  ;;  %18712 = vst [vmem:[#allocation7_spill] sm:$0xff] %v14587_v56 }
  0xa2   : > { %v14590_v58 = vpop.permute.xlu0 %919  ;;  %v14592_v59 = vpop.permute.xlu1 %924 }
  0xa3   : > { %18713 = vst [vmem:[#allocation8_spill] sm:$0xff] %v14590_v58  ;;  %18714 = vst [vmem:[#allocation9_spill] sm:$0xff] %v14592_v59 }
  0xa6   : > { %v14594_v60 = vpop.permute.xlu0 %929  ;;  %v14596_v61 = vpop.permute.xlu1 %934 }
  0xa7   : > { %18715 = vst [vmem:[#allocation10_spill] sm:$0xff] %v14594_v60  ;;  %18716 = vst [vmem:[#allocation11_spill] sm:$0xff] %v14596_v61 }
  0xaa   : > { %v14598_v62 = vpop.permute.xlu0 %939  ;;  %v14600_v63 = vpop.permute.xlu1 %944 }
  0xab   : > { %18717 = vst [vmem:[#allocation12_spill] sm:$0xff] %v14598_v62  ;;  %18718 = vst [vmem:[#allocation13_spill] sm:$0xff] %v14600_v63 }
  0xb0   : > { %v14608_v4 = vpop.permute.xlu0 %949 }
  0xb1   : > { %18719 = vst [vmem:[#allocation14_spill] sm:$0xff] %v14608_v4  ;;  %v14610_v5 = vpop.permute.xlu1 %954 }
  0xb2   : > { %18720 = vst [vmem:[#allocation15_spill] sm:$0xff] %v14610_v5 }
  0xb4   : > { %v14613_v7 = vpop.permute.xlu0 %959 }
  0xb5   : > { %18721 = vst [vmem:[#allocation16_spill] sm:$0xff] %v14613_v7  ;;  %v14615_v8 = vpop.permute.xlu1 %964 }
  0xb6   : > { %18722 = vst [vmem:[#allocation17_spill] sm:$0xff] %v14615_v8 }
  0xb8   : > { %v14617_v9 = vpop.permute.xlu0 %969 }
  0xb9   : > { %18723 = vst [vmem:[#allocation18_spill] sm:$0xff] %v14617_v9  ;;  %v14624_v11 = vpop.permute.xlu1 %974 }
  0xba   : > { %18724 = vst [vmem:[#allocation19_spill] sm:$0xff] %v14624_v11 }
  0xbc   : > { %v14628_v18 = vpop.permute.xlu0 %979 }
  0xbd   : > { %18725 = vst [vmem:[#allocation20_spill] sm:$0xff] %v14628_v18  ;;  %v14638_v32 = vpop.permute.xlu1 %984 }
  0xbe   : > { %18726 = vst [vmem:[#allocation21_spill] sm:$0xff] %v14638_v32 }
  0xc0   : > { %v14645_v48 = vpop.permute.xlu0 %989 }
  0xc1   : > { %18727 = vst [vmem:[#allocation22_spill] sm:$0xff] %v14645_v48 }
 0x102   : > { %v591_v12 = vpop.f32.mrb[0].mxu0  ;;  %v696_v13 = vpop.f32.mrb[0].mxu1 }
 0x103   : > { %v592_v14 = vadd.f32 %v14622_v10, %v591_v12  ;;  %v10221_v15 = vpop.f32.mrb[1].mxu0  ;;  %v697_v16 = vadd.f32 %v14622_v10, %v696_v13  ;;  %v10284_v17 = vpop.f32.mrb[1].mxu1  ;;  %v2228_v12 = vld [vmem:[%s18661_s4 + $0x188] sm:$0xff] }
 0x104   : > { %v13539_v21 = vpack.c.bf16 %v2228_v12, %v2227_v2 }
 0x105   : > { %v795_v19 = vmul.f32 0.1, %v592_v14  ;;  %v816_v20 = vmul.f32 0.1, %v697_v16 }
 0x106   : > { %v596_v23 = vpop.f32.mrb[2].mxu0  ;;  %v701_v24 = vpop.f32.mrb[2].mxu1  ;;  %13540 = vmatpush3.bf16.msra.mxu0 %v13539_v21 }
 0x107   : > { %v836_v26 = vmax.f32 %v592_v14, %v795_v19  ;;  %v857_v27 = vmax.f32 %v697_v16, %v816_v20  ;;  %v597_v28 = vadd.f32 %v14622_v10, %v596_v23  ;;  %v702_v29 = vadd.f32 %v14622_v10, %v701_v24  ;;  %v10224_v30 = vpop.f32.mrb[3].mxu0  ;;  %v10287_v31 = vpop.f32.mrb[3].mxu1  ;;  %13541 = vmatprep.subr.bf16.mxu0 %v18670_v3 }
 0x108   : > { %v14657_v20 = vpop.permute.xlu1 %994  ;;  %v2229_v30 = vld [vmem:[%s18661_s4 + $0x190] sm:$0xff] }
 0x109   : > { %v1082_v33 = vmul.f32 %v14560_v44, %v836_v26  ;;  %v1103_v34 = vmul.f32 %v14638_v32, %v857_v27  ;;  %v796_v35 = vmul.f32 0.1, %v597_v28  ;;  %v817_v36 = vmul.f32 0.1, %v702_v29  ;;  %18728 = vst [vmem:[#allocation23_spill] sm:$0xff] %v14657_v20 }
 0x10a   : > { %v601_v37 = vpop.f32.mrb[4].mxu0  ;;  %v706_v38 = vpop.f32.mrb[4].mxu1 }
 0x10b   : > { %1123 = vst [vmem:[#allocation2 + $0x13] sm:$0xff] %v1082_v33  ;;  %1144 = vst [vmem:[#allocation2 + $0xbb] sm:$0xff] %v1103_v34  ;;  %v837_v39 = vmax.f32 %v597_v28, %v796_v35  ;;  %v858_v40 = vmax.f32 %v702_v29, %v817_v36  ;;  %v602_v41 = vadd.f32 %v14622_v10, %v601_v37  ;;  %v10227_v43 = vpop.f32.mrb[5].mxu0  ;;  %v10290_v47 = vpop.f32.mrb[5].mxu1 }
 0x10c   : > { %v707_v42 = vadd.f32 %v14622_v10, %v706_v38  ;;  %v2230_v38 = vld [vmem:[%s18661_s4 + $0x198] sm:$0xff] }
 0x10d   : > { %v1083_v49 = vmul.f32 %v14564_v46, %v837_v39  ;;  %v1104_v54 = vmul.f32 %v14645_v48, %v858_v40  ;;  %v797_v55 = vmul.f32 0.1, %v602_v41  ;;  %v14669_v39 = vpop.permute.xlu0 %999  ;;  %v13542_v40 = vpack.c.bf16 %v2230_v38, %v2229_v30  ;;  %v3333_v48 = vld [vmem:[%s18661_s4 + $0x310] sm:$0xff] }
 0x10e   : > { %v818_v57 = vmul.f32 0.1, %v707_v42  ;;  %v606_v0 = vpop.f32.mrb[6].mxu0  ;;  %v711_v1 = vpop.f32.mrb[6].mxu1  ;;  %18729 = vst [vmem:[#allocation24_spill] sm:$0xff] %v14669_v39 }
 0x10f   : > { %1124 = vst [vmem:[#allocation2 + $0x1b] sm:$0xff] %v1083_v49  ;;  %1145 = vst [vmem:[#allocation2 + $0xc3] sm:$0xff] %v1104_v54  ;;  %v838_v13 = vmax.f32 %v602_v41, %v797_v55  ;;  %v607_v15 = vadd.f32 %v14622_v10, %v606_v0  ;;  %v712_v16 = vadd.f32 %v14622_v10, %v711_v1  ;;  %v10230_v17 = vpop.f32.mrb[7].mxu0  ;;  %v10293_v19 = vpop.f32.mrb[7].mxu1  ;;  %13543 = vmatpush3.bf16.msra.mxu0 %v13542_v40  ;;  %v1873_v40 = vld [vmem:[%s18661_s4 + $0x170] sm:$0xff] }
 0x110   : > { %v859_v14 = vmax.f32 %v707_v42, %v818_v57  ;;  %v14688_v17 = vld [vmem:[#allocation2] sm:$0xff]  ;;  %13544 = vmatprep.subr.bf16.mxu0 %v18670_v3 }
 0x111   : > { %v1084_v22 = vmul.f32 %v14562_v45, %v838_v13  ;;  %v798_v24 = vmul.f32 0.1, %v607_v15  ;;  %v819_v25 = vmul.f32 0.1, %v712_v16  ;;  %v14705_v38 = vpop.permute.xlu0 %1009 }
 0x112   : > { %v1105_v23 = vmul.f32 %v14657_v20, %v859_v14  ;;  %v611_v26 = vpop.f32.mrb[8].mxu0  ;;  %v716_v27 = vpop.f32.mrb[8].mxu1  ;;  %v1223_v28 = vld [vmem:[#allocation2 + $0x11] sm:$0xff]  ;;  %18731 = vst [vmem:[#allocation26_spill] sm:$0xff] %v14705_v38 }
 0x113   : > { %v1166_v29 = vld [vmem:[#allocation2 + $0x10] sm:$0xff]  ;;  %1125 = vst [vmem:[#allocation2 + $0x23] sm:$0xff] %v1084_v22  ;;  %v839_v31 = vmax.f32 %v607_v15, %v798_v24  ;;  %v860_v33 = vmax.f32 %v712_v16, %v819_v25  ;;  %v612_v34 = vadd.f32 %v14622_v10, %v611_v26  ;;  %v717_v35 = vadd.f32 %v14622_v10, %v716_v27  ;;  %v10233_v36 = vpop.f32.mrb[9].mxu0  ;;  %v10296_v37 = vpop.f32.mrb[9].mxu1  ;;  %v2232_v15 = vld [vmem:[%s18661_s4 + $0x1a8] sm:$0xff] }
 0x114   : > { %1146 = vst [vmem:[#allocation2 + $0xcb] sm:$0xff] %v1105_v23  ;;  %10381 = vmatmul.mubr.f32.gmra.mrb[44].mxu1 %v1223_v28  ;;  %10536 = vmatmul.mubr.f32.gmra.mrb[46].mxu0 %v1166_v29  ;;  %v14686_v16 = vpop.permute.xlu1 %1004  ;;  %v2233_v36 = vld [vmem:[%s18661_s4 + $0x1b0] sm:$0xff]  ;;  %v2234_v37 = vld [vmem:[%s18661_s4 + $0x1b8] sm:$0xff] }
 0x115   : > { %10383 = vmatprep.mubr.msk.f32.mxu1 %vm14006_vm0, %v14005_v6  ;;  %v1085_v41 = vmul.f32 %v14572_v50, %v839_v31  ;;  %v1106_v42 = vmul.f32 %v14669_v39, %v860_v33  ;;  %v799_v43 = vmul.f32 0.1, %v612_v34  ;;  %v820_v47 = vmul.f32 0.1, %v717_v35  ;;  %10538 = vmatprep.mubr.msk.f32.mxu0 %vm14006_vm0, %v14005_v6  ;;  %v2231_v6 = vld [vmem:[%s18661_s4 + $0x1a0] sm:$0xff]  ;;  %18730 = vst [vmem:[#allocation25_spill] sm:$0xff] %v14686_v16 }
 0x116   : > { %v616_v49 = vpop.f32.mrb[10].mxu0  ;;  %v721_v54 = vpop.f32.mrb[10].mxu1  ;;  %v1224_v55 = vld [vmem:[#allocation2 + $0x19] sm:$0xff]  ;;  %v13545_v19 = vpack.c.bf16 %v2232_v15, %v2231_v6 }
 0x117   : > { %v1167_v57 = vld [vmem:[#allocation2 + $0x18] sm:$0xff]  ;;  %1126 = vst [vmem:[#allocation2 + $0x2b] sm:$0xff] %v1085_v41  ;;  %1147 = vst [vmem:[#allocation2 + $0xd3] sm:$0xff] %v1106_v42  ;;  %v840_v0 = vmax.f32 %v612_v34, %v799_v43  ;;  %v861_v1 = vmax.f32 %v717_v35, %v820_v47  ;;  %v617_v2 = vadd.f32 %v14622_v10, %v616_v49  ;;  %v10236_v13 = vpop.f32.mrb[11].mxu0  ;;  %v10299_v14 = vpop.f32.mrb[11].mxu1 }
 0x118   : > { %v722_v12 = vadd.f32 %v14622_v10, %v721_v54  ;;  %10384 = vmatmul.mubr.f32.gmra.mrb[46].mxu1 %v1224_v55  ;;  %10539 = vmatmul.mubr.f32.gmra.mrb[48].mxu0 %v1167_v57  ;;  %v1874_v41 = vld [vmem:[%s18661_s4 + $0x178] sm:$0xff]  ;;  %v13548_v42 = vpack.c.bf16 %v2234_v37, %v2233_v36 }
 0x119   : > { %10386 = vmatprep.mubr.msk.f32.mxu1 %vm14006_vm0, %v14688_v17  ;;  %v1086_v21 = vmul.f32 %v14575_v51, %v840_v0  ;;  %v1107_v22 = vmul.f32 %v14686_v16, %v861_v1  ;;  %v800_v23 = vmul.f32 0.1, %v617_v2  ;;  %10541 = vmatprep.mubr.msk.f32.mxu0 %vm14006_vm0, %v14688_v17  ;;  %v2554_v20 = vld [vmem:[#allocation2 + $0x13] sm:$0xff]  ;;  %v2555_v32 = vld [vmem:[#allocation2 + $0x1b] sm:$0xff] }
 0x11a   : > { %v821_v24 = vmul.f32 0.1, %v722_v12  ;;  %v621_v25 = vpop.f32.mrb[12].mxu0  ;;  %v726_v26 = vpop.f32.mrb[12].mxu1  ;;  %v1225_v27 = vld [vmem:[#allocation2 + $0x21] sm:$0xff]  ;;  %13546 = vmatpush3.bf16.msra.mxu0 %v13545_v19 }
 0x11b   : > { %v1168_v28 = vld [vmem:[#allocation2 + $0x20] sm:$0xff]  ;;  %1127 = vst [vmem:[#allocation2 + $0x33] sm:$0xff] %v1086_v21  ;;  %1148 = vst [vmem:[#allocation2 + $0xdb] sm:$0xff] %v1107_v22  ;;  %v841_v29 = vmax.f32 %v617_v2, %v800_v23  ;;  %v622_v31 = vadd.f32 %v14622_v10, %v621_v25  ;;  %v727_v33 = vadd.f32 %v14622_v10, %v726_v26  ;;  %v10239_v34 = vpop.f32.mrb[13].mxu0  ;;  %v10302_v35 = vpop.f32.mrb[13].mxu1  ;;  %13547 = vmatprep.subr.bf16.mxu0 %v18670_v3  ;;  %v2236_v22 = vld [vmem:[%s18661_s4 + $0x1c8] sm:$0xff] }
 0x11c   : > { %v862_v30 = vmax.f32 %v722_v12, %v821_v24  ;;  %10387 = vmatmul.mubr.f32.gmra.mrb[48].mxu1 %v1225_v27  ;;  %10542 = vmatmul.mubr.f32.gmra.mrb[50].mxu0 %v1168_v28  ;;  %v13536_v2 = vpack.c.bf16 %v1874_v41, %v1873_v40  ;;  %v2235_v21 = vld [vmem:[%s18661_s4 + $0x1c0] sm:$0xff]  ;;  %v14728_v23 = vpop.permute.xlu1 %1014 }
 0x11d   : > { %10389 = vmatprep.mubr.msk.f32.mxu1 %vm14006_vm0, %v14688_v17  ;;  %v1087_v43 = vmul.f32 %v14577_v52, %v841_v29  ;;  %v801_v49 = vmul.f32 0.1, %v622_v31  ;;  %v822_v54 = vmul.f32 0.1, %v727_v33  ;;  %10544 = vmatprep.mubr.msk.f32.mxu0 %vm14006_vm0, %v14688_v17  ;;  %18732 = vst [vmem:[#allocation27_spill] sm:$0xff] %v14728_v23  ;;  %v13551_v24 = vpack.c.bf16 %v2236_v22, %v2235_v21 }
 0x11e   : > { %v1108_v47 = vmul.f32 %v14705_v38, %v862_v30  ;;  %v626_v55 = vpop.f32.mrb[14].mxu0  ;;  %v731_v57 = vpop.f32.mrb[14].mxu1  ;;  %v1226_v0 = vld [vmem:[#allocation2 + $0x29] sm:$0xff]  ;;  %13549 = vmatpush3.bf16.msra.mxu0 %v13548_v42  ;;  %13537 = vmatpush3.bf16.msra.mxu1 %v13536_v2 }
 0x11f   : > { %v1169_v1 = vld [vmem:[#allocation2 + $0x28] sm:$0xff]  ;;  %1128 = vst [vmem:[#allocation2 + $0x3b] sm:$0xff] %v1087_v43  ;;  %v842_v12 = vmax.f32 %v622_v31, %v801_v49  ;;  %v863_v13 = vmax.f32 %v727_v33, %v822_v54  ;;  %v627_v14 = vadd.f32 %v14622_v10, %v626_v55  ;;  %v732_v6 = vadd.f32 %v14622_v10, %v731_v57  ;;  %v10242_v15 = vpop.f32.mrb[15].mxu0  ;;  %v10305_v19 = vpop.f32.mrb[15].mxu1  ;;  %v2237_v42 = vld [vmem:[%s18661_s4 + $0x1d0] sm:$0xff]  ;;  %v2238_v43 = vld [vmem:[%s18661_s4 + $0x1d8] sm:$0xff] }
 0x120   : > { %1149 = vst [vmem:[#allocation2 + $0xe3] sm:$0xff] %v1108_v47  ;;  %10390 = vmatmul.mubr.f32.gmra.mrb[50].mxu1 %v1226_v0  ;;  %10545 = vmatmul.mubr.f32.gmra.mrb[52].mxu0 %v1169_v1  ;;  %v14746_v47 = vpop.permute.xlu0 %1019  ;;  %v13554_v49 = vpack.c.bf16 %v2238_v43, %v2237_v42 }
 0x121   : > { %10392 = vmatprep.mubr.msk.f32.mxu1 %vm14006_vm0, %v14688_v17  ;;  %v1088_v25 = vmul.f32 %v14579_v53, %v842_v12  ;;  %v1109_v26 = vmul.f32 %v14728_v23, %v863_v13  ;;  %v802_v27 = vmul.f32 0.1, %v627_v14  ;;  %v823_v28 = vmul.f32 0.1, %v732_v6  ;;  %10547 = vmatprep.mubr.msk.f32.mxu0 %vm14006_vm0, %v14688_v17  ;;  %18733 = vst [vmem:[#allocation28_spill] sm:$0xff] %v14746_v47 }
 0x122   : > { %v631_v29 = vpop.f32.mrb[16].mxu0  ;;  %v736_v30 = vpop.f32.mrb[16].mxu1  ;;  %v1227_v31 = vld [vmem:[#allocation2 + $0x31] sm:$0xff]  ;;  %13550 = vmatprep.subr.bf16.mxu0 %v18670_v3  ;;  %13562 = vmatprep.subr.bf16.mxu1 %v18670_v3 }
 0x123   : > { %v1170_v33 = vld [vmem:[#allocation2 + $0x30] sm:$0xff]  ;;  %1129 = vst [vmem:[#allocation2 + $0x43] sm:$0xff] %v1088_v25  ;;  %1150 = vst [vmem:[#allocation2 + $0xeb] sm:$0xff] %v1109_v26  ;;  %v843_v34 = vmax.f32 %v627_v14, %v802_v27  ;;  %v864_v35 = vmax.f32 %v732_v6, %v823_v28  ;;  %v632_v36 = vadd.f32 %v14622_v10, %v631_v29  ;;  %v10245_v40 = vpop.f32.mrb[17].mxu0  ;;  %v10308_v41 = vpop.f32.mrb[17].mxu1  ;;  %13552 = vmatpush3.bf16.msra.mxu0 %v13551_v24  ;;  %v2239_v24 = vld [vmem:[%s18661_s4 + $0x1e0] sm:$0xff] }
 0x124   : > { %v737_v37 = vadd.f32 %v14622_v10, %v736_v30  ;;  %10393 = vmatmul.mubr.f32.gmra.mrb[52].mxu1 %v1227_v31  ;;  %10548 = vmatmul.mubr.f32.gmra.mrb[54].mxu0 %v1170_v33  ;;  %v2240_v25 = vld [vmem:[%s18661_s4 + $0x1e8] sm:$0xff]  ;;  %v14763_v26 = vpop.permute.xlu1 %1024 }
 0x125   : > { %10395 = vmatprep.mubr.msk.f32.mxu1 %vm14006_vm0, %v14688_v17  ;;  %v1089_v54 = vmul.f32 %v14587_v56, %v843_v34  ;;  %v1110_v55 = vmul.f32 %v14746_v47, %v864_v35  ;;  %v803_v57 = vmul.f32 0.1, %v632_v36  ;;  %10550 = vmatprep.mubr.msk.f32.mxu0 %vm14006_vm0, %v14688_v17  ;;  %18734 = vst [vmem:[#allocation29_spill] sm:$0xff] %v14763_v26  ;;  %v3291_v56 = vld [vmem:[#allocation2 + $0x2c] sm:$0xff] }
 0x126   : > { %v824_v0 = vmul.f32 0.1, %v737_v37  ;;  %v636_v1 = vpop.f32.mrb[18].mxu0  ;;  %v741_v2 = vpop.f32.mrb[18].mxu1  ;;  %v1228_v12 = vld [vmem:[#allocation2 + $0x39] sm:$0xff]  ;;  %13553 = vmatprep.subr.bf16.mxu0 %v18670_v3  ;;  %v13557_v27 = vpack.c.bf16 %v2240_v25, %v2239_v24 }
 0x127   : > { %v1171_v13 = vld [vmem:[#allocation2 + $0x38] sm:$0xff]  ;;  %1130 = vst [vmem:[#allocation2 + $0x4b] sm:$0xff] %v1089_v54  ;;  %1151 = vst [vmem:[#allocation2 + $0xf3] sm:$0xff] %v1110_v55  ;;  %v844_v14 = vmax.f32 %v632_v36, %v803_v57  ;;  %v637_v15 = vadd.f32 %v14622_v10, %v636_v1  ;;  %v742_v19 = vadd.f32 %v14622_v10, %v741_v2  ;;  %v10248_v21 = vpop.f32.mrb[19].mxu0  ;;  %v10311_v22 = vpop.f32.mrb[19].mxu1  ;;  %13555 = vmatpush3.bf16.msra.mxu0 %v13554_v49  ;;  %v2241_v49 = vld [vmem:[%s18661_s4 + $0x1f0] sm:$0xff] }
 0x128   : > { %v865_v6 = vmax.f32 %v737_v37, %v824_v0  ;;  %10396 = vmatmul.mubr.f32.gmra.mrb[54].mxu1 %v1228_v12  ;;  %10551 = vmatmul.mubr.f32.gmra.mrb[56].mxu0 %v1171_v13  ;;  %v2242_v55 = vld [vmem:[%s18661_s4 + $0x1f8] sm:$0xff]  ;;  %v14780_v57 = vpop.permute.xlu0 %1029 }
 0x129   : > { %10398 = vmatprep.mubr.msk.f32.mxu1 %vm14006_vm0, %v14688_v17  ;;  %v1090_v28 = vmul.f32 %v14590_v58, %v844_v14  ;;  %v804_v30 = vmul.f32 0.1, %v637_v15  ;;  %v825_v31 = vmul.f32 0.1, %v742_v19  ;;  %10553 = vmatprep.mubr.msk.f32.mxu0 %vm14006_vm0, %v14688_v17  ;;  %18735 = vst [vmem:[#allocation30_spill] sm:$0xff] %v14780_v57  ;;  %v13560_v0 = vpack.c.bf16 %v2242_v55, %v2241_v49  ;;  %v3290_v58 = vld [vmem:[#allocation2 + $0x24] sm:$0xff] }
 0x12a   : > { %v1111_v29 = vmul.f32 %v14763_v26, %v865_v6  ;;  %v641_v33 = vpop.f32.mrb[20].mxu0  ;;  %v746_v34 = vpop.f32.mrb[20].mxu1  ;;  %v1229_v35 = vld [vmem:[#allocation2 + $0x41] sm:$0xff]  ;;  %13556 = vmatprep.subr.bf16.mxu0 %v18670_v3 }
 0x12b   : > { %v1172_v36 = vld [vmem:[#allocation2 + $0x40] sm:$0xff]  ;;  %1131 = vst [vmem:[#allocation2 + $0x53] sm:$0xff] %v1090_v28  ;;  %v845_v37 = vmax.f32 %v637_v15, %v804_v30  ;;  %v866_v40 = vmax.f32 %v742_v19, %v825_v31  ;;  %v642_v41 = vadd.f32 %v14622_v10, %v641_v33  ;;  %v747_v42 = vadd.f32 %v14622_v10, %v746_v34  ;;  %v10251_v43 = vpop.f32.mrb[21].mxu0  ;;  %v10314_v54 = vpop.f32.mrb[21].mxu1 }
 0x12c   : > { %1152 = vst [vmem:[#allocation2 + $0xfb] sm:$0xff] %v1111_v29  ;;  %10399 = vmatmul.mubr.f32.gmra.mrb[56].mxu1 %v1229_v35  ;;  %10554 = vmatmul.mubr.f32.gmra.mrb[58].mxu0 %v1172_v36  ;;  %v14791_v30 = vpop.permute.xlu1 %1034 }
 0x12d   : > { %10401 = vmatprep.mubr.msk.f32.mxu1 %vm14006_vm0, %v14688_v17  ;;  %v1091_v1 = vmul.f32 %v14592_v59, %v845_v37  ;;  %v1112_v2 = vmul.f32 %v14780_v57, %v866_v40  ;;  %v805_v12 = vmul.f32 0.1, %v642_v41  ;;  %v826_v13 = vmul.f32 0.1, %v747_v42  ;;  %10556 = vmatprep.mubr.msk.f32.mxu0 %vm14006_vm0, %v14688_v17  ;;  %18736 = vst [vmem:[#allocation31_spill] sm:$0xff] %v14791_v30 }
 0x12e   : > { %13558 = vmatpush3.bf16.msra.mxu0 %v13557_v27  ;;  %v646_v14 = vpop.f32.mrb[22].mxu0  ;;  %v751_v6 = vpop.f32.mrb[22].mxu1  ;;  %v1230_v15 = vld [vmem:[#allocation2 + $0x49] sm:$0xff] }
 0x12f   : > { %v1173_v19 = vld [vmem:[#allocation2 + $0x48] sm:$0xff]  ;;  %13559 = vmatprep.subr.bf16.mxu0 %v18670_v3  ;;  %1132 = vst [vmem:[#allocation2 + $0x5b] sm:$0xff] %v1091_v1  ;;  %1153 = vst [vmem:[#allocation2 + $0x103] sm:$0xff] %v1112_v2  ;;  %v846_v21 = vmax.f32 %v642_v41, %v805_v12  ;;  %v867_v22 = vmax.f32 %v747_v42, %v826_v13  ;;  %v647_v24 = vadd.f32 %v14622_v10, %v646_v14  ;;  %v10254_v28 = vpop.f32.mrb[23].mxu0  ;;  %v10317_v29 = vpop.f32.mrb[23].mxu1 }
 0x130   : > { %v752_v25 = vadd.f32 %v14622_v10, %v751_v6  ;;  %10402 = vmatmul.mubr.f32.gmra.mrb[58].mxu1 %v1230_v15  ;;  %10557 = vmatmul.mubr.f32.gmra.mrb[60].mxu0 %v1173_v19  ;;  %v14802_v1 = vpop.permute.xlu0 %1039 }
 0x131   : > { %10404 = vmatprep.mubr.msk.f32.mxu1 %vm14006_vm0, %v14688_v17  ;;  %v1092_v27 = vmul.f32 %v14594_v60, %v846_v21  ;;  %v1113_v31 = vmul.f32 %v14791_v30, %v867_v22  ;;  %v806_v33 = vmul.f32 0.1, %v647_v24  ;;  %10559 = vmatprep.mubr.msk.f32.mxu0 %vm14006_vm0, %v14688_v17  ;;  %18737 = vst [vmem:[#allocation32_spill] sm:$0xff] %v14802_v1 }
 0x132   : > { %v827_v34 = vmul.f32 0.1, %v752_v25  ;;  %13561 = vmatpush3.bf16.msra.mxu0 %v13560_v0  ;;  %v651_v35 = vpop.f32.mrb[24].mxu0  ;;  %v756_v36 = vpop.f32.mrb[24].mxu1  ;;  %v1231_v37 = vld [vmem:[#allocation2 + $0x51] sm:$0xff] }
 0x133   : > { %v1174_v40 = vld [vmem:[#allocation2 + $0x50] sm:$0xff]  ;;  %13586 = vmatprep.subr.bf16.mxu0 %v18670_v3  ;;  %1133 = vst [vmem:[#allocation2 + $0x63] sm:$0xff] %v1092_v27  ;;  %1154 = vst [vmem:[#allocation2 + $0x10b] sm:$0xff] %v1113_v31  ;;  %v847_v41 = vmax.f32 %v647_v24, %v806_v33  ;;  %v652_v43 = vadd.f32 %v14622_v10, %v651_v35  ;;  %v757_v54 = vadd.f32 %v14622_v10, %v756_v36  ;;  %v10257_v49 = vpop.f32.mrb[25].mxu0  ;;  %v10320_v55 = vpop.f32.mrb[25].mxu1 }
 0x134   : > { %v868_v42 = vmax.f32 %v752_v25, %v827_v34  ;;  %10405 = vmatmul.mubr.f32.gmra.mrb[60].mxu1 %v1231_v37  ;;  %10560 = vmatmul.mubr.f32.gmra.mrb[62].mxu0 %v1174_v40  ;;  %v14812_v27 = vpop.permute.xlu1 %1044 }
 0x135   : > { %10407 = vmatprep.mubr.msk.f32.mxu1 %vm14006_vm0, %v14688_v17  ;;  %v1093_v0 = vmul.f32 %v14596_v61, %v847_v41  ;;  %v807_v12 = vmul.f32 0.1, %v652_v43  ;;  %v828_v13 = vmul.f32 0.1, %v757_v54  ;;  %10562 = vmatprep.mubr.msk.f32.mxu0 %vm14006_vm0, %v14688_v17  ;;  %18738 = vst [vmem:[#allocation33_spill] sm:$0xff] %v14812_v27 }
 0x136   : > { %v1114_v2 = vmul.f32 %v14802_v1, %v868_v42  ;;  %v656_v14 = vpop.f32.mrb[26].mxu0  ;;  %v761_v6 = vpop.f32.mrb[26].mxu1  ;;  %v1232_v15 = vld [vmem:[#allocation2 + $0x59] sm:$0xff] }
 0x137   : > { %v1175_v19 = vld [vmem:[#allocation2 + $0x58] sm:$0xff]  ;;  %1134 = vst [vmem:[#allocation2 + $0x6b] sm:$0xff] %v1093_v0  ;;  %v848_v21 = vmax.f32 %v652_v43, %v807_v12  ;;  %v869_v22 = vmax.f32 %v757_v54, %v828_v13  ;;  %v657_v24 = vadd.f32 %v14622_v10, %v656_v14  ;;  %v762_v25 = vadd.f32 %v14622_v10, %v761_v6  ;;  %v10260_v28 = vpop.f32.mrb[27].mxu0  ;;  %v10323_v29 = vpop.f32.mrb[27].mxu1 }
 0x138   : > { %1155 = vst [vmem:[#allocation2 + $0x113] sm:$0xff] %v1114_v2  ;;  %10408 = vmatmul.mubr.f32.gmra.mrb[62].mxu1 %v1232_v15  ;;  %10563 = vmatmul.mubr.f32.gmra.mrb[64].mxu0 %v1175_v19  ;;  %v14822_v2 = vpop.permute.xlu0 %1049 }
 0x139   : > { %10410 = vmatprep.mubr.msk.f32.mxu1 %vm14006_vm0, %v14688_v17  ;;  %v1094_v31 = vmul.f32 %v14598_v62, %v848_v21  ;;  %v1115_v33 = vmul.f32 %v14812_v27, %v869_v22  ;;  %v808_v34 = vmul.f32 0.1, %v657_v24  ;;  %v829_v35 = vmul.f32 0.1, %v762_v25  ;;  %10565 = vmatprep.mubr.msk.f32.mxu0 %vm14006_vm0, %v14688_v17  ;;  %18739 = vst [vmem:[#allocation34_spill] sm:$0xff] %v14822_v2 }
 0x13a   : > { %v661_v36 = vpop.f32.mrb[28].mxu0  ;;  %v766_v37 = vpop.f32.mrb[28].mxu1  ;;  %v1233_v40 = vld [vmem:[#allocation2 + $0x61] sm:$0xff] }
 0x13b   : > { %v1176_v41 = vld [vmem:[#allocation2 + $0x60] sm:$0xff]  ;;  %1135 = vst [vmem:[#allocation2 + $0x73] sm:$0xff] %v1094_v31  ;;  %1156 = vst [vmem:[#allocation2 + $0x11b] sm:$0xff] %v1115_v33  ;;  %v849_v42 = vmax.f32 %v657_v24, %v808_v34  ;;  %v870_v43 = vmax.f32 %v762_v25, %v829_v35  ;;  %v662_v54 = vadd.f32 %v14622_v10, %v661_v36  ;;  %v10263_v55 = vpop.f32.mrb[29].mxu0  ;;  %v10326_v0 = vpop.f32.mrb[29].mxu1 }
 0x13c   : > { %v767_v49 = vadd.f32 %v14622_v10, %v766_v37  ;;  %10411 = vmatmul.mubr.f32.gmra.mrb[64].mxu1 %v1233_v40  ;;  %10566 = vmatmul.mubr.f32.gmra.mrb[66].mxu0 %v1176_v41  ;;  %v14832_v34 = vpop.permute.xlu1 %1054  ;;  %v2564_v61 = vld [vmem:[#allocation2 + $0x63] sm:$0xff] }
 0x13d   : > { %10413 = vmatprep.mubr.msk.f32.mxu1 %vm14006_vm0, %v14688_v17  ;;  %v1095_v12 = vmul.f32 %v14600_v63, %v849_v42  ;;  %v1116_v13 = vmul.f32 %v14822_v2, %v870_v43  ;;  %v809_v14 = vmul.f32 0.1, %v662_v54  ;;  %10568 = vmatprep.mubr.msk.f32.mxu0 %vm14006_vm0, %v14688_v17  ;;  %18740 = vst [vmem:[#allocation35_spill] sm:$0xff] %v14832_v34 }
 0x13e   : > { %v830_v6 = vmul.f32 0.1, %v767_v49  ;;  %v666_v15 = vpop.f32.mrb[30].mxu0  ;;  %v771_v19 = vpop.f32.mrb[30].mxu1  ;;  %v1234_v21 = vld [vmem:[#allocation2 + $0x69] sm:$0xff] }
 0x13f   : > { %v1177_v22 = vld [vmem:[#allocation2 + $0x68] sm:$0xff]  ;;  %1136 = vst [vmem:[#allocation2 + $0x7b] sm:$0xff] %v1095_v12  ;;  %1157 = vst [vmem:[#allocation2 + $0x123] sm:$0xff] %v1116_v13  ;;  %v850_v24 = vmax.f32 %v662_v54, %v809_v14  ;;  %v667_v28 = vadd.f32 %v14622_v10, %v666_v15  ;;  %v772_v29 = vadd.f32 %v14622_v10, %v771_v19  ;;  %v10266_v31 = vpop.f32.mrb[31].mxu0  ;;  %v10329_v33 = vpop.f32.mrb[31].mxu1 }
 0x140   : > { %v871_v25 = vmax.f32 %v767_v49, %v830_v6  ;;  %10414 = vmatmul.mubr.f32.gmra.mrb[66].mxu1 %v1234_v21  ;;  %10569 = vmatmul.mubr.f32.gmra.mrb[68].mxu0 %v1177_v22  ;;  %v14842_v6 = vpop.permute.xlu0 %1059 }
 0x141   : > { %10416 = vmatprep.mubr.msk.f32.mxu1 %vm14006_vm0, %v14688_v17  ;;  %v1096_v35 = vmul.f32 %v14608_v4, %v850_v24  ;;  %v810_v37 = vmul.f32 0.1, %v667_v28  ;;  %v831_v40 = vmul.f32 0.1, %v772_v29  ;;  %10571 = vmatprep.mubr.msk.f32.mxu0 %vm14006_vm0, %v14688_v17  ;;  %18741 = vst [vmem:[#allocation36_spill] sm:$0xff] %v14842_v6  ;;  %v2559_v4 = vld [vmem:[#allocation2 + $0x3b] sm:$0xff] }
 0x142   : > { %v1117_v36 = vmul.f32 %v14832_v34, %v871_v25  ;;  %v671_v41 = vpop.f32.mrb[32].mxu0  ;;  %v776_v42 = vpop.f32.mrb[32].mxu1  ;;  %v1235_v43 = vld [vmem:[#allocation2 + $0x71] sm:$0xff] }
 0x143   : > { %v1178_v54 = vld [vmem:[#allocation2 + $0x70] sm:$0xff]  ;;  %1137 = vst [vmem:[#allocation2 + $0x83] sm:$0xff] %v1096_v35  ;;  %v851_v49 = vmax.f32 %v667_v28, %v810_v37  ;;  %v872_v55 = vmax.f32 %v772_v29, %v831_v40  ;;  %v672_v0 = vadd.f32 %v14622_v10, %v671_v41  ;;  %v777_v12 = vadd.f32 %v14622_v10, %v776_v42  ;;  %v10269_v13 = vpop.f32.mrb[33].mxu0  ;;  %v10332_v14 = vpop.f32.mrb[33].mxu1 }
 0x144   : > { %1158 = vst [vmem:[#allocation2 + $0x12b] sm:$0xff] %v1117_v36  ;;  %10417 = vmatmul.mubr.f32.gmra.mrb[68].mxu1 %v1235_v43  ;;  %10572 = vmatmul.mubr.f32.gmra.mrb[70].mxu0 %v1178_v54  ;;  %v14852_v41 = vpop.permute.xlu1 %1064 }
 0x145   : > { %10419 = vmatprep.mubr.msk.f32.mxu1 %vm14006_vm0, %v14688_v17  ;;  %v1097_v15 = vmul.f32 %v14610_v5, %v851_v49  ;;  %v1118_v19 = vmul.f32 %v14842_v6, %v872_v55  ;;  %v811_v21 = vmul.f32 0.1, %v672_v0  ;;  %v832_v22 = vmul.f32 0.1, %v777_v12  ;;  %10574 = vmatprep.mubr.msk.f32.mxu0 %vm14006_vm0, %v14688_v17  ;;  %18742 = vst [vmem:[#allocation37_spill] sm:$0xff] %v14852_v41 }
 0x146   : > { %v676_v24 = vpop.f32.mrb[34].mxu0  ;;  %v781_v25 = vpop.f32.mrb[34].mxu1  ;;  %v1236_v28 = vld [vmem:[#allocation2 + $0x79] sm:$0xff] }
 0x147   : > { %v1179_v29 = vld [vmem:[#allocation2 + $0x78] sm:$0xff]  ;;  %1138 = vst [vmem:[#allocation2 + $0x8b] sm:$0xff] %v1097_v15  ;;  %1159 = vst [vmem:[#allocation2 + $0x133] sm:$0xff] %v1118_v19  ;;  %v852_v31 = vmax.f32 %v672_v0, %v811_v21  ;;  %v873_v33 = vmax.f32 %v777_v12, %v832_v22  ;;  %v677_v35 = vadd.f32 %v14622_v10, %v676_v24  ;;  %v10272_v37 = vpop.f32.mrb[35].mxu0  ;;  %v10335_v40 = vpop.f32.mrb[35].mxu1 }
 0x148   : > { %v782_v36 = vadd.f32 %v14622_v10, %v781_v25  ;;  %10420 = vmatmul.mubr.f32.gmra.mrb[70].mxu1 %v1236_v28  ;;  %10575 = vmatmul.mubr.f32.gmra.mrb[72].mxu0 %v1179_v29  ;;  %v14862_v25 = vpop.permute.xlu0 %1069 }
 0x149   : > { %10422 = vmatprep.mubr.msk.f32.mxu1 %vm14006_vm0, %v14688_v17  ;;  %v1098_v42 = vmul.f32 %v14613_v7, %v852_v31  ;;  %v1119_v43 = vmul.f32 %v14852_v41, %v873_v33  ;;  %v812_v54 = vmul.f32 0.1, %v677_v35  ;;  %10577 = vmatprep.mubr.msk.f32.mxu0 %vm14006_vm0, %v14688_v17  ;;  %18743 = vst [vmem:[#allocation38_spill] sm:$0xff] %v14862_v25 }
 0x14a   : > { %v833_v49 = vmul.f32 0.1, %v782_v36  ;;  %v681_v55 = vpop.f32.mrb[36].mxu0  ;;  %v786_v0 = vpop.f32.mrb[36].mxu1  ;;  %v1237_v12 = vld [vmem:[#allocation2 + $0x81] sm:$0xff] }
 0x14b   : > { %v1180_v13 = vld [vmem:[#allocation2 + $0x80] sm:$0xff]  ;;  %1139 = vst [vmem:[#allocation2 + $0x93] sm:$0xff] %v1098_v42  ;;  %1160 = vst [vmem:[#allocation2 + $0x13b] sm:$0xff] %v1119_v43  ;;  %v853_v14 = vmax.f32 %v677_v35, %v812_v54  ;;  %v682_v19 = vadd.f32 %v14622_v10, %v681_v55  ;;  %v787_v21 = vadd.f32 %v14622_v10, %v786_v0  ;;  %v10275_v22 = vpop.f32.mrb[37].mxu0  ;;  %v10338_v24 = vpop.f32.mrb[37].mxu1 }
 0x14c   : > { %v874_v15 = vmax.f32 %v782_v36, %v833_v49  ;;  %10423 = vmatmul.mubr.f32.gmra.mrb[72].mxu1 %v1237_v12  ;;  %10578 = vmatmul.mubr.f32.gmra.mrb[74].mxu0 %v1180_v13  ;;  %v14872_v12 = vpop.permute.xlu1 %1074 }
 0x14d   : > { %10425 = vmatprep.mubr.msk.f32.mxu1 %vm14006_vm0, %v14688_v17  ;;  %v1099_v28 = vmul.f32 %v14615_v8, %v853_v14  ;;  %v813_v31 = vmul.f32 0.1, %v682_v19  ;;  %v834_v33 = vmul.f32 0.1, %v787_v21  ;;  %10580 = vmatprep.mubr.msk.f32.mxu0 %vm14006_vm0, %v14688_v17  ;;  %18744 = vst [vmem:[#allocation39_spill] sm:$0xff] %v14872_v12 }
 0x14e   : > { %v1120_v29 = vmul.f32 %v14862_v25, %v874_v15  ;;  %v686_v35 = vpop.f32.mrb[38].mxu0  ;;  %v791_v36 = vpop.f32.mrb[38].mxu1  ;;  %v1238_v37 = vld [vmem:[#allocation2 + $0x89] sm:$0xff] }
 0x14f   : > { %v1181_v40 = vld [vmem:[#allocation2 + $0x88] sm:$0xff]  ;;  %1140 = vst [vmem:[#allocation2 + $0x9b] sm:$0xff] %v1099_v28  ;;  %v854_v42 = vmax.f32 %v682_v19, %v813_v31  ;;  %v875_v43 = vmax.f32 %v787_v21, %v834_v33  ;;  %v687_v54 = vadd.f32 %v14622_v10, %v686_v35  ;;  %v792_v49 = vadd.f32 %v14622_v10, %v791_v36  ;;  %v10278_v55 = vpop.f32.mrb[39].mxu0  ;;  %v10341_v0 = vpop.f32.mrb[39].mxu1 }
 0x150   : > { %1161 = vst [vmem:[#allocation2 + $0x143] sm:$0xff] %v1120_v29  ;;  %10426 = vmatmul.mubr.f32.gmra.mrb[74].mxu1 %v1238_v37  ;;  %10581 = vmatmul.mubr.f32.gmra.mrb[76].mxu0 %v1181_v40  ;;  %v14881_v35 = vpop.permute.xlu0 %1079 }
 0x151   : > { %10428 = vmatprep.mubr.msk.f32.mxu1 %vm14006_vm0, %v14688_v17  ;;  %v1100_v13 = vmul.f32 %v14617_v9, %v854_v42  ;;  %v1121_v14 = vmul.f32 %v14872_v12, %v875_v43  ;;  %v814_v15 = vmul.f32 0.1, %v687_v54  ;;  %v835_v19 = vmul.f32 0.1, %v792_v49  ;;  %10583 = vmatprep.mubr.msk.f32.mxu0 %vm14006_vm0, %v14688_v17  ;;  %18745 = vst [vmem:[#allocation40_spill] sm:$0xff] %v14881_v35 }
 0x152   : > { %v691_v21 = vpop.f32.mrb[40].mxu0  ;;  %v1239_v22 = vld [vmem:[#allocation2 + $0x91] sm:$0xff]  ;;  %v1344_v0 = vpop.f32.mrb[40].mxu1 }
 0x153   : > { %v1182_v24 = vld [vmem:[#allocation2 + $0x90] sm:$0xff]  ;;  %1141 = vst [vmem:[#allocation2 + $0xa3] sm:$0xff] %v1100_v13  ;;  %1162 = vst [vmem:[#allocation2 + $0x14b] sm:$0xff] %v1121_v14  ;;  %v855_v28 = vmax.f32 %v687_v54, %v814_v15  ;;  %v876_v29 = vmax.f32 %v792_v49, %v835_v19  ;;  %v692_v31 = vadd.f32 %v14622_v10, %v691_v21  ;;  %v10281_v33 = vpop.f32.mrb[41].mxu0  ;;  %v10376_v15 = vpop.f32.mrb[41].mxu1 }
 0x154   : > { %10429 = vmatmul.mubr.f32.gmra.mrb[76].mxu1 %v1239_v22  ;;  %10584 = vmatmul.mubr.f32.gmra.mrb[78].mxu0 %v1182_v24  ;;  %v1249_v15 = vld [vmem:[#allocation2 + $0xe1] sm:$0xff] }
 0x155   : > { %10431 = vmatprep.mubr.msk.f32.mxu1 %vm14006_vm0, %v14688_v17  ;;  %v1101_v36 = vmul.f32 %v14624_v11, %v855_v28  ;;  %v1122_v37 = vmul.f32 %v14881_v35, %v876_v29  ;;  %v815_v40 = vmul.f32 0.1, %v692_v31  ;;  %10586 = vmatprep.mubr.msk.f32.mxu0 %vm14006_vm0, %v14688_v17 }
 0x156   : > { %v1240_v42 = vld [vmem:[#allocation2 + $0x99] sm:$0xff]  ;;  %v1614_v19 = vpop.f32.mrb[42].mxu0  ;;  %v1349_v24 = vpop.f32.mrb[42].mxu1 }
 0x157   : > { %v1183_v43 = vld [vmem:[#allocation2 + $0x98] sm:$0xff]  ;;  %1142 = vst [vmem:[#allocation2 + $0xab] sm:$0xff] %v1101_v36  ;;  %1163 = vst [vmem:[#allocation2 + $0x153] sm:$0xff] %v1122_v37  ;;  %v856_v10 = vmax.f32 %v692_v31, %v815_v40  ;;  %v14898_v21 = vadd.f32 %v1614_v19, %v1344_v0  ;;  %v10531_v22 = vpop.f32.mrb[43].mxu0  ;;  %v10379_v31 = vpop.f32.mrb[43].mxu1  ;;  %v1190_v0 = vld [vmem:[#allocation2 + $0xd0] sm:$0xff] }
 0x158   : > { %10432 = vmatmul.mubr.f32.gmra.mrb[78].mxu1 %v1240_v42  ;;  %10587 = vmatmul.mubr.f32.gmra.mrb[80].mxu0 %v1183_v43  ;;  %v1245_v43 = vld [vmem:[#allocation2 + $0xc1] sm:$0xff]  ;;  %v1250_v22 = vld [vmem:[#allocation2 + $0xe9] sm:$0xff]  ;;  %v1252_v31 = vld [vmem:[#allocation2 + $0xf9] sm:$0xff] }
 0x159   : > { %10434 = vmatprep.mubr.msk.f32.mxu1 %vm14006_vm0, %v14688_v17  ;;  %v1102_v54 = vmul.f32 %v14628_v18, %v856_v10  ;;  %10589 = vmatprep.mubr.msk.f32.mxu0 %vm14006_vm0, %v14688_v17  ;;  %v1188_v10 = vld [vmem:[#allocation2 + $0xc0] sm:$0xff]  ;;  %v18746_v18 = vmov 0.0|0.0  }
 0x15a   : > { %v1241_v49 = vld [vmem:[#allocation2 + $0xa1] sm:$0xff]  ;;  %v1619_v33 = vpop.f32.mrb[44].mxu0 }
 0x15b   : > { %v1184_v55 = vld [vmem:[#allocation2 + $0xa0] sm:$0xff]  ;;  %1143 = vst [vmem:[#allocation2 + $0xb3] sm:$0xff] %v1102_v54  ;;  %v14904_v36 = vadd.f32 %v1619_v33, %v1349_v24  ;;  %v10534_v37 = vpop.f32.mrb[45].mxu0  ;;  %v1246_v54 = vld [vmem:[#allocation2 + $0xc9] sm:$0xff]  ;;  %v1195_v33 = vld [vmem:[#allocation2 + $0xf8] sm:$0xff] }
 0x15c   : > { %10435 = vmatmul.mubr.f32.gmra.mrb[80].mxu1 %v1241_v49  ;;  %10590 = vmatmul.mubr.f32.gmra.mrb[82].mxu0 %v1184_v55  ;;  %v1189_v49 = vld [vmem:[#allocation2 + $0xc8] sm:$0xff]  ;;  %v1247_v55 = vld [vmem:[#allocation2 + $0xd1] sm:$0xff]  ;;  %v1192_v19 = vld [vmem:[#allocation2 + $0xe0] sm:$0xff] }
 0x15d   : > { %10437 = vmatprep.mubr.msk.f32.mxu1 %vm14006_vm0, %v14688_v17  ;;  %10592 = vmatprep.mubr.msk.f32.mxu0 %vm14006_vm0, %v14688_v17  ;;  %v1193_v24 = vld [vmem:[#allocation2 + $0xe8] sm:$0xff] }
 0x15e   : > { %v1242_v13 = vld [vmem:[#allocation2 + $0xa9] sm:$0xff]  ;;  %v1253_v37 = vld [vmem:[#allocation2 + $0x101] sm:$0xff] }
 0x15f   : > { %v1185_v14 = vld [vmem:[#allocation2 + $0xa8] sm:$0xff] }
 0x160   : > { %10438 = vmatmul.mubr.f32.gmra.mrb[82].mxu1 %v1242_v13  ;;  %10593 = vmatmul.mubr.f32.gmra.mrb[84].mxu0 %v1185_v14  ;;  %v1248_v13 = vld [vmem:[#allocation2 + $0xd9] sm:$0xff] }
 0x161   : > { %10440 = vmatprep.mubr.msk.f32.mxu1 %vm14006_vm0, %v14688_v17  ;;  %10595 = vmatprep.mubr.msk.f32.mxu0 %vm14006_vm0, %v14688_v17  ;;  %v1191_v14 = vld [vmem:[#allocation2 + $0xd8] sm:$0xff] }
 0x162   : > { %v1243_v28 = vld [vmem:[#allocation2 + $0xb1] sm:$0xff]  ;;  %v1244_v40 = vld [vmem:[#allocation2 + $0xb9] sm:$0xff] }
 0x163   : > { %v1186_v29 = vld [vmem:[#allocation2 + $0xb0] sm:$0xff]  ;;  %v1187_v42 = vld [vmem:[#allocation2 + $0xb8] sm:$0xff] }
 0x164   : > { %10441 = vmatmul.mubr.f32.gmra.mrb[84].mxu1 %v1243_v28  ;;  %10596 = vmatmul.mubr.f32.gmra.mrb[86].mxu0 %v1186_v29  ;;  %v1251_v28 = vld [vmem:[#allocation2 + $0xf1] sm:$0xff] }
 0x165   : > { %10443 = vmatprep.mubr.msk.f32.mxu1 %vm14006_vm0, %v14688_v17  ;;  %10598 = vmatprep.mubr.msk.f32.mxu0 %vm14006_vm0, %v14688_v17  ;;  %v1194_v29 = vld [vmem:[#allocation2 + $0xf0] sm:$0xff] }
 0x168   : > { %10444 = vmatmul.mubr.f32.gmra.mrb[86].mxu1 %v1244_v40  ;;  %10599 = vmatmul.mubr.f32.gmra.mrb[88].mxu0 %v1187_v42  ;;  %v1196_v40 = vld [vmem:[#allocation2 + $0x100] sm:$0xff]  ;;  %v1254_v42 = vld [vmem:[#allocation2 + $0x109] sm:$0xff] }
 0x169   : > { %10446 = vmatprep.mubr.msk.f32.mxu1 %vm14006_vm0, %v14688_v17  ;;  %10601 = vmatprep.mubr.msk.f32.mxu0 %vm14006_vm0, %v14688_v17 }
 0x16c   : > { %10447 = vmatmul.mubr.f32.gmra.mrb[88].mxu1 %v1245_v43  ;;  %10602 = vmatmul.mubr.f32.gmra.mrb[90].mxu0 %v1188_v10  ;;  %v1197_v43 = vld [vmem:[#allocation2 + $0x108] sm:$0xff]  ;;  %v1255_v10 = vld [vmem:[#allocation2 + $0x111] sm:$0xff] }
 0x16d   : > { %10449 = vmatprep.mubr.msk.f32.mxu1 %vm14006_vm0, %v14688_v17  ;;  %10604 = vmatprep.mubr.msk.f32.mxu0 %vm14006_vm0, %v14688_v17 }
 0x170   : > { %10450 = vmatmul.mubr.f32.gmra.mrb[90].mxu1 %v1246_v54  ;;  %10605 = vmatmul.mubr.f32.gmra.mrb[92].mxu0 %v1189_v49  ;;  %v1198_v54 = vld [vmem:[#allocation2 + $0x110] sm:$0xff]  ;;  %v1256_v49 = vld [vmem:[#allocation2 + $0x119] sm:$0xff] }
 0x171   : > { %10452 = vmatprep.mubr.msk.f32.mxu1 %vm14006_vm0, %v14688_v17  ;;  %10607 = vmatprep.mubr.msk.f32.mxu0 %vm14006_vm0, %v14688_v17 }
 0x174   : > { %10453 = vmatmul.mubr.f32.gmra.mrb[92].mxu1 %v1247_v55  ;;  %10608 = vmatmul.mubr.f32.gmra.mrb[94].mxu0 %v1190_v0  ;;  %v1199_v55 = vld [vmem:[#allocation2 + $0x118] sm:$0xff]  ;;  %v1257_v0 = vld [vmem:[#allocation2 + $0x121] sm:$0xff] }
 0x175   : > { %10455 = vmatprep.mubr.msk.f32.mxu1 %vm14006_vm0, %v14688_v17  ;;  %10610 = vmatprep.mubr.msk.f32.mxu0 %vm14006_vm0, %v14688_v17 }
 0x178   : > { %10456 = vmatmul.mubr.f32.gmra.mrb[94].mxu1 %v1248_v13  ;;  %10611 = vmatmul.mubr.f32.gmra.mrb[96].mxu0 %v1191_v14  ;;  %v1200_v13 = vld [vmem:[#allocation2 + $0x120] sm:$0xff]  ;;  %v1258_v14 = vld [vmem:[#allocation2 + $0x129] sm:$0xff] }
 0x179   : > { %10458 = vmatprep.mubr.msk.f32.mxu1 %vm14006_vm0, %v14688_v17  ;;  %10613 = vmatprep.mubr.msk.f32.mxu0 %vm14006_vm0, %v14688_v17 }
 0x17c   : > { %10459 = vmatmul.mubr.f32.gmra.mrb[96].mxu1 %v1249_v15  ;;  %10614 = vmatmul.mubr.f32.gmra.mrb[98].mxu0 %v1192_v19  ;;  %v1201_v15 = vld [vmem:[#allocation2 + $0x128] sm:$0xff]  ;;  %v1259_v19 = vld [vmem:[#allocation2 + $0x131] sm:$0xff] }
 0x17d   : > { %10461 = vmatprep.mubr.msk.f32.mxu1 %vm14006_vm0, %v14688_v17  ;;  %10616 = vmatprep.mubr.msk.f32.mxu0 %vm14006_vm0, %v14688_v17 }
 0x180   : > { %10462 = vmatmul.mubr.f32.gmra.mrb[98].mxu1 %v1250_v22  ;;  %10617 = vmatmul.mubr.f32.gmra.mrb[100].mxu0 %v1193_v24  ;;  %v1202_v22 = vld [vmem:[#allocation2 + $0x130] sm:$0xff]  ;;  %v1260_v24 = vld [vmem:[#allocation2 + $0x139] sm:$0xff] }
 0x181   : > { %10464 = vmatprep.mubr.msk.f32.mxu1 %vm14006_vm0, %v14688_v17  ;;  %10619 = vmatprep.mubr.msk.f32.mxu0 %vm14006_vm0, %v14688_v17 }
 0x184   : > { %10465 = vmatmul.mubr.f32.gmra.mrb[100].mxu1 %v1251_v28  ;;  %10620 = vmatmul.mubr.f32.gmra.mrb[102].mxu0 %v1194_v29  ;;  %v1203_v28 = vld [vmem:[#allocation2 + $0x138] sm:$0xff]  ;;  %v2595_v29 = vld [vmem:[%s18661_s4 + $0x200] sm:$0xff] }
 0x185   : > { %10467 = vmatprep.mubr.msk.f32.mxu1 %vm14006_vm0, %v14688_v17  ;;  %10622 = vmatprep.mubr.msk.f32.mxu0 %vm14006_vm0, %v14688_v17 }
 0x188   : > { %10468 = vmatmul.mubr.f32.gmra.mrb[102].mxu1 %v1252_v31  ;;  %10623 = vmatmul.mubr.f32.gmra.mrb[104].mxu0 %v1195_v33  ;;  %v2596_v31 = vld [vmem:[%s18661_s4 + $0x208] sm:$0xff] }
 0x189   : > { %10470 = vmatprep.mubr.msk.f32.mxu1 %vm14006_vm0, %v14688_v17  ;;  %10625 = vmatprep.mubr.msk.f32.mxu0 %vm14006_vm0, %v14688_v17  ;;  %v1261_v33 = vld [vmem:[#allocation2 + $0x141] sm:$0xff] }
 0x18c   : > { %10471 = vmatmul.mubr.f32.gmra.mrb[104].mxu1 %v1253_v37  ;;  %10626 = vmatmul.mubr.f32.gmra.mrb[106].mxu0 %v1196_v40  ;;  %v1204_v37 = vld [vmem:[#allocation2 + $0x140] sm:$0xff] }
 0x18d   : > { %10473 = vmatprep.mubr.msk.f32.mxu1 %vm14006_vm0, %v14688_v17  ;;  %10628 = vmatprep.mubr.msk.f32.mxu0 %vm14006_vm0, %v14688_v17  ;;  %v1818_v40 = vld [vmem:[#allocation2 + $0x2] sm:$0xff] }
 0x190   : > { %10474 = vmatmul.mubr.f32.gmra.mrb[106].mxu1 %v1254_v42  ;;  %10629 = vmatmul.mubr.f32.gmra.mrb[108].mxu0 %v1197_v43  ;;  %v13563_v42 = vpack.c.bf16 %v2596_v31, %v2595_v29  ;;  %v2597_v43 = vld [vmem:[%s18661_s4 + $0x210] sm:$0xff]  ;;  %v2602_v29 = vld [vmem:[%s18661_s4 + $0x238] sm:$0xff]  ;;  %v2188_v31 = vld [vmem:[#allocation2 + $0x22] sm:$0xff] }
 0x191   : > { %10476 = vmatprep.mubr.msk.f32.mxu1 %vm14006_vm0, %v14688_v17  ;;  %10631 = vmatprep.mubr.msk.f32.mxu0 %vm14006_vm0, %v14688_v17 }
 0x194   : > { %10477 = vmatmul.mubr.f32.gmra.mrb[108].mxu1 %v1255_v10  ;;  %10632 = vmatmul.mubr.f32.gmra.mrb[110].mxu0 %v1198_v54  ;;  %v2598_v10 = vld [vmem:[%s18661_s4 + $0x218] sm:$0xff] }
 0x195   : > { %10479 = vmatprep.mubr.msk.f32.mxu1 %vm14006_vm0, %v14688_v17  ;;  %10634 = vmatprep.mubr.msk.f32.mxu0 %vm14006_vm0, %v14688_v17  ;;  %v2186_v54 = vld [vmem:[#allocation2 + $0x12] sm:$0xff] }
 0x198   : > { %10480 = vmatmul.mubr.f32.gmra.mrb[110].mxu1 %v1256_v49  ;;  %10635 = vmatmul.mubr.f32.gmra.mrb[112].mxu0 %v1199_v55  ;;  %v1819_v49 = vld [vmem:[#allocation2 + $0xa] sm:$0xff]  ;;  %v13566_v55 = vpack.c.bf16 %v2598_v10, %v2597_v43  ;;  %v2603_v43 = vld [vmem:[%s18661_s4 + $0x240] sm:$0xff] }
 0x199   : > { %10482 = vmatprep.mubr.msk.f32.mxu1 %vm14006_vm0, %v14688_v17  ;;  %10637 = vmatprep.mubr.msk.f32.mxu0 %vm14006_vm0, %v14688_v17  ;;  %v2604_v10 = vld [vmem:[%s18661_s4 + $0x248] sm:$0xff] }
 0x19c   : > { %10483 = vmatmul.mubr.f32.gmra.mrb[112].mxu1 %v1257_v0  ;;  %10638 = vmatmul.mubr.f32.gmra.mrb[114].mxu0 %v1200_v13  ;;  %v2599_v0 = vld [vmem:[%s18661_s4 + $0x220] sm:$0xff]  ;;  %v2600_v13 = vld [vmem:[%s18661_s4 + $0x228] sm:$0xff] }
 0x19d   : > { %10485 = vmatprep.mubr.msk.f32.mxu1 %vm14006_vm0, %v14688_v17  ;;  %10640 = vmatprep.mubr.msk.f32.mxu0 %vm14006_vm0, %v14688_v17 }
 0x1a0   : > { %10486 = vmatmul.mubr.f32.gmra.mrb[114].mxu1 %v1258_v14  ;;  %10641 = vmatmul.mubr.f32.gmra.mrb[116].mxu0 %v1201_v15  ;;  %v2187_v14 = vld [vmem:[#allocation2 + $0x1a] sm:$0xff] }
 0x1a1   : > { %10488 = vmatprep.mubr.msk.f32.mxu1 %vm14006_vm0, %v14688_v17  ;;  %10643 = vmatprep.mubr.msk.f32.mxu0 %vm14006_vm0, %v14688_v17  ;;  %v15005_v15 = vld [vmem:[#allocation2] sm:$0xff] }
 0x1a4   : > { %10489 = vmatmul.mubr.f32.gmra.mrb[116].mxu1 %v1259_v19  ;;  %10644 = vmatmul.mubr.f32.gmra.mrb[118].mxu0 %v1202_v22  ;;  %v2964_v19 = vld [vmem:[%s18661_s4 + $0x288] sm:$0xff]  ;;  %v13569_v22 = vpack.c.bf16 %v2600_v13, %v2599_v0  ;;  %v13575_v0 = vpack.c.bf16 %v2604_v10, %v2603_v43  ;;  %v2609_v10 = vld [vmem:[%s18661_s4 + $0x270] sm:$0xff] }
 0x1a5   : > { %10491 = vmatprep.mubr.msk.f32.mxu1 %vm14006_vm0, %v14688_v17  ;;  %10646 = vmatprep.mubr.msk.f32.mxu0 %vm14006_vm0, %v14688_v17 }
 0x1a8   : > { %10492 = vmatmul.mubr.f32.gmra.mrb[118].mxu1 %v1260_v24  ;;  %10647 = vmatmul.mubr.f32.gmra.mrb[120].mxu0 %v1203_v28  ;;  %v2601_v28 = vld [vmem:[%s18661_s4 + $0x230] sm:$0xff] }
 0x1a9   : > { %10494 = vmatprep.mubr.msk.f32.mxu1 %vm14006_vm0, %v14688_v17  ;;  %10649 = vmatprep.mubr.msk.f32.mxu0 %vm14006_vm0, %v14688_v17 }
 0x1ac   : > { %10495 = vmatmul.mubr.f32.gmra.mrb[120].mxu1 %v1261_v33  ;;  %10650 = vmatmul.mubr.f32.gmra.mrb[122].mxu0 %v1204_v37  ;;  %v2965_v33 = vld [vmem:[%s18661_s4 + $0x290] sm:$0xff]  ;;  %v2966_v37 = vld [vmem:[%s18661_s4 + $0x298] sm:$0xff] }
 0x1ad   : > { %10684 = vmatprep.mubr.msk.f32.mxu1 %vm14006_vm0, %v14688_v17  ;;  %10839 = vmatprep.mubr.msk.f32.mxu0 %vm14006_vm0, %v14688_v17 }
 0x1b0   : > { %10685 = vmatmul.mubr.f32.vlgmr.msra.gmra.mrb[122].mxu1 %v1818_v40  ;;  %10840 = vmatmul.mubr.f32.vlgmr.msra.gmra.mrb[124].mxu0 %v2186_v54  ;;  %v13572_v40 = vpack.c.bf16 %v2602_v29, %v2601_v28  ;;  %v2970_v28 = vld [vmem:[%s18661_s4 + $0x2b8] sm:$0xff]  ;;  %v2607_v29 = vld [vmem:[%s18661_s4 + $0x260] sm:$0xff] }
 0x1b1   : > { %13564 = vmatpush3.bf16.msra.mxu1 %v13563_v42  ;;  %10687 = vmatprep.mubr.msk.f32.mxu1 %vm14006_vm0, %v14688_v17  ;;  %v13590_v42 = vpack.c.bf16 %v2966_v37, %v2965_v33  ;;  %v2191_v37 = vld [vmem:[#allocation2 + $0x3a] sm:$0xff] }
 0x1b2   : > { %10842 = vmatprep.mubr.msk.f32.mxu0 %vm14006_vm0, %v14688_v17  ;;  %13565 = vmatprep.subr.bf16.mxu1 %v18670_v3  ;;  %v2963_v17 = vld [vmem:[%s18661_s4 + $0x280] sm:$0xff] }
 0x1b3   : > { %v13587_v24 = vpack.c.bf16 %v2964_v19, %v2963_v17  ;;  %v2606_v17 = vld [vmem:[%s18661_s4 + $0x258] sm:$0xff] }
 0x1b4   : > { %10688 = vmatmul.mubr.f32.gmra.mrb[124].mxu1 %v1819_v49  ;;  %10843 = vmatmul.mubr.f32.gmra.mrb[126].mxu0 %v2187_v14  ;;  %v2967_v49 = vld [vmem:[%s18661_s4 + $0x2a0] sm:$0xff]  ;;  %v2190_v19 = vld [vmem:[#allocation2 + $0x32] sm:$0xff] }
 0x1b5   : > { %10690 = vmatprep.mubr.msk.f32.mxu1 %vm14006_vm0, %v15005_v15  ;;  %10845 = vmatprep.mubr.msk.f32.mxu0 %vm14006_vm0, %v15005_v15 }
 0x1b6   : > { %13567 = vmatpush3.bf16.msra.mxu1 %v13566_v55  ;;  %13588 = vmatpush3.bf16.msra.mxu0 %v13587_v24  ;;  %v2968_v55 = vld [vmem:[%s18661_s4 + $0x2a8] sm:$0xff] }
 0x1b7   : > { %13568 = vmatprep.subr.bf16.mxu1 %v18670_v3  ;;  %13589 = vmatprep.subr.bf16.mxu0 %v18670_v3  ;;  %v13593_v13 = vpack.c.bf16 %v2968_v55, %v2967_v49  ;;  %v2192_v55 = vld [vmem:[#allocation2 + $0x42] sm:$0xff] }
 0x1b8   : > { %10691 = vmatmul.mubr.f32.gmra.mrb[126].mxu1 %v2186_v54  ;;  %10846 = vmatmul.mubr.f32.gmra.mrb[128].mxu0 %v2188_v31  ;;  %v2189_v54 = vld [vmem:[#allocation2 + $0x2a] sm:$0xff] }
 0x1b9   : > { %10693 = vmatprep.mubr.msk.f32.mxu1 %vm14006_vm0, %v15005_v15  ;;  %10848 = vmatprep.mubr.msk.f32.mxu0 %vm14006_vm0, %v15005_v15 }
 0x1ba   : > { %13570 = vmatpush3.bf16.msra.mxu1 %v13569_v22  ;;  %13591 = vmatpush3.bf16.msra.mxu0 %v13590_v42  ;;  %v2969_v22 = vld [vmem:[%s18661_s4 + $0x2b0] sm:$0xff]  ;;  %v2972_v42 = vld [vmem:[%s18661_s4 + $0x2c8] sm:$0xff] }
 0x1bb   : > { %13571 = vmatprep.subr.bf16.mxu1 %v18670_v3  ;;  %13592 = vmatprep.subr.bf16.mxu0 %v18670_v3  ;;  %v13596_v33 = vpack.c.bf16 %v2970_v28, %v2969_v22  ;;  %v2975_v22 = vld [vmem:[%s18661_s4 + $0x2e0] sm:$0xff] }
 0x1bc   : > { %10694 = vmatmul.mubr.f32.gmra.mrb[128].mxu1 %v2187_v14  ;;  %10849 = vmatmul.mubr.f32.gmra.mrb[130].mxu0 %v2189_v54  ;;  %v2605_v14 = vld [vmem:[%s18661_s4 + $0x250] sm:$0xff] }
 0x1bd   : > { %10696 = vmatprep.mubr.msk.f32.mxu1 %vm14006_vm0, %v15005_v15  ;;  %10851 = vmatprep.mubr.msk.f32.mxu0 %vm14006_vm0, %v15005_v15  ;;  %v13578_v24 = vpack.c.bf16 %v2606_v17, %v2605_v14 }
 0x1be   : > { %13573 = vmatpush3.bf16.msra.mxu1 %v13572_v40  ;;  %13594 = vmatpush3.bf16.msra.mxu0 %v13593_v13  ;;  %v2971_v40 = vld [vmem:[%s18661_s4 + $0x2c0] sm:$0xff]  ;;  %v2974_v13 = vld [vmem:[%s18661_s4 + $0x2d8] sm:$0xff] }
 0x1bf   : > { %13574 = vmatprep.subr.bf16.mxu1 %v18670_v3  ;;  %13595 = vmatprep.subr.bf16.mxu0 %v18670_v3  ;;  %v13599_v49 = vpack.c.bf16 %v2972_v42, %v2971_v40  ;;  %v2195_v40 = vld [vmem:[#allocation2 + $0x5a] sm:$0xff]  ;;  %v2196_v42 = vld [vmem:[#allocation2 + $0x62] sm:$0xff] }
 0x1c0   : > { %10697 = vmatmul.mubr.f32.gmra.mrb[130].mxu1 %v2188_v31  ;;  %10852 = vmatmul.mubr.f32.gmra.mrb[132].mxu0 %v2190_v19  ;;  %v2608_v31 = vld [vmem:[%s18661_s4 + $0x268] sm:$0xff] }
 0x1c1   : > { %10699 = vmatprep.mubr.msk.f32.mxu1 %vm14006_vm0, %v15005_v15  ;;  %10854 = vmatprep.mubr.msk.f32.mxu0 %vm14006_vm0, %v15005_v15  ;;  %v13581_v43 = vpack.c.bf16 %v2608_v31, %v2607_v29  ;;  %v2194_v29 = vld [vmem:[#allocation2 + $0x52] sm:$0xff] }
 0x1c2   : > { %13576 = vmatpush3.bf16.msra.mxu1 %v13575_v0  ;;  %13597 = vmatpush3.bf16.msra.mxu0 %v13596_v33  ;;  %v2973_v0 = vld [vmem:[%s18661_s4 + $0x2d0] sm:$0xff]  ;;  %v2978_v33 = vld [vmem:[%s18661_s4 + $0x2f8] sm:$0xff] }
 0x1c3   : > { %13577 = vmatprep.subr.bf16.mxu1 %v18670_v3  ;;  %13598 = vmatprep.subr.bf16.mxu0 %v18670_v3  ;;  %v13602_v17 = vpack.c.bf16 %v2974_v13, %v2973_v0  ;;  %v2977_v31 = vld [vmem:[%s18661_s4 + $0x2f0] sm:$0xff]  ;;  %v2200_v13 = vld [vmem:[#allocation2 + $0x82] sm:$0xff] }
 0x1c4   : > { %10700 = vmatmul.mubr.f32.gmra.mrb[132].mxu1 %v2189_v54  ;;  %10855 = vmatmul.mubr.f32.gmra.mrb[134].mxu0 %v2191_v37  ;;  %v2610_v54 = vld [vmem:[%s18661_s4 + $0x278] sm:$0xff] }
 0x1c5   : > { %10702 = vmatprep.mubr.msk.f32.mxu1 %vm14006_vm0, %v15005_v15  ;;  %10857 = vmatprep.mubr.msk.f32.mxu0 %vm14006_vm0, %v15005_v15  ;;  %v13584_v14 = vpack.c.bf16 %v2610_v54, %v2609_v10  ;;  %v2198_v10 = vld [vmem:[#allocation2 + $0x72] sm:$0xff]  ;;  %v2199_v54 = vld [vmem:[#allocation2 + $0x7a] sm:$0xff] }
 0x1c6   : > { %13579 = vmatpush3.bf16.msra.mxu1 %v13578_v24  ;;  %13600 = vmatpush3.bf16.msra.mxu0 %v13599_v49  ;;  %v2976_v24 = vld [vmem:[%s18661_s4 + $0x2e8] sm:$0xff] }
 0x1c7   : > { %13580 = vmatprep.subr.bf16.mxu1 %v18670_v3  ;;  %13601 = vmatprep.subr.bf16.mxu0 %v18670_v3  ;;  %v13605_v28 = vpack.c.bf16 %v2976_v24, %v2975_v22 }
 0x1c8   : > { %10703 = vmatmul.mubr.f32.gmra.mrb[134].mxu1 %v2190_v19  ;;  %10858 = vmatmul.mubr.f32.gmra.mrb[136].mxu0 %v2192_v55  ;;  %v2193_v19 = vld [vmem:[#allocation2 + $0x4a] sm:$0xff] }
 0x1c9   : > { %10705 = vmatprep.mubr.msk.f32.mxu1 %vm14006_vm0, %v15005_v15  ;;  %10860 = vmatprep.mubr.msk.f32.mxu0 %vm14006_vm0, %v15005_v15 }
 0x1ca   : > { %13582 = vmatpush3.bf16.msra.mxu1 %v13581_v43  ;;  %13603 = vmatpush3.bf16.msra.mxu0 %v13602_v17  ;;  %v2197_v43 = vld [vmem:[#allocation2 + $0x6a] sm:$0xff] }
 0x1cb   : > { %13583 = vmatprep.subr.bf16.mxu1 %v18670_v3  ;;  %13604 = vmatprep.subr.bf16.mxu0 %v18670_v3 }
 0x1cc   : > { %10706 = vmatmul.mubr.f32.gmra.mrb[136].mxu1 %v2191_v37  ;;  %10861 = vmatmul.mubr.f32.gmra.mrb[138].mxu0 %v2193_v19  ;;  %v13608_v37 = vpack.c.bf16 %v2978_v33, %v2977_v31 }
 0x1cd   : > { %10708 = vmatprep.mubr.msk.f32.mxu1 %vm14006_vm0, %v15005_v15  ;;  %10863 = vmatprep.mubr.msk.f32.mxu0 %vm14006_vm0, %v15005_v15 }
 0x1ce   : > { %13585 = vmatpush3.bf16.msra.mxu1 %v13584_v14  ;;  %13606 = vmatpush3.bf16.msra.mxu0 %v13605_v28  ;;  %v2201_v28 = vld [vmem:[#allocation2 + $0x8a] sm:$0xff] }
 0x1cf   : > { %13610 = vmatprep.subr.bf16.mxu1 %v18670_v3  ;;  %13607 = vmatprep.subr.bf16.mxu0 %v18670_v3 }
 0x1d0   : > { %10709 = vmatmul.mubr.f32.gmra.mrb[138].mxu1 %v2192_v55  ;;  %10864 = vmatmul.mubr.f32.gmra.mrb[140].mxu0 %v2194_v29 }
 0x1d1   : > { %10711 = vmatprep.mubr.msk.f32.mxu1 %vm14006_vm0, %v15005_v15  ;;  %10866 = vmatprep.mubr.msk.f32.mxu0 %vm14006_vm0, %v15005_v15 }
 0x1d2   : > { %13609 = vmatpush3.bf16.msra.mxu0 %v13608_v37 }
 0x1d3   : > { %13634 = vmatprep.subr.bf16.mxu0 %v18670_v3 }
 0x1d4   : > { %10712 = vmatmul.mubr.f32.gmra.mrb[140].mxu1 %v2193_v19  ;;  %10867 = vmatmul.mubr.f32.gmra.mrb[142].mxu0 %v2195_v40 }
 0x1d5   : > { %10714 = vmatprep.mubr.msk.f32.mxu1 %vm14006_vm0, %v15005_v15  ;;  %10869 = vmatprep.mubr.msk.f32.mxu0 %vm14006_vm0, %v15005_v15 }
 0x1d8   : > { %10715 = vmatmul.mubr.f32.gmra.mrb[142].mxu1 %v2194_v29  ;;  %10870 = vmatmul.mubr.f32.gmra.mrb[144].mxu0 %v2196_v42 }
 0x1d9   : > { %10717 = vmatprep.mubr.msk.f32.mxu1 %vm14006_vm0, %v15005_v15  ;;  %10872 = vmatprep.mubr.msk.f32.mxu0 %vm14006_vm0, %v15005_v15 }
 0x1dc   : > { %10718 = vmatmul.mubr.f32.gmra.mrb[144].mxu1 %v2195_v40  ;;  %10873 = vmatmul.mubr.f32.gmra.mrb[146].mxu0 %v2197_v43 }
 0x1dd   : > { %10720 = vmatprep.mubr.msk.f32.mxu1 %vm14006_vm0, %v15005_v15  ;;  %10875 = vmatprep.mubr.msk.f32.mxu0 %vm14006_vm0, %v15005_v15 }
 0x1e0   : > { %10721 = vmatmul.mubr.f32.gmra.mrb[146].mxu1 %v2196_v42  ;;  %10876 = vmatmul.mubr.f32.gmra.mrb[148].mxu0 %v2198_v10  ;;  %v2202_v42 = vld [vmem:[#allocation2 + $0x92] sm:$0xff] }
 0x1e1   : > { %10723 = vmatprep.mubr.msk.f32.mxu1 %vm14006_vm0, %v15005_v15  ;;  %10878 = vmatprep.mubr.msk.f32.mxu0 %vm14006_vm0, %v15005_v15 }
 0x1e4   : > { %10724 = vmatmul.mubr.f32.gmra.mrb[148].mxu1 %v2197_v43  ;;  %10879 = vmatmul.mubr.f32.gmra.mrb[150].mxu0 %v2199_v54 }
 0x1e5   : > { %10726 = vmatprep.mubr.msk.f32.mxu1 %vm14006_vm0, %v15005_v15  ;;  %10881 = vmatprep.mubr.msk.f32.mxu0 %vm14006_vm0, %v15005_v15 }
 0x1e7   : > { %v1354_v49 = vpop.f32.mrb[44].mxu1  ;;  %v1624_v55 = vpop.f32.mrb[46].mxu0 }
 0x1e8   : > { %v10382_v0 = vpop.f32.mrb[45].mxu1  ;;  %10727 = vmatmul.mubr.f32.gmra.mrb[150].mxu1 %v2198_v10  ;;  %v15152_v14 = vadd.f32 %v1624_v55, %v1354_v49  ;;  %v10537_v17 = vpop.f32.mrb[47].mxu0  ;;  %10882 = vmatmul.mubr.f32.gmra.mrb[152].mxu0 %v2200_v13 }
 0x1e9   : > { %10729 = vmatprep.mubr.msk.f32.mxu1 %vm14006_vm0, %v15005_v15  ;;  %10884 = vmatprep.mubr.msk.f32.mxu0 %vm14006_vm0, %v15005_v15  ;;  %v2203_v0 = vld [vmem:[#allocation2 + $0x9a] sm:$0xff] }
 0x1eb   : > { %v1359_v19 = vpop.f32.mrb[46].mxu1  ;;  %v1629_v22 = vpop.f32.mrb[48].mxu0 }
 0x1ec   : > { %v10385_v24 = vpop.f32.mrb[47].mxu1  ;;  %10730 = vmatmul.mubr.f32.gmra.mrb[152].mxu1 %v2199_v54  ;;  %v15158_v29 = vadd.f32 %v1629_v22, %v1359_v19  ;;  %v10540_v31 = vpop.f32.mrb[49].mxu0  ;;  %10885 = vmatmul.mubr.f32.gmra.mrb[154].mxu0 %v2201_v28 }
 0x1ed   : > { %10732 = vmatprep.mubr.msk.f32.mxu1 %vm14006_vm0, %v15005_v15  ;;  %10887 = vmatprep.mubr.msk.f32.mxu0 %vm14006_vm0, %v15005_v15  ;;  %v2204_v31 = vld [vmem:[#allocation2 + $0xa2] sm:$0xff] }
 0x1ef   : > { %v1364_v33 = vpop.f32.mrb[48].mxu1  ;;  %v1634_v37 = vpop.f32.mrb[50].mxu0 }
 0x1f0   : > { %v10388_v40 = vpop.f32.mrb[49].mxu1  ;;  %10733 = vmatmul.mubr.f32.gmra.mrb[154].mxu1 %v2200_v13  ;;  %v15164_v43 = vadd.f32 %v1634_v37, %v1364_v33  ;;  %v10543_v10 = vpop.f32.mrb[51].mxu0  ;;  %10888 = vmatmul.mubr.f32.gmra.mrb[156].mxu0 %v2202_v42 }
 0x1f1   : > { %10735 = vmatprep.mubr.msk.f32.mxu1 %vm14006_vm0, %v15005_v15  ;;  %10890 = vmatprep.mubr.msk.f32.mxu0 %vm14006_vm0, %v15005_v15 }
 0x1f3   : > { %v1369_v54 = vpop.f32.mrb[50].mxu1  ;;  %v1639_v49 = vpop.f32.mrb[52].mxu0 }
 0x1f4   : > { %v10391_v55 = vpop.f32.mrb[51].mxu1  ;;  %10736 = vmatmul.mubr.f32.gmra.mrb[156].mxu1 %v2201_v28  ;;  %v15170_v17 = vadd.f32 %v1639_v49, %v1369_v54  ;;  %v10546_v19 = vpop.f32.mrb[53].mxu0  ;;  %10891 = vmatmul.mubr.f32.gmra.mrb[158].mxu0 %v2203_v0  ;;  %v2205_v54 = vld [vmem:[#allocation2 + $0xaa] sm:$0xff] }
 0x1f5   : > { %10738 = vmatprep.mubr.msk.f32.mxu1 %vm14006_vm0, %v15005_v15  ;;  %10893 = vmatprep.mubr.msk.f32.mxu0 %vm14006_vm0, %v15005_v15 }
 0x1f7   : > { %v1374_v13 = vpop.f32.mrb[52].mxu1  ;;  %v1644_v22 = vpop.f32.mrb[54].mxu0 }
 0x1f8   : > { %v10394_v24 = vpop.f32.mrb[53].mxu1  ;;  %10739 = vmatmul.mubr.f32.gmra.mrb[158].mxu1 %v2202_v42  ;;  %v15176_v33 = vadd.f32 %v1644_v22, %v1374_v13  ;;  %v10549_v37 = vpop.f32.mrb[55].mxu0  ;;  %10894 = vmatmul.mubr.f32.gmra.mrb[160].mxu0 %v2204_v31  ;;  %v2206_v22 = vld [vmem:[#allocation2 + $0xb2] sm:$0xff] }
 0x1f9   : > { %10741 = vmatprep.mubr.msk.f32.mxu1 %vm14006_vm0, %v15005_v15  ;;  %10896 = vmatprep.mubr.msk.f32.mxu0 %vm14006_vm0, %v15005_v15 }
 0x1fb   : > { %v1379_v28 = vpop.f32.mrb[54].mxu1  ;;  %v1649_v40 = vpop.f32.mrb[56].mxu0 }
 0x1fc   : > { %v10397_v10 = vpop.f32.mrb[55].mxu1  ;;  %10742 = vmatmul.mubr.f32.gmra.mrb[160].mxu1 %v2203_v0  ;;  %v15182_v49 = vadd.f32 %v1649_v40, %v1379_v28  ;;  %v10552_v55 = vpop.f32.mrb[57].mxu0  ;;  %10897 = vmatmul.mubr.f32.gmra.mrb[162].mxu0 %v2205_v54 }
 0x1fd   : > { %10744 = vmatprep.mubr.msk.f32.mxu1 %vm14006_vm0, %v15005_v15  ;;  %10899 = vmatprep.mubr.msk.f32.mxu0 %vm14006_vm0, %v15005_v15  ;;  %v2207_v10 = vld [vmem:[#allocation2 + $0xba] sm:$0xff] }
 0x1ff   : > { %v1384_v42 = vpop.f32.mrb[56].mxu1  ;;  %v1654_v19 = vpop.f32.mrb[58].mxu0 }
 0x200   : > { %v10400_v13 = vpop.f32.mrb[57].mxu1  ;;  %10745 = vmatmul.mubr.f32.gmra.mrb[162].mxu1 %v2204_v31  ;;  %v15188_v24 = vadd.f32 %v1654_v19, %v1384_v42  ;;  %v10555_v37 = vpop.f32.mrb[59].mxu0  ;;  %10900 = vmatmul.mubr.f32.gmra.mrb[164].mxu0 %v2206_v22 }
 0x201   : > { %10747 = vmatprep.mubr.msk.f32.mxu1 %vm14006_vm0, %v15005_v15  ;;  %10902 = vmatprep.mubr.msk.f32.mxu0 %vm14006_vm0, %v15005_v15  ;;  %v2208_v37 = vld [vmem:[#allocation2 + $0xc2] sm:$0xff] }
 0x203   : > { %v1389_v0 = vpop.f32.mrb[58].mxu1  ;;  %v1659_v28 = vpop.f32.mrb[60].mxu0 }
 0x204   : > { %v10403_v40 = vpop.f32.mrb[59].mxu1  ;;  %10748 = vmatmul.mubr.f32.gmra.mrb[164].mxu1 %v2205_v54  ;;  %v15194_v55 = vadd.f32 %v1659_v28, %v1389_v0  ;;  %v10558_v13 = vpop.f32.mrb[61].mxu0  ;;  %10903 = vmatmul.mubr.f32.gmra.mrb[166].mxu0 %v2207_v10 }
 0x205   : > { %10750 = vmatprep.mubr.msk.f32.mxu1 %vm14006_vm0, %v15005_v15  ;;  %10905 = vmatprep.mubr.msk.f32.mxu0 %vm14006_vm0, %v15005_v15  ;;  %v2209_v13 = vld [vmem:[#allocation2 + $0xca] sm:$0xff] }
 0x207   : > { %v1394_v31 = vpop.f32.mrb[60].mxu1  ;;  %v1664_v42 = vpop.f32.mrb[62].mxu0 }
 0x208   : > { %v10406_v19 = vpop.f32.mrb[61].mxu1  ;;  %10751 = vmatmul.mubr.f32.gmra.mrb[166].mxu1 %v2206_v22  ;;  %v15200_v3 = vadd.f32 %v1664_v42, %v1394_v31  ;;  %v10561_v40 = vpop.f32.mrb[63].mxu0  ;;  %10906 = vmatmul.mubr.f32.gmra.mrb[168].mxu0 %v2208_v37 }
 0x209   : > { %10753 = vmatprep.mubr.msk.f32.mxu1 %vm14006_vm0, %v15005_v15  ;;  %10908 = vmatprep.mubr.msk.f32.mxu0 %vm14006_vm0, %v15005_v15  ;;  %v2210_v40 = vld [vmem:[#allocation2 + $0xd2] sm:$0xff] }
 0x20b   : > { %v1399_v54 = vpop.f32.mrb[62].mxu1  ;;  %v1669_v0 = vpop.f32.mrb[64].mxu0 }
 0x20c   : > { %v10409_v28 = vpop.f32.mrb[63].mxu1  ;;  %10754 = vmatmul.mubr.f32.gmra.mrb[168].mxu1 %v2207_v10  ;;  %v15206_v35 = vadd.f32 %v1669_v0, %v1399_v54  ;;  %v10564_v19 = vpop.f32.mrb[65].mxu0  ;;  %10909 = vmatmul.mubr.f32.gmra.mrb[170].mxu0 %v2209_v13 }
 0x20d   : > { %10756 = vmatprep.mubr.msk.f32.mxu1 %vm14006_vm0, %v15005_v15  ;;  %10911 = vmatprep.mubr.msk.f32.mxu0 %vm14006_vm0, %v15005_v15  ;;  %v2211_v19 = vld [vmem:[#allocation2 + $0xda] sm:$0xff] }
 0x20f   : > { %v1404_v22 = vpop.f32.mrb[64].mxu1  ;;  %v1674_v31 = vpop.f32.mrb[66].mxu0 }
 0x210   : > { %v10412_v42 = vpop.f32.mrb[65].mxu1  ;;  %10757 = vmatmul.mubr.f32.gmra.mrb[170].mxu1 %v2208_v37  ;;  %v15212_v12 = vadd.f32 %v1674_v31, %v1404_v22  ;;  %v10567_v28 = vpop.f32.mrb[67].mxu0  ;;  %10912 = vmatmul.mubr.f32.gmra.mrb[172].mxu0 %v2210_v40 }
 0x211   : > { %10759 = vmatprep.mubr.msk.f32.mxu1 %vm14006_vm0, %v15005_v15  ;;  %10914 = vmatprep.mubr.msk.f32.mxu0 %vm14006_vm0, %v15005_v15  ;;  %v2212_v28 = vld [vmem:[#allocation2 + $0xe2] sm:$0xff] }
 0x213   : > { %v1409_v10 = vpop.f32.mrb[66].mxu1  ;;  %v1679_v54 = vpop.f32.mrb[68].mxu0 }
 0x214   : > { %v10415_v0 = vpop.f32.mrb[67].mxu1  ;;  %10760 = vmatmul.mubr.f32.gmra.mrb[172].mxu1 %v2209_v13  ;;  %v15218_v25 = vadd.f32 %v1679_v54, %v1409_v10  ;;  %v10570_v42 = vpop.f32.mrb[69].mxu0  ;;  %10915 = vmatmul.mubr.f32.gmra.mrb[174].mxu0 %v2211_v19 }
 0x215   : > { %10762 = vmatprep.mubr.msk.f32.mxu1 %vm14006_vm0, %v15005_v15  ;;  %10917 = vmatprep.mubr.msk.f32.mxu0 %vm14006_vm0, %v15005_v15  ;;  %v2213_v42 = vld [vmem:[#allocation2 + $0xea] sm:$0xff] }
 0x217   : > { %v1414_v37 = vpop.f32.mrb[68].mxu1  ;;  %v1684_v22 = vpop.f32.mrb[70].mxu0 }
 0x218   : > { %v10418_v31 = vpop.f32.mrb[69].mxu1  ;;  %10763 = vmatmul.mubr.f32.gmra.mrb[174].mxu1 %v2210_v40  ;;  %v15224_v41 = vadd.f32 %v1684_v22, %v1414_v37  ;;  %v10573_v0 = vpop.f32.mrb[71].mxu0  ;;  %10918 = vmatmul.mubr.f32.gmra.mrb[176].mxu0 %v2212_v28 }
 0x219   : > { %10765 = vmatprep.mubr.msk.f32.mxu1 %vm14006_vm0, %v15005_v15  ;;  %10920 = vmatprep.mubr.msk.f32.mxu0 %vm14006_vm0, %v15005_v15  ;;  %v2214_v0 = vld [vmem:[#allocation2 + $0xf2] sm:$0xff] }
 0x21b   : > { %v1419_v13 = vpop.f32.mrb[70].mxu1  ;;  %v1689_v10 = vpop.f32.mrb[72].mxu0 }
 0x21c   : > { %v10421_v54 = vpop.f32.mrb[71].mxu1  ;;  %10766 = vmatmul.mubr.f32.gmra.mrb[176].mxu1 %v2211_v19  ;;  %v15230_v6 = vadd.f32 %v1689_v10, %v1419_v13  ;;  %v10576_v31 = vpop.f32.mrb[73].mxu0  ;;  %10921 = vmatmul.mubr.f32.gmra.mrb[178].mxu0 %v2213_v42 }
 0x21d   : > { %10768 = vmatprep.mubr.msk.f32.mxu1 %vm14006_vm0, %v15005_v15  ;;  %10923 = vmatprep.mubr.msk.f32.mxu0 %vm14006_vm0, %v15005_v15  ;;  %v2215_v31 = vld [vmem:[#allocation2 + $0xfa] sm:$0xff] }
 0x21f   : > { %v1424_v40 = vpop.f32.mrb[72].mxu1  ;;  %v1694_v37 = vpop.f32.mrb[74].mxu0 }
 0x220   : > { %v10424_v22 = vpop.f32.mrb[73].mxu1  ;;  %10769 = vmatmul.mubr.f32.gmra.mrb[178].mxu1 %v2212_v28  ;;  %v15236_v34 = vadd.f32 %v1694_v37, %v1424_v40  ;;  %v10579_v54 = vpop.f32.mrb[75].mxu0  ;;  %10924 = vmatmul.mubr.f32.gmra.mrb[180].mxu0 %v2214_v0 }
 0x221   : > { %10771 = vmatprep.mubr.msk.f32.mxu1 %vm14006_vm0, %v15005_v15  ;;  %10926 = vmatprep.mubr.msk.f32.mxu0 %vm14006_vm0, %v15005_v15  ;;  %v2216_v54 = vld [vmem:[#allocation2 + $0x102] sm:$0xff] }
 0x223   : > { %v1429_v19 = vpop.f32.mrb[74].mxu1  ;;  %v1699_v13 = vpop.f32.mrb[76].mxu0 }
 0x224   : > { %v10427_v10 = vpop.f32.mrb[75].mxu1  ;;  %10772 = vmatmul.mubr.f32.gmra.mrb[180].mxu1 %v2213_v42  ;;  %v15242_v2 = vadd.f32 %v1699_v13, %v1429_v19  ;;  %v10582_v22 = vpop.f32.mrb[77].mxu0  ;;  %10927 = vmatmul.mubr.f32.gmra.mrb[182].mxu0 %v2215_v31 }
 0x225   : > { %10774 = vmatprep.mubr.msk.f32.mxu1 %vm14006_vm0, %v15005_v15  ;;  %10929 = vmatprep.mubr.msk.f32.mxu0 %vm14006_vm0, %v15005_v15  ;;  %v2217_v22 = vld [vmem:[#allocation2 + $0x10a] sm:$0xff] }
 0x227   : > { %v1434_v28 = vpop.f32.mrb[76].mxu1  ;;  %v1704_v40 = vpop.f32.mrb[78].mxu0 }
 0x228   : > { %v10430_v37 = vpop.f32.mrb[77].mxu1  ;;  %10775 = vmatmul.mubr.f32.gmra.mrb[182].mxu1 %v2214_v0  ;;  %v15248_v27 = vadd.f32 %v1704_v40, %v1434_v28  ;;  %v10585_v10 = vpop.f32.mrb[79].mxu0  ;;  %10930 = vmatmul.mubr.f32.gmra.mrb[184].mxu0 %v2216_v54 }
 0x229   : > { %10777 = vmatprep.mubr.msk.f32.mxu1 %vm14006_vm0, %v15005_v15  ;;  %10932 = vmatprep.mubr.msk.f32.mxu0 %vm14006_vm0, %v15005_v15  ;;  %v2218_v10 = vld [vmem:[#allocation2 + $0x112] sm:$0xff] }
 0x22b   : > { %v1439_v42 = vpop.f32.mrb[78].mxu1  ;;  %v1709_v19 = vpop.f32.mrb[80].mxu0 }
 0x22c   : > { %v10433_v13 = vpop.f32.mrb[79].mxu1  ;;  %10778 = vmatmul.mubr.f32.gmra.mrb[184].mxu1 %v2215_v31  ;;  %v15254_v1 = vadd.f32 %v1709_v19, %v1439_v42  ;;  %v10588_v37 = vpop.f32.mrb[81].mxu0  ;;  %10933 = vmatmul.mubr.f32.gmra.mrb[186].mxu0 %v2217_v22 }
 0x22d   : > { %10780 = vmatprep.mubr.msk.f32.mxu1 %vm14006_vm0, %v15005_v15  ;;  %10935 = vmatprep.mubr.msk.f32.mxu0 %vm14006_vm0, %v15005_v15  ;;  %v2219_v37 = vld [vmem:[#allocation2 + $0x11a] sm:$0xff] }
 0x22f   : > { %v1444_v0 = vpop.f32.mrb[80].mxu1  ;;  %v1714_v28 = vpop.f32.mrb[82].mxu0 }
 0x230   : > { %v10436_v40 = vpop.f32.mrb[81].mxu1  ;;  %10781 = vmatmul.mubr.f32.gmra.mrb[186].mxu1 %v2216_v54  ;;  %v15260_v30 = vadd.f32 %v1714_v28, %v1444_v0  ;;  %v10591_v13 = vpop.f32.mrb[83].mxu0  ;;  %10936 = vmatmul.mubr.f32.gmra.mrb[188].mxu0 %v2218_v10 }
 0x231   : > { %10783 = vmatprep.mubr.msk.f32.mxu1 %vm14006_vm0, %v15005_v15  ;;  %10938 = vmatprep.mubr.msk.f32.mxu0 %vm14006_vm0, %v15005_v15  ;;  %v2220_v13 = vld [vmem:[#allocation2 + $0x122] sm:$0xff] }
 0x233   : > { %v1449_v31 = vpop.f32.mrb[82].mxu1  ;;  %v1719_v42 = vpop.f32.mrb[84].mxu0 }
 0x234   : > { %v10439_v19 = vpop.f32.mrb[83].mxu1  ;;  %10784 = vmatmul.mubr.f32.gmra.mrb[188].mxu1 %v2217_v22  ;;  %v15266_v57 = vadd.f32 %v1719_v42, %v1449_v31  ;;  %v10594_v40 = vpop.f32.mrb[85].mxu0  ;;  %10939 = vmatmul.mubr.f32.gmra.mrb[190].mxu0 %v2219_v37 }
 0x235   : > { %10786 = vmatprep.mubr.msk.f32.mxu1 %vm14006_vm0, %v15005_v15  ;;  %10941 = vmatprep.mubr.msk.f32.mxu0 %vm14006_vm0, %v15005_v15  ;;  %v2221_v40 = vld [vmem:[#allocation2 + $0x12a] sm:$0xff] }
 0x237   : > { %v1454_v54 = vpop.f32.mrb[84].mxu1  ;;  %v1724_v0 = vpop.f32.mrb[86].mxu0 }
 0x238   : > { %v10442_v28 = vpop.f32.mrb[85].mxu1  ;;  %10787 = vmatmul.mubr.f32.gmra.mrb[190].mxu1 %v2218_v10  ;;  %v15272_v26 = vadd.f32 %v1724_v0, %v1454_v54  ;;  %v10597_v19 = vpop.f32.mrb[87].mxu0  ;;  %10942 = vmatmul.mubr.f32.gmra.mrb[192].mxu0 %v2220_v13 }
 0x239   : > { %10789 = vmatprep.mubr.msk.f32.mxu1 %vm14006_vm0, %v15005_v15  ;;  %10944 = vmatprep.mubr.msk.f32.mxu0 %vm14006_vm0, %v15005_v15  ;;  %v2222_v19 = vld [vmem:[#allocation2 + $0x132] sm:$0xff] }
 0x23b   : > { %v1459_v22 = vpop.f32.mrb[86].mxu1  ;;  %v1729_v31 = vpop.f32.mrb[88].mxu0 }
 0x23c   : > { %v10445_v42 = vpop.f32.mrb[87].mxu1  ;;  %10790 = vmatmul.mubr.f32.gmra.mrb[192].mxu1 %v2219_v37  ;;  %v15278_v47 = vadd.f32 %v1729_v31, %v1459_v22  ;;  %v10600_v28 = vpop.f32.mrb[89].mxu0  ;;  %10945 = vmatmul.mubr.f32.gmra.mrb[194].mxu0 %v2221_v40 }
 0x23d   : > { %10792 = vmatprep.mubr.msk.f32.mxu1 %vm14006_vm0, %v15005_v15  ;;  %10947 = vmatprep.mubr.msk.f32.mxu0 %vm14006_vm0, %v15005_v15  ;;  %v2223_v28 = vld [vmem:[#allocation2 + $0x13a] sm:$0xff] }
 0x23f   : > { %v1464_v10 = vpop.f32.mrb[88].mxu1  ;;  %v1734_v54 = vpop.f32.mrb[90].mxu0 }
 0x240   : > { %v10448_v0 = vpop.f32.mrb[89].mxu1  ;;  %10793 = vmatmul.mubr.f32.gmra.mrb[194].mxu1 %v2220_v13  ;;  %v15284_v23 = vadd.f32 %v1734_v54, %v1464_v10  ;;  %v10603_v42 = vpop.f32.mrb[91].mxu0  ;;  %10948 = vmatmul.mubr.f32.gmra.mrb[196].mxu0 %v2222_v19 }
 0x241   : > { %10795 = vmatprep.mubr.msk.f32.mxu1 %vm14006_vm0, %v15005_v15  ;;  %10950 = vmatprep.mubr.msk.f32.mxu0 %vm14006_vm0, %v15005_v15  ;;  %v2224_v42 = vld [vmem:[#allocation2 + $0x142] sm:$0xff] }
 0x243   : > { %v1469_v37 = vpop.f32.mrb[90].mxu1  ;;  %v1739_v22 = vpop.f32.mrb[92].mxu0 }
 0x244   : > { %v10451_v31 = vpop.f32.mrb[91].mxu1  ;;  %10796 = vmatmul.mubr.f32.gmra.mrb[196].mxu1 %v2221_v40  ;;  %v15290_v38 = vadd.f32 %v1739_v22, %v1469_v37  ;;  %v10606_v0 = vpop.f32.mrb[93].mxu0  ;;  %10951 = vmatmul.mubr.f32.gmra.mrb[198].mxu0 %v2223_v28 }
 0x245   : > { %10798 = vmatprep.mubr.msk.f32.mxu1 %vm14006_vm0, %v15005_v15  ;;  %10953 = vmatprep.mubr.msk.f32.mxu0 %vm14006_vm0, %v15005_v15  ;;  %v2225_v0 = vld [vmem:[#allocation2 + $0x14a] sm:$0xff] }
 0x247   : > { %v1474_v13 = vpop.f32.mrb[92].mxu1  ;;  %v1744_v10 = vpop.f32.mrb[94].mxu0 }
 0x248   : > { %v10454_v54 = vpop.f32.mrb[93].mxu1  ;;  %10799 = vmatmul.mubr.f32.gmra.mrb[198].mxu1 %v2222_v19  ;;  %v15296_v16 = vadd.f32 %v1744_v10, %v1474_v13  ;;  %v10609_v31 = vpop.f32.mrb[95].mxu0  ;;  %10954 = vmatmul.mubr.f32.gmra.mrb[200].mxu0 %v2224_v42  ;;  %v3331_v19 = vld [vmem:[%s18661_s4 + $0x300] sm:$0xff]  ;;  %v3332_v13 = vld [vmem:[%s18661_s4 + $0x308] sm:$0xff] }
 0x249   : > { %10801 = vmatprep.mubr.msk.f32.mxu1 %vm14006_vm0, %v15005_v15  ;;  %10956 = vmatprep.mubr.msk.f32.mxu0 %vm14006_vm0, %v15005_v15 }
 0x24b   : > { %v1479_v40 = vpop.f32.mrb[94].mxu1  ;;  %v1749_v37 = vpop.f32.mrb[96].mxu0 }
 0x24c   : > { %v10457_v22 = vpop.f32.mrb[95].mxu1  ;;  %10802 = vmatmul.mubr.f32.gmra.mrb[200].mxu1 %v2223_v28  ;;  %v15302_v39 = vadd.f32 %v1749_v37, %v1479_v40  ;;  %v10612_v54 = vpop.f32.mrb[97].mxu0  ;;  %10957 = vmatmul.mubr.f32.gmra.mrb[202].mxu0 %v2225_v0  ;;  %v2226_v40 = vld [vmem:[#allocation2 + $0x152] sm:$0xff]  ;;  %v13611_v0 = vpack.c.bf16 %v3332_v13, %v3331_v19 }
 0x24d   : > { %10804 = vmatprep.mubr.msk.f32.mxu1 %vm14006_vm0, %v15005_v15  ;;  %10959 = vmatprep.mubr.msk.f32.mxu0 %vm14006_vm0, %v15005_v15 }
 0x24f   : > { %v1484_v28 = vpop.f32.mrb[96].mxu1  ;;  %v1754_v10 = vpop.f32.mrb[98].mxu0 }
 0x250   : > { %v10460_v31 = vpop.f32.mrb[97].mxu1  ;;  %10805 = vmatmul.mubr.f32.gmra.mrb[202].mxu1 %v2224_v42  ;;  %v15314_v37 = vadd.f32 %v1754_v10, %v1484_v28  ;;  %v10615_v22 = vpop.f32.mrb[99].mxu0  ;;  %10960 = vmatmul.mubr.f32.gmra.mrb[204].mxu0 %v2226_v40  ;;  %v3334_v42 = vld [vmem:[%s18661_s4 + $0x318] sm:$0xff] }
 0x251   : > { %10994 = vmatprep.mubr.msk.f32.mxu1 %vm14006_vm0, %v15005_v15  ;;  %11149 = vmatprep.mubr.msk.f32.mxu0 %vm14006_vm0, %v15005_v15  ;;  %v2922_v31 = vld [vmem:[#allocation2 + $0x14] sm:$0xff]  ;;  %v13614_v13 = vpack.c.bf16 %v3334_v42, %v3333_v48  ;;  %v3699_v42 = vld [vmem:[%s18661_s4 + $0x380] sm:$0xff] }
 0x253   : > { %v1489_v54 = vpop.f32.mrb[98].mxu1  ;;  %v1759_v28 = vpop.f32.mrb[100].mxu0 }
 0x254   : > { %v10463_v10 = vpop.f32.mrb[99].mxu1  ;;  %10995 = vmatmul.mubr.f32.vlgmr.msra.gmra.mrb[204].mxu1 %v2554_v20  ;;  %v15326_v40 = vadd.f32 %v1759_v28, %v1489_v54  ;;  %v10618_v19 = vpop.f32.mrb[101].mxu0  ;;  %11150 = vmatmul.mubr.f32.vlgmr.msra.gmra.mrb[206].mxu0 %v2922_v31  ;;  %v3335_v20 = vld [vmem:[%s18661_s4 + $0x320] sm:$0xff]  ;;  %v3336_v54 = vld [vmem:[%s18661_s4 + $0x328] sm:$0xff] }
 0x255   : > { %13612 = vmatpush3.bf16.msra.mxu1 %v13611_v0  ;;  %10997 = vmatprep.mubr.msk.f32.mxu1 %vm14006_vm0, %v15005_v15  ;;  %v2923_v10 = vld [vmem:[#allocation2 + $0x1c] sm:$0xff]  ;;  %v13617_v48 = vpack.c.bf16 %v3336_v54, %v3335_v20 }
 0x256   : > { %11152 = vmatprep.mubr.msk.f32.mxu0 %vm14006_vm0, %v15005_v15  ;;  %13613 = vmatprep.subr.bf16.mxu1 %v18746_v18 }
 0x257   : > { %v1494_v22 = vpop.f32.mrb[100].mxu1  ;;  %v1764_v0 = vpop.f32.mrb[102].mxu0 }
 0x258   : > { %v10466_v28 = vpop.f32.mrb[101].mxu1  ;;  %10998 = vmatmul.mubr.f32.gmra.mrb[206].mxu1 %v2555_v32  ;;  %v15339_v31 = vadd.f32 %v1764_v0, %v1494_v22  ;;  %v10621_v19 = vpop.f32.mrb[103].mxu0  ;;  %11153 = vmatmul.mubr.f32.gmra.mrb[208].mxu0 %v2923_v10  ;;  %v3700_v32 = vld [vmem:[%s18661_s4 + $0x388] sm:$0xff] }
 0x259   : > { %11000 = vmatprep.mubr.msk.f32.mxu1 %vm14006_vm0, %v15005_v15  ;;  %11155 = vmatprep.mubr.msk.f32.mxu0 %vm14006_vm0, %v15005_v15  ;;  %v2556_v0 = vld [vmem:[#allocation2 + $0x23] sm:$0xff]  ;;  %v3337_v28 = vld [vmem:[%s18661_s4 + $0x330] sm:$0xff]  ;;  %v13635_v20 = vpack.c.bf16 %v3700_v32, %v3699_v42  ;;  %v3702_v32 = vld [vmem:[%s18661_s4 + $0x398] sm:$0xff] }
 0x25a   : > { %13615 = vmatpush3.bf16.msra.mxu1 %v13614_v13  ;;  %v3338_v13 = vld [vmem:[%s18661_s4 + $0x338] sm:$0xff]  ;;  %v2924_v19 = vld [vmem:[#allocation2 + $0x24] sm:$0xff]  ;;  %v3701_v42 = vld [vmem:[%s18661_s4 + $0x390] sm:$0xff] }
 0x25b   : > { %v1499_v22 = vpop.f32.mrb[102].mxu1  ;;  %13616 = vmatprep.subr.bf16.mxu1 %v18746_v18  ;;  %v1769_v54 = vpop.f32.mrb[104].mxu0  ;;  %v13620_v8 = vpack.c.bf16 %v3338_v13, %v3337_v28  ;;  %13636 = vmatpush3.bf16.msra.mxu0 %v13635_v20  ;;  %v13638_v28 = vpack.c.bf16 %v3702_v32, %v3701_v42  ;;  %v3703_v20 = vld [vmem:[%s18661_s4 + $0x3a0] sm:$0xff]  ;;  %v3704_v42 = vld [vmem:[%s18661_s4 + $0x3a8] sm:$0xff] }
 0x25c   : > { %v10469_v10 = vpop.f32.mrb[103].mxu1  ;;  %11001 = vmatmul.mubr.f32.gmra.mrb[208].mxu1 %v2556_v0  ;;  %v15358_v11 = vadd.f32 %v1769_v54, %v1499_v22  ;;  %v10624_v9 = vpop.f32.mrb[105].mxu0  ;;  %11156 = vmatmul.mubr.f32.gmra.mrb[210].mxu0 %v2924_v19  ;;  %v2557_v0 = vld [vmem:[#allocation2 + $0x2b] sm:$0xff] }
 0x25d   : > { %11003 = vmatprep.mubr.msk.f32.mxu1 %vm14006_vm0, %v15005_v15  ;;  %11158 = vmatprep.mubr.msk.f32.mxu0 %vm14006_vm0, %v15005_v15  ;;  %v3339_v9 = vld [vmem:[%s18661_s4 + $0x340] sm:$0xff]  ;;  %v2925_v10 = vld [vmem:[#allocation2 + $0x2c] sm:$0xff] }
 0x25e   : > { %13618 = vmatpush3.bf16.msra.mxu1 %v13617_v48  ;;  %v3340_v48 = vld [vmem:[%s18661_s4 + $0x348] sm:$0xff]  ;;  %13637 = vmatprep.subr.bf16.mxu0 %v18746_v18 }
 0x25f   : > { %v1504_v22 = vpop.f32.mrb[104].mxu1  ;;  %13619 = vmatprep.subr.bf16.mxu1 %v18746_v18  ;;  %v1774_v13 = vpop.f32.mrb[106].mxu0  ;;  %v13623_v5 = vpack.c.bf16 %v3340_v48, %v3339_v9  ;;  %13639 = vmatpush3.bf16.msra.mxu0 %v13638_v28 }
 0x260   : > { %v10472_v54 = vpop.f32.mrb[105].mxu1  ;;  %11004 = vmatmul.mubr.f32.gmra.mrb[210].mxu1 %v2557_v0  ;;  %v15378_v19 = vadd.f32 %v1774_v13, %v1504_v22  ;;  %v10627_v7 = vpop.f32.mrb[107].mxu0  ;;  %11159 = vmatmul.mubr.f32.gmra.mrb[212].mxu0 %v2925_v10  ;;  %v2558_v22 = vld [vmem:[#allocation2 + $0x33] sm:$0xff]  ;;  %v13641_v0 = vpack.c.bf16 %v3704_v42, %v3703_v20 }
 0x261   : > { %11006 = vmatprep.mubr.msk.f32.mxu1 %vm14006_vm0, %v15005_v15  ;;  %11161 = vmatprep.mubr.msk.f32.mxu0 %vm14006_vm0, %v15005_v15  ;;  %v3341_v7 = vld [vmem:[%s18661_s4 + $0x350] sm:$0xff] }
 0x262   : > { %13621 = vmatpush3.bf16.msra.mxu1 %v13620_v8  ;;  %v3342_v8 = vld [vmem:[%s18661_s4 + $0x358] sm:$0xff]  ;;  %13640 = vmatprep.subr.bf16.mxu0 %v18746_v18  ;;  %v3705_v20 = vld [vmem:[%s18661_s4 + $0x3b0] sm:$0xff] }
 0x263   : > { %v1509_v32 = vpop.f32.mrb[106].mxu1  ;;  %13622 = vmatprep.subr.bf16.mxu1 %v18746_v18  ;;  %v1779_v9 = vpop.f32.mrb[108].mxu0  ;;  %v2926_v13 = vld [vmem:[#allocation2 + $0x34] sm:$0xff]  ;;  %v13626_v28 = vpack.c.bf16 %v3342_v8, %v3341_v7  ;;  %13642 = vmatpush3.bf16.msra.mxu0 %v13641_v0  ;;  %v2927_v8 = vld [vmem:[#allocation2 + $0x3c] sm:$0xff] }
 0x264   : > { %v10475_v48 = vpop.f32.mrb[107].mxu1  ;;  %11007 = vmatmul.mubr.f32.gmra.mrb[212].mxu1 %v2558_v22  ;;  %v15398_v54 = vadd.f32 %v1779_v9, %v1509_v32  ;;  %v10630_v10 = vpop.f32.mrb[109].mxu0  ;;  %11162 = vmatmul.mubr.f32.gmra.mrb[214].mxu0 %v2926_v13  ;;  %v3343_v32 = vld [vmem:[%s18661_s4 + $0x360] sm:$0xff]  ;;  %v3344_v22 = vld [vmem:[%s18661_s4 + $0x368] sm:$0xff] }
 0x265   : > { %11009 = vmatprep.mubr.msk.f32.mxu1 %vm14006_vm0, %v15005_v15  ;;  %11164 = vmatprep.mubr.msk.f32.mxu0 %vm14006_vm0, %v15005_v15  ;;  %v15420_v10 = vld [vmem:[#allocation2] sm:$0xff]  ;;  %v13629_v0 = vpack.c.bf16 %v3344_v22, %v3343_v32 }
 0x266   : > { %13624 = vmatpush3.bf16.msra.mxu1 %v13623_v5  ;;  %v3706_v5 = vld [vmem:[%s18661_s4 + $0x3b8] sm:$0xff]  ;;  %13643 = vmatprep.subr.bf16.mxu0 %v18746_v18 }
 0x267   : > { %v1514_v42 = vpop.f32.mrb[108].mxu1  ;;  %13625 = vmatprep.subr.bf16.mxu1 %v18746_v18  ;;  %v1784_v15 = vpop.f32.mrb[110].mxu0  ;;  %v13644_v9 = vpack.c.bf16 %v3706_v5, %v3705_v20  ;;  %v3708_v20 = vld [vmem:[%s18661_s4 + $0x3c8] sm:$0xff] }
 0x268   : > { %v10478_v7 = vpop.f32.mrb[109].mxu1  ;;  %11010 = vmatmul.mubr.f32.gmra.mrb[214].mxu1 %v2559_v4  ;;  %v15418_v48 = vadd.f32 %v1784_v15, %v1514_v42  ;;  %v10633_v13 = vpop.f32.mrb[111].mxu0  ;;  %11165 = vmatmul.mubr.f32.gmra.mrb[216].mxu0 %v2927_v8  ;;  %v3707_v4 = vld [vmem:[%s18661_s4 + $0x3c0] sm:$0xff]  ;;  %v3345_v15 = vld [vmem:[%s18661_s4 + $0x370] sm:$0xff] }
 0x269   : > { %11012 = vmatprep.mubr.msk.f32.mxu1 %vm14006_vm0, %v15420_v10  ;;  %11167 = vmatprep.mubr.msk.f32.mxu0 %vm14006_vm0, %v15420_v10  ;;  %v2560_v5 = vld [vmem:[#allocation2 + $0x43] sm:$0xff]  ;;  %v13647_v32 = vpack.c.bf16 %v3708_v20, %v3707_v4  ;;  %v3710_v4 = vld [vmem:[%s18661_s4 + $0x3d8] sm:$0xff] }
 0x26a   : > { %13627 = vmatpush3.bf16.msra.mxu1 %v13626_v28  ;;  %v3346_v28 = vld [vmem:[%s18661_s4 + $0x378] sm:$0xff]  ;;  %13645 = vmatpush3.bf16.msra.mxu0 %v13644_v9  ;;  %v2928_v8 = vld [vmem:[#allocation2 + $0x44] sm:$0xff]  ;;  %v3709_v9 = vld [vmem:[%s18661_s4 + $0x3d0] sm:$0xff] }
 0x26b   : > { %v1519_v42 = vpop.f32.mrb[110].mxu1  ;;  %13628 = vmatprep.subr.bf16.mxu1 %v18746_v18  ;;  %v1789_v22 = vpop.f32.mrb[112].mxu0  ;;  %13646 = vmatprep.subr.bf16.mxu0 %v18746_v18  ;;  %v13632_v62 = vpack.c.bf16 %v3346_v28, %v3345_v15  ;;  %v3711_v28 = vld [vmem:[%s18661_s4 + $0x3e0] sm:$0xff] }
 0x26c   : > { %v10481_v7 = vpop.f32.mrb[111].mxu1  ;;  %11013 = vmatmul.mubr.f32.gmra.mrb[216].mxu1 %v2560_v5  ;;  %v15440_v13 = vadd.f32 %v1789_v22, %v1519_v42  ;;  %v10636_v63 = vpop.f32.mrb[113].mxu0  ;;  %11168 = vmatmul.mubr.f32.gmra.mrb[218].mxu0 %v2928_v8  ;;  %v2561_v42 = vld [vmem:[#allocation2 + $0x4b] sm:$0xff] }
 0x26d   : > { %11015 = vmatprep.mubr.msk.f32.mxu1 %vm14006_vm0, %v15420_v10  ;;  %11170 = vmatprep.mubr.msk.f32.mxu0 %vm14006_vm0, %v15420_v10  ;;  %v13650_v63 = vpack.c.bf16 %v3710_v4, %v3709_v9  ;;  %v2929_v7 = vld [vmem:[#allocation2 + $0x4c] sm:$0xff] }
 0x26e   : > { %13630 = vmatpush3.bf16.msra.mxu1 %v13629_v0  ;;  %13648 = vmatpush3.bf16.msra.mxu0 %v13647_v32  ;;  %v3712_v32 = vld [vmem:[%s18661_s4 + $0x3e8] sm:$0xff]  ;;  %v2562_v9 = vld [vmem:[#allocation2 + $0x53] sm:$0xff] }
 0x26f   : > { %v1524_v20 = vpop.f32.mrb[112].mxu1  ;;  %13631 = vmatprep.subr.bf16.mxu1 %v18746_v18  ;;  %v1794_v5 = vpop.f32.mrb[114].mxu0  ;;  %13649 = vmatprep.subr.bf16.mxu0 %v18746_v18  ;;  %v13653_v4 = vpack.c.bf16 %v3712_v32, %v3711_v28  ;;  %v2563_v28 = vld [vmem:[#allocation2 + $0x5b] sm:$0xff] }
 0x270   : > { %v10484_v22 = vpop.f32.mrb[113].mxu1  ;;  %11016 = vmatmul.mubr.f32.gmra.mrb[218].mxu1 %v2561_v42  ;;  %v15454_v0 = vadd.f32 %v1794_v5, %v1524_v20  ;;  %v10639_v15 = vpop.f32.mrb[115].mxu0  ;;  %11171 = vmatmul.mubr.f32.gmra.mrb[220].mxu0 %v2929_v7  ;;  %v2930_v5 = vld [vmem:[#allocation2 + $0x54] sm:$0xff] }
 0x271   : > { %11018 = vmatprep.mubr.msk.f32.mxu1 %vm14006_vm0, %v15420_v10  ;;  %11173 = vmatprep.mubr.msk.f32.mxu0 %vm14006_vm0, %v15420_v10  ;;  %v3714_v7 = vld [vmem:[%s18661_s4 + $0x3f8] sm:$0xff] }
 0x272   : > { %13633 = vmatpush3.bf16.msra.mxu1 %v13632_v62  ;;  %13651 = vmatpush3.bf16.msra.mxu0 %v13650_v63  ;;  %v3713_v63 = vld [vmem:[%s18661_s4 + $0x3f0] sm:$0xff] }
 0x273   : > { %v1529_v8 = vpop.f32.mrb[114].mxu1  ;;  %13658 = vmatprep.subr.bf16.mxu1 %v18746_v18  ;;  %v1799_v20 = vpop.f32.mrb[116].mxu0  ;;  %13652 = vmatprep.subr.bf16.mxu0 %v18746_v18  ;;  %v13656_v32 = vpack.c.bf16 %v3714_v7, %v3713_v63  ;;  %v2932_v7 = vld [vmem:[#allocation2 + $0x64] sm:$0xff] }
 0x274   : > { %v10487_v42 = vpop.f32.mrb[115].mxu1  ;;  %11019 = vmatmul.mubr.f32.gmra.mrb[220].mxu1 %v2562_v9  ;;  %v15468_v62 = vadd.f32 %v1799_v20, %v1529_v8  ;;  %v10642_v22 = vpop.f32.mrb[117].mxu0  ;;  %11174 = vmatmul.mubr.f32.gmra.mrb[222].mxu0 %v2930_v5  ;;  %v2931_v20 = vld [vmem:[#allocation2 + $0x5c] sm:$0xff] }
 0x275   : > { %11021 = vmatprep.mubr.msk.f32.mxu1 %vm14006_vm0, %v15420_v10  ;;  %11176 = vmatprep.mubr.msk.f32.mxu0 %vm14006_vm0, %v15420_v10 }
 0x276   : > { %13654 = vmatpush3.bf16.msra.mxu0 %v13653_v4 }
 0x277   : > { %v1534_v15 = vpop.f32.mrb[116].mxu1  ;;  %v1804_v8 = vpop.f32.mrb[118].mxu0  ;;  %13655 = vmatprep.subr.bf16.mxu0 %v18746_v18 }
 0x278   : > { %v10490_v9 = vpop.f32.mrb[117].mxu1  ;;  %11022 = vmatmul.mubr.f32.gmra.mrb[222].mxu1 %v2563_v28  ;;  %v15481_v42 = vadd.f32 %v1804_v8, %v1534_v15  ;;  %v10645_v5 = vpop.f32.mrb[119].mxu0  ;;  %11177 = vmatmul.mubr.f32.gmra.mrb[224].mxu0 %v2931_v20 }
 0x279   : > { %11024 = vmatprep.mubr.msk.f32.mxu1 %vm14006_vm0, %v15420_v10  ;;  %11179 = vmatprep.mubr.msk.f32.mxu0 %vm14006_vm0, %v15420_v10  ;;  %v2565_v9 = vld [vmem:[#allocation2 + $0x6b] sm:$0xff] }
 0x27a   : > { %13657 = vmatpush3.bf16.msra.mxu0 %v13656_v32  ;;  %v2933_v5 = vld [vmem:[#allocation2 + $0x6c] sm:$0xff] }
 0x27b   : > { %v1539_v22 = vpop.f32.mrb[118].mxu1  ;;  %v1809_v4 = vpop.f32.mrb[120].mxu0  ;;  %13682 = vmatprep.subr.bf16.mxu0 %v18746_v18 }
 0x27c   : > { %v10493_v63 = vpop.f32.mrb[119].mxu1  ;;  %11025 = vmatmul.mubr.f32.gmra.mrb[224].mxu1 %v2564_v61  ;;  %v15488_v28 = vadd.f32 %v1809_v4, %v1539_v22  ;;  %v10648_v15 = vpop.f32.mrb[121].mxu0  ;;  %11180 = vmatmul.mubr.f32.gmra.mrb[226].mxu0 %v2932_v7  ;;  %v2566_v4 = vld [vmem:[#allocation2 + $0x73] sm:$0xff] }
 0x27d   : > { %11027 = vmatprep.mubr.msk.f32.mxu1 %vm14006_vm0, %v15420_v10  ;;  %11182 = vmatprep.mubr.msk.f32.mxu0 %vm14006_vm0, %v15420_v10 }
 0x27f   : > { %v1544_v8 = vpop.f32.mrb[120].mxu1  ;;  %v1814_v20 = vpop.f32.mrb[122].mxu0 }
 0x280   : > { %v10496_v32 = vpop.f32.mrb[121].mxu1  ;;  %11028 = vmatmul.mubr.f32.gmra.mrb[226].mxu1 %v2565_v9  ;;  %v15494_v61 = vadd.f32 %v1814_v20, %v1544_v8  ;;  %v10651_v63 = vpop.f32.mrb[123].mxu0  ;;  %11183 = vmatmul.mubr.f32.gmra.mrb[228].mxu0 %v2933_v5  ;;  %v2567_v5 = vld [vmem:[#allocation2 + $0x7b] sm:$0xff] }
 0x281   : > { %11030 = vmatprep.mubr.msk.f32.mxu1 %vm14006_vm0, %v15420_v10  ;;  %11185 = vmatprep.mubr.msk.f32.mxu0 %vm14006_vm0, %v15420_v10  ;;  %v2934_v32 = vld [vmem:[#allocation2 + $0x74] sm:$0xff] }
 0x283   : > { %v1941_v22 = vpop.f32.mrb[122].mxu1  ;;  %v2309_v15 = vpop.f32.mrb[124].mxu0 }
 0x284   : > { %v2145_v7 = vadd.f32 %v1941_v22, %v14898_v21  ;;  %v10686_v60 = vpop.f32.mrb[123].mxu1  ;;  %11031 = vmatmul.mubr.f32.gmra.mrb[228].mxu1 %v2566_v4  ;;  %v10841_v9 = vpop.f32.mrb[125].mxu0  ;;  %11186 = vmatmul.mubr.f32.gmra.mrb[230].mxu0 %v2934_v32 }
 0x285   : > { %11033 = vmatprep.mubr.msk.f32.mxu1 %vm14006_vm0, %v15420_v10  ;;  %11188 = vmatprep.mubr.msk.f32.mxu0 %vm14006_vm0, %v15420_v10  ;;  %v2935_v60 = vld [vmem:[#allocation2 + $0x7c] sm:$0xff] }
 0x286   : > { %v15503_v8 = vadd.f32 %v2309_v15, %v2145_v7  ;;  %v2568_v15 = vld [vmem:[#allocation2 + $0x83] sm:$0xff] }
 0x287   : > { %v1946_v20 = vpop.f32.mrb[124].mxu1  ;;  %v2314_v59 = vpop.f32.mrb[126].mxu0 }
 0x288   : > { %v2146_v63 = vadd.f32 %v1946_v20, %v14904_v36  ;;  %v10689_v21 = vpop.f32.mrb[125].mxu1  ;;  %11034 = vmatmul.mubr.f32.gmra.mrb[230].mxu1 %v2567_v5  ;;  %v10844_v22 = vpop.f32.mrb[127].mxu0  ;;  %11189 = vmatmul.mubr.f32.gmra.mrb[232].mxu0 %v2935_v60  ;;  %v2936_v20 = vld [vmem:[#allocation2 + $0x84] sm:$0xff] }
 0x289   : > { %11036 = vmatprep.mubr.msk.f32.mxu1 %vm14006_vm0, %v15420_v10  ;;  %11191 = vmatprep.mubr.msk.f32.mxu0 %vm14006_vm0, %v15420_v10 }
 0x28a   : > { %v15510_v4 = vadd.f32 %v2314_v59, %v2146_v63  ;;  %v2569_v63 = vld [vmem:[#allocation2 + $0x8b] sm:$0xff] }
 0x28b   : > { %v1951_v7 = vpop.f32.mrb[126].mxu1  ;;  %v2319_v9 = vpop.f32.mrb[128].mxu0 }
 0x28c   : > { %v2147_v32 = vadd.f32 %v1951_v7, %v15152_v14  ;;  %v10692_v36 = vpop.f32.mrb[127].mxu1  ;;  %11037 = vmatmul.mubr.f32.gmra.mrb[232].mxu1 %v2568_v15  ;;  %v10847_v5 = vpop.f32.mrb[129].mxu0  ;;  %11192 = vmatmul.mubr.f32.gmra.mrb[234].mxu0 %v2936_v20  ;;  %v2937_v7 = vld [vmem:[#allocation2 + $0x8c] sm:$0xff] }
 0x28d   : > { %11039 = vmatprep.mubr.msk.f32.mxu1 %vm14006_vm0, %v15420_v10  ;;  %11194 = vmatprep.mubr.msk.f32.mxu0 %vm14006_vm0, %v15420_v10 }
 0x28e   : > { %v15517_v21 = vadd.f32 %v2319_v9, %v2147_v32  ;;  %v2570_v9 = vld [vmem:[#allocation2 + $0x93] sm:$0xff] }
 0x28f   : > { %v1956_v59 = vpop.f32.mrb[128].mxu1  ;;  %v2324_v22 = vpop.f32.mrb[130].mxu0 }
 0x290   : > { %v2148_v60 = vadd.f32 %v1956_v59, %v15158_v29  ;;  %v10695_v14 = vpop.f32.mrb[129].mxu1  ;;  %11040 = vmatmul.mubr.f32.gmra.mrb[234].mxu1 %v2569_v63  ;;  %v10850_v15 = vpop.f32.mrb[131].mxu0  ;;  %11195 = vmatmul.mubr.f32.gmra.mrb[236].mxu0 %v2937_v7  ;;  %v2938_v59 = vld [vmem:[#allocation2 + $0x94] sm:$0xff] }
 0x291   : > { %11042 = vmatprep.mubr.msk.f32.mxu1 %vm14006_vm0, %v15420_v10  ;;  %11197 = vmatprep.mubr.msk.f32.mxu0 %vm14006_vm0, %v15420_v10 }
 0x292   : > { %v15524_v36 = vadd.f32 %v2324_v22, %v2148_v60  ;;  %v2571_v22 = vld [vmem:[#allocation2 + $0x9b] sm:$0xff] }
 0x293   : > { %v1961_v32 = vpop.f32.mrb[130].mxu1  ;;  %v2329_v5 = vpop.f32.mrb[132].mxu0 }
 0x294   : > { %v2149_v20 = vadd.f32 %v1961_v32, %v15164_v43  ;;  %v10698_v29 = vpop.f32.mrb[131].mxu1  ;;  %11043 = vmatmul.mubr.f32.gmra.mrb[236].mxu1 %v2570_v9  ;;  %v10853_v63 = vpop.f32.mrb[133].mxu0  ;;  %11198 = vmatmul.mubr.f32.gmra.mrb[238].mxu0 %v2938_v59  ;;  %v2939_v32 = vld [vmem:[#allocation2 + $0x9c] sm:$0xff] }
 0x295   : > { %11045 = vmatprep.mubr.msk.f32.mxu1 %vm14006_vm0, %v15420_v10  ;;  %11200 = vmatprep.mubr.msk.f32.mxu0 %vm14006_vm0, %v15420_v10 }
 0x296   : > { %v15531_v14 = vadd.f32 %v2329_v5, %v2149_v20  ;;  %v2572_v5 = vld [vmem:[#allocation2 + $0xa3] sm:$0xff] }
 0x297   : > { %v1966_v60 = vpop.f32.mrb[132].mxu1  ;;  %v2334_v15 = vpop.f32.mrb[134].mxu0 }
 0x298   : > { %v2150_v7 = vadd.f32 %v1966_v60, %v15170_v17  ;;  %v10701_v43 = vpop.f32.mrb[133].mxu1  ;;  %11046 = vmatmul.mubr.f32.gmra.mrb[238].mxu1 %v2571_v22  ;;  %v10856_v9 = vpop.f32.mrb[135].mxu0  ;;  %11201 = vmatmul.mubr.f32.gmra.mrb[240].mxu0 %v2939_v32  ;;  %v2940_v60 = vld [vmem:[#allocation2 + $0xa4] sm:$0xff] }
 0x299   : > { %11048 = vmatprep.mubr.msk.f32.mxu1 %vm14006_vm0, %v15420_v10  ;;  %11203 = vmatprep.mubr.msk.f32.mxu0 %vm14006_vm0, %v15420_v10 }
 0x29a   : > { %v15538_v29 = vadd.f32 %v2334_v15, %v2150_v7  ;;  %v2573_v15 = vld [vmem:[#allocation2 + $0xab] sm:$0xff] }
 0x29b   : > { %v1971_v20 = vpop.f32.mrb[134].mxu1  ;;  %v2339_v63 = vpop.f32.mrb[136].mxu0 }
 0x29c   : > { %v2151_v59 = vadd.f32 %v1971_v20, %v15176_v33  ;;  %v10704_v17 = vpop.f32.mrb[135].mxu1  ;;  %11049 = vmatmul.mubr.f32.gmra.mrb[240].mxu1 %v2572_v5  ;;  %v10859_v22 = vpop.f32.mrb[137].mxu0  ;;  %11204 = vmatmul.mubr.f32.gmra.mrb[242].mxu0 %v2940_v60  ;;  %v2941_v20 = vld [vmem:[#allocation2 + $0xac] sm:$0xff] }
 0x29d   : > { %11051 = vmatprep.mubr.msk.f32.mxu1 %vm14006_vm0, %v15420_v10  ;;  %11206 = vmatprep.mubr.msk.f32.mxu0 %vm14006_vm0, %v15420_v10 }
 0x29e   : > { %v15545_v43 = vadd.f32 %v2339_v63, %v2151_v59  ;;  %v2574_v63 = vld [vmem:[#allocation2 + $0xb3] sm:$0xff] }
 0x29f   : > { %v1976_v7 = vpop.f32.mrb[136].mxu1  ;;  %v2344_v9 = vpop.f32.mrb[138].mxu0 }
 0x2a0   : > { %v2152_v32 = vadd.f32 %v1976_v7, %v15182_v49  ;;  %v10707_v33 = vpop.f32.mrb[137].mxu1  ;;  %11052 = vmatmul.mubr.f32.gmra.mrb[242].mxu1 %v2573_v15  ;;  %v10862_v5 = vpop.f32.mrb[139].mxu0  ;;  %11207 = vmatmul.mubr.f32.gmra.mrb[244].mxu0 %v2941_v20  ;;  %v2942_v7 = vld [vmem:[#allocation2 + $0xb4] sm:$0xff] }
 0x2a1   : > { %11054 = vmatprep.mubr.msk.f32.mxu1 %vm14006_vm0, %v15420_v10  ;;  %11209 = vmatprep.mubr.msk.f32.mxu0 %vm14006_vm0, %v15420_v10 }
 0x2a2   : > { %v15552_v17 = vadd.f32 %v2344_v9, %v2152_v32  ;;  %v2575_v9 = vld [vmem:[#allocation2 + $0xbb] sm:$0xff] }
 0x2a3   : > { %v1981_v59 = vpop.f32.mrb[138].mxu1  ;;  %v2349_v22 = vpop.f32.mrb[140].mxu0 }
 0x2a4   : > { %v2153_v60 = vadd.f32 %v1981_v59, %v15188_v24  ;;  %v10710_v49 = vpop.f32.mrb[139].mxu1  ;;  %11055 = vmatmul.mubr.f32.gmra.mrb[244].mxu1 %v2574_v63  ;;  %v10865_v15 = vpop.f32.mrb[141].mxu0  ;;  %11210 = vmatmul.mubr.f32.gmra.mrb[246].mxu0 %v2942_v7  ;;  %v2943_v59 = vld [vmem:[#allocation2 + $0xbc] sm:$0xff] }
 0x2a5   : > { %11057 = vmatprep.mubr.msk.f32.mxu1 %vm14006_vm0, %v15420_v10  ;;  %11212 = vmatprep.mubr.msk.f32.mxu0 %vm14006_vm0, %v15420_v10 }
 0x2a6   : > { %v15559_v33 = vadd.f32 %v2349_v22, %v2153_v60  ;;  %v2576_v22 = vld [vmem:[#allocation2 + $0xc3] sm:$0xff] }
 0x2a7   : > { %v1986_v32 = vpop.f32.mrb[140].mxu1  ;;  %v2354_v5 = vpop.f32.mrb[142].mxu0 }
 0x2a8   : > { %v2154_v20 = vadd.f32 %v1986_v32, %v15194_v55  ;;  %v10713_v24 = vpop.f32.mrb[141].mxu1  ;;  %11058 = vmatmul.mubr.f32.gmra.mrb[246].mxu1 %v2575_v9  ;;  %v10868_v63 = vpop.f32.mrb[143].mxu0  ;;  %11213 = vmatmul.mubr.f32.gmra.mrb[248].mxu0 %v2943_v59  ;;  %v2944_v32 = vld [vmem:[#allocation2 + $0xc4] sm:$0xff] }
 0x2a9   : > { %11060 = vmatprep.mubr.msk.f32.mxu1 %vm14006_vm0, %v15420_v10  ;;  %11215 = vmatprep.mubr.msk.f32.mxu0 %vm14006_vm0, %v15420_v10 }
 0x2aa   : > { %v15566_v49 = vadd.f32 %v2354_v5, %v2154_v20  ;;  %v2577_v5 = vld [vmem:[#allocation2 + $0xcb] sm:$0xff] }
 0x2ab   : > { %v1991_v60 = vpop.f32.mrb[142].mxu1  ;;  %v2359_v15 = vpop.f32.mrb[144].mxu0 }
 0x2ac   : > { %v2155_v7 = vadd.f32 %v1991_v60, %v15200_v3  ;;  %v10716_v55 = vpop.f32.mrb[143].mxu1  ;;  %11061 = vmatmul.mubr.f32.gmra.mrb[248].mxu1 %v2576_v22  ;;  %v10871_v9 = vpop.f32.mrb[145].mxu0  ;;  %11216 = vmatmul.mubr.f32.gmra.mrb[250].mxu0 %v2944_v32  ;;  %v2945_v60 = vld [vmem:[#allocation2 + $0xcc] sm:$0xff] }
 0x2ad   : > { %11063 = vmatprep.mubr.msk.f32.mxu1 %vm14006_vm0, %v15420_v10  ;;  %11218 = vmatprep.mubr.msk.f32.mxu0 %vm14006_vm0, %v15420_v10 }
 0x2ae   : > { %v15573_v24 = vadd.f32 %v2359_v15, %v2155_v7  ;;  %v2578_v15 = vld [vmem:[#allocation2 + $0xd3] sm:$0xff] }
 0x2af   : > { %v1996_v20 = vpop.f32.mrb[144].mxu1  ;;  %v2364_v63 = vpop.f32.mrb[146].mxu0 }
 0x2b0   : > { %v2156_v59 = vadd.f32 %v1996_v20, %v15206_v35  ;;  %v10719_v3 = vpop.f32.mrb[145].mxu1  ;;  %11064 = vmatmul.mubr.f32.gmra.mrb[250].mxu1 %v2577_v5  ;;  %v10874_v22 = vpop.f32.mrb[147].mxu0  ;;  %11219 = vmatmul.mubr.f32.gmra.mrb[252].mxu0 %v2945_v60  ;;  %v2946_v20 = vld [vmem:[#allocation2 + $0xd4] sm:$0xff] }
 0x2b1   : > { %11066 = vmatprep.mubr.msk.f32.mxu1 %vm14006_vm0, %v15420_v10  ;;  %11221 = vmatprep.mubr.msk.f32.mxu0 %vm14006_vm0, %v15420_v10 }
 0x2b2   : > { %v15580_v55 = vadd.f32 %v2364_v63, %v2156_v59  ;;  %v2579_v63 = vld [vmem:[#allocation2 + $0xdb] sm:$0xff] }
 0x2b3   : > { %v2001_v7 = vpop.f32.mrb[146].mxu1  ;;  %v2369_v9 = vpop.f32.mrb[148].mxu0 }
 0x2b4   : > { %v2157_v32 = vadd.f32 %v2001_v7, %v15212_v12  ;;  %v10722_v35 = vpop.f32.mrb[147].mxu1  ;;  %11067 = vmatmul.mubr.f32.gmra.mrb[252].mxu1 %v2578_v15  ;;  %v10877_v5 = vpop.f32.mrb[149].mxu0  ;;  %11222 = vmatmul.mubr.f32.gmra.mrb[254].mxu0 %v2946_v20  ;;  %v2947_v7 = vld [vmem:[#allocation2 + $0xdc] sm:$0xff] }
 0x2b5   : > { %11069 = vmatprep.mubr.msk.f32.mxu1 %vm14006_vm0, %v15420_v10  ;;  %11224 = vmatprep.mubr.msk.f32.mxu0 %vm14006_vm0, %v15420_v10 }
 0x2b6   : > { %v15587_v3 = vadd.f32 %v2369_v9, %v2157_v32  ;;  %v2580_v9 = vld [vmem:[#allocation2 + $0xe3] sm:$0xff] }
 0x2b7   : > { %v2006_v59 = vpop.f32.mrb[148].mxu1  ;;  %v2374_v22 = vpop.f32.mrb[150].mxu0 }
 0x2b8   : > { %v2158_v60 = vadd.f32 %v2006_v59, %v15218_v25  ;;  %v10725_v12 = vpop.f32.mrb[149].mxu1  ;;  %11070 = vmatmul.mubr.f32.gmra.mrb[254].mxu1 %v2579_v63  ;;  %v10880_v15 = vpop.f32.mrb[151].mxu0  ;;  %11225 = vmatmul.mubr.f32.gmra.mrb[0].mxu0 %v2947_v7  ;;  %v2948_v59 = vld [vmem:[#allocation2 + $0xe4] sm:$0xff] }
 0x2b9   : > { %11072 = vmatprep.mubr.msk.f32.mxu1 %vm14006_vm0, %v15420_v10  ;;  %11227 = vmatprep.mubr.msk.f32.mxu0 %vm14006_vm0, %v15420_v10 }
 0x2ba   : > { %v15594_v35 = vadd.f32 %v2374_v22, %v2158_v60  ;;  %v2581_v22 = vld [vmem:[#allocation2 + $0xeb] sm:$0xff] }
 0x2bb   : > { %v2011_v32 = vpop.f32.mrb[150].mxu1  ;;  %v2379_v5 = vpop.f32.mrb[152].mxu0 }
 0x2bc   : > { %v2159_v20 = vadd.f32 %v2011_v32, %v15224_v41  ;;  %v10728_v25 = vpop.f32.mrb[151].mxu1  ;;  %11073 = vmatmul.mubr.f32.gmra.mrb[0].mxu1 %v2580_v9  ;;  %v10883_v63 = vpop.f32.mrb[153].mxu0  ;;  %11228 = vmatmul.mubr.f32.gmra.mrb[2].mxu0 %v2948_v59  ;;  %v2949_v32 = vld [vmem:[#allocation2 + $0xec] sm:$0xff] }
 0x2bd   : > { %11075 = vmatprep.mubr.msk.f32.mxu1 %vm14006_vm0, %v15420_v10  ;;  %11230 = vmatprep.mubr.msk.f32.mxu0 %vm14006_vm0, %v15420_v10 }
 0x2be   : > { %v15601_v12 = vadd.f32 %v2379_v5, %v2159_v20  ;;  %v2582_v5 = vld [vmem:[#allocation2 + $0xf3] sm:$0xff] }
 0x2bf   : > { %v2016_v60 = vpop.f32.mrb[152].mxu1  ;;  %v2384_v15 = vpop.f32.mrb[154].mxu0 }
 0x2c0   : > { %v2160_v7 = vadd.f32 %v2016_v60, %v15230_v6  ;;  %v10731_v41 = vpop.f32.mrb[153].mxu1  ;;  %11076 = vmatmul.mubr.f32.gmra.mrb[2].mxu1 %v2581_v22  ;;  %v10886_v9 = vpop.f32.mrb[155].mxu0  ;;  %11231 = vmatmul.mubr.f32.gmra.mrb[4].mxu0 %v2949_v32  ;;  %v2950_v60 = vld [vmem:[#allocation2 + $0xf4] sm:$0xff] }
 0x2c1   : > { %11078 = vmatprep.mubr.msk.f32.mxu1 %vm14006_vm0, %v15420_v10  ;;  %11233 = vmatprep.mubr.msk.f32.mxu0 %vm14006_vm0, %v15420_v10 }
 0x2c2   : > { %v15608_v25 = vadd.f32 %v2384_v15, %v2160_v7  ;;  %v2583_v15 = vld [vmem:[#allocation2 + $0xfb] sm:$0xff] }
 0x2c3   : > { %v2021_v20 = vpop.f32.mrb[154].mxu1  ;;  %v2389_v63 = vpop.f32.mrb[156].mxu0 }
 0x2c4   : > { %v2161_v59 = vadd.f32 %v2021_v20, %v15236_v34  ;;  %v10734_v6 = vpop.f32.mrb[155].mxu1  ;;  %11079 = vmatmul.mubr.f32.gmra.mrb[4].mxu1 %v2582_v5  ;;  %v10889_v22 = vpop.f32.mrb[157].mxu0  ;;  %11234 = vmatmul.mubr.f32.gmra.mrb[6].mxu0 %v2950_v60  ;;  %v2951_v20 = vld [vmem:[#allocation2 + $0xfc] sm:$0xff] }
 0x2c5   : > { %11081 = vmatprep.mubr.msk.f32.mxu1 %vm14006_vm0, %v15420_v10  ;;  %11236 = vmatprep.mubr.msk.f32.mxu0 %vm14006_vm0, %v15420_v10 }
 0x2c6   : > { %v15615_v41 = vadd.f32 %v2389_v63, %v2161_v59  ;;  %v2584_v63 = vld [vmem:[#allocation2 + $0x103] sm:$0xff] }
 0x2c7   : > { %v2026_v7 = vpop.f32.mrb[156].mxu1  ;;  %v2394_v9 = vpop.f32.mrb[158].mxu0 }
 0x2c8   : > { %v2162_v32 = vadd.f32 %v2026_v7, %v15242_v2  ;;  %v10737_v34 = vpop.f32.mrb[157].mxu1  ;;  %11082 = vmatmul.mubr.f32.gmra.mrb[6].mxu1 %v2583_v15  ;;  %v10892_v5 = vpop.f32.mrb[159].mxu0  ;;  %11237 = vmatmul.mubr.f32.gmra.mrb[8].mxu0 %v2951_v20  ;;  %v2952_v7 = vld [vmem:[#allocation2 + $0x104] sm:$0xff] }
 0x2c9   : > { %11084 = vmatprep.mubr.msk.f32.mxu1 %vm14006_vm0, %v15420_v10  ;;  %11239 = vmatprep.mubr.msk.f32.mxu0 %vm14006_vm0, %v15420_v10 }
 0x2ca   : > { %v15622_v6 = vadd.f32 %v2394_v9, %v2162_v32  ;;  %v2585_v9 = vld [vmem:[#allocation2 + $0x10b] sm:$0xff] }
 0x2cb   : > { %v2031_v59 = vpop.f32.mrb[158].mxu1  ;;  %v2399_v22 = vpop.f32.mrb[160].mxu0 }
 0x2cc   : > { %v2163_v60 = vadd.f32 %v2031_v59, %v15248_v27  ;;  %v10740_v2 = vpop.f32.mrb[159].mxu1  ;;  %11085 = vmatmul.mubr.f32.gmra.mrb[8].mxu1 %v2584_v63  ;;  %v10895_v15 = vpop.f32.mrb[161].mxu0  ;;  %11240 = vmatmul.mubr.f32.gmra.mrb[10].mxu0 %v2952_v7  ;;  %v2953_v59 = vld [vmem:[#allocation2 + $0x10c] sm:$0xff] }
 0x2cd   : > { %11087 = vmatprep.mubr.msk.f32.mxu1 %vm14006_vm0, %v15420_v10  ;;  %11242 = vmatprep.mubr.msk.f32.mxu0 %vm14006_vm0, %v15420_v10 }
 0x2ce   : > { %v15629_v34 = vadd.f32 %v2399_v22, %v2163_v60  ;;  %v2586_v22 = vld [vmem:[#allocation2 + $0x113] sm:$0xff] }
 0x2cf   : > { %v2036_v32 = vpop.f32.mrb[160].mxu1  ;;  %v2404_v5 = vpop.f32.mrb[162].mxu0 }
 0x2d0   : > { %v2164_v20 = vadd.f32 %v2036_v32, %v15254_v1  ;;  %v10743_v27 = vpop.f32.mrb[161].mxu1  ;;  %11088 = vmatmul.mubr.f32.gmra.mrb[10].mxu1 %v2585_v9  ;;  %v10898_v63 = vpop.f32.mrb[163].mxu0  ;;  %11243 = vmatmul.mubr.f32.gmra.mrb[12].mxu0 %v2953_v59  ;;  %v2954_v32 = vld [vmem:[#allocation2 + $0x114] sm:$0xff] }
 0x2d1   : > { %11090 = vmatprep.mubr.msk.f32.mxu1 %vm14006_vm0, %v15420_v10  ;;  %11245 = vmatprep.mubr.msk.f32.mxu0 %vm14006_vm0, %v15420_v10 }
 0x2d2   : > { %v15636_v2 = vadd.f32 %v2404_v5, %v2164_v20  ;;  %v2587_v5 = vld [vmem:[#allocation2 + $0x11b] sm:$0xff] }
 0x2d3   : > { %v2041_v60 = vpop.f32.mrb[162].mxu1  ;;  %v2409_v15 = vpop.f32.mrb[164].mxu0 }
 0x2d4   : > { %v2165_v7 = vadd.f32 %v2041_v60, %v15260_v30  ;;  %v10746_v1 = vpop.f32.mrb[163].mxu1  ;;  %11091 = vmatmul.mubr.f32.gmra.mrb[12].mxu1 %v2586_v22  ;;  %v10901_v9 = vpop.f32.mrb[165].mxu0  ;;  %11246 = vmatmul.mubr.f32.gmra.mrb[14].mxu0 %v2954_v32  ;;  %v2955_v60 = vld [vmem:[#allocation2 + $0x11c] sm:$0xff] }
 0x2d5   : > { %11093 = vmatprep.mubr.msk.f32.mxu1 %vm14006_vm0, %v15420_v10  ;;  %11248 = vmatprep.mubr.msk.f32.mxu0 %vm14006_vm0, %v15420_v10 }
 0x2d6   : > { %v15643_v27 = vadd.f32 %v2409_v15, %v2165_v7  ;;  %v2588_v15 = vld [vmem:[#allocation2 + $0x123] sm:$0xff] }
 0x2d7   : > { %v2046_v20 = vpop.f32.mrb[164].mxu1  ;;  %v2414_v63 = vpop.f32.mrb[166].mxu0 }
 0x2d8   : > { %v2166_v59 = vadd.f32 %v2046_v20, %v15266_v57  ;;  %v10749_v30 = vpop.f32.mrb[165].mxu1  ;;  %11094 = vmatmul.mubr.f32.gmra.mrb[14].mxu1 %v2587_v5  ;;  %v10904_v22 = vpop.f32.mrb[167].mxu0  ;;  %11249 = vmatmul.mubr.f32.gmra.mrb[16].mxu0 %v2955_v60  ;;  %v2956_v20 = vld [vmem:[#allocation2 + $0x124] sm:$0xff] }
 0x2d9   : > { %11096 = vmatprep.mubr.msk.f32.mxu1 %vm14006_vm0, %v15420_v10  ;;  %11251 = vmatprep.mubr.msk.f32.mxu0 %vm14006_vm0, %v15420_v10 }
 0x2da   : > { %v15650_v1 = vadd.f32 %v2414_v63, %v2166_v59  ;;  %v2589_v63 = vld [vmem:[#allocation2 + $0x12b] sm:$0xff] }
 0x2db   : > { %v2051_v7 = vpop.f32.mrb[166].mxu1  ;;  %v2419_v9 = vpop.f32.mrb[168].mxu0 }
 0x2dc   : > { %v2167_v32 = vadd.f32 %v2051_v7, %v15272_v26  ;;  %v10752_v57 = vpop.f32.mrb[167].mxu1  ;;  %11097 = vmatmul.mubr.f32.gmra.mrb[16].mxu1 %v2588_v15  ;;  %v10907_v5 = vpop.f32.mrb[169].mxu0  ;;  %11252 = vmatmul.mubr.f32.gmra.mrb[18].mxu0 %v2956_v20  ;;  %v2957_v7 = vld [vmem:[#allocation2 + $0x12c] sm:$0xff] }
 0x2dd   : > { %11099 = vmatprep.mubr.msk.f32.mxu1 %vm14006_vm0, %v15420_v10  ;;  %11254 = vmatprep.mubr.msk.f32.mxu0 %vm14006_vm0, %v15420_v10 }
 0x2de   : > { %v15657_v30 = vadd.f32 %v2419_v9, %v2167_v32  ;;  %v2590_v9 = vld [vmem:[#allocation2 + $0x133] sm:$0xff] }
 0x2df   : > { %v2056_v59 = vpop.f32.mrb[168].mxu1  ;;  %v2424_v22 = vpop.f32.mrb[170].mxu0 }
 0x2e0   : > { %v2168_v60 = vadd.f32 %v2056_v59, %v15278_v47  ;;  %v10755_v26 = vpop.f32.mrb[169].mxu1  ;;  %11100 = vmatmul.mubr.f32.gmra.mrb[18].mxu1 %v2589_v63  ;;  %v10910_v15 = vpop.f32.mrb[171].mxu0  ;;  %11255 = vmatmul.mubr.f32.gmra.mrb[20].mxu0 %v2957_v7  ;;  %v2958_v59 = vld [vmem:[#allocation2 + $0x134] sm:$0xff] }
 0x2e1   : > { %11102 = vmatprep.mubr.msk.f32.mxu1 %vm14006_vm0, %v15420_v10  ;;  %11257 = vmatprep.mubr.msk.f32.mxu0 %vm14006_vm0, %v15420_v10 }
 0x2e2   : > { %v15664_v57 = vadd.f32 %v2424_v22, %v2168_v60  ;;  %v2591_v22 = vld [vmem:[#allocation2 + $0x13b] sm:$0xff] }
 0x2e3   : > { %v2061_v32 = vpop.f32.mrb[170].mxu1  ;;  %v2429_v5 = vpop.f32.mrb[172].mxu0 }
 0x2e4   : > { %v2169_v20 = vadd.f32 %v2061_v32, %v15284_v23  ;;  %v10758_v47 = vpop.f32.mrb[171].mxu1  ;;  %11103 = vmatmul.mubr.f32.gmra.mrb[20].mxu1 %v2590_v9  ;;  %v10913_v63 = vpop.f32.mrb[173].mxu0  ;;  %11258 = vmatmul.mubr.f32.gmra.mrb[22].mxu0 %v2958_v59  ;;  %v2959_v32 = vld [vmem:[#allocation2 + $0x13c] sm:$0xff] }
 0x2e5   : > { %11105 = vmatprep.mubr.msk.f32.mxu1 %vm14006_vm0, %v15420_v10  ;;  %11260 = vmatprep.mubr.msk.f32.mxu0 %vm14006_vm0, %v15420_v10 }
 0x2e6   : > { %v15671_v26 = vadd.f32 %v2429_v5, %v2169_v20  ;;  %v2592_v5 = vld [vmem:[#allocation2 + $0x143] sm:$0xff] }
 0x2e7   : > { %v2066_v60 = vpop.f32.mrb[172].mxu1  ;;  %v2434_v15 = vpop.f32.mrb[174].mxu0 }
 0x2e8   : > { %v2170_v7 = vadd.f32 %v2066_v60, %v15290_v38  ;;  %v10761_v23 = vpop.f32.mrb[173].mxu1  ;;  %11106 = vmatmul.mubr.f32.gmra.mrb[22].mxu1 %v2591_v22  ;;  %v10916_v9 = vpop.f32.mrb[175].mxu0  ;;  %11261 = vmatmul.mubr.f32.gmra.mrb[24].mxu0 %v2959_v32  ;;  %v2960_v60 = vld [vmem:[#allocation2 + $0x144] sm:$0xff] }
 0x2e9   : > { %11108 = vmatprep.mubr.msk.f32.mxu1 %vm14006_vm0, %v15420_v10  ;;  %11263 = vmatprep.mubr.msk.f32.mxu0 %vm14006_vm0, %v15420_v10 }
 0x2ea   : > { %v15678_v47 = vadd.f32 %v2434_v15, %v2170_v7  ;;  %v2593_v15 = vld [vmem:[#allocation2 + $0x14b] sm:$0xff] }
 0x2eb   : > { %v2071_v20 = vpop.f32.mrb[174].mxu1  ;;  %v2439_v63 = vpop.f32.mrb[176].mxu0 }
 0x2ec   : > { %v2171_v59 = vadd.f32 %v2071_v20, %v15296_v16  ;;  %v10764_v38 = vpop.f32.mrb[175].mxu1  ;;  %11109 = vmatmul.mubr.f32.gmra.mrb[24].mxu1 %v2592_v5  ;;  %v10919_v22 = vpop.f32.mrb[177].mxu0  ;;  %11264 = vmatmul.mubr.f32.gmra.mrb[26].mxu0 %v2960_v60  ;;  %v2961_v20 = vld [vmem:[#allocation2 + $0x14c] sm:$0xff] }
 0x2ed   : > { %11111 = vmatprep.mubr.msk.f32.mxu1 %vm14006_vm0, %v15420_v10  ;;  %11266 = vmatprep.mubr.msk.f32.mxu0 %vm14006_vm0, %v15420_v10  ;;  %v2594_v60 = vld [vmem:[#allocation2 + $0x153] sm:$0xff] }
 0x2ee   : > { %v15685_v23 = vadd.f32 %v2439_v63, %v2171_v59  ;;  %v4067_v59 = vld [vmem:[%s18661_s4 + $0x400] sm:$0xff] }
 0x2ef   : > { %v2076_v7 = vpop.f32.mrb[176].mxu1  ;;  %v2444_v9 = vpop.f32.mrb[178].mxu0 }
 0x2f0   : > { %v2172_v32 = vadd.f32 %v2076_v7, %v15302_v39  ;;  %v10767_v16 = vpop.f32.mrb[177].mxu1  ;;  %11112 = vmatmul.mubr.f32.gmra.mrb[26].mxu1 %v2593_v15  ;;  %v10922_v5 = vpop.f32.mrb[179].mxu0  ;;  %11267 = vmatmul.mubr.f32.gmra.mrb[28].mxu0 %v2961_v20  ;;  %v4068_v39 = vld [vmem:[%s18661_s4 + $0x408] sm:$0xff] }
 0x2f1   : > { %11114 = vmatprep.mubr.msk.f32.mxu1 %vm14006_vm0, %v15420_v10  ;;  %11269 = vmatprep.mubr.msk.f32.mxu0 %vm14006_vm0, %v15420_v10  ;;  %v13659_v16 = vpack.c.bf16 %v4068_v39, %v4067_v59  ;;  %v3658_v59 = vld [vmem:[#allocation2 + $0x25] sm:$0xff] }
 0x2f2   : > { %v15692_v38 = vadd.f32 %v2444_v9, %v2172_v32  ;;  %v2962_v32 = vld [vmem:[#allocation2 + $0x154] sm:$0xff] }
 0x2f3   : > { %v2081_v63 = vpop.f32.mrb[178].mxu1  ;;  %v2449_v7 = vpop.f32.mrb[180].mxu0 }
 0x2f4   : > { %v2173_v22 = vadd.f32 %v2081_v63, %v15314_v37  ;;  %v10770_v15 = vpop.f32.mrb[179].mxu1  ;;  %11115 = vmatmul.mubr.f32.gmra.mrb[28].mxu1 %v2594_v60  ;;  %v10925_v9 = vpop.f32.mrb[181].mxu0  ;;  %11270 = vmatmul.mubr.f32.gmra.mrb[30].mxu0 %v2962_v32  ;;  %v4069_v37 = vld [vmem:[%s18661_s4 + $0x410] sm:$0xff]  ;;  %v4070_v63 = vld [vmem:[%s18661_s4 + $0x418] sm:$0xff] }
 0x2f5   : > { %11304 = vmatprep.mubr.msk.f32.mxu1 %vm14006_vm0, %v15420_v10  ;;  %11459 = vmatprep.mubr.msk.f32.mxu0 %vm14006_vm0, %v15420_v10 }
 0x2f6   : > { %v15705_v20 = vadd.f32 %v2449_v7, %v2173_v22  ;;  %v13662_v7 = vpack.c.bf16 %v4070_v63, %v4069_v37 }
 0x2f7   : > { %v2086_v5 = vpop.f32.mrb[180].mxu1  ;;  %v2454_v15 = vpop.f32.mrb[182].mxu0 }
 0x2f8   : > { %v2174_v60 = vadd.f32 %v2086_v5, %v15326_v40  ;;  %v10773_v32 = vpop.f32.mrb[181].mxu1  ;;  %11305 = vmatmul.mubr.f32.vlgmr.msra.gmra.mrb[30].mxu1 %v3290_v58  ;;  %v10928_v39 = vpop.f32.mrb[183].mxu0  ;;  %11460 = vmatmul.mubr.f32.vlgmr.msra.gmra.mrb[32].mxu0 %v3658_v59  ;;  %v4071_v58 = vld [vmem:[%s18661_s4 + $0x420] sm:$0xff]  ;;  %v4072_v40 = vld [vmem:[%s18661_s4 + $0x428] sm:$0xff] }
 0x2f9   : > { %13660 = vmatpush3.bf16.msra.mxu1 %v13659_v16  ;;  %11307 = vmatprep.mubr.msk.f32.mxu1 %vm14006_vm0, %v15420_v10  ;;  %v13665_v63 = vpack.c.bf16 %v4072_v40, %v4071_v58  ;;  %v3292_v39 = vld [vmem:[#allocation2 + $0x34] sm:$0xff] }
 0x2fa   : > { %v15716_v22 = vadd.f32 %v2454_v15, %v2174_v60  ;;  %11462 = vmatprep.mubr.msk.f32.mxu0 %vm14006_vm0, %v15420_v10  ;;  %13661 = vmatprep.subr.bf16.mxu1 %v18746_v18  ;;  %v3659_v15 = vld [vmem:[#allocation2 + $0x2d] sm:$0xff] }
 0x2fb   : > { %v2091_v9 = vpop.f32.mrb[182].mxu1  ;;  %v2459_v5 = vpop.f32.mrb[184].mxu0 }
 0x2fc   : > { %v2175_v16 = vadd.f32 %v2091_v9, %v15339_v31  ;;  %v10776_v60 = vpop.f32.mrb[183].mxu1  ;;  %11308 = vmatmul.mubr.f32.gmra.mrb[32].mxu1 %v3291_v56  ;;  %v10931_v32 = vpop.f32.mrb[185].mxu0  ;;  %11463 = vmatmul.mubr.f32.gmra.mrb[34].mxu0 %v3659_v15  ;;  %v4073_v56 = vld [vmem:[%s18661_s4 + $0x430] sm:$0xff]  ;;  %v4074_v31 = vld [vmem:[%s18661_s4 + $0x438] sm:$0xff] }
 0x2fd   : > { %11310 = vmatprep.mubr.msk.f32.mxu1 %vm14006_vm0, %v15420_v10  ;;  %11465 = vmatprep.mubr.msk.f32.mxu0 %vm14006_vm0, %v15420_v10  ;;  %v3660_v60 = vld [vmem:[#allocation2 + $0x35] sm:$0xff]  ;;  %v13668_v40 = vpack.c.bf16 %v4074_v31, %v4073_v56  ;;  %v15758_v56 = vld [vmem:[#allocation2] sm:$0xff] }
 0x2fe   : > { %v15732_v37 = vadd.f32 %v2459_v5, %v2175_v16  ;;  %13663 = vmatpush3.bf16.msra.mxu1 %v13662_v7  ;;  %v3293_v32 = vld [vmem:[#allocation2 + $0x3c] sm:$0xff] }
 0x2ff   : > { %v2096_v59 = vpop.f32.mrb[184].mxu1  ;;  %13664 = vmatprep.subr.bf16.mxu1 %v18746_v18  ;;  %v2464_v16 = vpop.f32.mrb[186].mxu0 }
 0x300   : > { %v2176_v9 = vadd.f32 %v2096_v59, %v15358_v11  ;;  %v10779_v5 = vpop.f32.mrb[185].mxu1  ;;  %11311 = vmatmul.mubr.f32.gmra.mrb[34].mxu1 %v3292_v39  ;;  %v10934_v7 = vpop.f32.mrb[187].mxu0  ;;  %11466 = vmatmul.mubr.f32.gmra.mrb[36].mxu0 %v3660_v60  ;;  %v4075_v11 = vld [vmem:[%s18661_s4 + $0x440] sm:$0xff]  ;;  %v4076_v59 = vld [vmem:[%s18661_s4 + $0x448] sm:$0xff] }
 0x301   : > { %11313 = vmatprep.mubr.msk.f32.mxu1 %vm14006_vm0, %v15420_v10  ;;  %11468 = vmatprep.mubr.msk.f32.mxu0 %vm14006_vm0, %v15420_v10  ;;  %v3661_v10 = vld [vmem:[#allocation2 + $0x3d] sm:$0xff]  ;;  %v13671_v5 = vpack.c.bf16 %v4076_v59, %v4075_v11  ;;  %v4077_v7 = vld [vmem:[%s18661_s4 + $0x450] sm:$0xff] }
 0x302   : > { %v15746_v58 = vadd.f32 %v2464_v16, %v2176_v9  ;;  %13666 = vmatpush3.bf16.msra.mxu1 %v13665_v63 }
 0x303   : > { %v2101_v15 = vpop.f32.mrb[186].mxu1  ;;  %13667 = vmatprep.subr.bf16.mxu1 %v18746_v18  ;;  %v2469_v9 = vpop.f32.mrb[188].mxu0 }
 0x304   : > { %v2177_v39 = vadd.f32 %v2101_v15, %v15378_v19  ;;  %v10782_v16 = vpop.f32.mrb[187].mxu1  ;;  %11314 = vmatmul.mubr.f32.gmra.mrb[36].mxu1 %v3293_v32  ;;  %v10937_v63 = vpop.f32.mrb[189].mxu0  ;;  %11469 = vmatmul.mubr.f32.gmra.mrb[38].mxu0 %v3661_v10  ;;  %v3294_v19 = vld [vmem:[#allocation2 + $0x44] sm:$0xff]  ;;  %v4078_v15 = vld [vmem:[%s18661_s4 + $0x458] sm:$0xff] }
 0x305   : > { %11316 = vmatprep.mubr.msk.f32.mxu1 %vm14006_vm0, %v15758_v56  ;;  %11471 = vmatprep.mubr.msk.f32.mxu0 %vm14006_vm0, %v15758_v56  ;;  %v3662_v16 = vld [vmem:[#allocation2 + $0x45] sm:$0xff]  ;;  %v13674_v59 = vpack.c.bf16 %v4078_v15, %v4077_v7 }
 0x306   : > { %v15762_v31 = vadd.f32 %v2469_v9, %v2177_v39  ;;  %13669 = vmatpush3.bf16.msra.mxu1 %v13668_v40  ;;  %v3295_v63 = vld [vmem:[#allocation2 + $0x4c] sm:$0xff] }
 0x307   : > { %v2106_v60 = vpop.f32.mrb[188].mxu1  ;;  %13670 = vmatprep.subr.bf16.mxu1 %v18746_v18  ;;  %v2474_v39 = vpop.f32.mrb[190].mxu0 }
 0x308   : > { %v2178_v32 = vadd.f32 %v2106_v60, %v15398_v54  ;;  %v10785_v9 = vpop.f32.mrb[189].mxu1  ;;  %11317 = vmatmul.mubr.f32.gmra.mrb[38].mxu1 %v3294_v19  ;;  %v10940_v40 = vpop.f32.mrb[191].mxu0  ;;  %11472 = vmatmul.mubr.f32.gmra.mrb[40].mxu0 %v3662_v16  ;;  %v4079_v54 = vld [vmem:[%s18661_s4 + $0x460] sm:$0xff]  ;;  %v4080_v60 = vld [vmem:[%s18661_s4 + $0x468] sm:$0xff] }
 0x309   : > { %11319 = vmatprep.mubr.msk.f32.mxu1 %vm14006_vm0, %v15758_v56  ;;  %11474 = vmatprep.mubr.msk.f32.mxu0 %vm14006_vm0, %v15758_v56  ;;  %v3663_v9 = vld [vmem:[#allocation2 + $0x4d] sm:$0xff]  ;;  %v13677_v15 = vpack.c.bf16 %v4080_v60, %v4079_v54 }
 0x30a   : > { %v15776_v11 = vadd.f32 %v2474_v39, %v2178_v32  ;;  %13672 = vmatpush3.bf16.msra.mxu1 %v13671_v5  ;;  %v3296_v40 = vld [vmem:[#allocation2 + $0x54] sm:$0xff] }
 0x30b   : > { %v2111_v10 = vpop.f32.mrb[190].mxu1  ;;  %13673 = vmatprep.subr.bf16.mxu1 %v18746_v18  ;;  %v2479_v32 = vpop.f32.mrb[192].mxu0 }
 0x30c   : > { %v2179_v19 = vadd.f32 %v2111_v10, %v15418_v48  ;;  %v10788_v39 = vpop.f32.mrb[191].mxu1  ;;  %11320 = vmatmul.mubr.f32.gmra.mrb[40].mxu1 %v3295_v63  ;;  %v10943_v5 = vpop.f32.mrb[193].mxu0  ;;  %11475 = vmatmul.mubr.f32.gmra.mrb[42].mxu0 %v3663_v9  ;;  %v4081_v48 = vld [vmem:[%s18661_s4 + $0x470] sm:$0xff]  ;;  %v4082_v10 = vld [vmem:[%s18661_s4 + $0x478] sm:$0xff] }
 0x30d   : > { %11322 = vmatprep.mubr.msk.f32.mxu1 %vm14006_vm0, %v15758_v56  ;;  %11477 = vmatprep.mubr.msk.f32.mxu0 %vm14006_vm0, %v15758_v56  ;;  %v3664_v39 = vld [vmem:[#allocation2 + $0x55] sm:$0xff]  ;;  %v13680_v60 = vpack.c.bf16 %v4082_v10, %v4081_v48  ;;  %v3298_v48 = vld [vmem:[#allocation2 + $0x64] sm:$0xff] }
 0x30e   : > { %v15790_v7 = vadd.f32 %v2479_v32, %v2179_v19  ;;  %13675 = vmatpush3.bf16.msra.mxu1 %v13674_v59  ;;  %v3297_v5 = vld [vmem:[#allocation2 + $0x5c] sm:$0xff] }
 0x30f   : > { %v2116_v16 = vpop.f32.mrb[192].mxu1  ;;  %13676 = vmatprep.subr.bf16.mxu1 %v18746_v18  ;;  %v2484_v19 = vpop.f32.mrb[194].mxu0 }
 0x310   : > { %v2180_v63 = vadd.f32 %v2116_v16, %v15440_v13  ;;  %v10791_v32 = vpop.f32.mrb[193].mxu1  ;;  %11323 = vmatmul.mubr.f32.gmra.mrb[42].mxu1 %v3296_v40  ;;  %v10946_v59 = vpop.f32.mrb[195].mxu0  ;;  %11478 = vmatmul.mubr.f32.gmra.mrb[44].mxu0 %v3664_v39 }
 0x311   : > { %11325 = vmatprep.mubr.msk.f32.mxu1 %vm14006_vm0, %v15758_v56  ;;  %11480 = vmatprep.mubr.msk.f32.mxu0 %vm14006_vm0, %v15758_v56  ;;  %v3665_v32 = vld [vmem:[#allocation2 + $0x5d] sm:$0xff]  ;;  %v3666_v59 = vld [vmem:[#allocation2 + $0x65] sm:$0xff] }
 0x312   : > { %v15804_v54 = vadd.f32 %v2484_v19, %v2180_v63  ;;  %13678 = vmatpush3.bf16.msra.mxu1 %v13677_v15 }
 0x313   : > { %v2121_v9 = vpop.f32.mrb[194].mxu1  ;;  %13679 = vmatprep.subr.bf16.mxu1 %v18746_v18  ;;  %v2489_v16 = vpop.f32.mrb[196].mxu0 }
 0x314   : > { %v2181_v13 = vadd.f32 %v2121_v9, %v15454_v0  ;;  %v10794_v40 = vpop.f32.mrb[195].mxu1  ;;  %11326 = vmatmul.mubr.f32.gmra.mrb[44].mxu1 %v3297_v5  ;;  %v10949_v39 = vpop.f32.mrb[197].mxu0  ;;  %11481 = vmatmul.mubr.f32.gmra.mrb[46].mxu0 %v3665_v32  ;;  %v3667_v32 = vld [vmem:[#allocation2 + $0x6d] sm:$0xff] }
 0x315   : > { %11328 = vmatprep.mubr.msk.f32.mxu1 %vm14006_vm0, %v15758_v56  ;;  %11483 = vmatprep.mubr.msk.f32.mxu0 %vm14006_vm0, %v15758_v56 }
 0x316   : > { %v15812_v63 = vadd.f32 %v2489_v16, %v2181_v13  ;;  %13681 = vmatpush3.bf16.msra.mxu1 %v13680_v60  ;;  %v3299_v13 = vld [vmem:[#allocation2 + $0x6c] sm:$0xff] }
 0x317   : > { %v2126_v15 = vpop.f32.mrb[196].mxu1  ;;  %13706 = vmatprep.subr.bf16.mxu1 %v18746_v18  ;;  %v2494_v10 = vpop.f32.mrb[198].mxu0 }
 0x318   : > { %v2182_v0 = vadd.f32 %v2126_v15, %v15468_v62  ;;  %v10797_v19 = vpop.f32.mrb[197].mxu1  ;;  %11329 = vmatmul.mubr.f32.gmra.mrb[46].mxu1 %v3298_v48  ;;  %v10952_v9 = vpop.f32.mrb[199].mxu0  ;;  %11484 = vmatmul.mubr.f32.gmra.mrb[48].mxu0 %v3666_v59  ;;  %v3668_v59 = vld [vmem:[#allocation2 + $0x75] sm:$0xff] }
 0x319   : > { %11331 = vmatprep.mubr.msk.f32.mxu1 %vm14006_vm0, %v15758_v56  ;;  %11486 = vmatprep.mubr.msk.f32.mxu0 %vm14006_vm0, %v15758_v56 }
 0x31a   : > { %v15820_v5 = vadd.f32 %v2494_v10, %v2182_v0  ;;  %v3300_v0 = vld [vmem:[#allocation2 + $0x74] sm:$0xff] }
 0x31b   : > { %v2131_v60 = vpop.f32.mrb[198].mxu1  ;;  %v2499_v40 = vpop.f32.mrb[200].mxu0 }
 0x31c   : > { %v2183_v16 = vadd.f32 %v2131_v60, %v15481_v42  ;;  %v10800_v62 = vpop.f32.mrb[199].mxu1  ;;  %11332 = vmatmul.mubr.f32.gmra.mrb[48].mxu1 %v3299_v13  ;;  %v10955_v39 = vpop.f32.mrb[201].mxu0  ;;  %11487 = vmatmul.mubr.f32.gmra.mrb[50].mxu0 %v3667_v32  ;;  %v3669_v32 = vld [vmem:[#allocation2 + $0x7d] sm:$0xff] }
 0x31d   : > { %11334 = vmatprep.mubr.msk.f32.mxu1 %vm14006_vm0, %v15758_v56  ;;  %11489 = vmatprep.mubr.msk.f32.mxu0 %vm14006_vm0, %v15758_v56 }
 0x31e   : > { %v15827_v15 = vadd.f32 %v2499_v40, %v2183_v16  ;;  %v3301_v16 = vld [vmem:[#allocation2 + $0x7c] sm:$0xff] }
 0x31f   : > { %v2136_v48 = vpop.f32.mrb[200].mxu1  ;;  %v2504_v19 = vpop.f32.mrb[202].mxu0 }
 0x320   : > { %v2184_v10 = vadd.f32 %v2136_v48, %v15488_v28  ;;  %v10803_v42 = vpop.f32.mrb[201].mxu1  ;;  %11335 = vmatmul.mubr.f32.gmra.mrb[50].mxu1 %v3300_v0  ;;  %v10958_v9 = vpop.f32.mrb[203].mxu0  ;;  %11490 = vmatmul.mubr.f32.gmra.mrb[52].mxu0 %v3668_v59  ;;  %v3670_v59 = vld [vmem:[#allocation2 + $0x85] sm:$0xff] }
 0x321   : > { %11337 = vmatprep.mubr.msk.f32.mxu1 %vm14006_vm0, %v15758_v56  ;;  %11492 = vmatprep.mubr.msk.f32.mxu0 %vm14006_vm0, %v15758_v56 }
 0x322   : > { %v15834_v60 = vadd.f32 %v2504_v19, %v2184_v10  ;;  %v3302_v10 = vld [vmem:[#allocation2 + $0x84] sm:$0xff] }
 0x323   : > { %v2141_v13 = vpop.f32.mrb[202].mxu1  ;;  %v2509_v62 = vpop.f32.mrb[204].mxu0 }
 0x324   : > { %v2185_v40 = vadd.f32 %v2141_v13, %v15494_v61  ;;  %v10806_v28 = vpop.f32.mrb[203].mxu1  ;;  %11338 = vmatmul.mubr.f32.gmra.mrb[52].mxu1 %v3301_v16  ;;  %v10961_v39 = vpop.f32.mrb[205].mxu0  ;;  %11493 = vmatmul.mubr.f32.gmra.mrb[54].mxu0 %v3669_v32  ;;  %v3671_v32 = vld [vmem:[#allocation2 + $0x8d] sm:$0xff] }
 0x325   : > { %11340 = vmatprep.mubr.msk.f32.mxu1 %vm14006_vm0, %v15758_v56  ;;  %11495 = vmatprep.mubr.msk.f32.mxu0 %vm14006_vm0, %v15758_v56 }
 0x326   : > { %v15841_v48 = vadd.f32 %v2509_v62, %v2185_v40  ;;  %v3303_v40 = vld [vmem:[#allocation2 + $0x8c] sm:$0xff] }
 0x327   : > { %v2677_v0 = vpop.f32.mrb[204].mxu1  ;;  %v3045_v42 = vpop.f32.mrb[206].mxu0 }
 0x328   : > { %v2881_v19 = vadd.f32 %v2677_v0, %v15503_v8  ;;  %v10996_v61 = vpop.f32.mrb[205].mxu1  ;;  %11341 = vmatmul.mubr.f32.gmra.mrb[54].mxu1 %v3302_v10  ;;  %v11151_v9 = vpop.f32.mrb[207].mxu0  ;;  %11496 = vmatmul.mubr.f32.gmra.mrb[56].mxu0 %v3670_v59  ;;  %v3672_v59 = vld [vmem:[#allocation2 + $0x95] sm:$0xff] }
 0x329   : > { %11343 = vmatprep.mubr.msk.f32.mxu1 %vm14006_vm0, %v15758_v56  ;;  %11498 = vmatprep.mubr.msk.f32.mxu0 %vm14006_vm0, %v15758_v56 }
 0x32a   : > { %v15848_v13 = vadd.f32 %v3045_v42, %v2881_v19  ;;  %v3304_v19 = vld [vmem:[#allocation2 + $0x94] sm:$0xff] }
 0x32b   : > { %v2682_v16 = vpop.f32.mrb[206].mxu1  ;;  %v3050_v28 = vpop.f32.mrb[208].mxu0 }
 0x32c   : > { %v2882_v62 = vadd.f32 %v2682_v16, %v15510_v4  ;;  %v10999_v8 = vpop.f32.mrb[207].mxu1  ;;  %11344 = vmatmul.mubr.f32.gmra.mrb[56].mxu1 %v3303_v40  ;;  %v11154_v39 = vpop.f32.mrb[209].mxu0  ;;  %11499 = vmatmul.mubr.f32.gmra.mrb[58].mxu0 %v3671_v32  ;;  %v3673_v32 = vld [vmem:[#allocation2 + $0x9d] sm:$0xff] }
 0x32d   : > { %11346 = vmatprep.mubr.msk.f32.mxu1 %vm14006_vm0, %v15758_v56  ;;  %11501 = vmatprep.mubr.msk.f32.mxu0 %vm14006_vm0, %v15758_v56 }
 0x32e   : > { %v15855_v0 = vadd.f32 %v3050_v28, %v2882_v62  ;;  %v3305_v62 = vld [vmem:[#allocation2 + $0x9c] sm:$0xff] }
 0x32f   : > { %v2687_v10 = vpop.f32.mrb[208].mxu1  ;;  %v3055_v61 = vpop.f32.mrb[210].mxu0 }
 0x330   : > { %v2883_v42 = vadd.f32 %v2687_v10, %v15517_v21  ;;  %v11002_v4 = vpop.f32.mrb[209].mxu1  ;;  %11347 = vmatmul.mubr.f32.gmra.mrb[58].mxu1 %v3304_v19  ;;  %v11157_v9 = vpop.f32.mrb[211].mxu0  ;;  %11502 = vmatmul.mubr.f32.gmra.mrb[60].mxu0 %v3672_v59  ;;  %v3674_v59 = vld [vmem:[#allocation2 + $0xa5] sm:$0xff] }
 0x331   : > { %11349 = vmatprep.mubr.msk.f32.mxu1 %vm14006_vm0, %v15758_v56  ;;  %11504 = vmatprep.mubr.msk.f32.mxu0 %vm14006_vm0, %v15758_v56 }
 0x332   : > { %v15862_v16 = vadd.f32 %v3055_v61, %v2883_v42  ;;  %v3306_v42 = vld [vmem:[#allocation2 + $0xa4] sm:$0xff] }
 0x333   : > { %v2692_v40 = vpop.f32.mrb[210].mxu1  ;;  %v3060_v8 = vpop.f32.mrb[212].mxu0 }
 0x334   : > { %v2884_v28 = vadd.f32 %v2692_v40, %v15524_v36  ;;  %v11005_v21 = vpop.f32.mrb[211].mxu1  ;;  %11350 = vmatmul.mubr.f32.gmra.mrb[60].mxu1 %v3305_v62  ;;  %v11160_v39 = vpop.f32.mrb[213].mxu0  ;;  %11505 = vmatmul.mubr.f32.gmra.mrb[62].mxu0 %v3673_v32  ;;  %v3675_v32 = vld [vmem:[#allocation2 + $0xad] sm:$0xff] }
 0x335   : > { %11352 = vmatprep.mubr.msk.f32.mxu1 %vm14006_vm0, %v15758_v56  ;;  %11507 = vmatprep.mubr.msk.f32.mxu0 %vm14006_vm0, %v15758_v56 }
 0x336   : > { %v15869_v10 = vadd.f32 %v3060_v8, %v2884_v28  ;;  %v3307_v28 = vld [vmem:[#allocation2 + $0xac] sm:$0xff] }
 0x337   : > { %v2697_v19 = vpop.f32.mrb[212].mxu1  ;;  %v3065_v4 = vpop.f32.mrb[214].mxu0 }
 0x338   : > { %v2885_v61 = vadd.f32 %v2697_v19, %v15531_v14  ;;  %v11008_v36 = vpop.f32.mrb[213].mxu1  ;;  %11353 = vmatmul.mubr.f32.gmra.mrb[62].mxu1 %v3306_v42  ;;  %v11163_v9 = vpop.f32.mrb[215].mxu0  ;;  %11508 = vmatmul.mubr.f32.gmra.mrb[64].mxu0 %v3674_v59  ;;  %v3676_v59 = vld [vmem:[#allocation2 + $0xb5] sm:$0xff] }
 0x339   : > { %11355 = vmatprep.mubr.msk.f32.mxu1 %vm14006_vm0, %v15758_v56  ;;  %11510 = vmatprep.mubr.msk.f32.mxu0 %vm14006_vm0, %v15758_v56 }
 0x33a   : > { %v15876_v40 = vadd.f32 %v3065_v4, %v2885_v61  ;;  %v3308_v61 = vld [vmem:[#allocation2 + $0xb4] sm:$0xff] }
 0x33b   : > { %v2702_v62 = vpop.f32.mrb[214].mxu1  ;;  %v3070_v21 = vpop.f32.mrb[216].mxu0 }
 0x33c   : > { %v2886_v8 = vadd.f32 %v2702_v62, %v15538_v29  ;;  %v11011_v14 = vpop.f32.mrb[215].mxu1  ;;  %11356 = vmatmul.mubr.f32.gmra.mrb[64].mxu1 %v3307_v28  ;;  %v11166_v39 = vpop.f32.mrb[217].mxu0  ;;  %11511 = vmatmul.mubr.f32.gmra.mrb[66].mxu0 %v3675_v32  ;;  %v3677_v32 = vld [vmem:[#allocation2 + $0xbd] sm:$0xff] }
 0x33d   : > { %11358 = vmatprep.mubr.msk.f32.mxu1 %vm14006_vm0, %v15758_v56  ;;  %11513 = vmatprep.mubr.msk.f32.mxu0 %vm14006_vm0, %v15758_v56 }
 0x33e   : > { %v15883_v19 = vadd.f32 %v3070_v21, %v2886_v8  ;;  %v3309_v8 = vld [vmem:[#allocation2 + $0xbc] sm:$0xff] }
 0x33f   : > { %v2707_v42 = vpop.f32.mrb[216].mxu1  ;;  %v3075_v36 = vpop.f32.mrb[218].mxu0 }
 0x340   : > { %v2887_v4 = vadd.f32 %v2707_v42, %v15545_v43  ;;  %v11014_v29 = vpop.f32.mrb[217].mxu1  ;;  %11359 = vmatmul.mubr.f32.gmra.mrb[66].mxu1 %v3308_v61  ;;  %v11169_v9 = vpop.f32.mrb[219].mxu0  ;;  %11514 = vmatmul.mubr.f32.gmra.mrb[68].mxu0 %v3676_v59  ;;  %v3678_v59 = vld [vmem:[#allocation2 + $0xc5] sm:$0xff] }
 0x341   : > { %11361 = vmatprep.mubr.msk.f32.mxu1 %vm14006_vm0, %v15758_v56  ;;  %11516 = vmatprep.mubr.msk.f32.mxu0 %vm14006_vm0, %v15758_v56 }
 0x342   : > { %v15890_v62 = vadd.f32 %v3075_v36, %v2887_v4  ;;  %v3310_v4 = vld [vmem:[#allocation2 + $0xc4] sm:$0xff] }
 0x343   : > { %v2712_v28 = vpop.f32.mrb[218].mxu1  ;;  %v3080_v14 = vpop.f32.mrb[220].mxu0 }
 0x344   : > { %v2888_v21 = vadd.f32 %v2712_v28, %v15552_v17  ;;  %v11017_v43 = vpop.f32.mrb[219].mxu1  ;;  %11362 = vmatmul.mubr.f32.gmra.mrb[68].mxu1 %v3309_v8  ;;  %v11172_v39 = vpop.f32.mrb[221].mxu0  ;;  %11517 = vmatmul.mubr.f32.gmra.mrb[70].mxu0 %v3677_v32  ;;  %v3679_v32 = vld [vmem:[#allocation2 + $0xcd] sm:$0xff] }
 0x345   : > { %11364 = vmatprep.mubr.msk.f32.mxu1 %vm14006_vm0, %v15758_v56  ;;  %11519 = vmatprep.mubr.msk.f32.mxu0 %vm14006_vm0, %v15758_v56 }
 0x346   : > { %v15897_v42 = vadd.f32 %v3080_v14, %v2888_v21  ;;  %v3311_v21 = vld [vmem:[#allocation2 + $0xcc] sm:$0xff] }
 0x347   : > { %v2717_v61 = vpop.f32.mrb[220].mxu1  ;;  %v3085_v29 = vpop.f32.mrb[222].mxu0 }
 0x348   : > { %v2889_v36 = vadd.f32 %v2717_v61, %v15559_v33  ;;  %v11020_v17 = vpop.f32.mrb[221].mxu1  ;;  %11365 = vmatmul.mubr.f32.gmra.mrb[70].mxu1 %v3310_v4  ;;  %v11175_v9 = vpop.f32.mrb[223].mxu0  ;;  %11520 = vmatmul.mubr.f32.gmra.mrb[72].mxu0 %v3678_v59  ;;  %v3680_v59 = vld [vmem:[#allocation2 + $0xd5] sm:$0xff] }
 0x349   : > { %11367 = vmatprep.mubr.msk.f32.mxu1 %vm14006_vm0, %v15758_v56  ;;  %11522 = vmatprep.mubr.msk.f32.mxu0 %vm14006_vm0, %v15758_v56 }
 0x34a   : > { %v15904_v28 = vadd.f32 %v3085_v29, %v2889_v36  ;;  %v3312_v36 = vld [vmem:[#allocation2 + $0xd4] sm:$0xff] }
 0x34b   : > { %v2722_v8 = vpop.f32.mrb[222].mxu1  ;;  %v3090_v43 = vpop.f32.mrb[224].mxu0 }
 0x34c   : > { %v2890_v14 = vadd.f32 %v2722_v8, %v15566_v49  ;;  %v11023_v33 = vpop.f32.mrb[223].mxu1  ;;  %11368 = vmatmul.mubr.f32.gmra.mrb[72].mxu1 %v3311_v21  ;;  %v11178_v39 = vpop.f32.mrb[225].mxu0  ;;  %11523 = vmatmul.mubr.f32.gmra.mrb[74].mxu0 %v3679_v32  ;;  %v3681_v32 = vld [vmem:[#allocation2 + $0xdd] sm:$0xff] }
 0x34d   : > { %11370 = vmatprep.mubr.msk.f32.mxu1 %vm14006_vm0, %v15758_v56  ;;  %11525 = vmatprep.mubr.msk.f32.mxu0 %vm14006_vm0, %v15758_v56 }
 0x34e   : > { %v15911_v61 = vadd.f32 %v3090_v43, %v2890_v14  ;;  %v3313_v14 = vld [vmem:[#allocation2 + $0xdc] sm:$0xff] }
 0x34f   : > { %v2727_v4 = vpop.f32.mrb[224].mxu1  ;;  %v3095_v17 = vpop.f32.mrb[226].mxu0 }
 0x350   : > { %v2891_v29 = vadd.f32 %v2727_v4, %v15573_v24  ;;  %v11026_v49 = vpop.f32.mrb[225].mxu1  ;;  %11371 = vmatmul.mubr.f32.gmra.mrb[74].mxu1 %v3312_v36  ;;  %v11181_v9 = vpop.f32.mrb[227].mxu0  ;;  %11526 = vmatmul.mubr.f32.gmra.mrb[76].mxu0 %v3680_v59  ;;  %v4606_v36 = vld [vmem:[%s18663_s6] sm:$0xff] }
 0x351   : > { %11373 = vmatprep.mubr.msk.f32.mxu1 %vm14006_vm0, %v15758_v56  ;;  %11528 = vmatprep.mubr.msk.f32.mxu0 %vm14006_vm0, %v15758_v56 }
 0x352   : > { %v15918_v8 = vadd.f32 %v3095_v17, %v2891_v29  ;;  %v3314_v17 = vld [vmem:[#allocation2 + $0xe4] sm:$0xff] }
 0x353   : > { %v2732_v21 = vpop.f32.mrb[226].mxu1  ;;  %v3100_v33 = vpop.f32.mrb[228].mxu0 }
 0x354   : > { %v2892_v43 = vadd.f32 %v2732_v21, %v15580_v55  ;;  %v11029_v24 = vpop.f32.mrb[227].mxu1  ;;  %11374 = vmatmul.mubr.f32.gmra.mrb[76].mxu1 %v3313_v14  ;;  %v11184_v39 = vpop.f32.mrb[229].mxu0  ;;  %11529 = vmatmul.mubr.f32.gmra.mrb[78].mxu0 %v3681_v32  ;;  %v4607_v55 = vld [vmem:[%s18663_s6 + $0x8] sm:$0xff] }
 0x355   : > { %11376 = vmatprep.mubr.msk.f32.mxu1 %vm14006_vm0, %v15758_v56  ;;  %11531 = vmatprep.mubr.msk.f32.mxu0 %vm14006_vm0, %v15758_v56  ;;  %v13683_v49 = vpack.c.bf16 %v4607_v55, %v4606_v36  ;;  %v3682_v14 = vld [vmem:[#allocation2 + $0xe5] sm:$0xff]  ;;  %v3683_v55 = vld [vmem:[#allocation2 + $0xed] sm:$0xff] }
 0x356   : > { %v15925_v4 = vadd.f32 %v3100_v33, %v2892_v43  ;;  %v3315_v32 = vld [vmem:[#allocation2 + $0xec] sm:$0xff] }
 0x357   : > { %v2737_v29 = vpop.f32.mrb[228].mxu1  ;;  %v3105_v9 = vpop.f32.mrb[230].mxu0  ;;  %13684 = vmatpush3.bf16.msra.mxu0 %v13683_v49 }
 0x358   : > { %v2893_v59 = vadd.f32 %v2737_v29, %v15587_v3  ;;  %v11032_v21 = vpop.f32.mrb[229].mxu1  ;;  %11377 = vmatmul.mubr.f32.gmra.mrb[78].mxu1 %v3314_v17  ;;  %v11187_v43 = vpop.f32.mrb[231].mxu0  ;;  %11532 = vmatmul.mubr.f32.gmra.mrb[80].mxu0 %v3682_v14  ;;  %v3684_v14 = vld [vmem:[#allocation2 + $0xf5] sm:$0xff] }
 0x359   : > { %11379 = vmatprep.mubr.msk.f32.mxu1 %vm14006_vm0, %v15758_v56  ;;  %11534 = vmatprep.mubr.msk.f32.mxu0 %vm14006_vm0, %v15758_v56 }
 0x35a   : > { %v15938_v33 = vadd.f32 %v3105_v9, %v2893_v59  ;;  %13685 = vmatprep.subr.bf16.mxu0 %v18746_v18  ;;  %v3316_v59 = vld [vmem:[#allocation2 + $0xf4] sm:$0xff] }
 0x35b   : > { %v2742_v24 = vpop.f32.mrb[230].mxu1  ;;  %v3110_v39 = vpop.f32.mrb[232].mxu0 }
 0x35c   : > { %v2894_v3 = vadd.f32 %v2742_v24, %v15594_v35  ;;  %v11035_v36 = vpop.f32.mrb[231].mxu1  ;;  %11380 = vmatmul.mubr.f32.gmra.mrb[80].mxu1 %v3315_v32  ;;  %v11190_v29 = vpop.f32.mrb[233].mxu0  ;;  %11535 = vmatmul.mubr.f32.gmra.mrb[82].mxu0 %v3683_v55  ;;  %v3685_v55 = vld [vmem:[#allocation2 + $0xfd] sm:$0xff] }
 0x35d   : > { %11382 = vmatprep.mubr.msk.f32.mxu1 %vm14006_vm0, %v15758_v56  ;;  %11537 = vmatprep.mubr.msk.f32.mxu0 %vm14006_vm0, %v15758_v56 }
 0x35e   : > { %v15946_v17 = vadd.f32 %v3110_v39, %v2894_v3  ;;  %v3317_v3 = vld [vmem:[#allocation2 + $0xfc] sm:$0xff] }
 0x35f   : > { %v2747_v49 = vpop.f32.mrb[232].mxu1  ;;  %v3115_v21 = vpop.f32.mrb[234].mxu0 }
 0x360   : > { %v2895_v9 = vadd.f32 %v2747_v49, %v15601_v12  ;;  %v11038_v35 = vpop.f32.mrb[233].mxu1  ;;  %11383 = vmatmul.mubr.f32.gmra.mrb[82].mxu1 %v3316_v59  ;;  %v11193_v43 = vpop.f32.mrb[235].mxu0  ;;  %11538 = vmatmul.mubr.f32.gmra.mrb[84].mxu0 %v3684_v14  ;;  %v3686_v14 = vld [vmem:[#allocation2 + $0x105] sm:$0xff] }
 0x361   : > { %11385 = vmatprep.mubr.msk.f32.mxu1 %vm14006_vm0, %v15758_v56  ;;  %11540 = vmatprep.mubr.msk.f32.mxu0 %vm14006_vm0, %v15758_v56 }
 0x362   : > { %v15953_v24 = vadd.f32 %v3115_v21, %v2895_v9  ;;  %v3318_v9 = vld [vmem:[#allocation2 + $0x104] sm:$0xff] }
 0x363   : > { %v2752_v32 = vpop.f32.mrb[234].mxu1  ;;  %v3120_v36 = vpop.f32.mrb[236].mxu0 }
 0x364   : > { %v2896_v39 = vadd.f32 %v2752_v32, %v15608_v25  ;;  %v11041_v12 = vpop.f32.mrb[235].mxu1  ;;  %11386 = vmatmul.mubr.f32.gmra.mrb[84].mxu1 %v3317_v3  ;;  %v11196_v29 = vpop.f32.mrb[237].mxu0  ;;  %11541 = vmatmul.mubr.f32.gmra.mrb[86].mxu0 %v3685_v55  ;;  %v4608_v3 = vld [vmem:[%s18663_s6 + $0x10] sm:$0xff] }
 0x365   : > { %11388 = vmatprep.mubr.msk.f32.mxu1 %vm14006_vm0, %v15758_v56  ;;  %11543 = vmatprep.mubr.msk.f32.mxu0 %vm14006_vm0, %v15758_v56 }
 0x366   : > { %v15960_v49 = vadd.f32 %v3120_v36, %v2896_v39  ;;  %v3319_v36 = vld [vmem:[#allocation2 + $0x10c] sm:$0xff] }
 0x367   : > { %v2757_v59 = vpop.f32.mrb[236].mxu1  ;;  %v3125_v35 = vpop.f32.mrb[238].mxu0 }
 0x368   : > { %v2897_v21 = vadd.f32 %v2757_v59, %v15615_v41  ;;  %v11044_v25 = vpop.f32.mrb[237].mxu1  ;;  %11389 = vmatmul.mubr.f32.gmra.mrb[86].mxu1 %v3318_v9  ;;  %v11199_v43 = vpop.f32.mrb[239].mxu0  ;;  %11544 = vmatmul.mubr.f32.gmra.mrb[88].mxu0 %v3686_v14  ;;  %v4609_v41 = vld [vmem:[%s18663_s6 + $0x18] sm:$0xff]  ;;  %v3687_v9 = vld [vmem:[#allocation2 + $0x10d] sm:$0xff] }
 0x369   : > { %11391 = vmatprep.mubr.msk.f32.mxu1 %vm14006_vm0, %v15758_v56  ;;  %11546 = vmatprep.mubr.msk.f32.mxu0 %vm14006_vm0, %v15758_v56  ;;  %v13686_v12 = vpack.c.bf16 %v4609_v41, %v4608_v3  ;;  %v3320_v14 = vld [vmem:[#allocation2 + $0x114] sm:$0xff] }
 0x36a   : > { %v15967_v32 = vadd.f32 %v3125_v35, %v2897_v21  ;;  %v3688_v41 = vld [vmem:[#allocation2 + $0x115] sm:$0xff] }
 0x36b   : > { %v2762_v39 = vpop.f32.mrb[238].mxu1  ;;  %v3130_v29 = vpop.f32.mrb[240].mxu0  ;;  %13687 = vmatpush3.bf16.msra.mxu0 %v13686_v12 }
 0x36c   : > { %v2898_v55 = vadd.f32 %v2762_v39, %v15622_v6  ;;  %v11047_v59 = vpop.f32.mrb[239].mxu1  ;;  %11392 = vmatmul.mubr.f32.gmra.mrb[88].mxu1 %v3319_v36  ;;  %v11202_v21 = vpop.f32.mrb[241].mxu0  ;;  %11547 = vmatmul.mubr.f32.gmra.mrb[90].mxu0 %v3687_v9  ;;  %v3689_v9 = vld [vmem:[#allocation2 + $0x11d] sm:$0xff] }
 0x36d   : > { %11394 = vmatprep.mubr.msk.f32.mxu1 %vm14006_vm0, %v15758_v56  ;;  %11549 = vmatprep.mubr.msk.f32.mxu0 %vm14006_vm0, %v15758_v56 }
 0x36e   : > { %v15980_v35 = vadd.f32 %v3130_v29, %v2898_v55  ;;  %13688 = vmatprep.subr.bf16.mxu0 %v18746_v18  ;;  %v3321_v55 = vld [vmem:[#allocation2 + $0x11c] sm:$0xff] }
 0x36f   : > { %v2767_v25 = vpop.f32.mrb[240].mxu1  ;;  %v3135_v43 = vpop.f32.mrb[242].mxu0 }
 0x370   : > { %v2899_v6 = vadd.f32 %v2767_v25, %v15629_v34  ;;  %v11050_v3 = vpop.f32.mrb[241].mxu1  ;;  %11395 = vmatmul.mubr.f32.gmra.mrb[90].mxu1 %v3320_v14  ;;  %v11205_v39 = vpop.f32.mrb[243].mxu0  ;;  %11550 = vmatmul.mubr.f32.gmra.mrb[92].mxu0 %v3688_v41  ;;  %v3690_v41 = vld [vmem:[#allocation2 + $0x125] sm:$0xff] }
 0x371   : > { %11397 = vmatprep.mubr.msk.f32.mxu1 %vm14006_vm0, %v15758_v56  ;;  %11552 = vmatprep.mubr.msk.f32.mxu0 %vm14006_vm0, %v15758_v56 }
 0x372   : > { %v15988_v36 = vadd.f32 %v3135_v43, %v2899_v6  ;;  %v3322_v6 = vld [vmem:[#allocation2 + $0x124] sm:$0xff] }
 0x373   : > { %v2772_v12 = vpop.f32.mrb[242].mxu1  ;;  %v3140_v59 = vpop.f32.mrb[244].mxu0 }
 0x374   : > { %v2900_v29 = vadd.f32 %v2772_v12, %v15636_v2  ;;  %v11053_v34 = vpop.f32.mrb[243].mxu1  ;;  %11398 = vmatmul.mubr.f32.gmra.mrb[92].mxu1 %v3321_v55  ;;  %v11208_v21 = vpop.f32.mrb[245].mxu0  ;;  %11553 = vmatmul.mubr.f32.gmra.mrb[94].mxu0 %v3689_v9  ;;  %v3691_v9 = vld [vmem:[#allocation2 + $0x12d] sm:$0xff] }
 0x375   : > { %11400 = vmatprep.mubr.msk.f32.mxu1 %vm14006_vm0, %v15758_v56  ;;  %11555 = vmatprep.mubr.msk.f32.mxu0 %vm14006_vm0, %v15758_v56 }
 0x376   : > { %v15995_v25 = vadd.f32 %v3140_v59, %v2900_v29  ;;  %v3323_v29 = vld [vmem:[#allocation2 + $0x12c] sm:$0xff] }
 0x377   : > { %v2777_v14 = vpop.f32.mrb[244].mxu1  ;;  %v3145_v3 = vpop.f32.mrb[246].mxu0 }
 0x378   : > { %v2901_v43 = vadd.f32 %v2777_v14, %v15643_v27  ;;  %v11056_v2 = vpop.f32.mrb[245].mxu1  ;;  %11401 = vmatmul.mubr.f32.gmra.mrb[94].mxu1 %v3322_v6  ;;  %v11211_v39 = vpop.f32.mrb[247].mxu0  ;;  %11556 = vmatmul.mubr.f32.gmra.mrb[96].mxu0 %v3690_v41  ;;  %v4610_v6 = vld [vmem:[%s18663_s6 + $0x20] sm:$0xff] }
 0x379   : > { %11403 = vmatprep.mubr.msk.f32.mxu1 %vm14006_vm0, %v15758_v56  ;;  %11558 = vmatprep.mubr.msk.f32.mxu0 %vm14006_vm0, %v15758_v56 }
 0x37a   : > { %v16002_v12 = vadd.f32 %v3145_v3, %v2901_v43  ;;  %v3324_v3 = vld [vmem:[#allocation2 + $0x134] sm:$0xff] }
 0x37b   : > { %v2782_v55 = vpop.f32.mrb[246].mxu1  ;;  %v3150_v34 = vpop.f32.mrb[248].mxu0 }
 0x37c   : > { %v2902_v59 = vadd.f32 %v2782_v55, %v15650_v1  ;;  %v11059_v27 = vpop.f32.mrb[247].mxu1  ;;  %11404 = vmatmul.mubr.f32.gmra.mrb[96].mxu1 %v3323_v29  ;;  %v11214_v21 = vpop.f32.mrb[249].mxu0  ;;  %11559 = vmatmul.mubr.f32.gmra.mrb[98].mxu0 %v3691_v9  ;;  %v4611_v1 = vld [vmem:[%s18663_s6 + $0x28] sm:$0xff]  ;;  %v3692_v29 = vld [vmem:[#allocation2 + $0x135] sm:$0xff] }
 0x37d   : > { %11406 = vmatprep.mubr.msk.f32.mxu1 %vm14006_vm0, %v15758_v56  ;;  %11561 = vmatprep.mubr.msk.f32.mxu0 %vm14006_vm0, %v15758_v56  ;;  %v13689_v2 = vpack.c.bf16 %v4611_v1, %v4610_v6  ;;  %v3325_v9 = vld [vmem:[#allocation2 + $0x13c] sm:$0xff] }
 0x37e   : > { %v16009_v14 = vadd.f32 %v3150_v34, %v2902_v59  ;;  %v3693_v1 = vld [vmem:[#allocation2 + $0x13d] sm:$0xff] }
 0x37f   : > { %v2787_v43 = vpop.f32.mrb[248].mxu1  ;;  %v3155_v39 = vpop.f32.mrb[250].mxu0  ;;  %13690 = vmatpush3.bf16.msra.mxu0 %v13689_v2 }
 0x380   : > { %v2903_v41 = vadd.f32 %v2787_v43, %v15657_v30  ;;  %v11062_v55 = vpop.f32.mrb[249].mxu1  ;;  %11407 = vmatmul.mubr.f32.gmra.mrb[98].mxu1 %v3324_v3  ;;  %v11217_v59 = vpop.f32.mrb[251].mxu0  ;;  %11562 = vmatmul.mubr.f32.gmra.mrb[100].mxu0 %v3692_v29  ;;  %v3694_v29 = vld [vmem:[#allocation2 + $0x145] sm:$0xff] }
 0x381   : > { %11409 = vmatprep.mubr.msk.f32.mxu1 %vm14006_vm0, %v15758_v56  ;;  %11564 = vmatprep.mubr.msk.f32.mxu0 %vm14006_vm0, %v15758_v56 }
 0x382   : > { %v16022_v34 = vadd.f32 %v3155_v39, %v2903_v41  ;;  %13691 = vmatprep.subr.bf16.mxu0 %v18746_v18  ;;  %v3326_v41 = vld [vmem:[#allocation2 + $0x144] sm:$0xff] }
 0x383   : > { %v2792_v27 = vpop.f32.mrb[250].mxu1  ;;  %v3160_v21 = vpop.f32.mrb[252].mxu0 }
 0x384   : > { %v2904_v30 = vadd.f32 %v2792_v27, %v15664_v57  ;;  %v11065_v6 = vpop.f32.mrb[251].mxu1  ;;  %11410 = vmatmul.mubr.f32.gmra.mrb[100].mxu1 %v3325_v9  ;;  %v11220_v43 = vpop.f32.mrb[253].mxu0  ;;  %11565 = vmatmul.mubr.f32.gmra.mrb[102].mxu0 %v3693_v1  ;;  %v3695_v1 = vld [vmem:[#allocation2 + $0x14d] sm:$0xff] }
 0x385   : > { %11412 = vmatprep.mubr.msk.f32.mxu1 %vm14006_vm0, %v15758_v56  ;;  %11567 = vmatprep.mubr.msk.f32.mxu0 %vm14006_vm0, %v15758_v56 }
 0x386   : > { %v16030_v3 = vadd.f32 %v3160_v21, %v2904_v30  ;;  %v3327_v30 = vld [vmem:[#allocation2 + $0x14c] sm:$0xff] }
 0x387   : > { %v2797_v2 = vpop.f32.mrb[252].mxu1  ;;  %v3165_v55 = vpop.f32.mrb[254].mxu0 }
 0x388   : > { %v2905_v39 = vadd.f32 %v2797_v2, %v15671_v26  ;;  %v11068_v57 = vpop.f32.mrb[253].mxu1  ;;  %11413 = vmatmul.mubr.f32.gmra.mrb[102].mxu1 %v3326_v41  ;;  %v11223_v59 = vpop.f32.mrb[255].mxu0  ;;  %11568 = vmatmul.mubr.f32.gmra.mrb[104].mxu0 %v3694_v29  ;;  %v3696_v29 = vld [vmem:[#allocation2 + $0x155] sm:$0xff] }
 0x389   : > { %11415 = vmatprep.mubr.msk.f32.mxu1 %vm14006_vm0, %v15758_v56  ;;  %11570 = vmatprep.mubr.msk.f32.mxu0 %vm14006_vm0, %v15758_v56 }
 0x38a   : > { %v16037_v27 = vadd.f32 %v3165_v55, %v2905_v39 }
 0x38b   : > { %v2802_v9 = vpop.f32.mrb[254].mxu1  ;;  %v3170_v6 = vpop.f32.mrb[0].mxu0 }
 0x38c   : > { %v2906_v21 = vadd.f32 %v2802_v9, %v15678_v47  ;;  %v11071_v26 = vpop.f32.mrb[255].mxu1  ;;  %11416 = vmatmul.mubr.f32.gmra.mrb[104].mxu1 %v3327_v30  ;;  %v11226_v43 = vpop.f32.mrb[1].mxu0  ;;  %11571 = vmatmul.mubr.f32.gmra.mrb[106].mxu0 %v3695_v1  ;;  %v13981_v47 = vld [vmem:[#allocation2 + $0x154] sm:$0xff]  ;;  %v3329_v9 = vld [vmem:[#allocation2 + $0x15c] sm:$0xff] }
 0x38d   : > { %11418 = vmatprep.mubr.msk.f32.mxu1 %vm14006_vm0, %v15758_v56  ;;  %11573 = vmatprep.mubr.msk.f32.mxu0 %vm14006_vm0, %v15758_v56 }
 0x38e   : > { %v16044_v2 = vadd.f32 %v3170_v6, %v2906_v21  ;;  %v3697_v21 = vld [vmem:[#allocation2 + $0x15d] sm:$0xff] }
 0x38f   : > { %v2807_v41 = vpop.f32.mrb[0].mxu1  ;;  %v3175_v55 = vpop.f32.mrb[2].mxu0  ;;  %v4613_v6 = vld [vmem:[%s18663_s6 + $0x38] sm:$0xff] }
 0x390   : > { %v2907_v39 = vadd.f32 %v2807_v41, %v15685_v23  ;;  %v11074_v57 = vpop.f32.mrb[1].mxu1  ;;  %11419 = vmatmul.mubr.f32.gmra.mrb[106].mxu1 %v13981_v47  ;;  %v11229_v59 = vpop.f32.mrb[3].mxu0  ;;  %11574 = vmatmul.mubr.f32.gmra.mrb[108].mxu0 %v3696_v29  ;;  %v4612_v23 = vld [vmem:[%s18663_s6 + $0x30] sm:$0xff]  ;;  %v3698_v29 = vld [vmem:[#allocation2 + $0x165] sm:$0xff] }
 0x391   : > { %11421 = vmatprep.mubr.msk.f32.mxu1 %vm14006_vm0, %v15758_v56  ;;  %11576 = vmatprep.mubr.msk.f32.mxu0 %vm14006_vm0, %v15758_v56  ;;  %v13692_v1 = vpack.c.bf16 %v4613_v6, %v4612_v23 }
 0x392   : > { %v16051_v30 = vadd.f32 %v3175_v55, %v2907_v39  ;;  %v3330_v55 = vld [vmem:[#allocation2 + $0x164] sm:$0xff] }
 0x393   : > { %v2812_v26 = vpop.f32.mrb[2].mxu1  ;;  %v3180_v41 = vpop.f32.mrb[4].mxu0  ;;  %13693 = vmatpush3.bf16.msra.mxu0 %v13692_v1  ;;  %v4026_v1 = vld [vmem:[#allocation2 + $0x26] sm:$0xff] }
 0x394   : > { %v2908_v43 = vadd.f32 %v2812_v26, %v15692_v38  ;;  %v11077_v57 = vpop.f32.mrb[3].mxu1  ;;  %11422 = vmatmul.mubr.f32.gmra.mrb[108].mxu1 %v3329_v9  ;;  %v11232_v39 = vpop.f32.mrb[5].mxu0  ;;  %11577 = vmatmul.mubr.f32.gmra.mrb[110].mxu0 %v3697_v21 }
 0x395   : > { %11424 = vmatprep.mubr.msk.f32.mxu1 %vm14006_vm0, %v15758_v56  ;;  %11579 = vmatprep.mubr.msk.f32.mxu0 %vm14006_vm0, %v15758_v56 }
 0x396   : > { %v16064_v47 = vadd.f32 %v3180_v41, %v2908_v43  ;;  %13694 = vmatprep.subr.bf16.mxu0 %v18746_v18 }
 0x397   : > { %v2817_v59 = vpop.f32.mrb[4].mxu1  ;;  %v3185_v23 = vpop.f32.mrb[6].mxu0 }
 0x398   : > { %v2909_v38 = vadd.f32 %v2817_v59, %v15705_v20  ;;  %v11080_v9 = vpop.f32.mrb[5].mxu1  ;;  %11425 = vmatmul.mubr.f32.gmra.mrb[110].mxu1 %v3330_v55  ;;  %v11235_v21 = vpop.f32.mrb[7].mxu0  ;;  %11580 = vmatmul.mubr.f32.gmra.mrb[112].mxu0 %v3698_v29  ;;  %v4027_v29 = vld [vmem:[#allocation2 + $0x2e] sm:$0xff] }
 0x399   : > { %11614 = vmatprep.mubr.msk.f32.mxu1 %vm14006_vm0, %v15758_v56  ;;  %11769 = vmatprep.mubr.msk.f32.mxu0 %vm14006_vm0, %v15758_v56 }
 0x39a   : > { %v16072_v6 = vadd.f32 %v3185_v23, %v2909_v38 }
 0x39b   : > { %v2822_v26 = vpop.f32.mrb[6].mxu1  ;;  %v3190_v41 = vpop.f32.mrb[8].mxu0 }
 0x39c   : > { %v2910_v43 = vadd.f32 %v2822_v26, %v15716_v22  ;;  %v11083_v57 = vpop.f32.mrb[7].mxu1  ;;  %11615 = vmatmul.mubr.f32.vlgmr.msra.gmra.mrb[112].mxu1 %v4026_v1  ;;  %v11238_v20 = vpop.f32.mrb[9].mxu0  ;;  %v4028_v26 = vld [vmem:[#allocation2 + $0x36] sm:$0xff] }
 0x39d   : > { %11617 = vmatprep.mubr.msk.f32.mxu1 %vm14006_vm0, %v15758_v56  ;;  %v4614_v20 = vld [vmem:[%s18663_s6 + $0x40] sm:$0xff] }
 0x39e   : > { %v16079_v39 = vadd.f32 %v3190_v41, %v2910_v43 }
 0x39f   : > { %v2827_v55 = vpop.f32.mrb[8].mxu1  ;;  %v3195_v38 = vpop.f32.mrb[10].mxu0 }
 0x3a0   : > { %v2911_v59 = vadd.f32 %v2827_v55, %v15732_v37  ;;  %v11086_v23 = vpop.f32.mrb[9].mxu1  ;;  %11618 = vmatmul.mubr.f32.gmra.mrb[114].mxu1 %v4027_v29  ;;  %v11241_v9 = vpop.f32.mrb[11].mxu0  ;;  %v4615_v55 = vld [vmem:[%s18663_s6 + $0x48] sm:$0xff] }
 0x3a1   : > { %11620 = vmatprep.mubr.msk.f32.mxu1 %vm14006_vm0, %v15758_v56 }
 0x3a2   : > { %v16084_v22 = vadd.f32 %v3195_v38, %v2911_v59  ;;  %v4029_v59 = vld [vmem:[#allocation2 + $0x3e] sm:$0xff] }
 0x3a3   : > { %v2832_v21 = vpop.f32.mrb[10].mxu1  ;;  %v3200_v57 = vpop.f32.mrb[12].mxu0 }
 0x3a4   : > { %v2912_v1 = vadd.f32 %v2832_v21, %v15746_v58  ;;  %v11089_v43 = vpop.f32.mrb[11].mxu1  ;;  %11621 = vmatmul.mubr.f32.gmra.mrb[116].mxu1 %v4028_v26  ;;  %v11244_v41 = vpop.f32.mrb[13].mxu0  ;;  %v13695_v58 = vpack.c.bf16 %v4615_v55, %v4614_v20 }
 0x3a5   : > { %11623 = vmatprep.mubr.msk.f32.mxu1 %vm14006_vm0, %v15758_v56  ;;  %v16098_v56 = vld [vmem:[#allocation2] sm:$0xff] }
 0x3a6   : > { %v16089_v37 = vadd.f32 %v3200_v57, %v2912_v1  ;;  %13696 = vmatpush3.bf16.msra.mxu0 %v13695_v58  ;;  %v4030_v57 = vld [vmem:[#allocation2 + $0x46] sm:$0xff] }
 0x3a7   : > { %v2837_v29 = vpop.f32.mrb[12].mxu1  ;;  %v3205_v23 = vpop.f32.mrb[14].mxu0  ;;  %13697 = vmatprep.subr.bf16.mxu0 %v18746_v18 }
 0x3a8   : > { %v2913_v38 = vadd.f32 %v2837_v29, %v15762_v31  ;;  %v11092_v9 = vpop.f32.mrb[13].mxu1  ;;  %11624 = vmatmul.mubr.f32.gmra.mrb[118].mxu1 %v4029_v59  ;;  %v11247_v21 = vpop.f32.mrb[15].mxu0  ;;  %v4031_v59 = vld [vmem:[#allocation2 + $0x4e] sm:$0xff] }
 0x3a9   : > { %11626 = vmatprep.mubr.msk.f32.mxu1 %vm14006_vm0, %v16098_v56 }
 0x3aa   : > { %v16102_v26 = vadd.f32 %v3205_v23, %v2913_v38 }
 0x3ab   : > { %v2842_v1 = vpop.f32.mrb[14].mxu1  ;;  %v3210_v41 = vpop.f32.mrb[16].mxu0 }
 0x3ac   : > { %v2914_v43 = vadd.f32 %v2842_v1, %v15776_v11  ;;  %v11095_v31 = vpop.f32.mrb[15].mxu1  ;;  %11627 = vmatmul.mubr.f32.gmra.mrb[120].mxu1 %v4030_v57  ;;  %v11250_v20 = vpop.f32.mrb[17].mxu0  ;;  %v4032_v1 = vld [vmem:[#allocation2 + $0x56] sm:$0xff] }
 0x3ad   : > { %11629 = vmatprep.mubr.msk.f32.mxu1 %vm14006_vm0, %v16098_v56 }
 0x3ae   : > { %v16108_v55 = vadd.f32 %v3210_v41, %v2914_v43 }
 0x3af   : > { %v2847_v29 = vpop.f32.mrb[16].mxu1  ;;  %v3215_v38 = vpop.f32.mrb[18].mxu0 }
 0x3b0   : > { %v2915_v58 = vadd.f32 %v2847_v29, %v15790_v7  ;;  %v11098_v23 = vpop.f32.mrb[17].mxu1  ;;  %11630 = vmatmul.mubr.f32.gmra.mrb[122].mxu1 %v4031_v59  ;;  %v11253_v9 = vpop.f32.mrb[19].mxu0  ;;  %v4033_v29 = vld [vmem:[#allocation2 + $0x5e] sm:$0xff] }
 0x3b1   : > { %11632 = vmatprep.mubr.msk.f32.mxu1 %vm14006_vm0, %v16098_v56 }
 0x3b2   : > { %v16113_v11 = vadd.f32 %v3215_v38, %v2915_v58 }
 0x3b3   : > { %v2852_v21 = vpop.f32.mrb[18].mxu1  ;;  %v3220_v31 = vpop.f32.mrb[20].mxu0 }
 0x3b4   : > { %v2916_v57 = vadd.f32 %v2852_v21, %v15804_v54  ;;  %v11101_v43 = vpop.f32.mrb[19].mxu1  ;;  %11633 = vmatmul.mubr.f32.gmra.mrb[124].mxu1 %v4032_v1  ;;  %v11256_v41 = vpop.f32.mrb[21].mxu0  ;;  %v4034_v21 = vld [vmem:[#allocation2 + $0x66] sm:$0xff] }
 0x3b5   : > { %11635 = vmatprep.mubr.msk.f32.mxu1 %vm14006_vm0, %v16098_v56  ;;  %v4616_v41 = vld [vmem:[%s18663_s6 + $0x50] sm:$0xff] }
 0x3b6   : > { %v16118_v7 = vadd.f32 %v3220_v31, %v2916_v57 }
 0x3b7   : > { %v2857_v20 = vpop.f32.mrb[20].mxu1  ;;  %v3225_v23 = vpop.f32.mrb[22].mxu0 }
 0x3b8   : > { %v2917_v59 = vadd.f32 %v2857_v20, %v15812_v63  ;;  %v11104_v58 = vpop.f32.mrb[21].mxu1  ;;  %11636 = vmatmul.mubr.f32.gmra.mrb[126].mxu1 %v4033_v29  ;;  %v11259_v38 = vpop.f32.mrb[23].mxu0  ;;  %v4617_v20 = vld [vmem:[%s18663_s6 + $0x58] sm:$0xff] }
 0x3b9   : > { %11638 = vmatprep.mubr.msk.f32.mxu1 %vm14006_vm0, %v16098_v56 }
 0x3ba   : > { %v16123_v54 = vadd.f32 %v3225_v23, %v2917_v59  ;;  %v4035_v59 = vld [vmem:[#allocation2 + $0x6e] sm:$0xff] }
 0x3bb   : > { %v2862_v9 = vpop.f32.mrb[22].mxu1  ;;  %v3230_v43 = vpop.f32.mrb[24].mxu0 }
 0x3bc   : > { %v2918_v1 = vadd.f32 %v2862_v9, %v15820_v5  ;;  %v11107_v57 = vpop.f32.mrb[23].mxu1  ;;  %11639 = vmatmul.mubr.f32.gmra.mrb[128].mxu1 %v4034_v21  ;;  %v11262_v31 = vpop.f32.mrb[25].mxu0  ;;  %v13698_v5 = vpack.c.bf16 %v4617_v20, %v4616_v41 }
 0x3bd   : > { %11641 = vmatprep.mubr.msk.f32.mxu1 %vm14006_vm0, %v16098_v56 }
 0x3be   : > { %v16128_v63 = vadd.f32 %v3230_v43, %v2918_v1  ;;  %13699 = vmatpush3.bf16.msra.mxu0 %v13698_v5  ;;  %v4036_v43 = vld [vmem:[#allocation2 + $0x76] sm:$0xff] }
 0x3bf   : > { %v2867_v29 = vpop.f32.mrb[24].mxu1  ;;  %v3235_v58 = vpop.f32.mrb[26].mxu0  ;;  %13700 = vmatprep.subr.bf16.mxu0 %v18746_v18 }
 0x3c0   : > { %v2919_v23 = vadd.f32 %v2867_v29, %v15827_v15  ;;  %v11110_v38 = vpop.f32.mrb[25].mxu1  ;;  %11642 = vmatmul.mubr.f32.gmra.mrb[130].mxu1 %v4035_v59  ;;  %v11265_v9 = vpop.f32.mrb[27].mxu0  ;;  %v4037_v59 = vld [vmem:[#allocation2 + $0x7e] sm:$0xff] }
 0x3c1   : > { %11644 = vmatprep.mubr.msk.f32.mxu1 %vm14006_vm0, %v16098_v56 }
 0x3c2   : > { %v16139_v21 = vadd.f32 %v3235_v58, %v2919_v23 }
 0x3c3   : > { %v2872_v1 = vpop.f32.mrb[26].mxu1  ;;  %v3240_v31 = vpop.f32.mrb[28].mxu0 }
 0x3c4   : > { %v2920_v57 = vadd.f32 %v2872_v1, %v15834_v60  ;;  %v11113_v41 = vpop.f32.mrb[27].mxu1  ;;  %11645 = vmatmul.mubr.f32.gmra.mrb[132].mxu1 %v4036_v43  ;;  %v11268_v15 = vpop.f32.mrb[29].mxu0  ;;  %v4038_v1 = vld [vmem:[#allocation2 + $0x86] sm:$0xff] }
 0x3c5   : > { %11647 = vmatprep.mubr.msk.f32.mxu1 %vm14006_vm0, %v16098_v56 }
 0x3c6   : > { %v16145_v20 = vadd.f32 %v3240_v31, %v2920_v57 }
 0x3c7   : > { %v2877_v29 = vpop.f32.mrb[28].mxu1  ;;  %v3245_v23 = vpop.f32.mrb[30].mxu0 }
 0x3c8   : > { %v2921_v5 = vadd.f32 %v2877_v29, %v15841_v48  ;;  %v11116_v58 = vpop.f32.mrb[29].mxu1  ;;  %11648 = vmatmul.mubr.f32.gmra.mrb[134].mxu1 %v4037_v59  ;;  %v11271_v38 = vpop.f32.mrb[31].mxu0  ;;  %v4039_v29 = vld [vmem:[#allocation2 + $0x8e] sm:$0xff] }
 0x3c9   : > { %11650 = vmatprep.mubr.msk.f32.mxu1 %vm14006_vm0, %v16098_v56  ;;  %v4618_v38 = vld [vmem:[%s18663_s6 + $0x60] sm:$0xff] }
 0x3ca   : > { %v16150_v60 = vadd.f32 %v3245_v23, %v2921_v5 }
 0x3cb   : > { %v3413_v9 = vpop.f32.mrb[30].mxu1  ;;  %v3781_v41 = vpop.f32.mrb[32].mxu0 }
 0x3cc   : > { %v3617_v43 = vadd.f32 %v3413_v9, %v15848_v13  ;;  %v11306_v57 = vpop.f32.mrb[31].mxu1  ;;  %11651 = vmatmul.mubr.f32.gmra.mrb[136].mxu1 %v4038_v1  ;;  %v11461_v31 = vpop.f32.mrb[33].mxu0  ;;  %v4619_v9 = vld [vmem:[%s18663_s6 + $0x68] sm:$0xff] }
 0x3cd   : > { %11653 = vmatprep.mubr.msk.f32.mxu1 %vm14006_vm0, %v16098_v56 }
 0x3ce   : > { %v16155_v48 = vadd.f32 %v3781_v41, %v3617_v43  ;;  %v4040_v43 = vld [vmem:[#allocation2 + $0x96] sm:$0xff] }
 0x3cf   : > { %v3418_v15 = vpop.f32.mrb[32].mxu1  ;;  %v3786_v58 = vpop.f32.mrb[34].mxu0 }
 0x3d0   : > { %v3618_v59 = vadd.f32 %v3418_v15, %v15855_v0  ;;  %v11309_v5 = vpop.f32.mrb[33].mxu1  ;;  %11654 = vmatmul.mubr.f32.gmra.mrb[138].mxu1 %v4039_v29  ;;  %v11464_v23 = vpop.f32.mrb[35].mxu0  ;;  %v13701_v0 = vpack.c.bf16 %v4619_v9, %v4618_v38 }
 0x3d1   : > { %11656 = vmatprep.mubr.msk.f32.mxu1 %vm14006_vm0, %v16098_v56 }
 0x3d2   : > { %v16160_v13 = vadd.f32 %v3786_v58, %v3618_v59  ;;  %13702 = vmatpush3.bf16.msra.mxu0 %v13701_v0  ;;  %v4041_v58 = vld [vmem:[#allocation2 + $0x9e] sm:$0xff] }
 0x3d3   : > { %v3423_v1 = vpop.f32.mrb[34].mxu1  ;;  %v3791_v57 = vpop.f32.mrb[36].mxu0  ;;  %13703 = vmatprep.subr.bf16.mxu0 %v18746_v18 }
 0x3d4   : > { %v3619_v41 = vadd.f32 %v3423_v1, %v15862_v16  ;;  %v11312_v31 = vpop.f32.mrb[35].mxu1  ;;  %11657 = vmatmul.mubr.f32.gmra.mrb[140].mxu1 %v4040_v43  ;;  %v11467_v15 = vpop.f32.mrb[37].mxu0  ;;  %v4042_v43 = vld [vmem:[#allocation2 + $0xa6] sm:$0xff] }
 0x3d5   : > { %11659 = vmatprep.mubr.msk.f32.mxu1 %vm14006_vm0, %v16098_v56 }
 0x3d6   : > { %v16171_v29 = vadd.f32 %v3791_v57, %v3619_v41 }
 0x3d7   : > { %v3428_v59 = vpop.f32.mrb[36].mxu1  ;;  %v3796_v23 = vpop.f32.mrb[38].mxu0 }
 0x3d8   : > { %v3620_v5 = vadd.f32 %v3428_v59, %v15869_v10  ;;  %v11315_v38 = vpop.f32.mrb[37].mxu1  ;;  %11660 = vmatmul.mubr.f32.gmra.mrb[142].mxu1 %v4041_v58  ;;  %v11470_v16 = vpop.f32.mrb[39].mxu0  ;;  %v4043_v59 = vld [vmem:[#allocation2 + $0xae] sm:$0xff] }
 0x3d9   : > { %11662 = vmatprep.mubr.msk.f32.mxu1 %vm14006_vm0, %v16098_v56 }
 0x3da   : > { %v16177_v9 = vadd.f32 %v3796_v23, %v3620_v5 }
 0x3db   : > { %v3433_v1 = vpop.f32.mrb[38].mxu1  ;;  %v3801_v41 = vpop.f32.mrb[40].mxu0 }
 0x3dc   : > { %v3621_v0 = vadd.f32 %v3433_v1, %v15876_v40  ;;  %v11318_v57 = vpop.f32.mrb[39].mxu1  ;;  %11663 = vmatmul.mubr.f32.gmra.mrb[144].mxu1 %v4042_v43  ;;  %v11473_v31 = vpop.f32.mrb[41].mxu0  ;;  %v4044_v1 = vld [vmem:[#allocation2 + $0xb6] sm:$0xff] }
 0x3dd   : > { %11665 = vmatprep.mubr.msk.f32.mxu1 %vm14006_vm0, %v16098_v56  ;;  %v4620_v31 = vld [vmem:[%s18663_s6 + $0x70] sm:$0xff] }
 0x3de   : > { %v16182_v10 = vadd.f32 %v3801_v41, %v3621_v0 }
 0x3df   : > { %v3438_v15 = vpop.f32.mrb[40].mxu1  ;;  %v3806_v38 = vpop.f32.mrb[42].mxu0 }
 0x3e0   : > { %v3622_v58 = vadd.f32 %v3438_v15, %v15883_v19  ;;  %v11321_v5 = vpop.f32.mrb[41].mxu1  ;;  %11666 = vmatmul.mubr.f32.gmra.mrb[146].mxu1 %v4043_v59  ;;  %v11476_v23 = vpop.f32.mrb[43].mxu0  ;;  %v4621_v15 = vld [vmem:[%s18663_s6 + $0x78] sm:$0xff] }
 0x3e1   : > { %11668 = vmatprep.mubr.msk.f32.mxu1 %vm14006_vm0, %v16098_v56 }
 0x3e2   : > { %v16187_v40 = vadd.f32 %v3806_v38, %v3622_v58  ;;  %v4045_v58 = vld [vmem:[#allocation2 + $0xbe] sm:$0xff] }
 0x3e3   : > { %v3443_v16 = vpop.f32.mrb[42].mxu1  ;;  %v3811_v57 = vpop.f32.mrb[44].mxu0 }
 0x3e4   : > { %v3623_v43 = vadd.f32 %v3443_v16, %v15890_v62  ;;  %v11324_v0 = vpop.f32.mrb[43].mxu1  ;;  %11669 = vmatmul.mubr.f32.gmra.mrb[148].mxu1 %v4044_v1  ;;  %v11479_v41 = vpop.f32.mrb[45].mxu0  ;;  %v13704_v62 = vpack.c.bf16 %v4621_v15, %v4620_v31 }
 0x3e5   : > { %11671 = vmatprep.mubr.msk.f32.mxu1 %vm14006_vm0, %v16098_v56 }
 0x3e6   : > { %v16192_v19 = vadd.f32 %v3811_v57, %v3623_v43  ;;  %13705 = vmatpush3.bf16.msra.mxu0 %v13704_v62  ;;  %v4046_v57 = vld [vmem:[#allocation2 + $0xc6] sm:$0xff] }
 0x3e7   : > { %v3448_v59 = vpop.f32.mrb[44].mxu1  ;;  %v3816_v5 = vpop.f32.mrb[46].mxu0  ;;  %13730 = vmatprep.subr.bf16.mxu0 %v18746_v18 }
 0x3e8   : > { %v3624_v38 = vadd.f32 %v3448_v59, %v15897_v42  ;;  %v11327_v23 = vpop.f32.mrb[45].mxu1  ;;  %11672 = vmatmul.mubr.f32.gmra.mrb[150].mxu1 %v4045_v58  ;;  %v11482_v16 = vpop.f32.mrb[47].mxu0  ;;  %v4047_v58 = vld [vmem:[#allocation2 + $0xce] sm:$0xff] }
 0x3e9   : > { %11674 = vmatprep.mubr.msk.f32.mxu1 %vm14006_vm0, %v16098_v56 }
 0x3ea   : > { %v16203_v1 = vadd.f32 %v3816_v5, %v3624_v38 }
 0x3eb   : > { %v3453_v43 = vpop.f32.mrb[46].mxu1  ;;  %v3821_v41 = vpop.f32.mrb[48].mxu0 }
 0x3ec   : > { %v3625_v0 = vadd.f32 %v3453_v43, %v15904_v28  ;;  %v11330_v31 = vpop.f32.mrb[47].mxu1  ;;  %11675 = vmatmul.mubr.f32.gmra.mrb[152].mxu1 %v4046_v57  ;;  %v11485_v42 = vpop.f32.mrb[49].mxu0  ;;  %v4048_v43 = vld [vmem:[#allocation2 + $0xd6] sm:$0xff] }
 0x3ed   : > { %11677 = vmatprep.mubr.msk.f32.mxu1 %vm14006_vm0, %v16098_v56 }
 0x3ee   : > { %v16209_v15 = vadd.f32 %v3821_v41, %v3625_v0 }
 0x3ef   : > { %v3458_v59 = vpop.f32.mrb[48].mxu1  ;;  %v3826_v38 = vpop.f32.mrb[50].mxu0 }
 0x3f0   : > { %v3626_v62 = vadd.f32 %v3458_v59, %v15911_v61  ;;  %v11333_v5 = vpop.f32.mrb[49].mxu1  ;;  %11678 = vmatmul.mubr.f32.gmra.mrb[154].mxu1 %v4047_v58  ;;  %v11488_v23 = vpop.f32.mrb[51].mxu0  ;;  %v4049_v59 = vld [vmem:[#allocation2 + $0xde] sm:$0xff] }
 0x3f1   : > { %11680 = vmatprep.mubr.msk.f32.mxu1 %vm14006_vm0, %v16098_v56 }
 0x3f2   : > { %v16214_v28 = vadd.f32 %v3826_v38, %v3626_v62 }
 0x3f3   : > { %v3463_v16 = vpop.f32.mrb[50].mxu1  ;;  %v3831_v31 = vpop.f32.mrb[52].mxu0 }
 0x3f4   : > { %v3627_v57 = vadd.f32 %v3463_v16, %v15918_v8  ;;  %v11336_v0 = vpop.f32.mrb[51].mxu1  ;;  %11681 = vmatmul.mubr.f32.gmra.mrb[156].mxu1 %v4048_v43  ;;  %v11491_v41 = vpop.f32.mrb[53].mxu0  ;;  %v4050_v16 = vld [vmem:[#allocation2 + $0xe6] sm:$0xff] }
 0x3f5   : > { %11683 = vmatprep.mubr.msk.f32.mxu1 %vm14006_vm0, %v16098_v56 }
 0x3f6   : > { %v16219_v61 = vadd.f32 %v3831_v31, %v3627_v57 }
 0x3f7   : > { %v3468_v42 = vpop.f32.mrb[52].mxu1  ;;  %v3836_v5 = vpop.f32.mrb[54].mxu0 }
 0x3f8   : > { %v3628_v58 = vadd.f32 %v3468_v42, %v15925_v4  ;;  %v11339_v62 = vpop.f32.mrb[53].mxu1  ;;  %11684 = vmatmul.mubr.f32.gmra.mrb[158].mxu1 %v4049_v59  ;;  %v11494_v38 = vpop.f32.mrb[55].mxu0  ;;  %v4051_v42 = vld [vmem:[#allocation2 + $0xee] sm:$0xff] }
 0x3f9   : > { %11686 = vmatprep.mubr.msk.f32.mxu1 %vm14006_vm0, %v16098_v56 }
 0x3fa   : > { %v16224_v8 = vadd.f32 %v3836_v5, %v3628_v58 }
 0x3fb   : > { %v3473_v23 = vpop.f32.mrb[54].mxu1  ;;  %v3841_v0 = vpop.f32.mrb[56].mxu0 }
 0x3fc   : > { %v3629_v43 = vadd.f32 %v3473_v23, %v15938_v33  ;;  %v11342_v57 = vpop.f32.mrb[55].mxu1  ;;  %11687 = vmatmul.mubr.f32.gmra.mrb[160].mxu1 %v4050_v16  ;;  %v11497_v31 = vpop.f32.mrb[57].mxu0  ;;  %v4052_v23 = vld [vmem:[#allocation2 + $0xf6] sm:$0xff] }
 0x3fd   : > { %11689 = vmatprep.mubr.msk.f32.mxu1 %vm14006_vm0, %v16098_v56 }
 0x3fe   : > { %v16229_v4 = vadd.f32 %v3841_v0, %v3629_v43 }
 0x3ff   : > { %v3478_v41 = vpop.f32.mrb[56].mxu1  ;;  %v3846_v62 = vpop.f32.mrb[58].mxu0 }
 0x400   : > { %v3630_v59 = vadd.f32 %v3478_v41, %v15946_v17  ;;  %v11345_v58 = vpop.f32.mrb[57].mxu1  ;;  %11690 = vmatmul.mubr.f32.gmra.mrb[162].mxu1 %v4051_v42  ;;  %v11500_v5 = vpop.f32.mrb[59].mxu0  ;;  %v4053_v41 = vld [vmem:[#allocation2 + $0xfe] sm:$0xff] }
 0x401   : > { %11692 = vmatprep.mubr.msk.f32.mxu1 %vm14006_vm0, %v16098_v56 }
 0x402   : > { %v16234_v33 = vadd.f32 %v3846_v62, %v3630_v59 }
 0x403   : > { %v3483_v38 = vpop.f32.mrb[58].mxu1  ;;  %v3851_v57 = vpop.f32.mrb[60].mxu0 }
 0x404   : > { %v3631_v16 = vadd.f32 %v3483_v38, %v15953_v24  ;;  %v11348_v43 = vpop.f32.mrb[59].mxu1  ;;  %11693 = vmatmul.mubr.f32.gmra.mrb[164].mxu1 %v4052_v23  ;;  %v11503_v0 = vpop.f32.mrb[61].mxu0  ;;  %v4054_v38 = vld [vmem:[#allocation2 + $0x106] sm:$0xff] }
 0x405   : > { %11695 = vmatprep.mubr.msk.f32.mxu1 %vm14006_vm0, %v16098_v56 }
 0x406   : > { %v16239_v17 = vadd.f32 %v3851_v57, %v3631_v16 }
 0x407   : > { %v3488_v31 = vpop.f32.mrb[60].mxu1  ;;  %v3856_v58 = vpop.f32.mrb[62].mxu0 }
 0x408   : > { %v3632_v42 = vadd.f32 %v3488_v31, %v15960_v49  ;;  %v11351_v59 = vpop.f32.mrb[61].mxu1  ;;  %11696 = vmatmul.mubr.f32.gmra.mrb[166].mxu1 %v4053_v41  ;;  %v11506_v62 = vpop.f32.mrb[63].mxu0  ;;  %v4055_v31 = vld [vmem:[#allocation2 + $0x10e] sm:$0xff] }
 0x409   : > { %11698 = vmatprep.mubr.msk.f32.mxu1 %vm14006_vm0, %v16098_v56 }
 0x40a   : > { %v16244_v24 = vadd.f32 %v3856_v58, %v3632_v42 }
 0x40b   : > { %v3493_v5 = vpop.f32.mrb[62].mxu1  ;;  %v3861_v43 = vpop.f32.mrb[64].mxu0 }
 0x40c   : > { %v3633_v23 = vadd.f32 %v3493_v5, %v15967_v32  ;;  %v11354_v16 = vpop.f32.mrb[63].mxu1  ;;  %11699 = vmatmul.mubr.f32.gmra.mrb[168].mxu1 %v4054_v38  ;;  %v11509_v57 = vpop.f32.mrb[65].mxu0  ;;  %v4056_v5 = vld [vmem:[#allocation2 + $0x116] sm:$0xff] }
 0x40d   : > { %11701 = vmatprep.mubr.msk.f32.mxu1 %vm14006_vm0, %v16098_v56 }
 0x40e   : > { %v16249_v49 = vadd.f32 %v3861_v43, %v3633_v23 }
 0x40f   : > { %v3498_v0 = vpop.f32.mrb[64].mxu1  ;;  %v3866_v59 = vpop.f32.mrb[66].mxu0 }
 0x410   : > { %v3634_v41 = vadd.f32 %v3498_v0, %v15980_v35  ;;  %v11357_v42 = vpop.f32.mrb[65].mxu1  ;;  %11702 = vmatmul.mubr.f32.gmra.mrb[170].mxu1 %v4055_v31  ;;  %v11512_v58 = vpop.f32.mrb[67].mxu0  ;;  %v4057_v0 = vld [vmem:[#allocation2 + $0x11e] sm:$0xff] }
 0x411   : > { %11704 = vmatprep.mubr.msk.f32.mxu1 %vm14006_vm0, %v16098_v56 }
 0x412   : > { %v16254_v32 = vadd.f32 %v3866_v59, %v3634_v41 }
 0x413   : > { %v3503_v62 = vpop.f32.mrb[66].mxu1  ;;  %v3871_v16 = vpop.f32.mrb[68].mxu0 }
 0x414   : > { %v3635_v38 = vadd.f32 %v3503_v62, %v15988_v36  ;;  %v11360_v23 = vpop.f32.mrb[67].mxu1  ;;  %11705 = vmatmul.mubr.f32.gmra.mrb[172].mxu1 %v4056_v5  ;;  %v11515_v43 = vpop.f32.mrb[69].mxu0  ;;  %v4058_v62 = vld [vmem:[#allocation2 + $0x126] sm:$0xff] }
 0x415   : > { %11707 = vmatprep.mubr.msk.f32.mxu1 %vm14006_vm0, %v16098_v56 }
 0x416   : > { %v16259_v35 = vadd.f32 %v3871_v16, %v3635_v38 }
 0x417   : > { %v3508_v57 = vpop.f32.mrb[68].mxu1  ;;  %v3876_v42 = vpop.f32.mrb[70].mxu0 }
 0x418   : > { %v3636_v31 = vadd.f32 %v3508_v57, %v15995_v25  ;;  %v11363_v41 = vpop.f32.mrb[69].mxu1  ;;  %11708 = vmatmul.mubr.f32.gmra.mrb[174].mxu1 %v4057_v0  ;;  %v11518_v59 = vpop.f32.mrb[71].mxu0  ;;  %v4059_v57 = vld [vmem:[#allocation2 + $0x12e] sm:$0xff] }
 0x419   : > { %11710 = vmatprep.mubr.msk.f32.mxu1 %vm14006_vm0, %v16098_v56 }
 0x41a   : > { %v16264_v36 = vadd.f32 %v3876_v42, %v3636_v31 }
 0x41b   : > { %v3513_v58 = vpop.f32.mrb[70].mxu1  ;;  %v3881_v23 = vpop.f32.mrb[72].mxu0 }
 0x41c   : > { %v3637_v5 = vadd.f32 %v3513_v58, %v16002_v12  ;;  %v11366_v38 = vpop.f32.mrb[71].mxu1  ;;  %11711 = vmatmul.mubr.f32.gmra.mrb[176].mxu1 %v4058_v62  ;;  %v11521_v16 = vpop.f32.mrb[73].mxu0  ;;  %v4060_v58 = vld [vmem:[#allocation2 + $0x136] sm:$0xff] }
 0x41d   : > { %11713 = vmatprep.mubr.msk.f32.mxu1 %vm14006_vm0, %v16098_v56 }
 0x41e   : > { %v16269_v25 = vadd.f32 %v3881_v23, %v3637_v5 }
 0x41f   : > { %v3518_v43 = vpop.f32.mrb[72].mxu1  ;;  %v3886_v41 = vpop.f32.mrb[74].mxu0 }
 0x420   : > { %v3638_v0 = vadd.f32 %v3518_v43, %v16009_v14  ;;  %v11369_v31 = vpop.f32.mrb[73].mxu1  ;;  %11714 = vmatmul.mubr.f32.gmra.mrb[178].mxu1 %v4059_v57  ;;  %v11524_v42 = vpop.f32.mrb[75].mxu0  ;;  %v4061_v43 = vld [vmem:[#allocation2 + $0x13e] sm:$0xff] }
 0x421   : > { %11716 = vmatprep.mubr.msk.f32.mxu1 %vm14006_vm0, %v16098_v56 }
 0x422   : > { %v16274_v12 = vadd.f32 %v3886_v41, %v3638_v0 }
 0x423   : > { %v3523_v59 = vpop.f32.mrb[74].mxu1  ;;  %v3891_v38 = vpop.f32.mrb[76].mxu0 }
 0x424   : > { %v3639_v62 = vadd.f32 %v3523_v59, %v16022_v34  ;;  %v11372_v5 = vpop.f32.mrb[75].mxu1  ;;  %11717 = vmatmul.mubr.f32.gmra.mrb[180].mxu1 %v4060_v58  ;;  %v11527_v23 = vpop.f32.mrb[77].mxu0  ;;  %v4062_v59 = vld [vmem:[#allocation2 + $0x146] sm:$0xff] }
 0x425   : > { %11719 = vmatprep.mubr.msk.f32.mxu1 %vm14006_vm0, %v16098_v56 }
 0x426   : > { %v16279_v14 = vadd.f32 %v3891_v38, %v3639_v62 }
 0x427   : > { %v3528_v16 = vpop.f32.mrb[76].mxu1  ;;  %v3896_v31 = vpop.f32.mrb[78].mxu0 }
 0x428   : > { %v3640_v57 = vadd.f32 %v3528_v16, %v16030_v3  ;;  %v11375_v0 = vpop.f32.mrb[77].mxu1  ;;  %11720 = vmatmul.mubr.f32.gmra.mrb[182].mxu1 %v4061_v43  ;;  %v11530_v41 = vpop.f32.mrb[79].mxu0  ;;  %v4063_v16 = vld [vmem:[#allocation2 + $0x14e] sm:$0xff] }
 0x429   : > { %11722 = vmatprep.mubr.msk.f32.mxu1 %vm14006_vm0, %v16098_v56 }
 0x42a   : > { %v16284_v34 = vadd.f32 %v3896_v31, %v3640_v57 }
 0x42b   : > { %v3533_v42 = vpop.f32.mrb[78].mxu1  ;;  %v3901_v5 = vpop.f32.mrb[80].mxu0 }
 0x42c   : > { %v3641_v58 = vadd.f32 %v3533_v42, %v16037_v27  ;;  %v11378_v62 = vpop.f32.mrb[79].mxu1  ;;  %11723 = vmatmul.mubr.f32.gmra.mrb[184].mxu1 %v4062_v59  ;;  %v11533_v38 = vpop.f32.mrb[81].mxu0  ;;  %v4064_v42 = vld [vmem:[#allocation2 + $0x156] sm:$0xff] }
 0x42d   : > { %11725 = vmatprep.mubr.msk.f32.mxu1 %vm14006_vm0, %v16098_v56 }
 0x42e   : > { %v16289_v3 = vadd.f32 %v3901_v5, %v3641_v58 }
 0x42f   : > { %v3538_v23 = vpop.f32.mrb[80].mxu1  ;;  %v3906_v0 = vpop.f32.mrb[82].mxu0 }
 0x430   : > { %v3642_v43 = vadd.f32 %v3538_v23, %v16044_v2  ;;  %v11381_v57 = vpop.f32.mrb[81].mxu1  ;;  %11726 = vmatmul.mubr.f32.gmra.mrb[186].mxu1 %v4063_v16  ;;  %v11536_v31 = vpop.f32.mrb[83].mxu0  ;;  %v4065_v2 = vld [vmem:[#allocation2 + $0x15e] sm:$0xff]  ;;  %v5162_v16 = vld [vmem:[%s18665_s8 + $0x88] sm:$0xff] }
 0x431   : > { %11728 = vmatprep.mubr.msk.f32.mxu1 %vm14006_vm0, %v16098_v56  ;;  %v5161_v23 = vld [vmem:[%s18665_s8 + $0x80] sm:$0xff] }
 0x432   : > { %v16294_v27 = vadd.f32 %v3906_v0, %v3642_v43 }
 0x433   : > { %v3543_v41 = vpop.f32.mrb[82].mxu1  ;;  %v3911_v62 = vpop.f32.mrb[84].mxu0 }
 0x434   : > { %v3643_v59 = vadd.f32 %v3543_v41, %v16051_v30  ;;  %v11384_v58 = vpop.f32.mrb[83].mxu1  ;;  %11729 = vmatmul.mubr.f32.gmra.mrb[188].mxu1 %v4064_v42  ;;  %v11539_v5 = vpop.f32.mrb[85].mxu0  ;;  %v13707_v30 = vpack.c.bf16 %v5162_v16, %v5161_v23  ;;  %v4066_v42 = vld [vmem:[#allocation2 + $0x166] sm:$0xff] }
 0x435   : > { %11731 = vmatprep.mubr.msk.f32.mxu1 %vm14006_vm0, %v16098_v56 }
 0x436   : > { %v16299_v38 = vadd.f32 %v3911_v62, %v3643_v59  ;;  %13708 = vmatpush3.bf16.msra.mxu1 %v13707_v30 }
 0x437   : > { %v3548_v43 = vpop.f32.mrb[84].mxu1  ;;  %v3916_v57 = vpop.f32.mrb[86].mxu0  ;;  %13709 = vmatprep.subr.bf16.mxu1 %v18746_v18 }
 0x438   : > { %v3644_v0 = vadd.f32 %v3548_v43, %v16064_v47  ;;  %v11387_v31 = vpop.f32.mrb[85].mxu1  ;;  %11732 = vmatmul.mubr.f32.gmra.mrb[190].mxu1 %v4065_v2  ;;  %v11542_v41 = vpop.f32.mrb[87].mxu0 }
 0x439   : > { %11734 = vmatprep.mubr.msk.f32.mxu1 %vm14006_vm0, %v16098_v56 }
 0x43a   : > { %v16310_v59 = vadd.f32 %v3916_v57, %v3644_v0 }
 0x43b   : > { %v3553_v62 = vpop.f32.mrb[86].mxu1  ;;  %v3921_v5 = vpop.f32.mrb[88].mxu0 }
 0x43c   : > { %v3645_v58 = vadd.f32 %v3553_v62, %v16072_v6  ;;  %v11390_v23 = vpop.f32.mrb[87].mxu1  ;;  %11735 = vmatmul.mubr.f32.gmra.mrb[192].mxu1 %v4066_v42  ;;  %v11545_v47 = vpop.f32.mrb[89].mxu0 }
 0x43d   : > { %11924 = vmatprep.mubr.msk.f32.mxu1 %vm14006_vm0, %v16098_v56 }
 0x43e   : > { %v16316_v2 = vadd.f32 %v3921_v5, %v3645_v58 }
 0x43f   : > { %v3558_v16 = vpop.f32.mrb[88].mxu1  ;;  %v3926_v30 = vpop.f32.mrb[90].mxu0 }
 0x440   : > { %v3646_v43 = vadd.f32 %v3558_v16, %v16079_v39  ;;  %v11393_v0 = vpop.f32.mrb[89].mxu1  ;;  %v11548_v57 = vpop.f32.mrb[91].mxu0  ;;  %v5163_v16 = vld [vmem:[%s18665_s8 + $0x90] sm:$0xff] }
 0x442   : > { %v16319_v31 = vadd.f32 %v3926_v30, %v3646_v43 }
 0x443   : > { %v3563_v41 = vpop.f32.mrb[90].mxu1  ;;  %v3931_v62 = vpop.f32.mrb[92].mxu0 }
 0x444   : > { %v3647_v6 = vadd.f32 %v3563_v41, %v16084_v22  ;;  %v11396_v23 = vpop.f32.mrb[91].mxu1  ;;  %v11551_v42 = vpop.f32.mrb[93].mxu0  ;;  %v5164_v22 = vld [vmem:[%s18665_s8 + $0x98] sm:$0xff] }
 0x445   : > { %v13710_v30 = vpack.c.bf16 %v5164_v22, %v5163_v16 }
 0x446   : > { %v16322_v47 = vadd.f32 %v3931_v62, %v3647_v6 }
 0x447   : > { %v3568_v53 = vpop.f32.mrb[92].mxu1  ;;  %v3936_v5 = vpop.f32.mrb[94].mxu0  ;;  %13711 = vmatpush3.bf16.msra.mxu1 %v13710_v30 }
 0x448   : > { %v3648_v58 = vadd.f32 %v3568_v53, %v16089_v37  ;;  %v11399_v52 = vpop.f32.mrb[93].mxu1  ;;  %v11554_v51 = vpop.f32.mrb[95].mxu0  ;;  %13712 = vmatprep.subr.bf16.mxu1 %v18746_v18 }
 0x44a   : > { %v16325_v39 = vadd.f32 %v3936_v5, %v3648_v58 }
 0x44b   : > { %v3573_v43 = vpop.f32.mrb[94].mxu1  ;;  %v3941_v57 = vpop.f32.mrb[96].mxu0 }
 0x44c   : > { %v3649_v0 = vadd.f32 %v3573_v43, %v16102_v26  ;;  %v11402_v41 = vpop.f32.mrb[95].mxu1  ;;  %v11557_v53 = vpop.f32.mrb[97].mxu0 }
 0x44e   : > { %v16334_v52 = vadd.f32 %v3941_v57, %v3649_v0 }
 0x44f   : > { %v3578_v51 = vpop.f32.mrb[96].mxu1  ;;  %v3946_v6 = vpop.f32.mrb[98].mxu0 }
 0x450   : > { %v3650_v37 = vadd.f32 %v3578_v51, %v16108_v55  ;;  %v11405_v62 = vpop.f32.mrb[97].mxu1  ;;  %v11560_v23 = vpop.f32.mrb[99].mxu0 }
 0x452   : > { %v16338_v42 = vadd.f32 %v3946_v6, %v3650_v37 }
 0x453   : > { %v3583_v58 = vpop.f32.mrb[98].mxu1  ;;  %v3951_v26 = vpop.f32.mrb[100].mxu0 }
 0x454   : > { %v3651_v5 = vadd.f32 %v3583_v58, %v16113_v11  ;;  %v11408_v16 = vpop.f32.mrb[99].mxu1  ;;  %v11563_v22 = vpop.f32.mrb[101].mxu0  ;;  %v5165_v58 = vld [vmem:[%s18665_s8 + $0xa0] sm:$0xff] }
 0x456   : > { %v16341_v43 = vadd.f32 %v3951_v26, %v3651_v5 }
 0x457   : > { %v3588_v30 = vpop.f32.mrb[100].mxu1  ;;  %v3956_v57 = vpop.f32.mrb[102].mxu0 }
 0x458   : > { %v3652_v0 = vadd.f32 %v3588_v30, %v16118_v7  ;;  %v11411_v41 = vpop.f32.mrb[101].mxu1  ;;  %v11566_v53 = vpop.f32.mrb[103].mxu0  ;;  %v5166_v7 = vld [vmem:[%s18665_s8 + $0xa8] sm:$0xff] }
 0x459   : > { %v13713_v26 = vpack.c.bf16 %v5166_v7, %v5165_v58 }
 0x45a   : > { %v16344_v55 = vadd.f32 %v3956_v57, %v3652_v0 }
 0x45b   : > { %v3593_v51 = vpop.f32.mrb[102].mxu1  ;;  %v3961_v6 = vpop.f32.mrb[104].mxu0  ;;  %13714 = vmatpush3.bf16.msra.mxu1 %v13713_v26 }
 0x45c   : > { %v3653_v37 = vadd.f32 %v3593_v51, %v16123_v54  ;;  %v11414_v62 = vpop.f32.mrb[103].mxu1  ;;  %v11569_v23 = vpop.f32.mrb[105].mxu0  ;;  %13715 = vmatprep.subr.bf16.mxu1 %v18746_v18 }
 0x45e   : > { %v16347_v11 = vadd.f32 %v3961_v6, %v3653_v37 }
 0x45f   : > { %v3598_v5 = vpop.f32.mrb[104].mxu1  ;;  %v3966_v22 = vpop.f32.mrb[106].mxu0 }
 0x460   : > { %v3654_v16 = vadd.f32 %v3598_v5, %v16128_v63  ;;  %v11417_v30 = vpop.f32.mrb[105].mxu1  ;;  %v11572_v54 = vpop.f32.mrb[107].mxu0 }
 0x462   : > { %v16356_v0 = vadd.f32 %v3966_v22, %v3654_v16 }
 0x463   : > { %v3603_v57 = vpop.f32.mrb[106].mxu1  ;;  %v3971_v53 = vpop.f32.mrb[108].mxu0 }
 0x464   : > { %v3655_v41 = vadd.f32 %v3603_v57, %v16139_v21  ;;  %v11420_v51 = vpop.f32.mrb[107].mxu1  ;;  %v11575_v37 = vpop.f32.mrb[109].mxu0 }
 0x465   : > { %v5168_v37 = vld [vmem:[%s18665_s8 + $0xb8] sm:$0xff] }
 0x466   : > { %v16360_v6 = vadd.f32 %v3971_v53, %v3655_v41  ;;  %v16371_v41 = vld [vmem:[%s18662_s5] ss:$0 sm:$0xff] }
 0x467   : > { %v3608_v62 = vpop.f32.mrb[108].mxu1  ;;  %v3976_v58 = vpop.f32.mrb[110].mxu0 }
 0x468   : > { %v3656_v23 = vadd.f32 %v3608_v62, %v16145_v20  ;;  %v11423_v63 = vpop.f32.mrb[109].mxu1  ;;  %v11578_v7 = vpop.f32.mrb[111].mxu0 }
 0x46a   : > { %v16363_v5 = vadd.f32 %v3976_v58, %v3656_v23 }
 0x46b   : > { %v3613_v26 = vpop.f32.mrb[110].mxu1  ;;  %v3981_v30 = vpop.f32.mrb[112].mxu0 }
 0x46c   : > { %v3657_v16 = vadd.f32 %v3613_v26, %v16150_v60  ;;  %v11426_v22 = vpop.f32.mrb[111].mxu1  ;;  %v11581_v54 = vpop.f32.mrb[113].mxu0  ;;  %v5167_v60 = vld [vmem:[%s18665_s8 + $0xb0] sm:$0xff] }
 0x46d   : > { %v13716_v23 = vpack.c.bf16 %v5168_v37, %v5167_v60 }
 0x46e   : > { %v16366_v21 = vadd.f32 %v3981_v30, %v3657_v16 }
 0x46f   : > { %v4149_v57 = vpop.f32.mrb[112].mxu1  ;;  %13717 = vmatpush3.bf16.msra.mxu1 %v13716_v23 }
 0x470   : > { %v4353_v20 = vadd.f32 %v4149_v57, %v16155_v48  ;;  %v11616_v53 = vpop.f32.mrb[113].mxu1  ;;  %13718 = vmatprep.subr.bf16.mxu1 %v18746_v18 }
 0x472   : > { %v4401_v51 = vadd.f32 %v16371_v41, %v4353_v20 }
 0x473   : > { %v4154_v62 = vpop.f32.mrb[114].mxu1 }
 0x474   : > { %v4442_v63 = vmul.f32 0.1, %v4401_v51  ;;  %v4354_v58 = vadd.f32 %v4154_v62, %v16160_v13  ;;  %v11619_v7 = vpop.f32.mrb[115].mxu1 }
 0x476   : > { %v4483_v26 = vmax.f32 %v4401_v51, %v4442_v63  ;;  %v4402_v48 = vadd.f32 %v16371_v41, %v4354_v58 }
 0x477   : > { %v4159_v16 = vpop.f32.mrb[116].mxu1 }
 0x478   : > { %v4443_v22 = vmul.f32 0.1, %v4402_v48  ;;  %v4355_v30 = vadd.f32 %v4159_v16, %v16171_v29  ;;  %v11622_v54 = vpop.f32.mrb[117].mxu1  ;;  %11770 = vmatmul.mubr.f32.vlgmr.msra.gmra.mrb[114].mxu0 %v4483_v26 }
 0x479   : > { %11772 = vmatprep.mubr.msk.f32.mxu0 %vm14006_vm0, %v16098_v56  ;;  %v5169_v54 = vld [vmem:[%s18665_s8 + $0xc0] sm:$0xff] }
 0x47a   : > { %v4484_v57 = vmax.f32 %v4402_v48, %v4443_v22  ;;  %v4403_v20 = vadd.f32 %v16371_v41, %v4355_v30 }
 0x47b   : > { %v4164_v13 = vpop.f32.mrb[118].mxu1 }
 0x47c   : > { %v4444_v53 = vmul.f32 0.1, %v4403_v20  ;;  %v4356_v51 = vadd.f32 %v4164_v13, %v16177_v9  ;;  %v11625_v60 = vpop.f32.mrb[119].mxu1  ;;  %11773 = vmatmul.mubr.f32.gmra.mrb[116].mxu0 %v4484_v57  ;;  %v5170_v57 = vld [vmem:[%s18665_s8 + $0xc8] sm:$0xff] }
 0x47d   : > { %11775 = vmatprep.mubr.msk.f32.mxu0 %vm14006_vm0, %v16098_v56  ;;  %v13719_v13 = vpack.c.bf16 %v5170_v57, %v5169_v54 }
 0x47e   : > { %v4485_v37 = vmax.f32 %v4403_v20, %v4444_v53  ;;  %v4404_v29 = vadd.f32 %v16371_v41, %v4356_v51 }
 0x47f   : > { %v4169_v62 = vpop.f32.mrb[120].mxu1  ;;  %13720 = vmatpush3.bf16.msra.mxu1 %v13719_v13  ;;  %v5172_v13 = vld [vmem:[%s18665_s8 + $0xd8] sm:$0xff] }
 0x480   : > { %v4445_v23 = vmul.f32 0.1, %v4404_v29  ;;  %v4357_v63 = vadd.f32 %v4169_v62, %v16182_v10  ;;  %v11628_v58 = vpop.f32.mrb[121].mxu1  ;;  %11776 = vmatmul.mubr.f32.gmra.mrb[118].mxu0 %v4485_v37  ;;  %13721 = vmatprep.subr.bf16.mxu1 %v18746_v18 }
 0x481   : > { %11778 = vmatprep.mubr.msk.f32.mxu0 %vm14006_vm0, %v16098_v56 }
 0x482   : > { %v4486_v7 = vmax.f32 %v4404_v29, %v4445_v23  ;;  %v4405_v9 = vadd.f32 %v16371_v41, %v4357_v63 }
 0x483   : > { %v4174_v26 = vpop.f32.mrb[122].mxu1 }
 0x484   : > { %v4446_v48 = vmul.f32 0.1, %v4405_v9  ;;  %v4358_v16 = vadd.f32 %v4174_v26, %v16187_v40  ;;  %v11631_v22 = vpop.f32.mrb[123].mxu1  ;;  %11779 = vmatmul.mubr.f32.gmra.mrb[120].mxu0 %v4486_v7 }
 0x485   : > { %11781 = vmatprep.mubr.msk.f32.mxu0 %vm14006_vm0, %v16098_v56 }
 0x486   : > { %v4487_v30 = vmax.f32 %v4405_v9, %v4446_v48  ;;  %v4406_v10 = vadd.f32 %v16371_v41, %v4358_v16  ;;  %v16416_v16 = vld [vmem:[#allocation2] sm:$0xff] }
 0x487   : > { %v4179_v20 = vpop.f32.mrb[124].mxu1 }
 0x488   : > { %v4447_v53 = vmul.f32 0.1, %v4406_v10  ;;  %v4359_v40 = vadd.f32 %v4179_v20, %v16192_v19  ;;  %v11634_v51 = vpop.f32.mrb[125].mxu1  ;;  %11782 = vmatmul.mubr.f32.gmra.mrb[122].mxu0 %v4487_v30  ;;  %v5171_v20 = vld [vmem:[%s18665_s8 + $0xd0] sm:$0xff] }
 0x489   : > { %11784 = vmatprep.mubr.msk.f32.mxu0 %vm14006_vm0, %v16098_v56 }
 0x48a   : > { %v4488_v60 = vmax.f32 %v4406_v10, %v4447_v53  ;;  %v4407_v37 = vadd.f32 %v16371_v41, %v4359_v40  ;;  %v13722_v40 = vpack.c.bf16 %v5172_v13, %v5171_v20  ;;  %v5109_v13 = vld [vmem:[%s18665_s8 + $0x28] sm:$0xff] }
 0x48b   : > { %v4184_v29 = vpop.f32.mrb[126].mxu1 }
 0x48c   : > { %v4448_v62 = vmul.f32 0.1, %v4407_v37  ;;  %v4360_v23 = vadd.f32 %v4184_v29, %v16203_v1  ;;  %v11637_v63 = vpop.f32.mrb[127].mxu1  ;;  %11785 = vmatmul.mubr.f32.gmra.mrb[124].mxu0 %v4488_v60  ;;  %v5174_v29 = vld [vmem:[%s18665_s8 + $0xe8] sm:$0xff]  ;;  %13723 = vmatpush3.bf16.msra.mxu1 %v13722_v40 }
 0x48d   : > { %11787 = vmatprep.mubr.msk.f32.mxu0 %vm14006_vm0, %v16098_v56  ;;  %13724 = vmatprep.subr.bf16.mxu1 %v18746_v18 }
 0x48e   : > { %v4489_v19 = vmax.f32 %v4407_v37, %v4448_v62  ;;  %v4408_v58 = vadd.f32 %v16371_v41, %v4360_v23  ;;  %v5173_v37 = vld [vmem:[%s18665_s8 + $0xe0] sm:$0xff] }
 0x48f   : > { %v4189_v7 = vpop.f32.mrb[128].mxu1  ;;  %v5104_v62 = vld [vmem:[%s18665_s8] sm:$0xff]  ;;  %v13725_v23 = vpack.c.bf16 %v5174_v29, %v5173_v37 }
 0x490   : > { %v4449_v9 = vmul.f32 0.1, %v4408_v58  ;;  %v4361_v26 = vadd.f32 %v4189_v7, %v16209_v15  ;;  %v11640_v48 = vpop.f32.mrb[129].mxu1  ;;  %11788 = vmatmul.mubr.f32.gmra.mrb[126].mxu0 %v4489_v19  ;;  %v5175_v7 = vld [vmem:[%s18665_s8 + $0xf0] sm:$0xff] }
 0x491   : > { %11790 = vmatprep.mubr.msk.f32.mxu0 %vm14006_vm0, %v16416_v16  ;;  %v5107_v48 = vld [vmem:[%s18665_s8 + $0x18] sm:$0xff]  ;;  %13726 = vmatpush3.bf16.msra.mxu1 %v13725_v23 }
 0x492   : > { %v4490_v1 = vmax.f32 %v4408_v58, %v4449_v9  ;;  %v4409_v22 = vadd.f32 %v16371_v41, %v4361_v26  ;;  %v5106_v26 = vld [vmem:[%s18665_s8 + $0x10] sm:$0xff]  ;;  %13727 = vmatprep.subr.bf16.mxu1 %v18746_v18 }
 0x493   : > { %v4194_v30 = vpop.f32.mrb[130].mxu1 }
 0x494   : > { %v4450_v10 = vmul.f32 0.1, %v4409_v22  ;;  %v4362_v56 = vadd.f32 %v4194_v30, %v16214_v28  ;;  %v11643_v54 = vpop.f32.mrb[131].mxu1  ;;  %11791 = vmatmul.mubr.f32.gmra.mrb[128].mxu0 %v4490_v1  ;;  %v5176_v1 = vld [vmem:[%s18665_s8 + $0xf8] sm:$0xff] }
 0x495   : > { %11793 = vmatprep.mubr.msk.f32.mxu0 %vm14006_vm0, %v16416_v16 }
 0x496   : > { %v4491_v15 = vmax.f32 %v4409_v22, %v4450_v10  ;;  %v4410_v57 = vadd.f32 %v16371_v41, %v4362_v56  ;;  %v13728_v56 = vpack.c.bf16 %v5176_v1, %v5175_v7 }
 0x497   : > { %v4199_v53 = vpop.f32.mrb[132].mxu1 }
 0x498   : > { %v4451_v51 = vmul.f32 0.1, %v4410_v57  ;;  %v4363_v28 = vadd.f32 %v4199_v53, %v16219_v61  ;;  %v11646_v60 = vpop.f32.mrb[133].mxu1  ;;  %11794 = vmatmul.mubr.f32.gmra.mrb[130].mxu0 %v4491_v15  ;;  %v5105_v61 = vld [vmem:[%s18665_s8 + $0x8] sm:$0xff]  ;;  %13729 = vmatpush3.bf16.msra.mxu1 %v13728_v56 }
 0x499   : > { %11796 = vmatprep.mubr.msk.f32.mxu0 %vm14006_vm0, %v16416_v16  ;;  %v13731_v58 = vpack.c.bf16 %v5105_v61, %v5104_v62  ;;  %13754 = vmatprep.subr.bf16.mxu1 %v18746_v18  ;;  %v5111_v62 = vld [vmem:[%s18665_s8 + $0x38] sm:$0xff] }
 0x49a   : > { %v4492_v63 = vmax.f32 %v4410_v57, %v4451_v51  ;;  %v4411_v19 = vadd.f32 %v16371_v41, %v4363_v28  ;;  %v13734_v57 = vpack.c.bf16 %v5107_v48, %v5106_v26  ;;  %v5112_v26 = vld [vmem:[%s18665_s8 + $0x40] sm:$0xff] }
 0x49b   : > { %v4204_v9 = vpop.f32.mrb[134].mxu1  ;;  %13732 = vmatpush3.bf16.msra.mxu0 %v13731_v58 }
 0x49c   : > { %v4452_v22 = vmul.f32 0.1, %v4411_v19  ;;  %v4364_v30 = vadd.f32 %v4204_v9, %v16224_v8  ;;  %v11649_v10 = vpop.f32.mrb[135].mxu1  ;;  %11797 = vmatmul.mubr.f32.gmra.mrb[132].mxu0 %v4492_v63  ;;  %13733 = vmatprep.subr.bf16.mxu0 %v18746_v18  ;;  %v5108_v8 = vld [vmem:[%s18665_s8 + $0x20] sm:$0xff] }
 0x49d   : > { %11799 = vmatprep.mubr.msk.f32.mxu0 %vm14006_vm0, %v16416_v16  ;;  %v13737_v37 = vpack.c.bf16 %v5109_v13, %v5108_v8 }
 0x49e   : > { %v4493_v54 = vmax.f32 %v4411_v19, %v4452_v22  ;;  %v4412_v15 = vadd.f32 %v16371_v41, %v4364_v30 }
 0x49f   : > { %v4209_v20 = vpop.f32.mrb[136].mxu1  ;;  %13735 = vmatpush3.bf16.msra.mxu0 %v13734_v57 }
 0x4a0   : > { %v4453_v53 = vmul.f32 0.1, %v4412_v15  ;;  %v4365_v40 = vadd.f32 %v4209_v20, %v16229_v4  ;;  %v11652_v51 = vpop.f32.mrb[137].mxu1  ;;  %11800 = vmatmul.mubr.f32.gmra.mrb[134].mxu0 %v4493_v54  ;;  %13736 = vmatprep.subr.bf16.mxu0 %v18746_v18  ;;  %v5110_v4 = vld [vmem:[%s18665_s8 + $0x30] sm:$0xff] }
 0x4a1   : > { %11802 = vmatprep.mubr.msk.f32.mxu0 %vm14006_vm0, %v16416_v16  ;;  %v13740_v7 = vpack.c.bf16 %v5111_v62, %v5110_v4 }
 0x4a2   : > { %v4494_v28 = vmax.f32 %v4412_v15, %v4453_v53  ;;  %v4413_v60 = vadd.f32 %v16371_v41, %v4365_v40  ;;  %v5114_v15 = vld [vmem:[%s18665_s8 + $0x50] sm:$0xff] }
 0x4a3   : > { %v4214_v29 = vpop.f32.mrb[138].mxu1  ;;  %13738 = vmatpush3.bf16.msra.mxu0 %v13737_v37 }
 0x4a4   : > { %v4454_v23 = vmul.f32 0.1, %v4413_v60  ;;  %v4366_v61 = vadd.f32 %v4214_v29, %v16234_v33  ;;  %v11655_v63 = vpop.f32.mrb[139].mxu1  ;;  %11803 = vmatmul.mubr.f32.gmra.mrb[136].mxu0 %v4494_v28  ;;  %13739 = vmatprep.subr.bf16.mxu0 %v18746_v18  ;;  %v5113_v33 = vld [vmem:[%s18665_s8 + $0x48] sm:$0xff] }
 0x4a5   : > { %11805 = vmatprep.mubr.msk.f32.mxu0 %vm14006_vm0, %v16416_v16  ;;  %v13743_v56 = vpack.c.bf16 %v5113_v33, %v5112_v26 }
 0x4a6   : > { %v4495_v19 = vmax.f32 %v4413_v60, %v4454_v23  ;;  %v4414_v58 = vadd.f32 %v16371_v41, %v4366_v61 }
 0x4a7   : > { %v4219_v9 = vpop.f32.mrb[140].mxu1  ;;  %13741 = vmatpush3.bf16.msra.mxu0 %v13740_v7 }
 0x4a8   : > { %v4455_v48 = vmul.f32 0.1, %v4414_v58  ;;  %v4367_v1 = vadd.f32 %v4219_v9, %v16239_v17  ;;  %v11658_v22 = vpop.f32.mrb[141].mxu1  ;;  %11806 = vmatmul.mubr.f32.gmra.mrb[138].mxu0 %v4495_v19  ;;  %13742 = vmatprep.subr.bf16.mxu0 %v18746_v18  ;;  %v5115_v17 = vld [vmem:[%s18665_s8 + $0x58] sm:$0xff] }
 0x4a9   : > { %11808 = vmatprep.mubr.msk.f32.mxu0 %vm14006_vm0, %v16416_v16  ;;  %v13746_v40 = vpack.c.bf16 %v5115_v17, %v5114_v15 }
 0x4aa   : > { %v4496_v30 = vmax.f32 %v4414_v58, %v4455_v48  ;;  %v4415_v10 = vadd.f32 %v16371_v41, %v4367_v1 }
 0x4ab   : > { %v4224_v54 = vpop.f32.mrb[142].mxu1  ;;  %13744 = vmatpush3.bf16.msra.mxu0 %v13743_v56 }
 0x4ac   : > { %v4456_v57 = vmul.f32 0.1, %v4415_v10  ;;  %v4368_v20 = vadd.f32 %v4224_v54, %v16244_v24  ;;  %v11661_v8 = vpop.f32.mrb[143].mxu1  ;;  %11809 = vmatmul.mubr.f32.gmra.mrb[140].mxu0 %v4496_v30  ;;  %13745 = vmatprep.subr.bf16.mxu0 %v18746_v18 }
 0x4ad   : > { %11811 = vmatprep.mubr.msk.f32.mxu0 %vm14006_vm0, %v16416_v16 }
 0x4ae   : > { %v4497_v13 = vmax.f32 %v4415_v10, %v4456_v57  ;;  %v4416_v53 = vadd.f32 %v16371_v41, %v4368_v20 }
 0x4af   : > { %v4229_v51 = vpop.f32.mrb[144].mxu1  ;;  %13747 = vmatpush3.bf16.msra.mxu0 %v13746_v40 }
 0x4b0   : > { %v4457_v28 = vmul.f32 0.1, %v4416_v53  ;;  %v4369_v60 = vadd.f32 %v4229_v51, %v16249_v49  ;;  %v11664_v37 = vpop.f32.mrb[145].mxu1  ;;  %11812 = vmatmul.mubr.f32.gmra.mrb[142].mxu0 %v4497_v13  ;;  %13748 = vmatprep.subr.bf16.mxu0 %v18746_v18 }
 0x4b1   : > { %11814 = vmatprep.mubr.msk.f32.mxu0 %vm14006_vm0, %v16416_v16 }
 0x4b2   : > { %v4498_v24 = vmax.f32 %v4416_v53, %v4457_v28  ;;  %v4417_v29 = vadd.f32 %v16371_v41, %v4369_v60 }
 0x4b3   : > { %v4234_v4 = vpop.f32.mrb[146].mxu1 }
 0x4b4   : > { %v4458_v62 = vmul.f32 0.1, %v4417_v29  ;;  %v4370_v23 = vadd.f32 %v4234_v4, %v16254_v32  ;;  %v11667_v61 = vpop.f32.mrb[147].mxu1  ;;  %11815 = vmatmul.mubr.f32.gmra.mrb[144].mxu0 %v4498_v24 }
 0x4b5   : > { %11817 = vmatprep.mubr.msk.f32.mxu0 %vm14006_vm0, %v16416_v16 }
 0x4b6   : > { %v4499_v49 = vmax.f32 %v4417_v29, %v4458_v62  ;;  %v4418_v63 = vadd.f32 %v16371_v41, %v4370_v23 }
 0x4b7   : > { %v4239_v19 = vpop.f32.mrb[148].mxu1 }
 0x4b8   : > { %v4459_v58 = vmul.f32 0.1, %v4418_v63  ;;  %v4371_v7 = vadd.f32 %v4239_v19, %v16259_v35  ;;  %v11670_v9 = vpop.f32.mrb[149].mxu1  ;;  %11818 = vmatmul.mubr.f32.gmra.mrb[146].mxu0 %v4499_v49 }
 0x4b9   : > { %11820 = vmatprep.mubr.msk.f32.mxu0 %vm14006_vm0, %v16416_v16 }
 0x4ba   : > { %v4500_v26 = vmax.f32 %v4418_v63, %v4459_v58  ;;  %v4419_v32 = vadd.f32 %v16371_v41, %v4371_v7 }
 0x4bb   : > { %v4244_v33 = vpop.f32.mrb[150].mxu1 }
 0x4bc   : > { %v4460_v48 = vmul.f32 0.1, %v4419_v32  ;;  %v4372_v1 = vadd.f32 %v4244_v33, %v16264_v36  ;;  %v11673_v22 = vpop.f32.mrb[151].mxu1  ;;  %11821 = vmatmul.mubr.f32.gmra.mrb[148].mxu0 %v4500_v26  ;;  %v5116_v33 = vld [vmem:[%s18665_s8 + $0x60] sm:$0xff] }
 0x4bd   : > { %11823 = vmatprep.mubr.msk.f32.mxu0 %vm14006_vm0, %v16416_v16 }
 0x4be   : > { %v4501_v30 = vmax.f32 %v4419_v32, %v4460_v48  ;;  %v4420_v35 = vadd.f32 %v16371_v41, %v4372_v1 }
 0x4bf   : > { %v4249_v10 = vpop.f32.mrb[152].mxu1 }
 0x4c0   : > { %v4461_v56 = vmul.f32 0.1, %v4420_v35  ;;  %v4373_v54 = vadd.f32 %v4249_v10, %v16269_v25  ;;  %v11676_v15 = vpop.f32.mrb[153].mxu1  ;;  %11824 = vmatmul.mubr.f32.gmra.mrb[150].mxu0 %v4501_v30 }
 0x4c1   : > { %11826 = vmatprep.mubr.msk.f32.mxu0 %vm14006_vm0, %v16416_v16 }
 0x4c2   : > { %v4502_v17 = vmax.f32 %v4420_v35, %v4461_v56  ;;  %v4421_v36 = vadd.f32 %v16371_v41, %v4373_v54  ;;  %v5118_v56 = vld [vmem:[%s18665_s8 + $0x70] sm:$0xff]  ;;  %v5119_v54 = vld [vmem:[%s18665_s8 + $0x78] sm:$0xff] }
 0x4c3   : > { %v4254_v57 = vpop.f32.mrb[154].mxu1  ;;  %v13752_v15 = vpack.c.bf16 %v5119_v54, %v5118_v56 }
 0x4c4   : > { %v4462_v20 = vmul.f32 0.1, %v4421_v36  ;;  %v4374_v8 = vadd.f32 %v4254_v57, %v16274_v12  ;;  %v11679_v13 = vpop.f32.mrb[155].mxu1  ;;  %11827 = vmatmul.mubr.f32.gmra.mrb[152].mxu0 %v4502_v17 }
 0x4c5   : > { %11829 = vmatprep.mubr.msk.f32.mxu0 %vm14006_vm0, %v16416_v16  ;;  %v5120_v13 = vld [vmem:[#allocation2 + $0x1] sm:$0xff] }
 0x4c6   : > { %v4503_v53 = vmax.f32 %v4421_v36, %v4462_v20  ;;  %v4422_v25 = vadd.f32 %v16371_v41, %v4374_v8  ;;  %11925 = vmatmul.mubr.f32.vlgmr.msra.gmra.mrb[194].mxu1 %v5120_v13 }
 0x4c7   : > { %v4259_v40 = vpop.f32.mrb[156].mxu1  ;;  %11927 = vmatprep.mubr.msk.f32.mxu1 %vm14006_vm0, %v16416_v16 }
 0x4c8   : > { %v4463_v51 = vmul.f32 0.1, %v4422_v25  ;;  %v4375_v28 = vadd.f32 %v4259_v40, %v16279_v14  ;;  %v11682_v60 = vpop.f32.mrb[157].mxu1  ;;  %11830 = vmatmul.mubr.f32.gmra.mrb[154].mxu0 %v4503_v53  ;;  %v5758_v53 = vld [vmem:[%s18665_s8 + $0x100] sm:$0xff] }
 0x4c9   : > { %11832 = vmatprep.mubr.msk.f32.mxu0 %vm14006_vm0, %v16416_v16 }
 0x4ca   : > { %v4504_v37 = vmax.f32 %v4422_v25, %v4463_v51  ;;  %v4423_v12 = vadd.f32 %v16371_v41, %v4375_v28  ;;  %v5759_v25 = vld [vmem:[%s18665_s8 + $0x108] sm:$0xff] }
 0x4cb   : > { %v4264_v24 = vpop.f32.mrb[158].mxu1  ;;  %v13755_v40 = vpack.c.bf16 %v5759_v25, %v5758_v53 }
 0x4cc   : > { %v4464_v29 = vmul.f32 0.1, %v4423_v12  ;;  %v4376_v4 = vadd.f32 %v4264_v24, %v16284_v34  ;;  %v11685_v62 = vpop.f32.mrb[159].mxu1  ;;  %11833 = vmatmul.mubr.f32.gmra.mrb[156].mxu0 %v4504_v37  ;;  %v5121_v24 = vld [vmem:[#allocation2 + $0x9] sm:$0xff] }
 0x4cd   : > { %11835 = vmatprep.mubr.msk.f32.mxu0 %vm14006_vm0, %v16416_v16  ;;  %13756 = vmatpush3.bf16.msra.mxu1 %v13755_v40 }
 0x4ce   : > { %v4505_v23 = vmax.f32 %v4423_v12, %v4464_v29  ;;  %v4424_v14 = vadd.f32 %v16371_v41, %v4376_v4  ;;  %13757 = vmatprep.subr.bf16.mxu1 %v18746_v18  ;;  %11928 = vmatmul.mubr.f32.gmra.mrb[196].mxu1 %v5121_v24 }
 0x4cf   : > { %v4269_v61 = vpop.f32.mrb[160].mxu1  ;;  %11930 = vmatprep.mubr.msk.f32.mxu1 %vm14006_vm0, %v16416_v16 }
 0x4d0   : > { %v4465_v49 = vmul.f32 0.1, %v4424_v14  ;;  %v4377_v63 = vadd.f32 %v4269_v61, %v16289_v3  ;;  %v11688_v19 = vpop.f32.mrb[161].mxu1  ;;  %11836 = vmatmul.mubr.f32.gmra.mrb[158].mxu0 %v4505_v23  ;;  %v5117_v3 = vld [vmem:[%s18665_s8 + $0x68] sm:$0xff] }
 0x4d1   : > { %11838 = vmatprep.mubr.msk.f32.mxu0 %vm14006_vm0, %v16416_v16  ;;  %v13749_v48 = vpack.c.bf16 %v5117_v3, %v5116_v33 }
 0x4d2   : > { %v4506_v58 = vmax.f32 %v4424_v14, %v4465_v49  ;;  %v4425_v34 = vadd.f32 %v16371_v41, %v4377_v63 }
 0x4d3   : > { %v4274_v7 = vpop.f32.mrb[162].mxu1  ;;  %13750 = vmatpush3.bf16.msra.mxu0 %v13749_v48 }
 0x4d4   : > { %v4466_v9 = vmul.f32 0.1, %v4425_v34  ;;  %v4378_v26 = vadd.f32 %v4274_v7, %v16294_v27  ;;  %v11691_v32 = vpop.f32.mrb[163].mxu1  ;;  %11839 = vmatmul.mubr.f32.gmra.mrb[160].mxu0 %v4506_v58  ;;  %13751 = vmatprep.subr.bf16.mxu0 %v18746_v18 }
 0x4d5   : > { %11841 = vmatprep.mubr.msk.f32.mxu0 %vm14006_vm0, %v16416_v16 }
 0x4d6   : > { %v4507_v1 = vmax.f32 %v4425_v34, %v4466_v9  ;;  %v4426_v22 = vadd.f32 %v16371_v41, %v4378_v26 }
 0x4d7   : > { %v4279_v30 = vpop.f32.mrb[164].mxu1  ;;  %13753 = vmatpush3.bf16.msra.mxu0 %v13752_v15 }
 0x4d8   : > { %v4467_v27 = vmul.f32 0.1, %v4426_v22  ;;  %v4379_v35 = vadd.f32 %v4279_v30, %v16299_v38  ;;  %v11694_v10 = vpop.f32.mrb[165].mxu1  ;;  %11842 = vmatmul.mubr.f32.gmra.mrb[162].mxu0 %v4507_v1  ;;  %13778 = vmatprep.subr.bf16.mxu0 %v18746_v18 }
 0x4d9   : > { %11844 = vmatprep.mubr.msk.f32.mxu0 %vm14006_vm0, %v16416_v16 }
 0x4da   : > { %v4508_v17 = vmax.f32 %v4426_v22, %v4467_v27  ;;  %v4427_v36 = vadd.f32 %v16371_v41, %v4379_v35  ;;  %v5760_v27 = vld [vmem:[%s18665_s8 + $0x110] sm:$0xff] }
 0x4db   : > { %v4284_v38 = vpop.f32.mrb[166].mxu1 }
 0x4dc   : > { %v4468_v57 = vmul.f32 0.1, %v4427_v36  ;;  %v4380_v20 = vadd.f32 %v4284_v38, %v16310_v59  ;;  %v11697_v8 = vpop.f32.mrb[167].mxu1  ;;  %11845 = vmatmul.mubr.f32.gmra.mrb[164].mxu0 %v4508_v17 }
 0x4dd   : > { %11847 = vmatprep.mubr.msk.f32.mxu0 %vm14006_vm0, %v16416_v16 }
 0x4de   : > { %v4509_v51 = vmax.f32 %v4427_v36, %v4468_v57  ;;  %v4428_v59 = vadd.f32 %v16371_v41, %v4380_v20 }
 0x4df   : > { %v4289_v28 = vpop.f32.mrb[168].mxu1 }
 0x4e0   : > { %v4469_v60 = vmul.f32 0.1, %v4428_v59  ;;  %v4381_v37 = vadd.f32 %v4289_v28, %v16316_v2  ;;  %v11700_v12 = vpop.f32.mrb[169].mxu1  ;;  %11848 = vmatmul.mubr.f32.gmra.mrb[166].mxu0 %v4509_v51 }
 0x4e1   : > { %11850 = vmatprep.mubr.msk.f32.mxu0 %vm14006_vm0, %v16416_v16 }
 0x4e2   : > { %v4510_v29 = vmax.f32 %v4428_v59, %v4469_v60  ;;  %v4429_v4 = vadd.f32 %v16371_v41, %v4381_v37 }
 0x4e3   : > { %v4294_v62 = vpop.f32.mrb[170].mxu1 }
 0x4e4   : > { %v4470_v23 = vmul.f32 0.1, %v4429_v4  ;;  %v4382_v14 = vadd.f32 %v4294_v62, %v16319_v31  ;;  %v11703_v2 = vpop.f32.mrb[171].mxu1  ;;  %11851 = vmatmul.mubr.f32.gmra.mrb[168].mxu0 %v4510_v29 }
 0x4e5   : > { %11853 = vmatprep.mubr.msk.f32.mxu0 %vm14006_vm0, %v16416_v16  ;;  %v5762_v2 = vld [vmem:[%s18665_s8 + $0x120] sm:$0xff] }
 0x4e6   : > { %v4511_v61 = vmax.f32 %v4429_v4, %v4470_v23  ;;  %v4430_v49 = vadd.f32 %v16371_v41, %v4382_v14 }
 0x4e7   : > { %v4299_v63 = vpop.f32.mrb[172].mxu1 }
 0x4e8   : > { %v4471_v19 = vmul.f32 0.1, %v4430_v49  ;;  %v4383_v58 = vadd.f32 %v4299_v63, %v16322_v47  ;;  %v11706_v34 = vpop.f32.mrb[173].mxu1  ;;  %11854 = vmatmul.mubr.f32.gmra.mrb[170].mxu0 %v4511_v61 }
 0x4e9   : > { %11856 = vmatprep.mubr.msk.f32.mxu0 %vm14006_vm0, %v16416_v16 }
 0x4ea   : > { %v4512_v7 = vmax.f32 %v4430_v49, %v4471_v19  ;;  %v4431_v31 = vadd.f32 %v16371_v41, %v4383_v58 }
 0x4eb   : > { %v4304_v9 = vpop.f32.mrb[174].mxu1 }
 0x4ec   : > { %v4472_v26 = vmul.f32 0.1, %v4431_v31  ;;  %v4384_v32 = vadd.f32 %v4304_v9, %v16325_v39  ;;  %v11709_v33 = vpop.f32.mrb[175].mxu1  ;;  %11857 = vmatmul.mubr.f32.gmra.mrb[172].mxu0 %v4512_v7  ;;  %v5761_v39 = vld [vmem:[%s18665_s8 + $0x118] sm:$0xff] }
 0x4ed   : > { %11859 = vmatprep.mubr.msk.f32.mxu0 %vm14006_vm0, %v16416_v16  ;;  %v13758_v35 = vpack.c.bf16 %v5761_v39, %v5760_v27 }
 0x4ee   : > { %v4513_v3 = vmax.f32 %v4431_v31, %v4472_v26  ;;  %v4432_v47 = vadd.f32 %v16371_v41, %v4384_v32 }
 0x4ef   : > { %v4309_v48 = vpop.f32.mrb[176].mxu1  ;;  %13759 = vmatpush3.bf16.msra.mxu1 %v13758_v35  ;;  %v5764_v35 = vld [vmem:[%s18665_s8 + $0x130] sm:$0xff] }
 0x4f0   : > { %v4473_v1 = vmul.f32 0.1, %v4432_v47  ;;  %v4385_v22 = vadd.f32 %v4309_v48, %v16334_v52  ;;  %v11712_v30 = vpop.f32.mrb[177].mxu1  ;;  %11860 = vmatmul.mubr.f32.gmra.mrb[174].mxu0 %v4513_v3  ;;  %13760 = vmatprep.subr.bf16.mxu1 %v18746_v18 }
 0x4f1   : > { %11862 = vmatprep.mubr.msk.f32.mxu0 %vm14006_vm0, %v16416_v16 }
 0x4f2   : > { %v4514_v10 = vmax.f32 %v4432_v47, %v4473_v1  ;;  %v4433_v56 = vadd.f32 %v16371_v41, %v4385_v22 }
 0x4f3   : > { %v4314_v54 = vpop.f32.mrb[178].mxu1 }
 0x4f4   : > { %v4474_v52 = vmul.f32 0.1, %v4433_v56  ;;  %v4386_v15 = vadd.f32 %v4314_v54, %v16338_v42  ;;  %v11715_v17 = vpop.f32.mrb[179].mxu1  ;;  %11863 = vmatmul.mubr.f32.gmra.mrb[176].mxu0 %v4514_v10 }
 0x4f5   : > { %11865 = vmatprep.mubr.msk.f32.mxu0 %vm14006_vm0, %v16416_v16 }
 0x4f6   : > { %v4515_v36 = vmax.f32 %v4433_v56, %v4474_v52  ;;  %v4434_v38 = vadd.f32 %v16371_v41, %v4386_v15  ;;  %v5767_v56 = vld [vmem:[%s18665_s8 + $0x148] sm:$0xff]  ;;  %v5768_v52 = vld [vmem:[%s18665_s8 + $0x150] sm:$0xff]  ;;  %v5769_v15 = vld [vmem:[%s18665_s8 + $0x158] sm:$0xff] }
 0x4f7   : > { %v4319_v57 = vpop.f32.mrb[180].mxu1  ;;  %v13770_v17 = vpack.c.bf16 %v5769_v15, %v5768_v52 }
 0x4f8   : > { %v4475_v20 = vmul.f32 0.1, %v4434_v38  ;;  %v4387_v8 = vadd.f32 %v4319_v57, %v16341_v43  ;;  %v11718_v13 = vpop.f32.mrb[181].mxu1  ;;  %11866 = vmatmul.mubr.f32.gmra.mrb[178].mxu0 %v4515_v36  ;;  %v16685_v36 = vld [vmem:[%s18664_s7] ss:$0 sm:$0xff] }
 0x4f9   : > { %11868 = vmatprep.mubr.msk.f32.mxu0 %vm14006_vm0, %v16416_v16 }
 0x4fa   : > { %v4516_v42 = vmax.f32 %v4434_v38, %v4475_v20  ;;  %v4435_v53 = vadd.f32 %v16371_v41, %v4387_v8 }
 0x4fb   : > { %v4324_v25 = vpop.f32.mrb[182].mxu1 }
 0x4fc   : > { %v4476_v40 = vmul.f32 0.1, %v4435_v53  ;;  %v4388_v51 = vadd.f32 %v4324_v25, %v16344_v55  ;;  %v11721_v59 = vpop.f32.mrb[183].mxu1  ;;  %11869 = vmatmul.mubr.f32.gmra.mrb[180].mxu0 %v4516_v42 }
 0x4fd   : > { %11871 = vmatprep.mubr.msk.f32.mxu0 %vm14006_vm0, %v16416_v16 }
 0x4fe   : > { %v4517_v28 = vmax.f32 %v4435_v53, %v4476_v40  ;;  %v4436_v43 = vadd.f32 %v16371_v41, %v4388_v51 }
 0x4ff   : > { %v4329_v60 = vpop.f32.mrb[184].mxu1 }
 0x500   : > { %v4477_v37 = vmul.f32 0.1, %v4436_v43  ;;  %v4389_v12 = vadd.f32 %v4329_v60, %v16347_v11  ;;  %v11724_v24 = vpop.f32.mrb[185].mxu1  ;;  %11872 = vmatmul.mubr.f32.gmra.mrb[182].mxu0 %v4517_v28  ;;  %v5763_v11 = vld [vmem:[%s18665_s8 + $0x128] sm:$0xff] }
 0x501   : > { %11874 = vmatprep.mubr.msk.f32.mxu0 %vm14006_vm0, %v16416_v16  ;;  %v13761_v61 = vpack.c.bf16 %v5763_v11, %v5762_v2 }
 0x502   : > { %v4518_v29 = vmax.f32 %v4436_v43, %v4477_v37  ;;  %v4437_v55 = vadd.f32 %v16371_v41, %v4389_v12 }
 0x503   : > { %v4334_v4 = vpop.f32.mrb[186].mxu1  ;;  %13762 = vmatpush3.bf16.msra.mxu1 %v13761_v61 }
 0x504   : > { %v4478_v62 = vmul.f32 0.1, %v4437_v55  ;;  %v4390_v23 = vadd.f32 %v4334_v4, %v16356_v0  ;;  %v11727_v14 = vpop.f32.mrb[187].mxu1  ;;  %11875 = vmatmul.mubr.f32.gmra.mrb[184].mxu0 %v4518_v29  ;;  %13763 = vmatprep.subr.bf16.mxu1 %v18746_v18 }
 0x505   : > { %11877 = vmatprep.mubr.msk.f32.mxu0 %vm14006_vm0, %v16416_v16 }
 0x506   : > { %v4519_v49 = vmax.f32 %v4437_v55, %v4478_v62  ;;  %v4438_v63 = vadd.f32 %v16371_v41, %v4390_v23  ;;  %v5771_v62 = vld [vmem:[%s18665_s8 + $0x168] sm:$0xff] }
 0x507   : > { %v4339_v19 = vpop.f32.mrb[188].mxu1 }
 0x508   : > { %v4479_v0 = vmul.f32 0.1, %v4438_v63  ;;  %v4391_v58 = vadd.f32 %v4339_v19, %v16360_v6  ;;  %v11730_v34 = vpop.f32.mrb[189].mxu1  ;;  %11878 = vmatmul.mubr.f32.gmra.mrb[186].mxu0 %v4519_v49 }
 0x509   : > { %11880 = vmatprep.mubr.msk.f32.mxu0 %vm14006_vm0, %v16416_v16 }
 0x50a   : > { %v4520_v7 = vmax.f32 %v4438_v63, %v4479_v0  ;;  %v4439_v31 = vadd.f32 %v16371_v41, %v4391_v58 }
 0x50b   : > { %v4344_v9 = vpop.f32.mrb[190].mxu1 }
 0x50c   : > { %v4480_v26 = vmul.f32 0.1, %v4439_v31  ;;  %v4392_v32 = vadd.f32 %v4344_v9, %v16363_v5  ;;  %11881 = vmatmul.mubr.f32.gmra.mrb[188].mxu0 %v4520_v7  ;;  %v11733_v33 = vpop.f32.mrb[191].mxu1 }
 0x50d   : > { %11883 = vmatprep.mubr.msk.f32.mxu0 %vm14006_vm0, %v16416_v16 }
 0x50e   : > { %v4521_v6 = vmax.f32 %v4439_v31, %v4480_v26  ;;  %v4440_v3 = vadd.f32 %v16371_v41, %v4392_v32  ;;  %v6126_v32 = vld [vmem:[%s18665_s8 + $0x180] sm:$0xff] }
 0x50f   : > { %v4349_v47 = vpop.f32.mrb[192].mxu1 }
 0x510   : > { %v4481_v48 = vmul.f32 0.1, %v4440_v3  ;;  %v4393_v1 = vadd.f32 %v4349_v47, %v16366_v21  ;;  %11884 = vmatmul.mubr.f32.gmra.mrb[190].mxu0 %v4521_v6  ;;  %v11736_v22 = vpop.f32.mrb[193].mxu1  ;;  %v5765_v21 = vld [vmem:[%s18665_s8 + $0x138] sm:$0xff]  ;;  %v18747_v6 = vld [vmem:[#allocation4_spill] sm:$0xff] }
 0x511   : > { %11886 = vmatprep.mubr.msk.f32.mxu0 %vm14006_vm0, %v16416_v16  ;;  %v13764_v10 = vpack.c.bf16 %v5765_v21, %v5764_v35  ;;  %v6129_v35 = vld [vmem:[%s18665_s8 + $0x198] sm:$0xff] }
 0x512   : > { %v4522_v30 = vmax.f32 %v4440_v3, %v4481_v48  ;;  %v4441_v5 = vadd.f32 %v16371_v41, %v4393_v1  ;;  %v5766_v41 = vld [vmem:[%s18665_s8 + $0x140] sm:$0xff] }
 0x513   : > { %13765 = vmatpush3.bf16.msra.mxu1 %v13764_v10  ;;  %v13767_v54 = vpack.c.bf16 %v5767_v56, %v5766_v41  ;;  %v18748_v10 = vld [vmem:[#allocation5_spill] sm:$0xff] }
 0x514   : > { %v4482_v27 = vmul.f32 0.1, %v4441_v5  ;;  %11887 = vmatmul.mubr.f32.gmra.mrb[192].mxu0 %v4522_v30  ;;  %13766 = vmatprep.subr.bf16.mxu1 %v18746_v18 }
 0x515   : > { %11889 = vmatprep.mubr.msk.f32.mxu0 %vm14006_vm0, %v16416_v16 }
 0x516   : > { %v4523_v39 = vmax.f32 %v4441_v5, %v4482_v27 }
 0x517   : > { %13768 = vmatpush3.bf16.msra.mxu1 %v13767_v54 }
 0x518   : > { %11890 = vmatmul.mubr.f32.gmra.mrb[194].mxu0 %v4523_v39  ;;  %13769 = vmatprep.subr.bf16.mxu1 %v18746_v18  ;;  %v6128_v39 = vld [vmem:[%s18665_s8 + $0x190] sm:$0xff] }
 0x519   : > { %12079 = vmatprep.mubr.msk.f32.mxu0 %vm14006_vm0, %v16416_v16  ;;  %v13782_v21 = vpack.c.bf16 %v6129_v35, %v6128_v39  ;;  %v6139_v39 = vld [vmem:[%s18665_s8 + $0x1e8] sm:$0xff] }
 0x51b   : > { %13771 = vmatpush3.bf16.msra.mxu1 %v13770_v17 }
 0x51c   : > { %12080 = vmatmul.mubr.f32.vlgmr.msra.gmra.mrb[196].mxu0 %v16416_v16  ;;  %13772 = vmatprep.subr.bf16.mxu1 %v18746_v18 }
 0x51d   : > { %12082 = vmatprep.mubr.msk.f32.mxu0 %vm14006_vm0, %v16416_v16 }
 0x520   : > { %12083 = vmatmul.mubr.f32.gmra.mrb[198].mxu0 %v16416_v16 }
 0x521   : > { %12085 = vmatprep.mubr.msk.f32.mxu0 %vm14006_vm0, %v16416_v16 }
 0x54b   : > { %v4695_v38 = vpop.f32.mrb[114].mxu0 }
 0x54c   : > { %v4696_v57 = vadd.f32 %v16685_v36, %v4695_v38  ;;  %v11771_v20 = vpop.f32.mrb[115].mxu0 }
 0x54d   : > { %v6130_v20 = vld [vmem:[%s18665_s8 + $0x1a0] sm:$0xff] }
 0x54e   : > { %v4899_v8 = vmul.f32 0.1, %v4696_v57 }
 0x54f   : > { %v4700_v13 = vpop.f32.mrb[116].mxu0 }
 0x550   : > { %v4940_v42 = vmax.f32 %v4696_v57, %v4899_v8  ;;  %v4701_v53 = vadd.f32 %v16685_v36, %v4700_v13  ;;  %v11774_v25 = vpop.f32.mrb[117].mxu0  ;;  %v6131_v8 = vld [vmem:[%s18665_s8 + $0x1a8] sm:$0xff] }
 0x551   : > { %v13785_v13 = vpack.c.bf16 %v6131_v8, %v6130_v20  ;;  %v6141_v20 = vld [vmem:[%s18665_s8 + $0x1f8] sm:$0xff] }
 0x552   : > { %v4981_v40 = vmul.f32 %v4940_v42, %v14560_v44  ;;  %v4900_v51 = vmul.f32 0.1, %v4701_v53  ;;  %v5770_v44 = vld [vmem:[%s18665_s8 + $0x160] sm:$0xff] }
 0x553   : > { %v4705_v59 = vpop.f32.mrb[118].mxu0  ;;  %v13773_v23 = vpack.c.bf16 %v5771_v62, %v5770_v44  ;;  %v18749_v42 = vld [vmem:[#allocation6_spill] sm:$0xff] }
 0x554   : > { %5022 = vst [vmem:[#allocation2 + $0x13] sm:$0xff] %v4981_v40  ;;  %v4941_v28 = vmax.f32 %v4701_v53, %v4900_v51  ;;  %v4706_v43 = vadd.f32 %v16685_v36, %v4705_v59  ;;  %v11777_v60 = vpop.f32.mrb[119].mxu0 }
 0x555   : > { %13774 = vmatpush3.bf16.msra.mxu1 %v13773_v23 }
 0x556   : > { %v4982_v37 = vmul.f32 %v4941_v28, %v14564_v46  ;;  %v4901_v12 = vmul.f32 0.1, %v4706_v43  ;;  %13775 = vmatprep.subr.bf16.mxu1 %v18746_v18 }
 0x557   : > { %v4710_v24 = vpop.f32.mrb[120].mxu0 }
 0x558   : > { %5023 = vst [vmem:[#allocation2 + $0x1b] sm:$0xff] %v4982_v37  ;;  %v4942_v29 = vmax.f32 %v4706_v43, %v4901_v12  ;;  %v4711_v55 = vadd.f32 %v16685_v36, %v4710_v24  ;;  %v11780_v4 = vpop.f32.mrb[121].mxu0  ;;  %v5772_v37 = vld [vmem:[%s18665_s8 + $0x170] sm:$0xff]  ;;  %v5773_v12 = vld [vmem:[%s18665_s8 + $0x178] sm:$0xff] }
 0x559   : > { %v6132_v24 = vld [vmem:[%s18665_s8 + $0x1b0] sm:$0xff]  ;;  %v18750_v4 = vld [vmem:[#allocation7_spill] sm:$0xff] }
 0x55a   : > { %v4983_v14 = vmul.f32 %v4942_v29, %v14562_v45  ;;  %v4902_v2 = vmul.f32 0.1, %v4711_v55  ;;  %v13776_v29 = vpack.c.bf16 %v5773_v12, %v5772_v37 }
 0x55b   : > { %v4715_v46 = vpop.f32.mrb[122].mxu0  ;;  %v5122_v11 = vld [vmem:[#allocation2 + $0x11] sm:$0xff] }
 0x55c   : > { %v5065_v61 = vld [vmem:[#allocation2 + $0x10] sm:$0xff]  ;;  %5024 = vst [vmem:[#allocation2 + $0x23] sm:$0xff] %v4983_v14  ;;  %v4943_v49 = vmax.f32 %v4711_v55, %v4902_v2  ;;  %v4716_v63 = vadd.f32 %v16685_v36, %v4715_v46  ;;  %v11783_v19 = vpop.f32.mrb[123].mxu0  ;;  %11931 = vmatmul.mubr.f32.gmra.mrb[198].mxu1 %v5122_v11  ;;  %v6133_v55 = vld [vmem:[%s18665_s8 + $0x1b8] sm:$0xff] }
 0x55d   : > { %12086 = vmatmul.mubr.f32.gmra.mrb[200].mxu0 %v5065_v61  ;;  %11933 = vmatprep.mubr.msk.f32.mxu1 %vm14006_vm0, %v16416_v16  ;;  %v13788_v23 = vpack.c.bf16 %v6133_v55, %v6132_v24  ;;  %v6135_v19 = vld [vmem:[%s18665_s8 + $0x1c8] sm:$0xff]  ;;  %v18755_v24 = vld [vmem:[#allocation12_spill] sm:$0xff] }
 0x55e   : > { %12088 = vmatprep.mubr.msk.f32.mxu0 %vm14006_vm0, %v16416_v16  ;;  %v4984_v45 = vmul.f32 %v4943_v49, %v14572_v50  ;;  %v4903_v0 = vmul.f32 0.1, %v4716_v63  ;;  %v6127_v50 = vld [vmem:[%s18665_s8 + $0x188] sm:$0xff]  ;;  %13777 = vmatpush3.bf16.msra.mxu1 %v13776_v29 }
 0x55f   : > { %v4720_v58 = vpop.f32.mrb[124].mxu0  ;;  %v5123_v34 = vld [vmem:[#allocation2 + $0x19] sm:$0xff]  ;;  %v13779_v33 = vpack.c.bf16 %v6127_v50, %v6126_v32  ;;  %13802 = vmatprep.subr.bf16.mxu1 %v18746_v18 }
 0x560   : > { %v5066_v7 = vld [vmem:[#allocation2 + $0x18] sm:$0xff]  ;;  %5025 = vst [vmem:[#allocation2 + $0x2b] sm:$0xff] %v4984_v45  ;;  %v4944_v31 = vmax.f32 %v4716_v63, %v4903_v0  ;;  %v4721_v9 = vadd.f32 %v16685_v36, %v4720_v58  ;;  %v11786_v26 = vpop.f32.mrb[125].mxu0  ;;  %11934 = vmatmul.mubr.f32.gmra.mrb[200].mxu1 %v5123_v34  ;;  %v6134_v63 = vld [vmem:[%s18665_s8 + $0x1c0] sm:$0xff]  ;;  %v18751_v45 = vld [vmem:[#allocation8_spill] sm:$0xff] }
 0x561   : > { %12089 = vmatmul.mubr.f32.gmra.mrb[202].mxu0 %v5066_v7  ;;  %11936 = vmatprep.mubr.msk.f32.mxu1 %vm14006_vm0, %v16416_v16  ;;  %v13791_v34 = vpack.c.bf16 %v6135_v19, %v6134_v63 }
 0x562   : > { %12091 = vmatprep.mubr.msk.f32.mxu0 %vm14006_vm0, %v16416_v16  ;;  %v4985_v3 = vmul.f32 %v4944_v31, %v18747_v6  ;;  %v4904_v47 = vmul.f32 0.1, %v4721_v9  ;;  %13780 = vmatpush3.bf16.msra.mxu0 %v13779_v33  ;;  %v6136_v33 = vld [vmem:[%s18665_s8 + $0x1d0] sm:$0xff]  ;;  %v6137_v6 = vld [vmem:[%s18665_s8 + $0x1d8] sm:$0xff] }
 0x563   : > { %v4725_v48 = vpop.f32.mrb[126].mxu0  ;;  %v5124_v1 = vld [vmem:[#allocation2 + $0x21] sm:$0xff]  ;;  %13781 = vmatprep.subr.bf16.mxu0 %v18746_v18 }
 0x564   : > { %v5067_v22 = vld [vmem:[#allocation2 + $0x20] sm:$0xff]  ;;  %5026 = vst [vmem:[#allocation2 + $0x33] sm:$0xff] %v4985_v3  ;;  %v4945_v30 = vmax.f32 %v4721_v9, %v4904_v47  ;;  %v4726_v5 = vadd.f32 %v16685_v36, %v4725_v48  ;;  %v11789_v27 = vpop.f32.mrb[127].mxu0  ;;  %11937 = vmatmul.mubr.f32.gmra.mrb[202].mxu1 %v5124_v1  ;;  %v18752_v3 = vld [vmem:[#allocation9_spill] sm:$0xff]  ;;  %v13794_v1 = vpack.c.bf16 %v6137_v6, %v6136_v33 }
 0x565   : > { %12092 = vmatmul.mubr.f32.gmra.mrb[204].mxu0 %v5067_v22  ;;  %11939 = vmatprep.mubr.msk.f32.mxu1 %vm14006_vm0, %v16416_v16  ;;  %v6138_v22 = vld [vmem:[%s18665_s8 + $0x1e0] sm:$0xff] }
 0x566   : > { %12094 = vmatprep.mubr.msk.f32.mxu0 %vm14006_vm0, %v16416_v16  ;;  %v4986_v41 = vmul.f32 %v4945_v30, %v18748_v10  ;;  %v4905_v56 = vmul.f32 0.1, %v4726_v5  ;;  %13783 = vmatpush3.bf16.msra.mxu0 %v13782_v21  ;;  %v16798_v10 = vld [vmem:[#allocation2] sm:$0xff] }
 0x567   : > { %v4730_v54 = vpop.f32.mrb[128].mxu0  ;;  %v5125_v52 = vld [vmem:[#allocation2 + $0x29] sm:$0xff]  ;;  %13784 = vmatprep.subr.bf16.mxu0 %v18746_v18 }
 0x568   : > { %v5068_v15 = vld [vmem:[#allocation2 + $0x28] sm:$0xff]  ;;  %5027 = vst [vmem:[#allocation2 + $0x3b] sm:$0xff] %v4986_v41  ;;  %v4946_v17 = vmax.f32 %v4726_v5, %v4905_v56  ;;  %v4731_v38 = vadd.f32 %v16685_v36, %v4730_v54  ;;  %v11792_v57 = vpop.f32.mrb[129].mxu0  ;;  %11940 = vmatmul.mubr.f32.gmra.mrb[204].mxu1 %v5125_v52  ;;  %v18753_v41 = vld [vmem:[#allocation10_spill] sm:$0xff]  ;;  %v13797_v52 = vpack.c.bf16 %v6139_v39, %v6138_v22 }
 0x569   : > { %12095 = vmatmul.mubr.f32.gmra.mrb[206].mxu0 %v5068_v15  ;;  %11942 = vmatprep.mubr.msk.f32.mxu1 %vm14006_vm0, %v16416_v16  ;;  %v6140_v15 = vld [vmem:[%s18665_s8 + $0x1f0] sm:$0xff] }
 0x56a   : > { %12097 = vmatprep.mubr.msk.f32.mxu0 %vm14006_vm0, %v16416_v16  ;;  %v4987_v53 = vmul.f32 %v4946_v17, %v18749_v42  ;;  %v4906_v25 = vmul.f32 0.1, %v4731_v38  ;;  %13786 = vmatpush3.bf16.msra.mxu0 %v13785_v13 }
 0x56b   : > { %v4735_v40 = vpop.f32.mrb[130].mxu0  ;;  %v5126_v51 = vld [vmem:[#allocation2 + $0x31] sm:$0xff]  ;;  %13787 = vmatprep.subr.bf16.mxu0 %v18746_v18 }
 0x56c   : > { %v5069_v59 = vld [vmem:[#allocation2 + $0x30] sm:$0xff]  ;;  %5028 = vst [vmem:[#allocation2 + $0x43] sm:$0xff] %v4987_v53  ;;  %v4947_v28 = vmax.f32 %v4731_v38, %v4906_v25  ;;  %v4736_v43 = vadd.f32 %v16685_v36, %v4735_v40  ;;  %v11795_v60 = vpop.f32.mrb[131].mxu0  ;;  %11943 = vmatmul.mubr.f32.gmra.mrb[206].mxu1 %v5126_v51  ;;  %v18754_v53 = vld [vmem:[#allocation11_spill] sm:$0xff]  ;;  %v13800_v51 = vpack.c.bf16 %v6141_v20, %v6140_v15 }
 0x56d   : > { %12098 = vmatmul.mubr.f32.gmra.mrb[208].mxu0 %v5069_v59  ;;  %11945 = vmatprep.mubr.msk.f32.mxu1 %vm14006_vm0, %v16416_v16 }
 0x56e   : > { %12100 = vmatprep.mubr.msk.f32.mxu0 %vm14006_vm0, %v16416_v16  ;;  %v4988_v44 = vmul.f32 %v4947_v28, %v18750_v4  ;;  %v4907_v62 = vmul.f32 0.1, %v4736_v43  ;;  %13789 = vmatpush3.bf16.msra.mxu0 %v13788_v23 }
 0x56f   : > { %v4740_v14 = vpop.f32.mrb[132].mxu0  ;;  %v5127_v2 = vld [vmem:[#allocation2 + $0x39] sm:$0xff]  ;;  %13790 = vmatprep.subr.bf16.mxu0 %v18746_v18 }
 0x570   : > { %v5070_v46 = vld [vmem:[#allocation2 + $0x38] sm:$0xff]  ;;  %5029 = vst [vmem:[#allocation2 + $0x4b] sm:$0xff] %v4988_v44  ;;  %v4948_v11 = vmax.f32 %v4736_v43, %v4907_v62  ;;  %v4741_v61 = vadd.f32 %v16685_v36, %v4740_v14  ;;  %v11798_v49 = vpop.f32.mrb[133].mxu0  ;;  %11946 = vmatmul.mubr.f32.gmra.mrb[208].mxu1 %v5127_v2 }
 0x571   : > { %12101 = vmatmul.mubr.f32.gmra.mrb[210].mxu0 %v5070_v46  ;;  %11948 = vmatprep.mubr.msk.f32.mxu1 %vm14006_vm0, %v16416_v16  ;;  %v18756_v46 = vld [vmem:[#allocation13_spill] sm:$0xff] }
 0x572   : > { %12103 = vmatprep.mubr.msk.f32.mxu0 %vm14006_vm0, %v16416_v16  ;;  %v4989_v0 = vmul.f32 %v4948_v11, %v18751_v45  ;;  %v4908_v58 = vmul.f32 0.1, %v4741_v61  ;;  %13792 = vmatpush3.bf16.msra.mxu0 %v13791_v34  ;;  %v18757_v34 = vld [vmem:[#allocation14_spill] sm:$0xff] }
 0x573   : > { %v4745_v7 = vpop.f32.mrb[134].mxu0  ;;  %v5128_v31 = vld [vmem:[#allocation2 + $0x41] sm:$0xff]  ;;  %13793 = vmatprep.subr.bf16.mxu0 %v18746_v18 }
 0x574   : > { %v5071_v9 = vld [vmem:[#allocation2 + $0x40] sm:$0xff]  ;;  %5030 = vst [vmem:[#allocation2 + $0x53] sm:$0xff] %v4989_v0  ;;  %v4949_v26 = vmax.f32 %v4741_v61, %v4908_v58  ;;  %v4746_v32 = vadd.f32 %v16685_v36, %v4745_v7  ;;  %v11801_v50 = vpop.f32.mrb[135].mxu0  ;;  %11949 = vmatmul.mubr.f32.gmra.mrb[210].mxu1 %v5128_v31 }
 0x575   : > { %12104 = vmatmul.mubr.f32.gmra.mrb[212].mxu0 %v5071_v9  ;;  %11951 = vmatprep.mubr.msk.f32.mxu1 %vm14006_vm0, %v16416_v16 }
 0x576   : > { %12106 = vmatprep.mubr.msk.f32.mxu0 %vm14006_vm0, %v16416_v16  ;;  %v4990_v47 = vmul.f32 %v4949_v26, %v18752_v3  ;;  %v4909_v48 = vmul.f32 0.1, %v4746_v32  ;;  %13795 = vmatpush3.bf16.msra.mxu0 %v13794_v1  ;;  %v18758_v3 = vld [vmem:[#allocation15_spill] sm:$0xff] }
 0x577   : > { %v4750_v30 = vpop.f32.mrb[136].mxu0  ;;  %v5129_v5 = vld [vmem:[#allocation2 + $0x49] sm:$0xff]  ;;  %13796 = vmatprep.subr.bf16.mxu0 %v18746_v18 }
 0x578   : > { %v5072_v27 = vld [vmem:[#allocation2 + $0x48] sm:$0xff]  ;;  %5031 = vst [vmem:[#allocation2 + $0x5b] sm:$0xff] %v4990_v47  ;;  %v4950_v16 = vmax.f32 %v4746_v32, %v4909_v48  ;;  %v4751_v35 = vadd.f32 %v16685_v36, %v4750_v30  ;;  %v11804_v21 = vpop.f32.mrb[137].mxu0  ;;  %11952 = vmatmul.mubr.f32.gmra.mrb[212].mxu1 %v5129_v5 }
 0x579   : > { %12107 = vmatmul.mubr.f32.gmra.mrb[214].mxu0 %v5072_v27  ;;  %11954 = vmatprep.mubr.msk.f32.mxu1 %vm14006_vm0, %v16798_v10 }
 0x57a   : > { %12109 = vmatprep.mubr.msk.f32.mxu0 %vm14006_vm0, %v16798_v10  ;;  %v4991_v56 = vmul.f32 %v4950_v16, %v18753_v41  ;;  %v4910_v54 = vmul.f32 0.1, %v4751_v35  ;;  %13798 = vmatpush3.bf16.msra.mxu0 %v13797_v52  ;;  %v18759_v16 = vld [vmem:[#allocation16_spill] sm:$0xff] }
 0x57b   : > { %v4755_v17 = vpop.f32.mrb[138].mxu0  ;;  %v5130_v38 = vld [vmem:[#allocation2 + $0x51] sm:$0xff]  ;;  %13799 = vmatprep.subr.bf16.mxu0 %v18746_v18 }
 0x57c   : > { %v5073_v57 = vld [vmem:[#allocation2 + $0x50] sm:$0xff]  ;;  %5032 = vst [vmem:[#allocation2 + $0x63] sm:$0xff] %v4991_v56  ;;  %v4951_v8 = vmax.f32 %v4751_v35, %v4910_v54  ;;  %v4756_v13 = vadd.f32 %v16685_v36, %v4755_v17  ;;  %v11807_v42 = vpop.f32.mrb[139].mxu0  ;;  %11955 = vmatmul.mubr.f32.gmra.mrb[214].mxu1 %v5130_v38  ;;  %v18760_v38 = vld [vmem:[#allocation17_spill] sm:$0xff] }
 0x57d   : > { %12110 = vmatmul.mubr.f32.gmra.mrb[216].mxu0 %v5073_v57  ;;  %11957 = vmatprep.mubr.msk.f32.mxu1 %vm14006_vm0, %v16798_v10 }
 0x57e   : > { %12112 = vmatprep.mubr.msk.f32.mxu0 %vm14006_vm0, %v16798_v10  ;;  %v4992_v25 = vmul.f32 %v4951_v8, %v18754_v53  ;;  %v4911_v40 = vmul.f32 0.1, %v4756_v13  ;;  %13801 = vmatpush3.bf16.msra.mxu0 %v13800_v51  ;;  %v18761_v51 = vld [vmem:[#allocation18_spill] sm:$0xff] }
 0x57f   : > { %v4760_v59 = vpop.f32.mrb[140].mxu0  ;;  %v5131_v28 = vld [vmem:[#allocation2 + $0x59] sm:$0xff]  ;;  %13826 = vmatprep.subr.bf16.mxu0 %v18746_v18 }
 0x580   : > { %v5074_v43 = vld [vmem:[#allocation2 + $0x58] sm:$0xff]  ;;  %5033 = vst [vmem:[#allocation2 + $0x6b] sm:$0xff] %v4992_v25  ;;  %v4952_v60 = vmax.f32 %v4756_v13, %v4911_v40  ;;  %v4761_v37 = vadd.f32 %v16685_v36, %v4760_v59  ;;  %v11810_v12 = vpop.f32.mrb[141].mxu0  ;;  %11958 = vmatmul.mubr.f32.gmra.mrb[216].mxu1 %v5131_v28 }
 0x581   : > { %12113 = vmatmul.mubr.f32.gmra.mrb[218].mxu0 %v5074_v43  ;;  %11960 = vmatprep.mubr.msk.f32.mxu1 %vm14006_vm0, %v16798_v10 }
 0x582   : > { %12115 = vmatprep.mubr.msk.f32.mxu0 %vm14006_vm0, %v16798_v10  ;;  %v4993_v29 = vmul.f32 %v4952_v60, %v18755_v24  ;;  %v4912_v55 = vmul.f32 0.1, %v4761_v37 }
 0x583   : > { %v4765_v4 = vpop.f32.mrb[142].mxu0  ;;  %v5132_v44 = vld [vmem:[#allocation2 + $0x61] sm:$0xff] }
 0x584   : > { %v5075_v62 = vld [vmem:[#allocation2 + $0x60] sm:$0xff]  ;;  %5034 = vst [vmem:[#allocation2 + $0x73] sm:$0xff] %v4993_v29  ;;  %v4953_v23 = vmax.f32 %v4761_v37, %v4912_v55  ;;  %v4766_v14 = vadd.f32 %v16685_v36, %v4765_v4  ;;  %v11813_v2 = vpop.f32.mrb[143].mxu0  ;;  %11961 = vmatmul.mubr.f32.gmra.mrb[218].mxu1 %v5132_v44  ;;  %v18762_v55 = vld [vmem:[#allocation19_spill] sm:$0xff] }
 0x585   : > { %12116 = vmatmul.mubr.f32.gmra.mrb[220].mxu0 %v5075_v62  ;;  %11963 = vmatprep.mubr.msk.f32.mxu1 %vm14006_vm0, %v16798_v10 }
 0x586   : > { %12118 = vmatprep.mubr.msk.f32.mxu0 %vm14006_vm0, %v16798_v10  ;;  %v4994_v11 = vmul.f32 %v4953_v23, %v18756_v46  ;;  %v4913_v61 = vmul.f32 0.1, %v4766_v14 }
 0x587   : > { %v4770_v49 = vpop.f32.mrb[144].mxu0  ;;  %v5133_v63 = vld [vmem:[#allocation2 + $0x69] sm:$0xff] }
 0x588   : > { %v5076_v19 = vld [vmem:[#allocation2 + $0x68] sm:$0xff]  ;;  %5035 = vst [vmem:[#allocation2 + $0x7b] sm:$0xff] %v4994_v11  ;;  %v4954_v45 = vmax.f32 %v4766_v14, %v4913_v61  ;;  %v4771_v0 = vadd.f32 %v16685_v36, %v4770_v49  ;;  %v11816_v58 = vpop.f32.mrb[145].mxu0  ;;  %11964 = vmatmul.mubr.f32.gmra.mrb[220].mxu1 %v5133_v63  ;;  %v18763_v61 = vld [vmem:[#allocation20_spill] sm:$0xff] }
 0x589   : > { %12119 = vmatmul.mubr.f32.gmra.mrb[222].mxu0 %v5076_v19  ;;  %11966 = vmatprep.mubr.msk.f32.mxu1 %vm14006_vm0, %v16798_v10 }
 0x58a   : > { %12121 = vmatprep.mubr.msk.f32.mxu0 %vm14006_vm0, %v16798_v10  ;;  %v4995_v7 = vmul.f32 %v4954_v45, %v18757_v34  ;;  %v4914_v31 = vmul.f32 0.1, %v4771_v0 }
 0x58b   : > { %v4775_v9 = vpop.f32.mrb[146].mxu0  ;;  %v5134_v26 = vld [vmem:[#allocation2 + $0x71] sm:$0xff] }
 0x58c   : > { %v5077_v32 = vld [vmem:[#allocation2 + $0x70] sm:$0xff]  ;;  %5036 = vst [vmem:[#allocation2 + $0x83] sm:$0xff] %v4995_v7  ;;  %v4955_v50 = vmax.f32 %v4771_v0, %v4914_v31  ;;  %v4776_v33 = vadd.f32 %v16685_v36, %v4775_v9  ;;  %v11819_v6 = vpop.f32.mrb[147].mxu0  ;;  %11967 = vmatmul.mubr.f32.gmra.mrb[222].mxu1 %v5134_v26  ;;  %v18764_v31 = vld [vmem:[#allocation21_spill] sm:$0xff] }
 0x58d   : > { %12122 = vmatmul.mubr.f32.gmra.mrb[224].mxu0 %v5077_v32  ;;  %11969 = vmatprep.mubr.msk.f32.mxu1 %vm14006_vm0, %v16798_v10 }
 0x58e   : > { %12124 = vmatprep.mubr.msk.f32.mxu0 %vm14006_vm0, %v16798_v10  ;;  %v4996_v47 = vmul.f32 %v4955_v50, %v18758_v3  ;;  %v4915_v48 = vmul.f32 0.1, %v4776_v33 }
 0x58f   : > { %v4780_v1 = vpop.f32.mrb[148].mxu0  ;;  %v5135_v22 = vld [vmem:[#allocation2 + $0x79] sm:$0xff] }
 0x590   : > { %v5078_v30 = vld [vmem:[#allocation2 + $0x78] sm:$0xff]  ;;  %5037 = vst [vmem:[#allocation2 + $0x8b] sm:$0xff] %v4996_v47  ;;  %v4956_v5 = vmax.f32 %v4776_v33, %v4915_v48  ;;  %v4781_v27 = vadd.f32 %v16685_v36, %v4780_v1  ;;  %v11822_v39 = vpop.f32.mrb[149].mxu0  ;;  %11970 = vmatmul.mubr.f32.gmra.mrb[224].mxu1 %v5135_v22  ;;  %v18765_v48 = vld [vmem:[#allocation22_spill] sm:$0xff] }
 0x591   : > { %12125 = vmatmul.mubr.f32.gmra.mrb[226].mxu0 %v5078_v30  ;;  %11972 = vmatprep.mubr.msk.f32.mxu1 %vm14006_vm0, %v16798_v10 }
 0x592   : > { %12127 = vmatprep.mubr.msk.f32.mxu0 %vm14006_vm0, %v16798_v10  ;;  %v4997_v35 = vmul.f32 %v4956_v5, %v18759_v16  ;;  %v4916_v21 = vmul.f32 0.1, %v4781_v27 }
 0x593   : > { %v4785_v41 = vpop.f32.mrb[150].mxu0  ;;  %v5136_v56 = vld [vmem:[#allocation2 + $0x81] sm:$0xff] }
 0x594   : > { %v5079_v54 = vld [vmem:[#allocation2 + $0x80] sm:$0xff]  ;;  %5038 = vst [vmem:[#allocation2 + $0x93] sm:$0xff] %v4997_v35  ;;  %v4957_v52 = vmax.f32 %v4781_v27, %v4916_v21  ;;  %v4786_v15 = vadd.f32 %v16685_v36, %v4785_v41  ;;  %v11825_v17 = vpop.f32.mrb[151].mxu0  ;;  %11973 = vmatmul.mubr.f32.gmra.mrb[226].mxu1 %v5136_v56  ;;  %v18766_v21 = vld [vmem:[#allocation23_spill] sm:$0xff] }
 0x595   : > { %12128 = vmatmul.mubr.f32.gmra.mrb[228].mxu0 %v5079_v54  ;;  %11975 = vmatprep.mubr.msk.f32.mxu1 %vm14006_vm0, %v16798_v10 }
 0x596   : > { %12130 = vmatprep.mubr.msk.f32.mxu0 %vm14006_vm0, %v16798_v10  ;;  %v4998_v57 = vmul.f32 %v4957_v52, %v18760_v38  ;;  %v4917_v20 = vmul.f32 0.1, %v4786_v15 }
 0x597   : > { %v4790_v8 = vpop.f32.mrb[152].mxu0  ;;  %v5137_v13 = vld [vmem:[#allocation2 + $0x89] sm:$0xff] }
 0x598   : > { %v5080_v42 = vld [vmem:[#allocation2 + $0x88] sm:$0xff]  ;;  %5039 = vst [vmem:[#allocation2 + $0x9b] sm:$0xff] %v4998_v57  ;;  %v4958_v53 = vmax.f32 %v4786_v15, %v4917_v20  ;;  %v4791_v25 = vadd.f32 %v16685_v36, %v4790_v8  ;;  %v11828_v40 = vpop.f32.mrb[153].mxu0  ;;  %11976 = vmatmul.mubr.f32.gmra.mrb[228].mxu1 %v5137_v13  ;;  %v18767_v13 = vld [vmem:[#allocation24_spill] sm:$0xff] }
 0x599   : > { %12131 = vmatmul.mubr.f32.gmra.mrb[230].mxu0 %v5080_v42  ;;  %11978 = vmatprep.mubr.msk.f32.mxu1 %vm14006_vm0, %v16798_v10  ;;  %v16893_v20 = vpop.f32.mrb[194].mxu1 }
 0x59a   : > { %12133 = vmatprep.mubr.msk.f32.mxu0 %vm14006_vm0, %v16798_v10  ;;  %v4999_v59 = vmul.f32 %v4958_v53, %v18761_v51  ;;  %v4918_v28 = vmul.f32 0.1, %v4791_v25  ;;  %v11926_v8 = vpop.f32.mrb[195].mxu1 }
 0x59b   : > { %v4795_v43 = vpop.f32.mrb[154].mxu0  ;;  %v5138_v60 = vld [vmem:[#allocation2 + $0x91] sm:$0xff] }
 0x59c   : > { %v5081_v37 = vld [vmem:[#allocation2 + $0x90] sm:$0xff]  ;;  %5040 = vst [vmem:[#allocation2 + $0xa3] sm:$0xff] %v4999_v59  ;;  %v4959_v12 = vmax.f32 %v4791_v25, %v4918_v28  ;;  %v4796_v24 = vadd.f32 %v16685_v36, %v4795_v43  ;;  %v11831_v29 = vpop.f32.mrb[155].mxu0  ;;  %11979 = vmatmul.mubr.f32.gmra.mrb[230].mxu1 %v5138_v60 }
 0x59d   : > { %12134 = vmatmul.mubr.f32.gmra.mrb[232].mxu0 %v5081_v37  ;;  %11981 = vmatprep.mubr.msk.f32.mxu1 %vm14006_vm0, %v16798_v10 }
 0x59e   : > { %12136 = vmatprep.mubr.msk.f32.mxu0 %vm14006_vm0, %v16798_v10  ;;  %v5000_v4 = vmul.f32 %v4959_v12, %v18762_v55  ;;  %v4919_v44 = vmul.f32 0.1, %v4796_v24  ;;  %v18768_v12 = vld [vmem:[#allocation25_spill] sm:$0xff] }
 0x59f   : > { %v4800_v62 = vpop.f32.mrb[156].mxu0  ;;  %v5139_v23 = vld [vmem:[#allocation2 + $0x99] sm:$0xff] }
 0x5a0   : > { %v5082_v14 = vld [vmem:[#allocation2 + $0x98] sm:$0xff]  ;;  %5041 = vst [vmem:[#allocation2 + $0xab] sm:$0xff] %v5000_v4  ;;  %v4960_v2 = vmax.f32 %v4796_v24, %v4919_v44  ;;  %v4801_v46 = vadd.f32 %v16685_v36, %v4800_v62  ;;  %v11834_v11 = vpop.f32.mrb[157].mxu0  ;;  %11982 = vmatmul.mubr.f32.gmra.mrb[232].mxu1 %v5139_v23 }
 0x5a1   : > { %12137 = vmatmul.mubr.f32.gmra.mrb[234].mxu0 %v5082_v14  ;;  %11984 = vmatprep.mubr.msk.f32.mxu1 %vm14006_vm0, %v16798_v10  ;;  %v16901_v60 = vpop.f32.mrb[196].mxu1 }
 0x5a2   : > { %12139 = vmatprep.mubr.msk.f32.mxu0 %vm14006_vm0, %v16798_v10  ;;  %v5001_v49 = vmul.f32 %v4960_v2, %v18763_v61  ;;  %v4920_v63 = vmul.f32 0.1, %v4801_v46  ;;  %v11929_v37 = vpop.f32.mrb[197].mxu1  ;;  %v18769_v2 = vld [vmem:[#allocation26_spill] sm:$0xff] }
 0x5a3   : > { %v4805_v19 = vpop.f32.mrb[158].mxu0  ;;  %v5140_v45 = vld [vmem:[#allocation2 + $0xa1] sm:$0xff] }
 0x5a4   : > { %v5083_v0 = vld [vmem:[#allocation2 + $0xa0] sm:$0xff]  ;;  %5042 = vst [vmem:[#allocation2 + $0xb3] sm:$0xff] %v5001_v49  ;;  %v4961_v58 = vmax.f32 %v4801_v46, %v4920_v63  ;;  %v4806_v34 = vadd.f32 %v16685_v36, %v4805_v19  ;;  %v11837_v7 = vpop.f32.mrb[159].mxu0  ;;  %11985 = vmatmul.mubr.f32.gmra.mrb[234].mxu1 %v5140_v45 }
 0x5a5   : > { %12140 = vmatmul.mubr.f32.gmra.mrb[236].mxu0 %v5083_v0  ;;  %11987 = vmatprep.mubr.msk.f32.mxu1 %vm14006_vm0, %v16798_v10 }
 0x5a6   : > { %12142 = vmatprep.mubr.msk.f32.mxu0 %vm14006_vm0, %v16798_v10  ;;  %v5002_v9 = vmul.f32 %v4961_v58, %v18764_v31  ;;  %v4921_v26 = vmul.f32 0.1, %v4806_v34  ;;  %v18770_v58 = vld [vmem:[#allocation27_spill] sm:$0xff] }
 0x5a7   : > { %v4810_v32 = vpop.f32.mrb[160].mxu0  ;;  %v5141_v50 = vld [vmem:[#allocation2 + $0xa9] sm:$0xff] }
 0x5a8   : > { %v5084_v33 = vld [vmem:[#allocation2 + $0xa8] sm:$0xff]  ;;  %5043 = vst [vmem:[#allocation2 + $0xbb] sm:$0xff] %v5002_v9  ;;  %v4962_v6 = vmax.f32 %v4806_v34, %v4921_v26  ;;  %v4811_v3 = vadd.f32 %v16685_v36, %v4810_v32  ;;  %v11840_v47 = vpop.f32.mrb[161].mxu0  ;;  %11988 = vmatmul.mubr.f32.gmra.mrb[236].mxu1 %v5141_v50 }
 0x5a9   : > { %12143 = vmatmul.mubr.f32.gmra.mrb[238].mxu0 %v5084_v33  ;;  %11990 = vmatprep.mubr.msk.f32.mxu1 %vm14006_vm0, %v16798_v10 }
 0x5aa   : > { %12145 = vmatprep.mubr.msk.f32.mxu0 %vm14006_vm0, %v16798_v10  ;;  %v5003_v1 = vmul.f32 %v4962_v6, %v18765_v48  ;;  %v4922_v22 = vmul.f32 0.1, %v4811_v3  ;;  %v18771_v6 = vld [vmem:[#allocation28_spill] sm:$0xff] }
 0x5ab   : > { %v4815_v30 = vpop.f32.mrb[162].mxu0  ;;  %v5142_v5 = vld [vmem:[#allocation2 + $0xb1] sm:$0xff] }
 0x5ac   : > { %v5085_v27 = vld [vmem:[#allocation2 + $0xb0] sm:$0xff]  ;;  %5044 = vst [vmem:[#allocation2 + $0xc3] sm:$0xff] %v5003_v1  ;;  %v4963_v39 = vmax.f32 %v4811_v3, %v4922_v22  ;;  %v4816_v16 = vadd.f32 %v16685_v36, %v4815_v30  ;;  %v11843_v35 = vpop.f32.mrb[163].mxu0  ;;  %11991 = vmatmul.mubr.f32.gmra.mrb[238].mxu1 %v5142_v5 }
 0x5ad   : > { %12146 = vmatmul.mubr.f32.gmra.mrb[240].mxu0 %v5085_v27  ;;  %11993 = vmatprep.mubr.msk.f32.mxu1 %vm14006_vm0, %v16798_v10 }
 0x5ae   : > { %12148 = vmatprep.mubr.msk.f32.mxu0 %vm14006_vm0, %v16798_v10  ;;  %v5004_v41 = vmul.f32 %v4963_v39, %v18766_v21  ;;  %v4923_v56 = vmul.f32 0.1, %v4816_v16  ;;  %v18772_v39 = vld [vmem:[#allocation29_spill] sm:$0xff] }
 0x5af   : > { %v4820_v54 = vpop.f32.mrb[164].mxu0  ;;  %v5143_v52 = vld [vmem:[#allocation2 + $0xb9] sm:$0xff] }
 0x5b0   : > { %v5086_v15 = vld [vmem:[#allocation2 + $0xb8] sm:$0xff]  ;;  %5045 = vst [vmem:[#allocation2 + $0xcb] sm:$0xff] %v5004_v41  ;;  %v4964_v17 = vmax.f32 %v4816_v16, %v4923_v56  ;;  %v4821_v38 = vadd.f32 %v16685_v36, %v4820_v54  ;;  %v11846_v57 = vpop.f32.mrb[165].mxu0  ;;  %11994 = vmatmul.mubr.f32.gmra.mrb[240].mxu1 %v5143_v52 }
 0x5b1   : > { %12149 = vmatmul.mubr.f32.gmra.mrb[242].mxu0 %v5086_v15  ;;  %11996 = vmatprep.mubr.msk.f32.mxu1 %vm14006_vm0, %v16798_v10 }
 0x5b2   : > { %12151 = vmatprep.mubr.msk.f32.mxu0 %vm14006_vm0, %v16798_v10  ;;  %v5005_v42 = vmul.f32 %v4964_v17, %v18767_v13  ;;  %v4924_v53 = vmul.f32 0.1, %v4821_v38  ;;  %v18773_v17 = vld [vmem:[#allocation30_spill] sm:$0xff] }
 0x5b3   : > { %v4825_v25 = vpop.f32.mrb[166].mxu0  ;;  %v5144_v40 = vld [vmem:[#allocation2 + $0xc1] sm:$0xff] }
 0x5b4   : > { %v5087_v51 = vld [vmem:[#allocation2 + $0xc0] sm:$0xff]  ;;  %5046 = vst [vmem:[#allocation2 + $0xd3] sm:$0xff] %v5005_v42  ;;  %v4965_v59 = vmax.f32 %v4821_v38, %v4924_v53  ;;  %v4826_v28 = vadd.f32 %v16685_v36, %v4825_v25  ;;  %v11849_v43 = vpop.f32.mrb[167].mxu0  ;;  %11997 = vmatmul.mubr.f32.gmra.mrb[242].mxu1 %v5144_v40 }
 0x5b5   : > { %12152 = vmatmul.mubr.f32.gmra.mrb[244].mxu0 %v5087_v51  ;;  %11999 = vmatprep.mubr.msk.f32.mxu1 %vm14006_vm0, %v16798_v10  ;;  %v18774_v51 = vld [vmem:[#allocation31_spill] sm:$0xff] }
 0x5b6   : > { %12154 = vmatprep.mubr.msk.f32.mxu0 %vm14006_vm0, %v16798_v10  ;;  %v5006_v24 = vmul.f32 %v4965_v59, %v18768_v12  ;;  %v4925_v29 = vmul.f32 0.1, %v4826_v28 }
 0x5b7   : > { %v4830_v55 = vpop.f32.mrb[168].mxu0  ;;  %v5145_v4 = vld [vmem:[#allocation2 + $0xc9] sm:$0xff] }
 0x5b8   : > { %v5088_v44 = vld [vmem:[#allocation2 + $0xc8] sm:$0xff]  ;;  %5047 = vst [vmem:[#allocation2 + $0xdb] sm:$0xff] %v5006_v24  ;;  %v4966_v62 = vmax.f32 %v4826_v28, %v4925_v29  ;;  %v4831_v23 = vadd.f32 %v16685_v36, %v4830_v55  ;;  %v11852_v14 = vpop.f32.mrb[169].mxu0  ;;  %12000 = vmatmul.mubr.f32.gmra.mrb[244].mxu1 %v5145_v4  ;;  %v18775_v4 = vld [vmem:[#allocation32_spill] sm:$0xff] }
 0x5b9   : > { %12155 = vmatmul.mubr.f32.gmra.mrb[246].mxu0 %v5088_v44  ;;  %12002 = vmatprep.mubr.msk.f32.mxu1 %vm14006_vm0, %v16798_v10 }
 0x5ba   : > { %12157 = vmatprep.mubr.msk.f32.mxu0 %vm14006_vm0, %v16798_v10  ;;  %v5007_v46 = vmul.f32 %v4966_v62, %v18769_v2  ;;  %v4926_v11 = vmul.f32 0.1, %v4831_v23 }
 0x5bb   : > { %v4835_v61 = vpop.f32.mrb[170].mxu0  ;;  %v5146_v49 = vld [vmem:[#allocation2 + $0xd1] sm:$0xff] }
 0x5bc   : > { %v5089_v63 = vld [vmem:[#allocation2 + $0xd0] sm:$0xff]  ;;  %5048 = vst [vmem:[#allocation2 + $0xe3] sm:$0xff] %v5007_v46  ;;  %v4967_v19 = vmax.f32 %v4831_v23, %v4926_v11  ;;  %v4836_v45 = vadd.f32 %v16685_v36, %v4835_v61  ;;  %v11855_v0 = vpop.f32.mrb[171].mxu0  ;;  %12003 = vmatmul.mubr.f32.gmra.mrb[246].mxu1 %v5146_v49  ;;  %v18776_v49 = vld [vmem:[#allocation33_spill] sm:$0xff] }
 0x5bd   : > { %12158 = vmatmul.mubr.f32.gmra.mrb[248].mxu0 %v5089_v63  ;;  %12005 = vmatprep.mubr.msk.f32.mxu1 %vm14006_vm0, %v16798_v10 }
 0x5be   : > { %12160 = vmatprep.mubr.msk.f32.mxu0 %vm14006_vm0, %v16798_v10  ;;  %v5008_v34 = vmul.f32 %v4967_v19, %v18770_v58  ;;  %v4927_v7 = vmul.f32 0.1, %v4836_v45 }
 0x5bf   : > { %v4840_v31 = vpop.f32.mrb[172].mxu0  ;;  %v5147_v9 = vld [vmem:[#allocation2 + $0xd9] sm:$0xff] }
 0x5c0   : > { %v5090_v26 = vld [vmem:[#allocation2 + $0xd8] sm:$0xff]  ;;  %5049 = vst [vmem:[#allocation2 + $0xeb] sm:$0xff] %v5008_v34  ;;  %v4968_v32 = vmax.f32 %v4836_v45, %v4927_v7  ;;  %v4841_v50 = vadd.f32 %v16685_v36, %v4840_v31  ;;  %v11858_v33 = vpop.f32.mrb[173].mxu0  ;;  %12006 = vmatmul.mubr.f32.gmra.mrb[248].mxu1 %v5147_v9  ;;  %v18777_v9 = vld [vmem:[#allocation34_spill] sm:$0xff] }
 0x5c1   : > { %12161 = vmatmul.mubr.f32.gmra.mrb[250].mxu0 %v5090_v26  ;;  %12008 = vmatprep.mubr.msk.f32.mxu1 %vm14006_vm0, %v16798_v10 }
 0x5c2   : > { %12163 = vmatprep.mubr.msk.f32.mxu0 %vm14006_vm0, %v16798_v10  ;;  %v5009_v3 = vmul.f32 %v4968_v32, %v18771_v6  ;;  %v4928_v47 = vmul.f32 0.1, %v4841_v50 }
 0x5c3   : > { %v4845_v48 = vpop.f32.mrb[174].mxu0  ;;  %v5148_v1 = vld [vmem:[#allocation2 + $0xe1] sm:$0xff] }
 0x5c4   : > { %v5091_v22 = vld [vmem:[#allocation2 + $0xe0] sm:$0xff]  ;;  %5050 = vst [vmem:[#allocation2 + $0xf3] sm:$0xff] %v5009_v3  ;;  %v4969_v30 = vmax.f32 %v4841_v50, %v4928_v47  ;;  %v4846_v5 = vadd.f32 %v16685_v36, %v4845_v48  ;;  %v11861_v27 = vpop.f32.mrb[175].mxu0  ;;  %12009 = vmatmul.mubr.f32.gmra.mrb[250].mxu1 %v5148_v1  ;;  %v18778_v1 = vld [vmem:[#allocation35_spill] sm:$0xff] }
 0x5c5   : > { %12164 = vmatmul.mubr.f32.gmra.mrb[252].mxu0 %v5091_v22  ;;  %12011 = vmatprep.mubr.msk.f32.mxu1 %vm14006_vm0, %v16798_v10 }
 0x5c6   : > { %12166 = vmatprep.mubr.msk.f32.mxu0 %vm14006_vm0, %v16798_v10  ;;  %v5010_v16 = vmul.f32 %v4969_v30, %v18772_v39  ;;  %v4929_v35 = vmul.f32 0.1, %v4846_v5 }
 0x5c7   : > { %v4850_v21 = vpop.f32.mrb[176].mxu0  ;;  %v5149_v41 = vld [vmem:[#allocation2 + $0xe9] sm:$0xff] }
 0x5c8   : > { %v5092_v56 = vld [vmem:[#allocation2 + $0xe8] sm:$0xff]  ;;  %5051 = vst [vmem:[#allocation2 + $0xfb] sm:$0xff] %v5010_v16  ;;  %v4970_v54 = vmax.f32 %v4846_v5, %v4929_v35  ;;  %v4851_v52 = vadd.f32 %v16685_v36, %v4850_v21  ;;  %v11864_v15 = vpop.f32.mrb[177].mxu0  ;;  %12012 = vmatmul.mubr.f32.gmra.mrb[252].mxu1 %v5149_v41  ;;  %v18779_v41 = vld [vmem:[#allocation36_spill] sm:$0xff] }
 0x5c9   : > { %12167 = vmatmul.mubr.f32.gmra.mrb[254].mxu0 %v5092_v56  ;;  %12014 = vmatprep.mubr.msk.f32.mxu1 %vm14006_vm0, %v16798_v10 }
 0x5ca   : > { %12169 = vmatprep.mubr.msk.f32.mxu0 %vm14006_vm0, %v16798_v10  ;;  %v5011_v38 = vmul.f32 %v4970_v54, %v18773_v17  ;;  %v4930_v57 = vmul.f32 0.1, %v4851_v52 }
 0x5cb   : > { %v4855_v8 = vpop.f32.mrb[178].mxu0  ;;  %v5150_v13 = vld [vmem:[#allocation2 + $0xf1] sm:$0xff] }
 0x5cc   : > { %v5093_v42 = vld [vmem:[#allocation2 + $0xf0] sm:$0xff]  ;;  %5052 = vst [vmem:[#allocation2 + $0x103] sm:$0xff] %v5011_v38  ;;  %v4971_v53 = vmax.f32 %v4851_v52, %v4930_v57  ;;  %v4856_v25 = vadd.f32 %v16685_v36, %v4855_v8  ;;  %v11867_v40 = vpop.f32.mrb[179].mxu0  ;;  %12015 = vmatmul.mubr.f32.gmra.mrb[254].mxu1 %v5150_v13  ;;  %v18780_v13 = vld [vmem:[#allocation37_spill] sm:$0xff] }
 0x5cd   : > { %12170 = vmatmul.mubr.f32.gmra.mrb[0].mxu0 %v5093_v42  ;;  %12017 = vmatprep.mubr.msk.f32.mxu1 %vm14006_vm0, %v16798_v10 }
 0x5ce   : > { %12172 = vmatprep.mubr.msk.f32.mxu0 %vm14006_vm0, %v16798_v10  ;;  %v5012_v59 = vmul.f32 %v4971_v53, %v18774_v51  ;;  %v4931_v28 = vmul.f32 0.1, %v4856_v25 }
 0x5cf   : > { %v4860_v43 = vpop.f32.mrb[180].mxu0  ;;  %v5151_v37 = vld [vmem:[#allocation2 + $0xf9] sm:$0xff] }
 0x5d0   : > { %v5094_v12 = vld [vmem:[#allocation2 + $0xf8] sm:$0xff]  ;;  %5053 = vst [vmem:[#allocation2 + $0x10b] sm:$0xff] %v5012_v59  ;;  %v4972_v24 = vmax.f32 %v4856_v25, %v4931_v28  ;;  %v4861_v29 = vadd.f32 %v16685_v36, %v4860_v43  ;;  %v11870_v55 = vpop.f32.mrb[181].mxu0  ;;  %12018 = vmatmul.mubr.f32.gmra.mrb[0].mxu1 %v5151_v37  ;;  %v18781_v37 = vld [vmem:[#allocation38_spill] sm:$0xff] }
 0x5d1   : > { %12173 = vmatmul.mubr.f32.gmra.mrb[2].mxu0 %v5094_v12  ;;  %12020 = vmatprep.mubr.msk.f32.mxu1 %vm14006_vm0, %v16798_v10 }
 0x5d2   : > { %12175 = vmatprep.mubr.msk.f32.mxu0 %vm14006_vm0, %v16798_v10  ;;  %v5013_v44 = vmul.f32 %v4972_v24, %v18775_v4  ;;  %v4932_v62 = vmul.f32 0.1, %v4861_v29 }
 0x5d3   : > { %v4865_v23 = vpop.f32.mrb[182].mxu0  ;;  %v5152_v14 = vld [vmem:[#allocation2 + $0x101] sm:$0xff] }
 0x5d4   : > { %v5095_v2 = vld [vmem:[#allocation2 + $0x100] sm:$0xff]  ;;  %5054 = vst [vmem:[#allocation2 + $0x113] sm:$0xff] %v5013_v44  ;;  %v4973_v46 = vmax.f32 %v4861_v29, %v4932_v62  ;;  %v4866_v11 = vadd.f32 %v16685_v36, %v4865_v23  ;;  %v11873_v61 = vpop.f32.mrb[183].mxu0  ;;  %12021 = vmatmul.mubr.f32.gmra.mrb[2].mxu1 %v5152_v14  ;;  %v18782_v14 = vld [vmem:[#allocation39_spill] sm:$0xff] }
 0x5d5   : > { %12176 = vmatmul.mubr.f32.gmra.mrb[4].mxu0 %v5095_v2  ;;  %12023 = vmatprep.mubr.msk.f32.mxu1 %vm14006_vm0, %v16798_v10 }
 0x5d6   : > { %12178 = vmatprep.mubr.msk.f32.mxu0 %vm14006_vm0, %v16798_v10  ;;  %v5014_v63 = vmul.f32 %v4973_v46, %v18776_v49  ;;  %v4933_v19 = vmul.f32 0.1, %v4866_v11 }
 0x5d7   : > { %v4870_v45 = vpop.f32.mrb[184].mxu0  ;;  %v5153_v0 = vld [vmem:[#allocation2 + $0x109] sm:$0xff] }
 0x5d8   : > { %v5096_v58 = vld [vmem:[#allocation2 + $0x108] sm:$0xff]  ;;  %5055 = vst [vmem:[#allocation2 + $0x11b] sm:$0xff] %v5014_v63  ;;  %v4974_v34 = vmax.f32 %v4866_v11, %v4933_v19  ;;  %v4871_v7 = vadd.f32 %v16685_v36, %v4870_v45  ;;  %v11876_v31 = vpop.f32.mrb[185].mxu0  ;;  %12024 = vmatmul.mubr.f32.gmra.mrb[4].mxu1 %v5153_v0  ;;  %v18783_v0 = vld [vmem:[#allocation40_spill] sm:$0xff] }
 0x5d9   : > { %12179 = vmatmul.mubr.f32.gmra.mrb[6].mxu0 %v5096_v58  ;;  %12026 = vmatprep.mubr.msk.f32.mxu1 %vm14006_vm0, %v16798_v10 }
 0x5da   : > { %12181 = vmatprep.mubr.msk.f32.mxu0 %vm14006_vm0, %v16798_v10  ;;  %v5015_v26 = vmul.f32 %v4974_v34, %v18777_v9  ;;  %v4934_v32 = vmul.f32 0.1, %v4871_v7  ;;  %v6494_v34 = vld [vmem:[%s18665_s8 + $0x200] sm:$0xff] }
 0x5db   : > { %v4875_v50 = vpop.f32.mrb[186].mxu0  ;;  %v5154_v33 = vld [vmem:[#allocation2 + $0x111] sm:$0xff] }
 0x5dc   : > { %v5097_v6 = vld [vmem:[#allocation2 + $0x110] sm:$0xff]  ;;  %5056 = vst [vmem:[#allocation2 + $0x123] sm:$0xff] %v5015_v26  ;;  %v4975_v3 = vmax.f32 %v4871_v7, %v4934_v32  ;;  %v4876_v47 = vadd.f32 %v16685_v36, %v4875_v50  ;;  %v11879_v48 = vpop.f32.mrb[187].mxu0  ;;  %12027 = vmatmul.mubr.f32.gmra.mrb[6].mxu1 %v5154_v33  ;;  %v13985_v36 = vld [vmem:[%s18664_s7] ss:$0 sm:$0xff]  ;;  %v6495_v7 = vld [vmem:[%s18665_s8 + $0x208] sm:$0xff] }
 0x5dd   : > { %12182 = vmatmul.mubr.f32.gmra.mrb[8].mxu0 %v5097_v6  ;;  %12029 = vmatprep.mubr.msk.f32.mxu1 %vm14006_vm0, %v16798_v10  ;;  %v5717_v50 = vld [vmem:[#allocation2 + $0x2] sm:$0xff]  ;;  %v13803_v33 = vpack.c.bf16 %v6495_v7, %v6494_v34  ;;  %v6085_v6 = vld [vmem:[#allocation2 + $0x12] sm:$0xff] }
 0x5de   : > { %12184 = vmatprep.mubr.msk.f32.mxu0 %vm14006_vm0, %v16798_v10  ;;  %v5016_v22 = vmul.f32 %v4975_v3, %v18778_v1  ;;  %v4935_v30 = vmul.f32 0.1, %v4876_v47  ;;  %v6496_v3 = vld [vmem:[%s18665_s8 + $0x210] sm:$0xff]  ;;  %v6086_v1 = vld [vmem:[#allocation2 + $0x1a] sm:$0xff] }
 0x5df   : > { %v4880_v5 = vpop.f32.mrb[188].mxu0  ;;  %v5155_v27 = vld [vmem:[#allocation2 + $0x119] sm:$0xff]  ;;  %v6876_v34 = vld [vmem:[%s18665_s8 + $0x2f0] sm:$0xff] }
 0x5e0   : > { %v5098_v39 = vld [vmem:[#allocation2 + $0x118] sm:$0xff]  ;;  %5057 = vst [vmem:[#allocation2 + $0x12b] sm:$0xff] %v5016_v22  ;;  %v4976_v16 = vmax.f32 %v4876_v47, %v4935_v30  ;;  %v4881_v35 = vadd.f32 %v13985_v36, %v4880_v5  ;;  %v11882_v21 = vpop.f32.mrb[189].mxu0  ;;  %12030 = vmatmul.mubr.f32.gmra.mrb[8].mxu1 %v5155_v27  ;;  %v6498_v22 = vld [vmem:[%s18665_s8 + $0x220] sm:$0xff]  ;;  %v6499_v30 = vld [vmem:[%s18665_s8 + $0x228] sm:$0xff] }
 0x5e1   : > { %12185 = vmatmul.mubr.f32.gmra.mrb[10].mxu0 %v5098_v39  ;;  %12032 = vmatprep.mubr.msk.f32.mxu1 %vm14006_vm0, %v16798_v10  ;;  %v6497_v47 = vld [vmem:[%s18665_s8 + $0x218] sm:$0xff]  ;;  %v6862_v5 = vld [vmem:[%s18665_s8 + $0x280] sm:$0xff]  ;;  %v6863_v27 = vld [vmem:[%s18665_s8 + $0x288] sm:$0xff] }
 0x5e2   : > { %12187 = vmatprep.mubr.msk.f32.mxu0 %vm14006_vm0, %v16798_v10  ;;  %v5017_v56 = vmul.f32 %v4976_v16, %v18779_v41  ;;  %v4936_v54 = vmul.f32 0.1, %v4881_v35  ;;  %v13806_v48 = vpack.c.bf16 %v6497_v47, %v6496_v3  ;;  %v13827_v39 = vpack.c.bf16 %v6863_v27, %v6862_v5  ;;  %v6501_v21 = vld [vmem:[%s18665_s8 + $0x238] sm:$0xff]  ;;  %v6864_v41 = vld [vmem:[%s18665_s8 + $0x290] sm:$0xff]  ;;  %v6099_v47 = vld [vmem:[#allocation2 + $0x82] sm:$0xff] }
 0x5e3   : > { %v4885_v52 = vpop.f32.mrb[190].mxu0  ;;  %v5156_v15 = vld [vmem:[#allocation2 + $0x121] sm:$0xff]  ;;  %v13809_v16 = vpack.c.bf16 %v6499_v30, %v6498_v22  ;;  %v6877_v7 = vld [vmem:[%s18665_s8 + $0x2f8] sm:$0xff]  ;;  %v6100_v5 = vld [vmem:[#allocation2 + $0x8a] sm:$0xff] }
 0x5e4   : > { %v5099_v17 = vld [vmem:[#allocation2 + $0x120] sm:$0xff]  ;;  %5058 = vst [vmem:[#allocation2 + $0x133] sm:$0xff] %v5017_v56  ;;  %v4977_v38 = vmax.f32 %v4881_v35, %v4936_v54  ;;  %v4886_v57 = vadd.f32 %v13985_v36, %v4885_v52  ;;  %v11885_v8 = vpop.f32.mrb[191].mxu0  ;;  %12033 = vmatmul.mubr.f32.gmra.mrb[10].mxu1 %v5156_v15  ;;  %v6500_v35 = vld [vmem:[%s18665_s8 + $0x230] sm:$0xff]  ;;  %v6865_v56 = vld [vmem:[%s18665_s8 + $0x298] sm:$0xff] }
 0x5e5   : > { %12188 = vmatmul.mubr.f32.gmra.mrb[12].mxu0 %v5099_v17  ;;  %12035 = vmatprep.mubr.msk.f32.mxu1 %vm14006_vm0, %v16798_v10  ;;  %v13830_v54 = vpack.c.bf16 %v6865_v56, %v6864_v41  ;;  %v13812_v52 = vpack.c.bf16 %v6501_v21, %v6500_v35  ;;  %v6088_v15 = vld [vmem:[#allocation2 + $0x2a] sm:$0xff]  ;;  %v6502_v17 = vld [vmem:[%s18665_s8 + $0x240] sm:$0xff]  ;;  %v6101_v21 = vld [vmem:[#allocation2 + $0x92] sm:$0xff] }
 0x5e6   : > { %12190 = vmatprep.mubr.msk.f32.mxu0 %vm14006_vm0, %v16798_v10  ;;  %v5018_v42 = vmul.f32 %v4977_v38, %v18780_v13  ;;  %v4937_v53 = vmul.f32 0.1, %v4886_v57  ;;  %v6503_v38 = vld [vmem:[%s18665_s8 + $0x248] sm:$0xff] }
 0x5e7   : > { %v4890_v25 = vpop.f32.mrb[192].mxu0  ;;  %v5157_v40 = vld [vmem:[#allocation2 + $0x129] sm:$0xff] }
 0x5e8   : > { %v5100_v51 = vld [vmem:[#allocation2 + $0x128] sm:$0xff]  ;;  %5059 = vst [vmem:[#allocation2 + $0x13b] sm:$0xff] %v5018_v42  ;;  %v4978_v59 = vmax.f32 %v4886_v57, %v4937_v53  ;;  %v4891_v28 = vadd.f32 %v13985_v36, %v4890_v25  ;;  %v11888_v43 = vpop.f32.mrb[193].mxu0  ;;  %12036 = vmatmul.mubr.f32.gmra.mrb[12].mxu1 %v5157_v40  ;;  %v6866_v57 = vld [vmem:[%s18665_s8 + $0x2a0] sm:$0xff]  ;;  %v13815_v42 = vpack.c.bf16 %v6503_v38, %v6502_v17  ;;  %v6089_v53 = vld [vmem:[#allocation2 + $0x32] sm:$0xff] }
 0x5e9   : > { %12191 = vmatmul.mubr.f32.gmra.mrb[14].mxu0 %v5100_v51  ;;  %12038 = vmatprep.mubr.msk.f32.mxu1 %vm14006_vm0, %v16798_v10  ;;  %v6867_v8 = vld [vmem:[%s18665_s8 + $0x2a8] sm:$0xff]  ;;  %v6504_v25 = vld [vmem:[%s18665_s8 + $0x250] sm:$0xff]  ;;  %v6505_v40 = vld [vmem:[%s18665_s8 + $0x258] sm:$0xff] }
 0x5ea   : > { %12193 = vmatprep.mubr.msk.f32.mxu0 %vm14006_vm0, %v16798_v10  ;;  %v5019_v12 = vmul.f32 %v4978_v59, %v18781_v37  ;;  %v4938_v24 = vmul.f32 0.1, %v4891_v28  ;;  %v13833_v13 = vpack.c.bf16 %v6867_v8, %v6866_v57  ;;  %v6868_v51 = vld [vmem:[%s18665_s8 + $0x2b0] sm:$0xff]  ;;  %v6869_v59 = vld [vmem:[%s18665_s8 + $0x2b8] sm:$0xff] }
 0x5eb   : > { %v4895_v29 = vpop.f32.mrb[194].mxu0  ;;  %v5158_v55 = vld [vmem:[#allocation2 + $0x131] sm:$0xff]  ;;  %v13836_v43 = vpack.c.bf16 %v6869_v59, %v6868_v51  ;;  %v6090_v37 = vld [vmem:[#allocation2 + $0x3a] sm:$0xff] }
 0x5ec   : > { %v5101_v4 = vld [vmem:[#allocation2 + $0x130] sm:$0xff]  ;;  %5060 = vst [vmem:[#allocation2 + $0x143] sm:$0xff] %v5019_v12  ;;  %v4979_v44 = vmax.f32 %v4891_v28, %v4938_v24  ;;  %v4896_v62 = vadd.f32 %v13985_v36, %v4895_v29  ;;  %v11891_v23 = vpop.f32.mrb[195].mxu0  ;;  %12039 = vmatmul.mubr.f32.gmra.mrb[14].mxu1 %v5158_v55  ;;  %v6087_v36 = vld [vmem:[#allocation2 + $0x22] sm:$0xff]  ;;  %v13818_v28 = vpack.c.bf16 %v6505_v40, %v6504_v25  ;;  %v6102_v17 = vld [vmem:[#allocation2 + $0x9a] sm:$0xff] }
 0x5ed   : > { %12194 = vmatmul.mubr.f32.gmra.mrb[16].mxu0 %v5101_v4  ;;  %12041 = vmatprep.mubr.msk.f32.mxu1 %vm14006_vm0, %v16798_v10  ;;  %v6506_v12 = vld [vmem:[%s18665_s8 + $0x260] sm:$0xff]  ;;  %v6507_v24 = vld [vmem:[%s18665_s8 + $0x268] sm:$0xff]  ;;  %v6508_v23 = vld [vmem:[%s18665_s8 + $0x270] sm:$0xff] }
 0x5ee   : > { %12196 = vmatprep.mubr.msk.f32.mxu0 %vm14006_vm0, %v16798_v10  ;;  %v5020_v2 = vmul.f32 %v4979_v44, %v18782_v14  ;;  %v4939_v46 = vmul.f32 0.1, %v4896_v62  ;;  %v6870_v29 = vld [vmem:[%s18665_s8 + $0x2c0] sm:$0xff]  ;;  %v6871_v55 = vld [vmem:[%s18665_s8 + $0x2c8] sm:$0xff]  ;;  %v13821_v4 = vpack.c.bf16 %v6507_v24, %v6506_v12  ;;  %v6509_v14 = vld [vmem:[%s18665_s8 + $0x278] sm:$0xff] }
 0x5ef   : > { %v5159_v11 = vld [vmem:[#allocation2 + $0x139] sm:$0xff]  ;;  %v5513_v49 = vpop.f32.mrb[196].mxu0  ;;  %v13839_v44 = vpack.c.bf16 %v6871_v55, %v6870_v29 }
 0x5f0   : > { %v5102_v61 = vld [vmem:[#allocation2 + $0x138] sm:$0xff]  ;;  %5061 = vst [vmem:[#allocation2 + $0x14b] sm:$0xff] %v5020_v2  ;;  %v4980_v63 = vmax.f32 %v4896_v62, %v4939_v46  ;;  %12042 = vmatmul.mubr.f32.gmra.mrb[16].mxu1 %v5159_v11  ;;  %v16992_v19 = vadd.f32 %v5513_v49, %v16893_v20  ;;  %v12081_v45 = vpop.f32.mrb[197].mxu0  ;;  %v6091_v62 = vld [vmem:[#allocation2 + $0x42] sm:$0xff]  ;;  %v13824_v11 = vpack.c.bf16 %v6509_v14, %v6508_v23  ;;  %v6092_v49 = vld [vmem:[#allocation2 + $0x4a] sm:$0xff] }
 0x5f1   : > { %12197 = vmatmul.mubr.f32.gmra.mrb[18].mxu0 %v5102_v61  ;;  %12044 = vmatprep.mubr.msk.f32.mxu1 %vm14006_vm0, %v16798_v10  ;;  %v6873_v2 = vld [vmem:[%s18665_s8 + $0x2d8] sm:$0xff]  ;;  %v17124_v46 = vld [vmem:[#allocation2] sm:$0xff]  ;;  %v6875_v45 = vld [vmem:[%s18665_s8 + $0x2e8] sm:$0xff] }
 0x5f2   : > { %12199 = vmatprep.mubr.msk.f32.mxu0 %vm14006_vm0, %v16798_v10  ;;  %v5021_v58 = vmul.f32 %v4980_v63, %v18783_v0  ;;  %v6874_v63 = vld [vmem:[%s18665_s8 + $0x2e0] sm:$0xff] }
 0x5f3   : > { %v5160_v31 = vld [vmem:[#allocation2 + $0x141] sm:$0xff]  ;;  %v5518_v9 = vpop.f32.mrb[198].mxu0  ;;  %v13845_v0 = vpack.c.bf16 %v6875_v45, %v6874_v63 }
 0x5f4   : > { %v5103_v20 = vld [vmem:[#allocation2 + $0x140] sm:$0xff]  ;;  %5062 = vst [vmem:[#allocation2 + $0x153] sm:$0xff] %v5021_v58  ;;  %12045 = vmatmul.mubr.f32.gmra.mrb[18].mxu1 %v5160_v31  ;;  %v17006_v26 = vadd.f32 %v5518_v9, %v16901_v60  ;;  %v12084_v32 = vpop.f32.mrb[199].mxu0  ;;  %v5718_v60 = vld [vmem:[#allocation2 + $0xa] sm:$0xff]  ;;  %v6093_v58 = vld [vmem:[#allocation2 + $0x52] sm:$0xff]  ;;  %v13848_v31 = vpack.c.bf16 %v6877_v7, %v6876_v34 }
 0x5f5   : > { %12200 = vmatmul.mubr.f32.gmra.mrb[20].mxu0 %v5103_v20  ;;  %12234 = vmatprep.mubr.msk.f32.mxu1 %vm14006_vm0, %v16798_v10  ;;  %v6094_v20 = vld [vmem:[#allocation2 + $0x5a] sm:$0xff]  ;;  %v6095_v9 = vld [vmem:[#allocation2 + $0x62] sm:$0xff]  ;;  %v6096_v32 = vld [vmem:[#allocation2 + $0x6a] sm:$0xff] }
 0x5f6   : > { %12389 = vmatprep.mubr.msk.f32.mxu0 %vm14006_vm0, %v16798_v10 }
 0x5f8   : > { %12235 = vmatmul.mubr.f32.vlgmr.msra.gmra.mrb[20].mxu1 %v5717_v50  ;;  %v6097_v50 = vld [vmem:[#allocation2 + $0x72] sm:$0xff] }
 0x5f9   : > { %12390 = vmatmul.mubr.f32.vlgmr.msra.gmra.mrb[22].mxu0 %v6085_v6  ;;  %13804 = vmatpush3.bf16.msra.mxu1 %v13803_v33  ;;  %v6098_v33 = vld [vmem:[#allocation2 + $0x7a] sm:$0xff] }
 0x5fa   : > { %12237 = vmatprep.mubr.msk.f32.mxu1 %vm14006_vm0, %v16798_v10  ;;  %12392 = vmatprep.mubr.msk.f32.mxu0 %vm14006_vm0, %v16798_v10 }
 0x5fb   : > { %13805 = vmatprep.subr.bf16.mxu1 %v18746_v18  ;;  %13828 = vmatpush3.bf16.msra.mxu0 %v13827_v39 }
 0x5fc   : > { %12238 = vmatmul.mubr.f32.gmra.mrb[22].mxu1 %v5718_v60  ;;  %13829 = vmatprep.subr.bf16.mxu0 %v18746_v18 }
 0x5fd   : > { %12393 = vmatmul.mubr.f32.gmra.mrb[24].mxu0 %v6086_v1  ;;  %12240 = vmatprep.mubr.msk.f32.mxu1 %vm14006_vm0, %v16798_v10 }
 0x5fe   : > { %12395 = vmatprep.mubr.msk.f32.mxu0 %vm14006_vm0, %v16798_v10  ;;  %13807 = vmatpush3.bf16.msra.mxu1 %v13806_v48 }
 0x5ff   : > { %13808 = vmatprep.subr.bf16.mxu1 %v18746_v18  ;;  %13831 = vmatpush3.bf16.msra.mxu0 %v13830_v54 }
 0x600   : > { %12241 = vmatmul.mubr.f32.gmra.mrb[24].mxu1 %v6085_v6  ;;  %13832 = vmatprep.subr.bf16.mxu0 %v18746_v18 }
 0x601   : > { %12396 = vmatmul.mubr.f32.gmra.mrb[26].mxu0 %v6087_v36  ;;  %12243 = vmatprep.mubr.msk.f32.mxu1 %vm14006_vm0, %v16798_v10 }
 0x602   : > { %12398 = vmatprep.mubr.msk.f32.mxu0 %vm14006_vm0, %v16798_v10  ;;  %13810 = vmatpush3.bf16.msra.mxu1 %v13809_v16 }
 0x603   : > { %13811 = vmatprep.subr.bf16.mxu1 %v18746_v18  ;;  %13834 = vmatpush3.bf16.msra.mxu0 %v13833_v13 }
 0x604   : > { %12244 = vmatmul.mubr.f32.gmra.mrb[26].mxu1 %v6086_v1  ;;  %13835 = vmatprep.subr.bf16.mxu0 %v18746_v18 }
 0x605   : > { %12399 = vmatmul.mubr.f32.gmra.mrb[28].mxu0 %v6088_v15  ;;  %12246 = vmatprep.mubr.msk.f32.mxu1 %vm14006_vm0, %v16798_v10 }
 0x606   : > { %12401 = vmatprep.mubr.msk.f32.mxu0 %vm14006_vm0, %v16798_v10  ;;  %13813 = vmatpush3.bf16.msra.mxu1 %v13812_v52 }
 0x607   : > { %13814 = vmatprep.subr.bf16.mxu1 %v18746_v18  ;;  %13837 = vmatpush3.bf16.msra.mxu0 %v13836_v43  ;;  %v6104_v43 = vld [vmem:[#allocation2 + $0xaa] sm:$0xff] }
 0x608   : > { %12247 = vmatmul.mubr.f32.gmra.mrb[28].mxu1 %v6087_v36  ;;  %13838 = vmatprep.subr.bf16.mxu0 %v18746_v18 }
 0x609   : > { %12402 = vmatmul.mubr.f32.gmra.mrb[30].mxu0 %v6089_v53  ;;  %12249 = vmatprep.mubr.msk.f32.mxu1 %vm14006_vm0, %v16798_v10 }
 0x60a   : > { %12404 = vmatprep.mubr.msk.f32.mxu0 %vm14006_vm0, %v16798_v10  ;;  %13816 = vmatpush3.bf16.msra.mxu1 %v13815_v42 }
 0x60b   : > { %13817 = vmatprep.subr.bf16.mxu1 %v18746_v18  ;;  %13840 = vmatpush3.bf16.msra.mxu0 %v13839_v44 }
 0x60c   : > { %12250 = vmatmul.mubr.f32.gmra.mrb[30].mxu1 %v6088_v15  ;;  %13841 = vmatprep.subr.bf16.mxu0 %v18746_v18 }
 0x60d   : > { %12405 = vmatmul.mubr.f32.gmra.mrb[32].mxu0 %v6090_v37  ;;  %12252 = vmatprep.mubr.msk.f32.mxu1 %vm14006_vm0, %v16798_v10 }
 0x60e   : > { %12407 = vmatprep.mubr.msk.f32.mxu0 %vm14006_vm0, %v16798_v10  ;;  %13819 = vmatpush3.bf16.msra.mxu1 %v13818_v28  ;;  %v6872_v10 = vld [vmem:[%s18665_s8 + $0x2d0] sm:$0xff] }
 0x60f   : > { %13820 = vmatprep.subr.bf16.mxu1 %v18746_v18  ;;  %v13842_v61 = vpack.c.bf16 %v6873_v2, %v6872_v10  ;;  %v6106_v2 = vld [vmem:[#allocation2 + $0xba] sm:$0xff] }
 0x610   : > { %12253 = vmatmul.mubr.f32.gmra.mrb[32].mxu1 %v6089_v53  ;;  %v6103_v53 = vld [vmem:[#allocation2 + $0xa2] sm:$0xff] }
 0x611   : > { %12408 = vmatmul.mubr.f32.gmra.mrb[34].mxu0 %v6091_v62  ;;  %12255 = vmatprep.mubr.msk.f32.mxu1 %vm14006_vm0, %v17124_v46 }
 0x612   : > { %12410 = vmatprep.mubr.msk.f32.mxu0 %vm14006_vm0, %v17124_v46  ;;  %13822 = vmatpush3.bf16.msra.mxu1 %v13821_v4  ;;  %v6105_v4 = vld [vmem:[#allocation2 + $0xb2] sm:$0xff] }
 0x613   : > { %13823 = vmatprep.subr.bf16.mxu1 %v18746_v18  ;;  %13843 = vmatpush3.bf16.msra.mxu0 %v13842_v61 }
 0x614   : > { %12256 = vmatmul.mubr.f32.gmra.mrb[34].mxu1 %v6090_v37  ;;  %13844 = vmatprep.subr.bf16.mxu0 %v18746_v18 }
 0x615   : > { %12411 = vmatmul.mubr.f32.gmra.mrb[36].mxu0 %v6092_v49  ;;  %12258 = vmatprep.mubr.msk.f32.mxu1 %vm14006_vm0, %v17124_v46 }
 0x616   : > { %12413 = vmatprep.mubr.msk.f32.mxu0 %vm14006_vm0, %v17124_v46  ;;  %13825 = vmatpush3.bf16.msra.mxu1 %v13824_v11 }
 0x617   : > { %13850 = vmatprep.subr.bf16.mxu1 %v18746_v18  ;;  %13846 = vmatpush3.bf16.msra.mxu0 %v13845_v0  ;;  %v6107_v0 = vld [vmem:[#allocation2 + $0xc2] sm:$0xff] }
 0x618   : > { %12259 = vmatmul.mubr.f32.gmra.mrb[36].mxu1 %v6091_v62  ;;  %13847 = vmatprep.subr.bf16.mxu0 %v18746_v18 }
 0x619   : > { %12414 = vmatmul.mubr.f32.gmra.mrb[38].mxu0 %v6093_v58  ;;  %12261 = vmatprep.mubr.msk.f32.mxu1 %vm14006_vm0, %v17124_v46 }
 0x61a   : > { %12416 = vmatprep.mubr.msk.f32.mxu0 %vm14006_vm0, %v17124_v46 }
 0x61b   : > { %13849 = vmatpush3.bf16.msra.mxu0 %v13848_v31 }
 0x61c   : > { %12262 = vmatmul.mubr.f32.gmra.mrb[38].mxu1 %v6092_v49  ;;  %13874 = vmatprep.subr.bf16.mxu0 %v18746_v18 }
 0x61d   : > { %12417 = vmatmul.mubr.f32.gmra.mrb[40].mxu0 %v6094_v20  ;;  %12264 = vmatprep.mubr.msk.f32.mxu1 %vm14006_vm0, %v17124_v46 }
 0x61e   : > { %12419 = vmatprep.mubr.msk.f32.mxu0 %vm14006_vm0, %v17124_v46 }
 0x620   : > { %12265 = vmatmul.mubr.f32.gmra.mrb[40].mxu1 %v6093_v58 }
 0x621   : > { %12420 = vmatmul.mubr.f32.gmra.mrb[42].mxu0 %v6095_v9  ;;  %12267 = vmatprep.mubr.msk.f32.mxu1 %vm14006_vm0, %v17124_v46 }
 0x622   : > { %12422 = vmatprep.mubr.msk.f32.mxu0 %vm14006_vm0, %v17124_v46 }
 0x624   : > { %12268 = vmatmul.mubr.f32.gmra.mrb[42].mxu1 %v6094_v20 }
 0x625   : > { %12423 = vmatmul.mubr.f32.gmra.mrb[44].mxu0 %v6096_v32  ;;  %12270 = vmatprep.mubr.msk.f32.mxu1 %vm14006_vm0, %v17124_v46 }
 0x626   : > { %12425 = vmatprep.mubr.msk.f32.mxu0 %vm14006_vm0, %v17124_v46 }
 0x628   : > { %12271 = vmatmul.mubr.f32.gmra.mrb[44].mxu1 %v6095_v9  ;;  %v6108_v9 = vld [vmem:[#allocation2 + $0xca] sm:$0xff] }
 0x629   : > { %12426 = vmatmul.mubr.f32.gmra.mrb[46].mxu0 %v6097_v50  ;;  %12273 = vmatprep.mubr.msk.f32.mxu1 %vm14006_vm0, %v17124_v46 }
 0x62a   : > { %12428 = vmatprep.mubr.msk.f32.mxu0 %vm14006_vm0, %v17124_v46 }
 0x62c   : > { %12274 = vmatmul.mubr.f32.gmra.mrb[46].mxu1 %v6096_v32 }
 0x62d   : > { %12429 = vmatmul.mubr.f32.gmra.mrb[48].mxu0 %v6098_v33  ;;  %12276 = vmatprep.mubr.msk.f32.mxu1 %vm14006_vm0, %v17124_v46 }
 0x62e   : > { %12431 = vmatprep.mubr.msk.f32.mxu0 %vm14006_vm0, %v17124_v46 }
 0x62f   : > { %v5253_v6 = vpop.f32.mrb[198].mxu1 }
 0x630   : > { %v5523_v3 = vpop.f32.mrb[200].mxu0  ;;  %v11932_v48 = vpop.f32.mrb[199].mxu1  ;;  %12277 = vmatmul.mubr.f32.gmra.mrb[48].mxu1 %v6097_v50 }
 0x631   : > { %v17176_v60 = vadd.f32 %v5523_v3, %v5253_v6  ;;  %v12087_v1 = vpop.f32.mrb[201].mxu0  ;;  %12432 = vmatmul.mubr.f32.gmra.mrb[50].mxu0 %v6099_v47  ;;  %12279 = vmatprep.mubr.msk.f32.mxu1 %vm14006_vm0, %v17124_v46 }
 0x632   : > { %12434 = vmatprep.mubr.msk.f32.mxu0 %vm14006_vm0, %v17124_v46 }
 0x633   : > { %v5258_v22 = vpop.f32.mrb[200].mxu1 }
 0x634   : > { %v5528_v30 = vpop.f32.mrb[202].mxu0  ;;  %v11935_v39 = vpop.f32.mrb[201].mxu1  ;;  %12280 = vmatmul.mubr.f32.gmra.mrb[50].mxu1 %v6098_v33 }
 0x635   : > { %v17182_v27 = vadd.f32 %v5528_v30, %v5258_v22  ;;  %v12090_v16 = vpop.f32.mrb[203].mxu0  ;;  %12435 = vmatmul.mubr.f32.gmra.mrb[52].mxu0 %v6100_v5  ;;  %12282 = vmatprep.mubr.msk.f32.mxu1 %vm14006_vm0, %v17124_v46  ;;  %v6110_v39 = vld [vmem:[#allocation2 + $0xda] sm:$0xff] }
 0x636   : > { %12437 = vmatprep.mubr.msk.f32.mxu0 %vm14006_vm0, %v17124_v46 }
 0x637   : > { %v5263_v36 = vpop.f32.mrb[202].mxu1 }
 0x638   : > { %v5533_v35 = vpop.f32.mrb[204].mxu0  ;;  %v11938_v56 = vpop.f32.mrb[203].mxu1  ;;  %12283 = vmatmul.mubr.f32.gmra.mrb[52].mxu1 %v6099_v47  ;;  %v6109_v47 = vld [vmem:[#allocation2 + $0xd2] sm:$0xff] }
 0x639   : > { %v17188_v41 = vadd.f32 %v5533_v35, %v5263_v36  ;;  %v12093_v54 = vpop.f32.mrb[205].mxu0  ;;  %12438 = vmatmul.mubr.f32.gmra.mrb[54].mxu0 %v6101_v21  ;;  %12285 = vmatprep.mubr.msk.f32.mxu1 %vm14006_vm0, %v17124_v46 }
 0x63a   : > { %12440 = vmatprep.mubr.msk.f32.mxu0 %vm14006_vm0, %v17124_v46  ;;  %v6111_v54 = vld [vmem:[#allocation2 + $0xe2] sm:$0xff] }
 0x63b   : > { %v5268_v52 = vpop.f32.mrb[204].mxu1 }
 0x63c   : > { %v5538_v15 = vpop.f32.mrb[206].mxu0  ;;  %v11941_v57 = vpop.f32.mrb[205].mxu1  ;;  %12286 = vmatmul.mubr.f32.gmra.mrb[54].mxu1 %v6100_v5 }
 0x63d   : > { %v17194_v38 = vadd.f32 %v5538_v15, %v5268_v52  ;;  %v12096_v8 = vpop.f32.mrb[207].mxu0  ;;  %12441 = vmatmul.mubr.f32.gmra.mrb[56].mxu0 %v6102_v17  ;;  %12288 = vmatprep.mubr.msk.f32.mxu1 %vm14006_vm0, %v17124_v46 }
 0x63e   : > { %12443 = vmatprep.mubr.msk.f32.mxu0 %vm14006_vm0, %v17124_v46 }
 0x63f   : > { %v5273_v13 = vpop.f32.mrb[206].mxu1 }
 0x640   : > { %v5543_v42 = vpop.f32.mrb[208].mxu0  ;;  %v11944_v40 = vpop.f32.mrb[207].mxu1  ;;  %12289 = vmatmul.mubr.f32.gmra.mrb[56].mxu1 %v6101_v21 }
 0x641   : > { %v17200_v25 = vadd.f32 %v5543_v42, %v5273_v13  ;;  %v12099_v51 = vpop.f32.mrb[209].mxu0  ;;  %12444 = vmatmul.mubr.f32.gmra.mrb[58].mxu0 %v6103_v53  ;;  %12291 = vmatprep.mubr.msk.f32.mxu1 %vm14006_vm0, %v17124_v46  ;;  %v6112_v13 = vld [vmem:[#allocation2 + $0xea] sm:$0xff] }
 0x642   : > { %12446 = vmatprep.mubr.msk.f32.mxu0 %vm14006_vm0, %v17124_v46 }
 0x643   : > { %v5278_v59 = vpop.f32.mrb[208].mxu1 }
 0x644   : > { %v5548_v28 = vpop.f32.mrb[210].mxu0  ;;  %v11947_v12 = vpop.f32.mrb[209].mxu1  ;;  %12292 = vmatmul.mubr.f32.gmra.mrb[58].mxu1 %v6102_v17 }
 0x645   : > { %v17206_v37 = vadd.f32 %v5548_v28, %v5278_v59  ;;  %v12102_v24 = vpop.f32.mrb[211].mxu0  ;;  %12447 = vmatmul.mubr.f32.gmra.mrb[60].mxu0 %v6104_v43  ;;  %12294 = vmatprep.mubr.msk.f32.mxu1 %vm14006_vm0, %v17124_v46  ;;  %v6113_v28 = vld [vmem:[#allocation2 + $0xf2] sm:$0xff] }
 0x646   : > { %12449 = vmatprep.mubr.msk.f32.mxu0 %vm14006_vm0, %v17124_v46 }
 0x647   : > { %v5283_v29 = vpop.f32.mrb[210].mxu1 }
 0x648   : > { %v5553_v55 = vpop.f32.mrb[212].mxu0  ;;  %v11950_v62 = vpop.f32.mrb[211].mxu1  ;;  %12295 = vmatmul.mubr.f32.gmra.mrb[60].mxu1 %v6103_v53 }
 0x649   : > { %v17212_v44 = vadd.f32 %v5553_v55, %v5283_v29  ;;  %v12105_v23 = vpop.f32.mrb[213].mxu0  ;;  %12450 = vmatmul.mubr.f32.gmra.mrb[62].mxu0 %v6105_v4  ;;  %12297 = vmatprep.mubr.msk.f32.mxu1 %vm14006_vm0, %v17124_v46 }
 0x64a   : > { %12452 = vmatprep.mubr.msk.f32.mxu0 %vm14006_vm0, %v17124_v46 }
 0x64b   : > { %v5288_v14 = vpop.f32.mrb[212].mxu1 }
 0x64c   : > { %v5558_v10 = vpop.f32.mrb[214].mxu0  ;;  %v11953_v61 = vpop.f32.mrb[213].mxu1  ;;  %12298 = vmatmul.mubr.f32.gmra.mrb[62].mxu1 %v6104_v43 }
 0x64d   : > { %v17218_v11 = vadd.f32 %v5558_v10, %v5288_v14  ;;  %v12108_v49 = vpop.f32.mrb[215].mxu0  ;;  %12453 = vmatmul.mubr.f32.gmra.mrb[64].mxu0 %v6106_v2  ;;  %12300 = vmatprep.mubr.msk.f32.mxu1 %vm14006_vm0, %v17124_v46  ;;  %v6115_v61 = vld [vmem:[#allocation2 + $0x102] sm:$0xff] }
 0x64e   : > { %12455 = vmatprep.mubr.msk.f32.mxu0 %vm14006_vm0, %v17124_v46 }
 0x64f   : > { %v5293_v63 = vpop.f32.mrb[214].mxu1 }
 0x650   : > { %v5563_v45 = vpop.f32.mrb[216].mxu0  ;;  %v11956_v34 = vpop.f32.mrb[215].mxu1  ;;  %12301 = vmatmul.mubr.f32.gmra.mrb[64].mxu1 %v6105_v4  ;;  %v6114_v4 = vld [vmem:[#allocation2 + $0xfa] sm:$0xff] }
 0x651   : > { %v17224_v58 = vadd.f32 %v5563_v45, %v5293_v63  ;;  %v12111_v7 = vpop.f32.mrb[217].mxu0  ;;  %12456 = vmatmul.mubr.f32.gmra.mrb[66].mxu0 %v6107_v0  ;;  %12303 = vmatprep.mubr.msk.f32.mxu1 %vm14006_vm0, %v17124_v46 }
 0x652   : > { %12458 = vmatprep.mubr.msk.f32.mxu0 %vm14006_vm0, %v17124_v46  ;;  %v6116_v7 = vld [vmem:[#allocation2 + $0x10a] sm:$0xff] }
 0x653   : > { %v5298_v31 = vpop.f32.mrb[216].mxu1 }
 0x654   : > { %v5568_v20 = vpop.f32.mrb[218].mxu0  ;;  %v11959_v50 = vpop.f32.mrb[217].mxu1  ;;  %12304 = vmatmul.mubr.f32.gmra.mrb[66].mxu1 %v6106_v2 }
 0x655   : > { %v17230_v32 = vadd.f32 %v5568_v20, %v5298_v31  ;;  %v12114_v33 = vpop.f32.mrb[219].mxu0  ;;  %12459 = vmatmul.mubr.f32.gmra.mrb[68].mxu0 %v6108_v9  ;;  %12306 = vmatprep.mubr.msk.f32.mxu1 %vm14006_vm0, %v17124_v46 }
 0x656   : > { %12461 = vmatprep.mubr.msk.f32.mxu0 %vm14006_vm0, %v17124_v46 }
 0x657   : > { %v5303_v6 = vpop.f32.mrb[218].mxu1 }
 0x658   : > { %v5573_v3 = vpop.f32.mrb[220].mxu0  ;;  %v11962_v1 = vpop.f32.mrb[219].mxu1  ;;  %12307 = vmatmul.mubr.f32.gmra.mrb[68].mxu1 %v6107_v0 }
 0x659   : > { %v17236_v48 = vadd.f32 %v5573_v3, %v5303_v6  ;;  %v12117_v22 = vpop.f32.mrb[221].mxu0  ;;  %12462 = vmatmul.mubr.f32.gmra.mrb[70].mxu0 %v6109_v47  ;;  %12309 = vmatprep.mubr.msk.f32.mxu1 %vm14006_vm0, %v17124_v46  ;;  %v6117_v6 = vld [vmem:[#allocation2 + $0x112] sm:$0xff] }
 0x65a   : > { %12464 = vmatprep.mubr.msk.f32.mxu0 %vm14006_vm0, %v17124_v46 }
 0x65b   : > { %v5308_v30 = vpop.f32.mrb[220].mxu1 }
 0x65c   : > { %v5578_v5 = vpop.f32.mrb[222].mxu0  ;;  %v11965_v36 = vpop.f32.mrb[221].mxu1  ;;  %12310 = vmatmul.mubr.f32.gmra.mrb[70].mxu1 %v6108_v9 }
 0x65d   : > { %v17242_v16 = vadd.f32 %v5578_v5, %v5308_v30  ;;  %v12120_v35 = vpop.f32.mrb[223].mxu0  ;;  %12465 = vmatmul.mubr.f32.gmra.mrb[72].mxu0 %v6110_v39  ;;  %12312 = vmatprep.mubr.msk.f32.mxu1 %vm14006_vm0, %v17124_v46  ;;  %v6118_v5 = vld [vmem:[#allocation2 + $0x11a] sm:$0xff] }
 0x65e   : > { %12467 = vmatprep.mubr.msk.f32.mxu0 %vm14006_vm0, %v17124_v46 }
 0x65f   : > { %v5313_v21 = vpop.f32.mrb[222].mxu1 }
 0x660   : > { %v5583_v56 = vpop.f32.mrb[224].mxu0  ;;  %v11968_v15 = vpop.f32.mrb[223].mxu1  ;;  %12313 = vmatmul.mubr.f32.gmra.mrb[72].mxu1 %v6109_v47 }
 0x661   : > { %v17248_v52 = vadd.f32 %v5583_v56, %v5313_v21  ;;  %v12123_v17 = vpop.f32.mrb[225].mxu0  ;;  %12468 = vmatmul.mubr.f32.gmra.mrb[74].mxu0 %v6111_v54  ;;  %12315 = vmatprep.mubr.msk.f32.mxu1 %vm14006_vm0, %v17124_v46 }
 0x662   : > { %12470 = vmatprep.mubr.msk.f32.mxu0 %vm14006_vm0, %v17124_v46 }
 0x663   : > { %v5318_v57 = vpop.f32.mrb[224].mxu1 }
 0x664   : > { %v5588_v8 = vpop.f32.mrb[226].mxu0  ;;  %v11971_v53 = vpop.f32.mrb[225].mxu1  ;;  %12316 = vmatmul.mubr.f32.gmra.mrb[74].mxu1 %v6110_v39 }
 0x665   : > { %v17254_v42 = vadd.f32 %v5588_v8, %v5318_v57  ;;  %v12126_v40 = vpop.f32.mrb[227].mxu0  ;;  %12471 = vmatmul.mubr.f32.gmra.mrb[76].mxu0 %v6112_v13  ;;  %12318 = vmatprep.mubr.msk.f32.mxu1 %vm14006_vm0, %v17124_v46  ;;  %v6120_v53 = vld [vmem:[#allocation2 + $0x12a] sm:$0xff] }
 0x666   : > { %12473 = vmatprep.mubr.msk.f32.mxu0 %vm14006_vm0, %v17124_v46 }
 0x667   : > { %v5323_v51 = vpop.f32.mrb[226].mxu1 }
 0x668   : > { %v5593_v59 = vpop.f32.mrb[228].mxu0  ;;  %v11974_v12 = vpop.f32.mrb[227].mxu1  ;;  %12319 = vmatmul.mubr.f32.gmra.mrb[76].mxu1 %v6111_v54  ;;  %v6119_v54 = vld [vmem:[#allocation2 + $0x122] sm:$0xff] }
 0x669   : > { %v17260_v43 = vadd.f32 %v5593_v59, %v5323_v51  ;;  %v12129_v24 = vpop.f32.mrb[229].mxu0  ;;  %12474 = vmatmul.mubr.f32.gmra.mrb[78].mxu0 %v6113_v28  ;;  %12321 = vmatprep.mubr.msk.f32.mxu1 %vm14006_vm0, %v17124_v46 }
 0x66a   : > { %12476 = vmatprep.mubr.msk.f32.mxu0 %vm14006_vm0, %v17124_v46  ;;  %v6121_v24 = vld [vmem:[#allocation2 + $0x132] sm:$0xff] }
 0x66b   : > { %v5328_v29 = vpop.f32.mrb[228].mxu1 }
 0x66c   : > { %v5598_v55 = vpop.f32.mrb[230].mxu0  ;;  %v11977_v23 = vpop.f32.mrb[229].mxu1  ;;  %12322 = vmatmul.mubr.f32.gmra.mrb[78].mxu1 %v6112_v13 }
 0x66d   : > { %v17266_v62 = vadd.f32 %v5598_v55, %v5328_v29  ;;  %v12132_v14 = vpop.f32.mrb[231].mxu0  ;;  %12477 = vmatmul.mubr.f32.gmra.mrb[80].mxu0 %v6114_v4  ;;  %12324 = vmatprep.mubr.msk.f32.mxu1 %vm14006_vm0, %v17124_v46 }
 0x66e   : > { %12479 = vmatprep.mubr.msk.f32.mxu0 %vm14006_vm0, %v17124_v46 }
 0x66f   : > { %v5333_v10 = vpop.f32.mrb[230].mxu1 }
 0x670   : > { %v5603_v2 = vpop.f32.mrb[232].mxu0  ;;  %v11980_v63 = vpop.f32.mrb[231].mxu1  ;;  %12325 = vmatmul.mubr.f32.gmra.mrb[80].mxu1 %v6113_v28 }
 0x671   : > { %v17272_v49 = vadd.f32 %v5603_v2, %v5333_v10  ;;  %v12135_v45 = vpop.f32.mrb[233].mxu0  ;;  %12480 = vmatmul.mubr.f32.gmra.mrb[82].mxu0 %v6115_v61  ;;  %12327 = vmatprep.mubr.msk.f32.mxu1 %vm14006_vm0, %v17124_v46  ;;  %v6122_v10 = vld [vmem:[#allocation2 + $0x13a] sm:$0xff] }
 0x672   : > { %12482 = vmatprep.mubr.msk.f32.mxu0 %vm14006_vm0, %v17124_v46 }
 0x673   : > { %v5338_v0 = vpop.f32.mrb[232].mxu1 }
 0x674   : > { %v5608_v34 = vpop.f32.mrb[234].mxu0  ;;  %v11983_v20 = vpop.f32.mrb[233].mxu1  ;;  %12328 = vmatmul.mubr.f32.gmra.mrb[82].mxu1 %v6114_v4 }
 0x675   : > { %v17278_v31 = vadd.f32 %v5608_v34, %v5338_v0  ;;  %v12138_v9 = vpop.f32.mrb[235].mxu0  ;;  %12483 = vmatmul.mubr.f32.gmra.mrb[84].mxu0 %v6116_v7  ;;  %12330 = vmatprep.mubr.msk.f32.mxu1 %vm14006_vm0, %v17124_v46  ;;  %v6123_v34 = vld [vmem:[#allocation2 + $0x142] sm:$0xff] }
 0x676   : > { %12485 = vmatprep.mubr.msk.f32.mxu0 %vm14006_vm0, %v17124_v46 }
 0x677   : > { %v5343_v50 = vpop.f32.mrb[234].mxu1 }
 0x678   : > { %v5613_v33 = vpop.f32.mrb[236].mxu0  ;;  %v11986_v47 = vpop.f32.mrb[235].mxu1  ;;  %12331 = vmatmul.mubr.f32.gmra.mrb[84].mxu1 %v6115_v61 }
 0x679   : > { %v17284_v3 = vadd.f32 %v5613_v33, %v5343_v50  ;;  %v12141_v1 = vpop.f32.mrb[237].mxu0  ;;  %12486 = vmatmul.mubr.f32.gmra.mrb[86].mxu0 %v6117_v6  ;;  %12333 = vmatprep.mubr.msk.f32.mxu1 %vm14006_vm0, %v17124_v46 }
 0x67a   : > { %12488 = vmatprep.mubr.msk.f32.mxu0 %vm14006_vm0, %v17124_v46 }
 0x67b   : > { %v5348_v22 = vpop.f32.mrb[236].mxu1 }
 0x67c   : > { %v5618_v30 = vpop.f32.mrb[238].mxu0  ;;  %v11989_v36 = vpop.f32.mrb[237].mxu1  ;;  %12334 = vmatmul.mubr.f32.gmra.mrb[86].mxu1 %v6116_v7 }
 0x67d   : > { %v17290_v39 = vadd.f32 %v5618_v30, %v5348_v22  ;;  %v12144_v35 = vpop.f32.mrb[239].mxu0  ;;  %12489 = vmatmul.mubr.f32.gmra.mrb[88].mxu0 %v6118_v5  ;;  %12336 = vmatprep.mubr.msk.f32.mxu1 %vm14006_vm0, %v17124_v46  ;;  %v7230_v30 = vld [vmem:[%s18665_s8 + $0x300] sm:$0xff] }
 0x67e   : > { %12491 = vmatprep.mubr.msk.f32.mxu0 %vm14006_vm0, %v17124_v46 }
 0x67f   : > { %v5353_v21 = vpop.f32.mrb[238].mxu1 }
 0x680   : > { %v5623_v56 = vpop.f32.mrb[240].mxu0  ;;  %v11992_v17 = vpop.f32.mrb[239].mxu1  ;;  %12337 = vmatmul.mubr.f32.gmra.mrb[88].mxu1 %v6117_v6  ;;  %v6124_v6 = vld [vmem:[#allocation2 + $0x14a] sm:$0xff] }
 0x681   : > { %v17296_v15 = vadd.f32 %v5623_v56, %v5353_v21  ;;  %v12147_v57 = vpop.f32.mrb[241].mxu0  ;;  %12492 = vmatmul.mubr.f32.gmra.mrb[90].mxu0 %v6119_v54  ;;  %12339 = vmatprep.mubr.msk.f32.mxu1 %vm14006_vm0, %v17124_v46  ;;  %v6125_v21 = vld [vmem:[#allocation2 + $0x152] sm:$0xff] }
 0x682   : > { %12494 = vmatprep.mubr.msk.f32.mxu0 %vm14006_vm0, %v17124_v46 }
 0x683   : > { %v5358_v8 = vpop.f32.mrb[240].mxu1 }
 0x684   : > { %v5628_v13 = vpop.f32.mrb[242].mxu0  ;;  %v11995_v51 = vpop.f32.mrb[241].mxu1  ;;  %12340 = vmatmul.mubr.f32.gmra.mrb[90].mxu1 %v6118_v5  ;;  %v7231_v5 = vld [vmem:[%s18665_s8 + $0x308] sm:$0xff] }
 0x685   : > { %v17302_v40 = vadd.f32 %v5628_v13, %v5358_v8  ;;  %v12150_v59 = vpop.f32.mrb[243].mxu0  ;;  %12495 = vmatmul.mubr.f32.gmra.mrb[92].mxu0 %v6120_v53  ;;  %12342 = vmatprep.mubr.msk.f32.mxu1 %vm14006_vm0, %v17124_v46  ;;  %v13851_v57 = vpack.c.bf16 %v7231_v5, %v7230_v30  ;;  %v6453_v8 = vld [vmem:[#allocation2 + $0x13] sm:$0xff]  ;;  %v6823_v5 = vld [vmem:[#allocation2 + $0x24] sm:$0xff] }
 0x686   : > { %12497 = vmatprep.mubr.msk.f32.mxu0 %vm14006_vm0, %v17124_v46  ;;  %v6821_v51 = vld [vmem:[#allocation2 + $0x14] sm:$0xff] }
 0x687   : > { %v5363_v28 = vpop.f32.mrb[242].mxu1  ;;  %v7232_v59 = vld [vmem:[%s18665_s8 + $0x310] sm:$0xff] }
 0x688   : > { %v5633_v12 = vpop.f32.mrb[244].mxu0  ;;  %v11998_v55 = vpop.f32.mrb[243].mxu1  ;;  %12343 = vmatmul.mubr.f32.gmra.mrb[92].mxu1 %v6119_v54 }
 0x689   : > { %v17308_v29 = vadd.f32 %v5633_v12, %v5363_v28  ;;  %v12153_v4 = vpop.f32.mrb[245].mxu0  ;;  %12498 = vmatmul.mubr.f32.gmra.mrb[94].mxu0 %v6121_v24  ;;  %12345 = vmatprep.mubr.msk.f32.mxu1 %vm14006_vm0, %v17124_v46  ;;  %v7233_v28 = vld [vmem:[%s18665_s8 + $0x318] sm:$0xff] }
 0x68a   : > { %12500 = vmatprep.mubr.msk.f32.mxu0 %vm14006_vm0, %v17124_v46  ;;  %v6454_v4 = vld [vmem:[#allocation2 + $0x1b] sm:$0xff] }
 0x68b   : > { %v5368_v23 = vpop.f32.mrb[244].mxu1 }
 0x68c   : > { %v5638_v14 = vpop.f32.mrb[246].mxu0  ;;  %v12001_v61 = vpop.f32.mrb[245].mxu1  ;;  %12346 = vmatmul.mubr.f32.gmra.mrb[94].mxu1 %v6120_v53 }
 0x68d   : > { %v17314_v2 = vadd.f32 %v5638_v14, %v5368_v23  ;;  %v12156_v63 = vpop.f32.mrb[247].mxu0  ;;  %12501 = vmatmul.mubr.f32.gmra.mrb[96].mxu0 %v6122_v10  ;;  %12348 = vmatprep.mubr.msk.f32.mxu1 %vm14006_vm0, %v17124_v46  ;;  %v13854_v23 = vpack.c.bf16 %v7233_v28, %v7232_v59  ;;  %v6822_v61 = vld [vmem:[#allocation2 + $0x1c] sm:$0xff] }
 0x68e   : > { %12503 = vmatprep.mubr.msk.f32.mxu0 %vm14006_vm0, %v17124_v46  ;;  %v7234_v63 = vld [vmem:[%s18665_s8 + $0x320] sm:$0xff] }
 0x68f   : > { %v5373_v45 = vpop.f32.mrb[246].mxu1 }
 0x690   : > { %v5643_v0 = vpop.f32.mrb[248].mxu0  ;;  %v12004_v20 = vpop.f32.mrb[247].mxu1  ;;  %12349 = vmatmul.mubr.f32.gmra.mrb[96].mxu1 %v6121_v24 }
 0x691   : > { %v17320_v7 = vadd.f32 %v5643_v0, %v5373_v45  ;;  %v12159_v9 = vpop.f32.mrb[249].mxu0  ;;  %12504 = vmatmul.mubr.f32.gmra.mrb[98].mxu0 %v6123_v34  ;;  %12351 = vmatprep.mubr.msk.f32.mxu1 %vm14006_vm0, %v17124_v46  ;;  %v7235_v45 = vld [vmem:[%s18665_s8 + $0x328] sm:$0xff] }
 0x692   : > { %12506 = vmatprep.mubr.msk.f32.mxu0 %vm14006_vm0, %v17124_v46  ;;  %v7598_v9 = vld [vmem:[%s18665_s8 + $0x380] sm:$0xff] }
 0x693   : > { %v5378_v50 = vpop.f32.mrb[248].mxu1 }
 0x694   : > { %v5648_v33 = vpop.f32.mrb[250].mxu0  ;;  %v12007_v1 = vpop.f32.mrb[249].mxu1  ;;  %12352 = vmatmul.mubr.f32.gmra.mrb[98].mxu1 %v6122_v10 }
 0x695   : > { %v17326_v47 = vadd.f32 %v5648_v33, %v5378_v50  ;;  %v12162_v22 = vpop.f32.mrb[251].mxu0  ;;  %12507 = vmatmul.mubr.f32.gmra.mrb[100].mxu0 %v6124_v6  ;;  %12354 = vmatprep.mubr.msk.f32.mxu1 %vm14006_vm0, %v17124_v46  ;;  %v7599_v50 = vld [vmem:[%s18665_s8 + $0x388] sm:$0xff]  ;;  %v13857_v1 = vpack.c.bf16 %v7235_v45, %v7234_v63 }
 0x696   : > { %12509 = vmatprep.mubr.msk.f32.mxu0 %vm14006_vm0, %v17124_v46  ;;  %v13875_v33 = vpack.c.bf16 %v7599_v50, %v7598_v9  ;;  %v6455_v6 = vld [vmem:[#allocation2 + $0x23] sm:$0xff] }
 0x697   : > { %v5383_v36 = vpop.f32.mrb[250].mxu1  ;;  %v7603_v63 = vld [vmem:[%s18665_s8 + $0x3a8] sm:$0xff] }
 0x698   : > { %v5653_v35 = vpop.f32.mrb[252].mxu0  ;;  %v12010_v54 = vpop.f32.mrb[251].mxu1  ;;  %12355 = vmatmul.mubr.f32.gmra.mrb[100].mxu1 %v6123_v34 }
 0x699   : > { %v17338_v56 = vadd.f32 %v5653_v35, %v5383_v36  ;;  %v12165_v17 = vpop.f32.mrb[253].mxu0  ;;  %12510 = vmatmul.mubr.f32.gmra.mrb[102].mxu0 %v6125_v21  ;;  %12544 = vmatprep.mubr.msk.f32.mxu1 %vm14006_vm0, %v17124_v46  ;;  %v7236_v36 = vld [vmem:[%s18665_s8 + $0x330] sm:$0xff]  ;;  %v7237_v35 = vld [vmem:[%s18665_s8 + $0x338] sm:$0xff] }
 0x69a   : > { %12699 = vmatprep.mubr.msk.f32.mxu0 %vm14006_vm0, %v17124_v46 }
 0x69b   : > { %v5388_v13 = vpop.f32.mrb[252].mxu1 }
 0x69c   : > { %v5658_v53 = vpop.f32.mrb[254].mxu0  ;;  %v12013_v24 = vpop.f32.mrb[253].mxu1  ;;  %12545 = vmatmul.mubr.f32.vlgmr.msra.gmra.mrb[102].mxu1 %v6453_v8  ;;  %v7601_v8 = vld [vmem:[%s18665_s8 + $0x398] sm:$0xff] }
 0x69d   : > { %v17350_v12 = vadd.f32 %v5658_v53, %v5388_v13  ;;  %v12168_v55 = vpop.f32.mrb[255].mxu0  ;;  %12700 = vmatmul.mubr.f32.vlgmr.msra.gmra.mrb[104].mxu0 %v6821_v51  ;;  %13852 = vmatpush3.bf16.msra.mxu1 %v13851_v57  ;;  %v7600_v57 = vld [vmem:[%s18665_s8 + $0x390] sm:$0xff]  ;;  %v13860_v51 = vpack.c.bf16 %v7237_v35, %v7236_v36  ;;  %v7605_v35 = vld [vmem:[%s18665_s8 + $0x3b8] sm:$0xff] }
 0x69e   : > { %12547 = vmatprep.mubr.msk.f32.mxu1 %vm14006_vm0, %v17124_v46  ;;  %12702 = vmatprep.mubr.msk.f32.mxu0 %vm14006_vm0, %v17124_v46  ;;  %v13878_v13 = vpack.c.bf16 %v7601_v8, %v7600_v57  ;;  %v6456_v53 = vld [vmem:[#allocation2 + $0x2b] sm:$0xff]  ;;  %v7238_v55 = vld [vmem:[%s18665_s8 + $0x340] sm:$0xff] }
 0x69f   : > { %13853 = vmatprep.subr.bf16.mxu1 %v18746_v18  ;;  %v5393_v14 = vpop.f32.mrb[254].mxu1  ;;  %13876 = vmatpush3.bf16.msra.mxu0 %v13875_v33  ;;  %v6824_v24 = vld [vmem:[#allocation2 + $0x2c] sm:$0xff]  ;;  %v6825_v33 = vld [vmem:[#allocation2 + $0x34] sm:$0xff] }
 0x6a0   : > { %v5663_v10 = vpop.f32.mrb[0].mxu0  ;;  %v12016_v34 = vpop.f32.mrb[255].mxu1  ;;  %12548 = vmatmul.mubr.f32.gmra.mrb[104].mxu1 %v6454_v4  ;;  %13877 = vmatprep.subr.bf16.mxu0 %v18746_v18  ;;  %v7239_v4 = vld [vmem:[%s18665_s8 + $0x348] sm:$0xff]  ;;  %v7604_v36 = vld [vmem:[%s18665_s8 + $0x3b0] sm:$0xff] }
 0x6a1   : > { %v17363_v0 = vadd.f32 %v5663_v10, %v5393_v14  ;;  %v12171_v20 = vpop.f32.mrb[1].mxu0  ;;  %12703 = vmatmul.mubr.f32.gmra.mrb[106].mxu0 %v6822_v61  ;;  %12550 = vmatprep.mubr.msk.f32.mxu1 %vm14006_vm0, %v17124_v46  ;;  %v7602_v61 = vld [vmem:[%s18665_s8 + $0x3a0] sm:$0xff]  ;;  %v6457_v34 = vld [vmem:[#allocation2 + $0x33] sm:$0xff]  ;;  %v13884_v57 = vpack.c.bf16 %v7605_v35, %v7604_v36 }
 0x6a2   : > { %12705 = vmatprep.mubr.msk.f32.mxu0 %vm14006_vm0, %v17124_v46  ;;  %13855 = vmatpush3.bf16.msra.mxu1 %v13854_v23  ;;  %v13881_v45 = vpack.c.bf16 %v7603_v63, %v7602_v61  ;;  %v13863_v20 = vpack.c.bf16 %v7239_v4, %v7238_v55  ;;  %v7606_v4 = vld [vmem:[%s18665_s8 + $0x3c0] sm:$0xff] }
 0x6a3   : > { %v5398_v22 = vpop.f32.mrb[0].mxu1  ;;  %13856 = vmatprep.subr.bf16.mxu1 %v18746_v18  ;;  %13879 = vmatpush3.bf16.msra.mxu0 %v13878_v13 }
 0x6a4   : > { %v5668_v30 = vpop.f32.mrb[2].mxu0  ;;  %v12019_v54 = vpop.f32.mrb[1].mxu1  ;;  %12551 = vmatmul.mubr.f32.gmra.mrb[106].mxu1 %v6455_v6  ;;  %13880 = vmatprep.subr.bf16.mxu0 %v18746_v18  ;;  %v7240_v6 = vld [vmem:[%s18665_s8 + $0x350] sm:$0xff] }
 0x6a5   : > { %v17382_v21 = vadd.f32 %v5668_v30, %v5398_v22  ;;  %v12174_v17 = vpop.f32.mrb[3].mxu0  ;;  %12706 = vmatmul.mubr.f32.gmra.mrb[108].mxu0 %v6823_v5  ;;  %12553 = vmatprep.mubr.msk.f32.mxu1 %vm14006_vm0, %v17124_v46  ;;  %v6458_v54 = vld [vmem:[#allocation2 + $0x3b] sm:$0xff] }
 0x6a6   : > { %12708 = vmatprep.mubr.msk.f32.mxu0 %vm14006_vm0, %v17124_v46  ;;  %13858 = vmatpush3.bf16.msra.mxu1 %v13857_v1  ;;  %v7241_v1 = vld [vmem:[%s18665_s8 + $0x358] sm:$0xff] }
 0x6a7   : > { %v5403_v59 = vpop.f32.mrb[2].mxu1  ;;  %13859 = vmatprep.subr.bf16.mxu1 %v18746_v18  ;;  %13882 = vmatpush3.bf16.msra.mxu0 %v13881_v45  ;;  %v13866_v17 = vpack.c.bf16 %v7241_v1, %v7240_v6 }
 0x6a8   : > { %v5673_v28 = vpop.f32.mrb[4].mxu0  ;;  %v12022_v14 = vpop.f32.mrb[3].mxu1  ;;  %12554 = vmatmul.mubr.f32.gmra.mrb[108].mxu1 %v6456_v53  ;;  %13883 = vmatprep.subr.bf16.mxu0 %v18746_v18  ;;  %v6826_v53 = vld [vmem:[#allocation2 + $0x3c] sm:$0xff] }
 0x6a9   : > { %v17402_v23 = vadd.f32 %v5673_v28, %v5403_v59  ;;  %v12177_v10 = vpop.f32.mrb[5].mxu0  ;;  %12709 = vmatmul.mubr.f32.gmra.mrb[110].mxu0 %v6824_v24  ;;  %12556 = vmatprep.mubr.msk.f32.mxu1 %vm14006_vm0, %v17124_v46  ;;  %v7243_v59 = vld [vmem:[%s18665_s8 + $0x368] sm:$0xff] }
 0x6aa   : > { %12711 = vmatprep.mubr.msk.f32.mxu0 %vm14006_vm0, %v17124_v46  ;;  %13861 = vmatpush3.bf16.msra.mxu1 %v13860_v51  ;;  %v7242_v51 = vld [vmem:[%s18665_s8 + $0x360] sm:$0xff]  ;;  %v7607_v14 = vld [vmem:[%s18665_s8 + $0x3c8] sm:$0xff] }
 0x6ab   : > { %v5408_v9 = vpop.f32.mrb[4].mxu1  ;;  %13862 = vmatprep.subr.bf16.mxu1 %v18746_v18  ;;  %v6459_v10 = vld [vmem:[#allocation2 + $0x43] sm:$0xff]  ;;  %v13869_v61 = vpack.c.bf16 %v7243_v59, %v7242_v51  ;;  %13885 = vmatpush3.bf16.msra.mxu0 %v13884_v57  ;;  %v13887_v63 = vpack.c.bf16 %v7607_v14, %v7606_v4  ;;  %v6460_v57 = vld [vmem:[#allocation2 + $0x4b] sm:$0xff] }
 0x6ac   : > { %v5678_v50 = vpop.f32.mrb[6].mxu0  ;;  %v12025_v30 = vpop.f32.mrb[5].mxu1  ;;  %12557 = vmatmul.mubr.f32.gmra.mrb[110].mxu1 %v6457_v34  ;;  %13886 = vmatprep.subr.bf16.mxu0 %v18746_v18  ;;  %v7610_v51 = vld [vmem:[%s18665_s8 + $0x3e0] sm:$0xff]  ;;  %v7611_v59 = vld [vmem:[%s18665_s8 + $0x3e8] sm:$0xff] }
 0x6ad   : > { %v17422_v22 = vadd.f32 %v5678_v50, %v5408_v9  ;;  %v12180_v5 = vpop.f32.mrb[7].mxu0  ;;  %12712 = vmatmul.mubr.f32.gmra.mrb[112].mxu0 %v6825_v33  ;;  %12559 = vmatprep.mubr.msk.f32.mxu1 %vm14006_vm0, %v17124_v46  ;;  %v7244_v9 = vld [vmem:[%s18665_s8 + $0x370] sm:$0xff]  ;;  %v7245_v50 = vld [vmem:[%s18665_s8 + $0x378] sm:$0xff] }
 0x6ae   : > { %12714 = vmatprep.mubr.msk.f32.mxu0 %vm14006_vm0, %v17124_v46  ;;  %13864 = vmatpush3.bf16.msra.mxu1 %v13863_v20  ;;  %v6827_v20 = vld [vmem:[#allocation2 + $0x44] sm:$0xff]  ;;  %v7608_v30 = vld [vmem:[%s18665_s8 + $0x3d0] sm:$0xff]  ;;  %v7609_v5 = vld [vmem:[%s18665_s8 + $0x3d8] sm:$0xff]  ;;  %v13872_v36 = vpack.c.bf16 %v7245_v50, %v7244_v9 }
 0x6af   : > { %v5413_v8 = vpop.f32.mrb[6].mxu1  ;;  %13865 = vmatprep.subr.bf16.mxu1 %v18746_v18  ;;  %13888 = vmatpush3.bf16.msra.mxu0 %v13887_v63  ;;  %v13890_v35 = vpack.c.bf16 %v7609_v5, %v7608_v30  ;;  %v6462_v30 = vld [vmem:[#allocation2 + $0x5b] sm:$0xff] }
 0x6b0   : > { %v5683_v13 = vpop.f32.mrb[8].mxu0  ;;  %v12028_v24 = vpop.f32.mrb[7].mxu1  ;;  %12560 = vmatmul.mubr.f32.gmra.mrb[112].mxu1 %v6458_v54  ;;  %13889 = vmatprep.subr.bf16.mxu0 %v18746_v18  ;;  %v17508_v5 = vld [vmem:[#allocation2 + $0x5c] sm:$0xff] }
 0x6b1   : > { %v17442_v28 = vadd.f32 %v5683_v13, %v5413_v8  ;;  %v12183_v55 = vpop.f32.mrb[9].mxu0  ;;  %12715 = vmatmul.mubr.f32.gmra.mrb[114].mxu0 %v6826_v53  ;;  %12562 = vmatprep.mubr.msk.f32.mxu1 %vm14006_vm0, %v17124_v46  ;;  %v17474_v8 = vld [vmem:[#allocation2 + $0x4c] sm:$0xff] }
 0x6b2   : > { %12717 = vmatprep.mubr.msk.f32.mxu0 %vm14006_vm0, %v17124_v46  ;;  %13867 = vmatpush3.bf16.msra.mxu1 %v13866_v17  ;;  %v13893_v55 = vpack.c.bf16 %v7611_v59, %v7610_v51 }
 0x6b3   : > { %v5418_v45 = vpop.f32.mrb[8].mxu1  ;;  %13868 = vmatprep.subr.bf16.mxu1 %v18746_v18  ;;  %13891 = vmatpush3.bf16.msra.mxu0 %v13890_v35 }
 0x6b4   : > { %v5688_v34 = vpop.f32.mrb[10].mxu0  ;;  %v12031_v6 = vpop.f32.mrb[9].mxu1  ;;  %12563 = vmatmul.mubr.f32.gmra.mrb[114].mxu1 %v6459_v10  ;;  %v6461_v10 = vld [vmem:[#allocation2 + $0x53] sm:$0xff]  ;;  %13892 = vmatprep.subr.bf16.mxu0 %v18746_v18 }
 0x6b5   : > { %v17462_v33 = vadd.f32 %v5688_v34, %v5418_v45  ;;  %v12186_v1 = vpop.f32.mrb[11].mxu0  ;;  %12718 = vmatmul.mubr.f32.gmra.mrb[116].mxu0 %v6827_v20  ;;  %12565 = vmatprep.mubr.msk.f32.mxu1 %vm14006_vm0, %v17124_v46  ;;  %v7612_v34 = vld [vmem:[%s18665_s8 + $0x3f0] sm:$0xff]  ;;  %v7613_v20 = vld [vmem:[%s18665_s8 + $0x3f8] sm:$0xff] }
 0x6b6   : > { %12720 = vmatprep.mubr.msk.f32.mxu0 %vm14006_vm0, %v17124_v46  ;;  %13870 = vmatpush3.bf16.msra.mxu1 %v13869_v61  ;;  %v17491_v61 = vld [vmem:[#allocation2 + $0x54] sm:$0xff]  ;;  %v13896_v50 = vpack.c.bf16 %v7613_v20, %v7612_v34 }
 0x6b7   : > { %v5423_v54 = vpop.f32.mrb[10].mxu1  ;;  %13871 = vmatprep.subr.bf16.mxu1 %v18746_v18  ;;  %13894 = vmatpush3.bf16.msra.mxu0 %v13893_v55 }
 0x6b8   : > { %v5693_v17 = vpop.f32.mrb[12].mxu0  ;;  %v12034_v13 = vpop.f32.mrb[11].mxu1  ;;  %12566 = vmatmul.mubr.f32.gmra.mrb[116].mxu1 %v6460_v57  ;;  %13895 = vmatprep.subr.bf16.mxu0 %v18746_v18 }
 0x6b9   : > { %v12189_v53 = vpop.f32.mrb[13].mxu0  ;;  %12721 = vmatmul.mubr.f32.gmra.mrb[118].mxu0 %v17474_v8  ;;  %v17485_v24 = vadd.f32 %v5693_v17, %v5423_v54  ;;  %12568 = vmatprep.mubr.msk.f32.mxu1 %vm14006_vm0, %v17124_v46  ;;  %v17514_v17 = vld [vmem:[#allocation2] sm:$0xff] }
 0x6ba   : > { %12723 = vmatprep.mubr.msk.f32.mxu0 %vm14006_vm0, %v17124_v46  ;;  %13873 = vmatpush3.bf16.msra.mxu1 %v13872_v36  ;;  %v6463_v13 = vld [vmem:[#allocation2 + $0x63] sm:$0xff] }
 0x6bb   : > { %v5428_v4 = vpop.f32.mrb[12].mxu1  ;;  %13898 = vmatprep.subr.bf16.mxu1 %v18746_v18  ;;  %13897 = vmatpush3.bf16.msra.mxu0 %v13896_v50  ;;  %v17520_v53 = vld [vmem:[#allocation2 + $0x64] sm:$0xff] }
 0x6bc   : > { %v5698_v14 = vpop.f32.mrb[14].mxu0  ;;  %v12037_v63 = vpop.f32.mrb[13].mxu1  ;;  %12569 = vmatmul.mubr.f32.gmra.mrb[118].mxu1 %v6461_v10  ;;  %13922 = vmatprep.subr.bf16.mxu0 %v18746_v18  ;;  %v6464_v10 = vld [vmem:[#allocation2 + $0x6b] sm:$0xff] }
 0x6bd   : > { %v12192_v45 = vpop.f32.mrb[15].mxu0  ;;  %12724 = vmatmul.mubr.f32.gmra.mrb[120].mxu0 %v17491_v61  ;;  %v17502_v9 = vadd.f32 %v5698_v14, %v5428_v4  ;;  %12571 = vmatprep.mubr.msk.f32.mxu1 %vm14006_vm0, %v17124_v46  ;;  %v17530_v63 = vld [vmem:[#allocation2 + $0x6c] sm:$0xff] }
 0x6be   : > { %12726 = vmatprep.mubr.msk.f32.mxu0 %vm14006_vm0, %v17124_v46 }
 0x6bf   : > { %v5433_v6 = vpop.f32.mrb[14].mxu1 }
 0x6c0   : > { %v5703_v1 = vpop.f32.mrb[16].mxu0  ;;  %v12040_v36 = vpop.f32.mrb[15].mxu1  ;;  %12572 = vmatmul.mubr.f32.gmra.mrb[120].mxu1 %v6462_v30  ;;  %v17539_v30 = vld [vmem:[#allocation2 + $0x74] sm:$0xff] }
 0x6c1   : > { %v12195_v35 = vpop.f32.mrb[17].mxu0  ;;  %12727 = vmatmul.mubr.f32.gmra.mrb[122].mxu0 %v17508_v5  ;;  %v17512_v54 = vadd.f32 %v5703_v1, %v5433_v6  ;;  %12574 = vmatprep.mubr.msk.f32.mxu1 %vm14006_vm0, %v17514_v17  ;;  %v6465_v1 = vld [vmem:[#allocation2 + $0x73] sm:$0xff] }
 0x6c2   : > { %12729 = vmatprep.mubr.msk.f32.mxu0 %vm14006_vm0, %v17514_v17 }
 0x6c3   : > { %v5438_v46 = vpop.f32.mrb[16].mxu1 }
 0x6c4   : > { %v5708_v57 = vpop.f32.mrb[18].mxu0  ;;  %v12043_v51 = vpop.f32.mrb[17].mxu1  ;;  %12575 = vmatmul.mubr.f32.gmra.mrb[122].mxu1 %v6463_v13 }
 0x6c5   : > { %v12198_v59 = vpop.f32.mrb[19].mxu0  ;;  %12730 = vmatmul.mubr.f32.gmra.mrb[124].mxu0 %v17520_v53  ;;  %v17524_v55 = vadd.f32 %v5708_v57, %v5438_v46  ;;  %12577 = vmatprep.mubr.msk.f32.mxu1 %vm14006_vm0, %v17514_v17 }
 0x6c6   : > { %12732 = vmatprep.mubr.msk.f32.mxu0 %vm14006_vm0, %v17514_v17  ;;  %v6466_v59 = vld [vmem:[#allocation2 + $0x7b] sm:$0xff] }
 0x6c7   : > { %v5443_v4 = vpop.f32.mrb[18].mxu1 }
 0x6c8   : > { %v5713_v14 = vpop.f32.mrb[20].mxu0  ;;  %v12046_v45 = vpop.f32.mrb[19].mxu1  ;;  %12578 = vmatmul.mubr.f32.gmra.mrb[124].mxu1 %v6464_v10 }
 0x6c9   : > { %v12201_v34 = vpop.f32.mrb[21].mxu0  ;;  %12733 = vmatmul.mubr.f32.gmra.mrb[126].mxu0 %v17530_v63  ;;  %v17533_v20 = vadd.f32 %v5713_v14, %v5443_v4  ;;  %12580 = vmatprep.mubr.msk.f32.mxu1 %vm14006_vm0, %v17514_v17  ;;  %v6834_v4 = vld [vmem:[#allocation2 + $0x7c] sm:$0xff] }
 0x6ca   : > { %12735 = vmatprep.mubr.msk.f32.mxu0 %vm14006_vm0, %v17514_v17 }
 0x6cb   : > { %v5840_v50 = vpop.f32.mrb[20].mxu1 }
 0x6cc   : > { %v6208_v6 = vpop.f32.mrb[22].mxu0  ;;  %v6044_v36 = vadd.f32 %v5840_v50, %v16992_v19  ;;  %v12236_v35 = vpop.f32.mrb[21].mxu1  ;;  %12581 = vmatmul.mubr.f32.gmra.mrb[126].mxu1 %v6465_v1  ;;  %v6835_v1 = vld [vmem:[#allocation2 + $0x84] sm:$0xff] }
 0x6cd   : > { %v12391_v46 = vpop.f32.mrb[23].mxu0  ;;  %12736 = vmatmul.mubr.f32.gmra.mrb[128].mxu0 %v17539_v30  ;;  %12583 = vmatprep.mubr.msk.f32.mxu1 %vm14006_vm0, %v17514_v17 }
 0x6ce   : > { %12738 = vmatprep.mubr.msk.f32.mxu0 %vm14006_vm0, %v17514_v17  ;;  %v17547_v57 = vadd.f32 %v6208_v6, %v6044_v36  ;;  %v6467_v6 = vld [vmem:[#allocation2 + $0x83] sm:$0xff] }
 0x6cf   : > { %v5845_v13 = vpop.f32.mrb[22].mxu1 }
 0x6d0   : > { %v6213_v51 = vpop.f32.mrb[24].mxu0  ;;  %v6045_v14 = vadd.f32 %v5845_v13, %v17006_v26  ;;  %v12239_v19 = vpop.f32.mrb[23].mxu1  ;;  %12584 = vmatmul.mubr.f32.gmra.mrb[128].mxu1 %v6466_v59  ;;  %v6468_v59 = vld [vmem:[#allocation2 + $0x8b] sm:$0xff] }
 0x6d1   : > { %v12394_v10 = vpop.f32.mrb[25].mxu0  ;;  %12739 = vmatmul.mubr.f32.gmra.mrb[130].mxu0 %v6834_v4  ;;  %12586 = vmatprep.mubr.msk.f32.mxu1 %vm14006_vm0, %v17514_v17  ;;  %v6836_v4 = vld [vmem:[#allocation2 + $0x8c] sm:$0xff] }
 0x6d2   : > { %12741 = vmatprep.mubr.msk.f32.mxu0 %vm14006_vm0, %v17514_v17  ;;  %v17554_v45 = vadd.f32 %v6213_v51, %v6045_v14 }
 0x6d3   : > { %v5850_v34 = vpop.f32.mrb[24].mxu1 }
 0x6d4   : > { %v6218_v50 = vpop.f32.mrb[26].mxu0  ;;  %v6046_v36 = vadd.f32 %v5850_v34, %v17176_v60  ;;  %v12242_v35 = vpop.f32.mrb[25].mxu1  ;;  %12587 = vmatmul.mubr.f32.gmra.mrb[130].mxu1 %v6467_v6  ;;  %v6469_v6 = vld [vmem:[#allocation2 + $0x93] sm:$0xff] }
 0x6d5   : > { %v12397_v26 = vpop.f32.mrb[27].mxu0  ;;  %12742 = vmatmul.mubr.f32.gmra.mrb[132].mxu0 %v6835_v1  ;;  %12589 = vmatprep.mubr.msk.f32.mxu1 %vm14006_vm0, %v17514_v17  ;;  %v6837_v1 = vld [vmem:[#allocation2 + $0x94] sm:$0xff] }
 0x6d6   : > { %12744 = vmatprep.mubr.msk.f32.mxu0 %vm14006_vm0, %v17514_v17  ;;  %v17561_v46 = vadd.f32 %v6218_v50, %v6046_v36 }
 0x6d7   : > { %v5855_v13 = vpop.f32.mrb[26].mxu1 }
 0x6d8   : > { %v6223_v51 = vpop.f32.mrb[28].mxu0  ;;  %v6047_v14 = vadd.f32 %v5855_v13, %v17182_v27  ;;  %v12245_v19 = vpop.f32.mrb[27].mxu1  ;;  %12590 = vmatmul.mubr.f32.gmra.mrb[132].mxu1 %v6468_v59  ;;  %v6470_v59 = vld [vmem:[#allocation2 + $0x9b] sm:$0xff] }
 0x6d9   : > { %v12400_v60 = vpop.f32.mrb[29].mxu0  ;;  %12745 = vmatmul.mubr.f32.gmra.mrb[134].mxu0 %v6836_v4  ;;  %12592 = vmatprep.mubr.msk.f32.mxu1 %vm14006_vm0, %v17514_v17  ;;  %v6838_v4 = vld [vmem:[#allocation2 + $0x9c] sm:$0xff] }
 0x6da   : > { %12747 = vmatprep.mubr.msk.f32.mxu0 %vm14006_vm0, %v17514_v17  ;;  %v17568_v10 = vadd.f32 %v6223_v51, %v6047_v14 }
 0x6db   : > { %v5860_v34 = vpop.f32.mrb[28].mxu1 }
 0x6dc   : > { %v6228_v50 = vpop.f32.mrb[30].mxu0  ;;  %v6048_v36 = vadd.f32 %v5860_v34, %v17188_v41  ;;  %v12248_v35 = vpop.f32.mrb[29].mxu1  ;;  %12593 = vmatmul.mubr.f32.gmra.mrb[134].mxu1 %v6469_v6  ;;  %v6471_v6 = vld [vmem:[#allocation2 + $0xa3] sm:$0xff] }
 0x6dd   : > { %v12403_v27 = vpop.f32.mrb[31].mxu0  ;;  %12748 = vmatmul.mubr.f32.gmra.mrb[136].mxu0 %v6837_v1  ;;  %12595 = vmatprep.mubr.msk.f32.mxu1 %vm14006_vm0, %v17514_v17  ;;  %v6839_v1 = vld [vmem:[#allocation2 + $0xa4] sm:$0xff] }
 0x6de   : > { %12750 = vmatprep.mubr.msk.f32.mxu0 %vm14006_vm0, %v17514_v17  ;;  %v17575_v26 = vadd.f32 %v6228_v50, %v6048_v36 }
 0x6df   : > { %v5865_v13 = vpop.f32.mrb[30].mxu1 }
 0x6e0   : > { %v6233_v51 = vpop.f32.mrb[32].mxu0  ;;  %v6049_v14 = vadd.f32 %v5865_v13, %v17194_v38  ;;  %v12251_v19 = vpop.f32.mrb[31].mxu1  ;;  %12596 = vmatmul.mubr.f32.gmra.mrb[136].mxu1 %v6470_v59  ;;  %v6472_v59 = vld [vmem:[#allocation2 + $0xab] sm:$0xff] }
 0x6e1   : > { %v12406_v41 = vpop.f32.mrb[33].mxu0  ;;  %12751 = vmatmul.mubr.f32.gmra.mrb[138].mxu0 %v6838_v4  ;;  %12598 = vmatprep.mubr.msk.f32.mxu1 %vm14006_vm0, %v17514_v17  ;;  %v6840_v4 = vld [vmem:[#allocation2 + $0xac] sm:$0xff] }
 0x6e2   : > { %12753 = vmatprep.mubr.msk.f32.mxu0 %vm14006_vm0, %v17514_v17  ;;  %v17582_v60 = vadd.f32 %v6233_v51, %v6049_v14 }
 0x6e3   : > { %v5870_v34 = vpop.f32.mrb[32].mxu1 }
 0x6e4   : > { %v6238_v50 = vpop.f32.mrb[34].mxu0  ;;  %v6050_v36 = vadd.f32 %v5870_v34, %v17200_v25  ;;  %v12254_v35 = vpop.f32.mrb[33].mxu1  ;;  %12599 = vmatmul.mubr.f32.gmra.mrb[138].mxu1 %v6471_v6  ;;  %v6473_v6 = vld [vmem:[#allocation2 + $0xb3] sm:$0xff] }
 0x6e5   : > { %v12409_v38 = vpop.f32.mrb[35].mxu0  ;;  %12754 = vmatmul.mubr.f32.gmra.mrb[140].mxu0 %v6839_v1  ;;  %12601 = vmatprep.mubr.msk.f32.mxu1 %vm14006_vm0, %v17514_v17  ;;  %v6841_v1 = vld [vmem:[#allocation2 + $0xb4] sm:$0xff] }
 0x6e6   : > { %12756 = vmatprep.mubr.msk.f32.mxu0 %vm14006_vm0, %v17514_v17  ;;  %v17589_v27 = vadd.f32 %v6238_v50, %v6050_v36 }
 0x6e7   : > { %v5875_v13 = vpop.f32.mrb[34].mxu1 }
 0x6e8   : > { %v6243_v51 = vpop.f32.mrb[36].mxu0  ;;  %v6051_v14 = vadd.f32 %v5875_v13, %v17206_v37  ;;  %v12257_v19 = vpop.f32.mrb[35].mxu1  ;;  %12602 = vmatmul.mubr.f32.gmra.mrb[140].mxu1 %v6472_v59  ;;  %v6474_v59 = vld [vmem:[#allocation2 + $0xbb] sm:$0xff] }
 0x6e9   : > { %v12412_v25 = vpop.f32.mrb[37].mxu0  ;;  %12757 = vmatmul.mubr.f32.gmra.mrb[142].mxu0 %v6840_v4  ;;  %12604 = vmatprep.mubr.msk.f32.mxu1 %vm14006_vm0, %v17514_v17  ;;  %v6842_v4 = vld [vmem:[#allocation2 + $0xbc] sm:$0xff] }
 0x6ea   : > { %12759 = vmatprep.mubr.msk.f32.mxu0 %vm14006_vm0, %v17514_v17  ;;  %v17596_v41 = vadd.f32 %v6243_v51, %v6051_v14 }
 0x6eb   : > { %v5880_v34 = vpop.f32.mrb[36].mxu1 }
 0x6ec   : > { %v6248_v50 = vpop.f32.mrb[38].mxu0  ;;  %v6052_v36 = vadd.f32 %v5880_v34, %v17212_v44  ;;  %v12260_v35 = vpop.f32.mrb[37].mxu1  ;;  %12605 = vmatmul.mubr.f32.gmra.mrb[142].mxu1 %v6473_v6  ;;  %v6475_v6 = vld [vmem:[#allocation2 + $0xc3] sm:$0xff] }
 0x6ed   : > { %v12415_v37 = vpop.f32.mrb[39].mxu0  ;;  %12760 = vmatmul.mubr.f32.gmra.mrb[144].mxu0 %v6841_v1  ;;  %12607 = vmatprep.mubr.msk.f32.mxu1 %vm14006_vm0, %v17514_v17  ;;  %v6843_v1 = vld [vmem:[#allocation2 + $0xc4] sm:$0xff] }
 0x6ee   : > { %12762 = vmatprep.mubr.msk.f32.mxu0 %vm14006_vm0, %v17514_v17  ;;  %v17603_v38 = vadd.f32 %v6248_v50, %v6052_v36 }
 0x6ef   : > { %v5885_v13 = vpop.f32.mrb[38].mxu1 }
 0x6f0   : > { %v6253_v51 = vpop.f32.mrb[40].mxu0  ;;  %v6053_v14 = vadd.f32 %v5885_v13, %v17218_v11  ;;  %v12263_v19 = vpop.f32.mrb[39].mxu1  ;;  %12608 = vmatmul.mubr.f32.gmra.mrb[144].mxu1 %v6474_v59  ;;  %v6476_v59 = vld [vmem:[#allocation2 + $0xcb] sm:$0xff] }
 0x6f1   : > { %v12418_v44 = vpop.f32.mrb[41].mxu0  ;;  %12763 = vmatmul.mubr.f32.gmra.mrb[146].mxu0 %v6842_v4  ;;  %12610 = vmatprep.mubr.msk.f32.mxu1 %vm14006_vm0, %v17514_v17  ;;  %v6844_v4 = vld [vmem:[#allocation2 + $0xcc] sm:$0xff] }
 0x6f2   : > { %12765 = vmatprep.mubr.msk.f32.mxu0 %vm14006_vm0, %v17514_v17  ;;  %v17610_v25 = vadd.f32 %v6253_v51, %v6053_v14 }
 0x6f3   : > { %v5890_v34 = vpop.f32.mrb[40].mxu1 }
 0x6f4   : > { %v6258_v50 = vpop.f32.mrb[42].mxu0  ;;  %v6054_v36 = vadd.f32 %v5890_v34, %v17224_v58  ;;  %v12266_v35 = vpop.f32.mrb[41].mxu1  ;;  %12611 = vmatmul.mubr.f32.gmra.mrb[146].mxu1 %v6475_v6  ;;  %v6477_v6 = vld [vmem:[#allocation2 + $0xd3] sm:$0xff] }
 0x6f5   : > { %v12421_v11 = vpop.f32.mrb[43].mxu0  ;;  %12766 = vmatmul.mubr.f32.gmra.mrb[148].mxu0 %v6843_v1  ;;  %12613 = vmatprep.mubr.msk.f32.mxu1 %vm14006_vm0, %v17514_v17  ;;  %v6845_v1 = vld [vmem:[#allocation2 + $0xd4] sm:$0xff] }
 0x6f6   : > { %12768 = vmatprep.mubr.msk.f32.mxu0 %vm14006_vm0, %v17514_v17  ;;  %v17617_v37 = vadd.f32 %v6258_v50, %v6054_v36 }
 0x6f7   : > { %v5895_v13 = vpop.f32.mrb[42].mxu1 }
 0x6f8   : > { %v6263_v51 = vpop.f32.mrb[44].mxu0  ;;  %v6055_v14 = vadd.f32 %v5895_v13, %v17230_v32  ;;  %v12269_v19 = vpop.f32.mrb[43].mxu1  ;;  %12614 = vmatmul.mubr.f32.gmra.mrb[148].mxu1 %v6476_v59  ;;  %v6478_v59 = vld [vmem:[#allocation2 + $0xdb] sm:$0xff] }
 0x6f9   : > { %v12424_v58 = vpop.f32.mrb[45].mxu0  ;;  %12769 = vmatmul.mubr.f32.gmra.mrb[150].mxu0 %v6844_v4  ;;  %12616 = vmatprep.mubr.msk.f32.mxu1 %vm14006_vm0, %v17514_v17  ;;  %v6846_v4 = vld [vmem:[#allocation2 + $0xdc] sm:$0xff] }
 0x6fa   : > { %12771 = vmatprep.mubr.msk.f32.mxu0 %vm14006_vm0, %v17514_v17  ;;  %v17624_v44 = vadd.f32 %v6263_v51, %v6055_v14 }
 0x6fb   : > { %v5900_v34 = vpop.f32.mrb[44].mxu1 }
 0x6fc   : > { %v6268_v50 = vpop.f32.mrb[46].mxu0  ;;  %v6056_v36 = vadd.f32 %v5900_v34, %v17236_v48  ;;  %v12272_v35 = vpop.f32.mrb[45].mxu1  ;;  %12617 = vmatmul.mubr.f32.gmra.mrb[150].mxu1 %v6477_v6  ;;  %v6479_v6 = vld [vmem:[#allocation2 + $0xe3] sm:$0xff] }
 0x6fd   : > { %v12427_v32 = vpop.f32.mrb[47].mxu0  ;;  %12772 = vmatmul.mubr.f32.gmra.mrb[152].mxu0 %v6845_v1  ;;  %12619 = vmatprep.mubr.msk.f32.mxu1 %vm14006_vm0, %v17514_v17  ;;  %v6847_v1 = vld [vmem:[#allocation2 + $0xe4] sm:$0xff] }
 0x6fe   : > { %12774 = vmatprep.mubr.msk.f32.mxu0 %vm14006_vm0, %v17514_v17  ;;  %v17631_v11 = vadd.f32 %v6268_v50, %v6056_v36 }
 0x6ff   : > { %v5905_v13 = vpop.f32.mrb[46].mxu1 }
 0x700   : > { %v6273_v51 = vpop.f32.mrb[48].mxu0  ;;  %v6057_v14 = vadd.f32 %v5905_v13, %v17242_v16  ;;  %v12275_v19 = vpop.f32.mrb[47].mxu1  ;;  %12620 = vmatmul.mubr.f32.gmra.mrb[152].mxu1 %v6478_v59  ;;  %v6480_v59 = vld [vmem:[#allocation2 + $0xeb] sm:$0xff] }
 0x701   : > { %v12430_v48 = vpop.f32.mrb[49].mxu0  ;;  %12775 = vmatmul.mubr.f32.gmra.mrb[154].mxu0 %v6846_v4  ;;  %12622 = vmatprep.mubr.msk.f32.mxu1 %vm14006_vm0, %v17514_v17  ;;  %v6848_v4 = vld [vmem:[#allocation2 + $0xec] sm:$0xff] }
 0x702   : > { %12777 = vmatprep.mubr.msk.f32.mxu0 %vm14006_vm0, %v17514_v17  ;;  %v17638_v58 = vadd.f32 %v6273_v51, %v6057_v14 }
 0x703   : > { %v5910_v34 = vpop.f32.mrb[48].mxu1 }
 0x704   : > { %v6278_v50 = vpop.f32.mrb[50].mxu0  ;;  %v6058_v36 = vadd.f32 %v5910_v34, %v17248_v52  ;;  %v12278_v35 = vpop.f32.mrb[49].mxu1  ;;  %12623 = vmatmul.mubr.f32.gmra.mrb[154].mxu1 %v6479_v6  ;;  %v6481_v6 = vld [vmem:[#allocation2 + $0xf3] sm:$0xff] }
 0x705   : > { %v12433_v16 = vpop.f32.mrb[51].mxu0  ;;  %12778 = vmatmul.mubr.f32.gmra.mrb[156].mxu0 %v6847_v1  ;;  %12625 = vmatprep.mubr.msk.f32.mxu1 %vm14006_vm0, %v17514_v17  ;;  %v6849_v1 = vld [vmem:[#allocation2 + $0xf4] sm:$0xff] }
 0x706   : > { %12780 = vmatprep.mubr.msk.f32.mxu0 %vm14006_vm0, %v17514_v17  ;;  %v17645_v32 = vadd.f32 %v6278_v50, %v6058_v36 }
 0x707   : > { %v5915_v13 = vpop.f32.mrb[50].mxu1 }
 0x708   : > { %v6283_v51 = vpop.f32.mrb[52].mxu0  ;;  %v6059_v14 = vadd.f32 %v5915_v13, %v17254_v42  ;;  %v12281_v19 = vpop.f32.mrb[51].mxu1  ;;  %12626 = vmatmul.mubr.f32.gmra.mrb[156].mxu1 %v6480_v59  ;;  %v6482_v59 = vld [vmem:[#allocation2 + $0xfb] sm:$0xff] }
 0x709   : > { %v12436_v52 = vpop.f32.mrb[53].mxu0  ;;  %12781 = vmatmul.mubr.f32.gmra.mrb[158].mxu0 %v6848_v4  ;;  %12628 = vmatprep.mubr.msk.f32.mxu1 %vm14006_vm0, %v17514_v17  ;;  %v6850_v4 = vld [vmem:[#allocation2 + $0xfc] sm:$0xff] }
 0x70a   : > { %12783 = vmatprep.mubr.msk.f32.mxu0 %vm14006_vm0, %v17514_v17  ;;  %v17652_v48 = vadd.f32 %v6283_v51, %v6059_v14 }
 0x70b   : > { %v5920_v34 = vpop.f32.mrb[52].mxu1 }
 0x70c   : > { %v6288_v50 = vpop.f32.mrb[54].mxu0  ;;  %v6060_v36 = vadd.f32 %v5920_v34, %v17260_v43  ;;  %v12284_v35 = vpop.f32.mrb[53].mxu1  ;;  %12629 = vmatmul.mubr.f32.gmra.mrb[158].mxu1 %v6481_v6  ;;  %v6483_v6 = vld [vmem:[#allocation2 + $0x103] sm:$0xff] }
 0x70d   : > { %v12439_v42 = vpop.f32.mrb[55].mxu0  ;;  %12784 = vmatmul.mubr.f32.gmra.mrb[160].mxu0 %v6849_v1  ;;  %12631 = vmatprep.mubr.msk.f32.mxu1 %vm14006_vm0, %v17514_v17  ;;  %v6851_v1 = vld [vmem:[#allocation2 + $0x104] sm:$0xff] }
 0x70e   : > { %12786 = vmatprep.mubr.msk.f32.mxu0 %vm14006_vm0, %v17514_v17  ;;  %v17659_v16 = vadd.f32 %v6288_v50, %v6060_v36 }
 0x70f   : > { %v5925_v13 = vpop.f32.mrb[54].mxu1 }
 0x710   : > { %v6293_v51 = vpop.f32.mrb[56].mxu0  ;;  %v6061_v14 = vadd.f32 %v5925_v13, %v17266_v62  ;;  %v12287_v19 = vpop.f32.mrb[55].mxu1  ;;  %12632 = vmatmul.mubr.f32.gmra.mrb[160].mxu1 %v6482_v59  ;;  %v6484_v59 = vld [vmem:[#allocation2 + $0x10b] sm:$0xff] }
 0x711   : > { %v12442_v43 = vpop.f32.mrb[57].mxu0  ;;  %12787 = vmatmul.mubr.f32.gmra.mrb[162].mxu0 %v6850_v4  ;;  %12634 = vmatprep.mubr.msk.f32.mxu1 %vm14006_vm0, %v17514_v17  ;;  %v6852_v4 = vld [vmem:[#allocation2 + $0x10c] sm:$0xff] }
 0x712   : > { %12789 = vmatprep.mubr.msk.f32.mxu0 %vm14006_vm0, %v17514_v17  ;;  %v17666_v52 = vadd.f32 %v6293_v51, %v6061_v14 }
 0x713   : > { %v5930_v34 = vpop.f32.mrb[56].mxu1 }
 0x714   : > { %v6298_v50 = vpop.f32.mrb[58].mxu0  ;;  %v6062_v36 = vadd.f32 %v5930_v34, %v17272_v49  ;;  %v12290_v35 = vpop.f32.mrb[57].mxu1  ;;  %12635 = vmatmul.mubr.f32.gmra.mrb[162].mxu1 %v6483_v6  ;;  %v6485_v6 = vld [vmem:[#allocation2 + $0x113] sm:$0xff] }
 0x715   : > { %v12445_v62 = vpop.f32.mrb[59].mxu0  ;;  %12790 = vmatmul.mubr.f32.gmra.mrb[164].mxu0 %v6851_v1  ;;  %12637 = vmatprep.mubr.msk.f32.mxu1 %vm14006_vm0, %v17514_v17  ;;  %v6853_v1 = vld [vmem:[#allocation2 + $0x114] sm:$0xff] }
 0x716   : > { %12792 = vmatprep.mubr.msk.f32.mxu0 %vm14006_vm0, %v17514_v17  ;;  %v17673_v42 = vadd.f32 %v6298_v50, %v6062_v36 }
 0x717   : > { %v5935_v13 = vpop.f32.mrb[58].mxu1 }
 0x718   : > { %v6303_v51 = vpop.f32.mrb[60].mxu0  ;;  %v6063_v14 = vadd.f32 %v5935_v13, %v17278_v31  ;;  %v12293_v19 = vpop.f32.mrb[59].mxu1  ;;  %12638 = vmatmul.mubr.f32.gmra.mrb[164].mxu1 %v6484_v59  ;;  %v6486_v59 = vld [vmem:[#allocation2 + $0x11b] sm:$0xff] }
 0x719   : > { %v12448_v49 = vpop.f32.mrb[61].mxu0  ;;  %12793 = vmatmul.mubr.f32.gmra.mrb[166].mxu0 %v6852_v4  ;;  %12640 = vmatprep.mubr.msk.f32.mxu1 %vm14006_vm0, %v17514_v17  ;;  %v6854_v4 = vld [vmem:[#allocation2 + $0x11c] sm:$0xff] }
 0x71a   : > { %12795 = vmatprep.mubr.msk.f32.mxu0 %vm14006_vm0, %v17514_v17  ;;  %v17680_v43 = vadd.f32 %v6303_v51, %v6063_v14 }
 0x71b   : > { %v5940_v34 = vpop.f32.mrb[60].mxu1 }
 0x71c   : > { %v6308_v50 = vpop.f32.mrb[62].mxu0  ;;  %v6064_v36 = vadd.f32 %v5940_v34, %v17284_v3  ;;  %v12296_v35 = vpop.f32.mrb[61].mxu1  ;;  %12641 = vmatmul.mubr.f32.gmra.mrb[166].mxu1 %v6485_v6  ;;  %v6487_v6 = vld [vmem:[#allocation2 + $0x123] sm:$0xff] }
 0x71d   : > { %v12451_v31 = vpop.f32.mrb[63].mxu0  ;;  %12796 = vmatmul.mubr.f32.gmra.mrb[168].mxu0 %v6853_v1  ;;  %12643 = vmatprep.mubr.msk.f32.mxu1 %vm14006_vm0, %v17514_v17  ;;  %v6855_v1 = vld [vmem:[#allocation2 + $0x124] sm:$0xff] }
 0x71e   : > { %12798 = vmatprep.mubr.msk.f32.mxu0 %vm14006_vm0, %v17514_v17  ;;  %v17687_v62 = vadd.f32 %v6308_v50, %v6064_v36 }
 0x71f   : > { %v5945_v13 = vpop.f32.mrb[62].mxu1 }
 0x720   : > { %v6313_v51 = vpop.f32.mrb[64].mxu0  ;;  %v6065_v14 = vadd.f32 %v5945_v13, %v17290_v39  ;;  %v12299_v19 = vpop.f32.mrb[63].mxu1  ;;  %12644 = vmatmul.mubr.f32.gmra.mrb[168].mxu1 %v6486_v59  ;;  %v6488_v59 = vld [vmem:[#allocation2 + $0x12b] sm:$0xff] }
 0x721   : > { %v12454_v3 = vpop.f32.mrb[65].mxu0  ;;  %12799 = vmatmul.mubr.f32.gmra.mrb[170].mxu0 %v6854_v4  ;;  %12646 = vmatprep.mubr.msk.f32.mxu1 %vm14006_vm0, %v17514_v17  ;;  %v6856_v4 = vld [vmem:[#allocation2 + $0x12c] sm:$0xff] }
 0x722   : > { %12801 = vmatprep.mubr.msk.f32.mxu0 %vm14006_vm0, %v17514_v17  ;;  %v17694_v49 = vadd.f32 %v6313_v51, %v6065_v14 }
 0x723   : > { %v5950_v34 = vpop.f32.mrb[64].mxu1 }
 0x724   : > { %v6318_v50 = vpop.f32.mrb[66].mxu0  ;;  %v6066_v36 = vadd.f32 %v5950_v34, %v17296_v15  ;;  %v12302_v35 = vpop.f32.mrb[65].mxu1  ;;  %12647 = vmatmul.mubr.f32.gmra.mrb[170].mxu1 %v6487_v6  ;;  %v6489_v6 = vld [vmem:[#allocation2 + $0x133] sm:$0xff] }
 0x725   : > { %v12457_v39 = vpop.f32.mrb[67].mxu0  ;;  %12802 = vmatmul.mubr.f32.gmra.mrb[172].mxu0 %v6855_v1  ;;  %12649 = vmatprep.mubr.msk.f32.mxu1 %vm14006_vm0, %v17514_v17  ;;  %v6857_v1 = vld [vmem:[#allocation2 + $0x134] sm:$0xff] }
 0x726   : > { %12804 = vmatprep.mubr.msk.f32.mxu0 %vm14006_vm0, %v17514_v17  ;;  %v17701_v31 = vadd.f32 %v6318_v50, %v6066_v36 }
 0x727   : > { %v5955_v13 = vpop.f32.mrb[66].mxu1 }
 0x728   : > { %v6323_v51 = vpop.f32.mrb[68].mxu0  ;;  %v6067_v14 = vadd.f32 %v5955_v13, %v17302_v40  ;;  %v12305_v19 = vpop.f32.mrb[67].mxu1  ;;  %12650 = vmatmul.mubr.f32.gmra.mrb[172].mxu1 %v6488_v59  ;;  %v6490_v59 = vld [vmem:[#allocation2 + $0x13b] sm:$0xff] }
 0x729   : > { %v12460_v15 = vpop.f32.mrb[69].mxu0  ;;  %12805 = vmatmul.mubr.f32.gmra.mrb[174].mxu0 %v6856_v4  ;;  %12652 = vmatprep.mubr.msk.f32.mxu1 %vm14006_vm0, %v17514_v17  ;;  %v6858_v4 = vld [vmem:[#allocation2 + $0x13c] sm:$0xff] }
 0x72a   : > { %12807 = vmatprep.mubr.msk.f32.mxu0 %vm14006_vm0, %v17514_v17  ;;  %v17708_v3 = vadd.f32 %v6323_v51, %v6067_v14 }
 0x72b   : > { %v5960_v34 = vpop.f32.mrb[68].mxu1 }
 0x72c   : > { %v6328_v50 = vpop.f32.mrb[70].mxu0  ;;  %v6068_v36 = vadd.f32 %v5960_v34, %v17308_v29  ;;  %v12308_v35 = vpop.f32.mrb[69].mxu1  ;;  %12653 = vmatmul.mubr.f32.gmra.mrb[174].mxu1 %v6489_v6  ;;  %v6491_v6 = vld [vmem:[#allocation2 + $0x143] sm:$0xff] }
 0x72d   : > { %v12463_v40 = vpop.f32.mrb[71].mxu0  ;;  %12808 = vmatmul.mubr.f32.gmra.mrb[176].mxu0 %v6857_v1  ;;  %12655 = vmatprep.mubr.msk.f32.mxu1 %vm14006_vm0, %v17514_v17  ;;  %v6859_v1 = vld [vmem:[#allocation2 + $0x144] sm:$0xff] }
 0x72e   : > { %12810 = vmatprep.mubr.msk.f32.mxu0 %vm14006_vm0, %v17514_v17  ;;  %v17715_v39 = vadd.f32 %v6328_v50, %v6068_v36 }
 0x72f   : > { %v5965_v13 = vpop.f32.mrb[70].mxu1 }
 0x730   : > { %v6333_v51 = vpop.f32.mrb[72].mxu0  ;;  %v6069_v14 = vadd.f32 %v5965_v13, %v17314_v2  ;;  %v12311_v19 = vpop.f32.mrb[71].mxu1  ;;  %12656 = vmatmul.mubr.f32.gmra.mrb[176].mxu1 %v6490_v59  ;;  %v6492_v59 = vld [vmem:[#allocation2 + $0x14b] sm:$0xff] }
 0x731   : > { %v12466_v29 = vpop.f32.mrb[73].mxu0  ;;  %12811 = vmatmul.mubr.f32.gmra.mrb[178].mxu0 %v6858_v4  ;;  %12658 = vmatprep.mubr.msk.f32.mxu1 %vm14006_vm0, %v17514_v17  ;;  %v6860_v4 = vld [vmem:[#allocation2 + $0x14c] sm:$0xff] }
 0x732   : > { %12813 = vmatprep.mubr.msk.f32.mxu0 %vm14006_vm0, %v17514_v17  ;;  %v17722_v15 = vadd.f32 %v6333_v51, %v6069_v14  ;;  %v7966_v29 = vld [vmem:[%s18665_s8 + $0x400] sm:$0xff] }
 0x733   : > { %v5970_v34 = vpop.f32.mrb[72].mxu1 }
 0x734   : > { %v6338_v50 = vpop.f32.mrb[74].mxu0  ;;  %v6070_v36 = vadd.f32 %v5970_v34, %v17320_v7  ;;  %v12314_v35 = vpop.f32.mrb[73].mxu1  ;;  %12659 = vmatmul.mubr.f32.gmra.mrb[178].mxu1 %v6491_v6  ;;  %v7967_v34 = vld [vmem:[%s18665_s8 + $0x408] sm:$0xff] }
 0x735   : > { %v12469_v2 = vpop.f32.mrb[75].mxu0  ;;  %12814 = vmatmul.mubr.f32.gmra.mrb[180].mxu0 %v6859_v1  ;;  %12661 = vmatprep.mubr.msk.f32.mxu1 %vm14006_vm0, %v17514_v17  ;;  %v6493_v1 = vld [vmem:[#allocation2 + $0x153] sm:$0xff] }
 0x736   : > { %12816 = vmatprep.mubr.msk.f32.mxu0 %vm14006_vm0, %v17514_v17  ;;  %v17729_v40 = vadd.f32 %v6338_v50, %v6070_v36  ;;  %v6861_v36 = vld [vmem:[#allocation2 + $0x154] sm:$0xff] }
 0x737   : > { %v5975_v13 = vpop.f32.mrb[74].mxu1 }
 0x738   : > { %v6343_v51 = vpop.f32.mrb[76].mxu0  ;;  %v6071_v14 = vadd.f32 %v5975_v13, %v17326_v47  ;;  %v12317_v19 = vpop.f32.mrb[75].mxu1  ;;  %12662 = vmatmul.mubr.f32.gmra.mrb[180].mxu1 %v6492_v59  ;;  %v13899_v59 = vpack.c.bf16 %v7967_v34, %v7966_v29 }
 0x739   : > { %v12472_v7 = vpop.f32.mrb[77].mxu0  ;;  %12817 = vmatmul.mubr.f32.gmra.mrb[182].mxu0 %v6860_v4  ;;  %12664 = vmatprep.mubr.msk.f32.mxu1 %vm14006_vm0, %v17514_v17  ;;  %v7557_v19 = vld [vmem:[#allocation2 + $0x25] sm:$0xff] }
 0x73a   : > { %12819 = vmatprep.mubr.msk.f32.mxu0 %vm14006_vm0, %v17514_v17  ;;  %v17742_v50 = vadd.f32 %v6343_v51, %v6071_v14  ;;  %v7969_v7 = vld [vmem:[%s18665_s8 + $0x418] sm:$0xff] }
 0x73b   : > { %v5980_v47 = vpop.f32.mrb[76].mxu1 }
 0x73c   : > { %v6348_v6 = vpop.f32.mrb[78].mxu0  ;;  %v6072_v35 = vadd.f32 %v5980_v47, %v17338_v56  ;;  %v12320_v2 = vpop.f32.mrb[77].mxu1  ;;  %12665 = vmatmul.mubr.f32.gmra.mrb[182].mxu1 %v6493_v1  ;;  %v7968_v56 = vld [vmem:[%s18665_s8 + $0x410] sm:$0xff] }
 0x73d   : > { %v12475_v13 = vpop.f32.mrb[79].mxu0  ;;  %12820 = vmatmul.mubr.f32.gmra.mrb[184].mxu0 %v6861_v36  ;;  %12854 = vmatprep.mubr.msk.f32.mxu1 %vm14006_vm0, %v17514_v17  ;;  %v13988_v2 = vld [vmem:[#allocation2 + $0x24] sm:$0xff]  ;;  %v13902_v29 = vpack.c.bf16 %v7969_v7, %v7968_v56 }
 0x73e   : > { %13009 = vmatprep.mubr.msk.f32.mxu0 %vm14006_vm0, %v17514_v17  ;;  %v17749_v4 = vadd.f32 %v6348_v6, %v6072_v35  ;;  %v7970_v13 = vld [vmem:[%s18665_s8 + $0x420] sm:$0xff] }
 0x73f   : > { %v5985_v51 = vpop.f32.mrb[78].mxu1 }
 0x740   : > { %v6353_v14 = vpop.f32.mrb[80].mxu0  ;;  %v6073_v47 = vadd.f32 %v5985_v51, %v17350_v12  ;;  %v12323_v1 = vpop.f32.mrb[79].mxu1  ;;  %12855 = vmatmul.mubr.f32.vlgmr.msra.gmra.mrb[184].mxu1 %v13988_v2  ;;  %v7558_v12 = vld [vmem:[#allocation2 + $0x2d] sm:$0xff]  ;;  %v7559_v2 = vld [vmem:[#allocation2 + $0x35] sm:$0xff] }
 0x741   : > { %v12478_v36 = vpop.f32.mrb[81].mxu0  ;;  %13010 = vmatmul.mubr.f32.vlgmr.msra.gmra.mrb[186].mxu0 %v7557_v19  ;;  %13900 = vmatpush3.bf16.msra.mxu1 %v13899_v59  ;;  %v7971_v59 = vld [vmem:[%s18665_s8 + $0x428] sm:$0xff] }
 0x742   : > { %12857 = vmatprep.mubr.msk.f32.mxu1 %vm14006_vm0, %v17514_v17  ;;  %13012 = vmatprep.mubr.msk.f32.mxu0 %vm14006_vm0, %v17514_v17  ;;  %v17763_v34 = vadd.f32 %v6353_v14, %v6073_v47  ;;  %v13989_v36 = vld [vmem:[#allocation2 + $0x2c] sm:$0xff]  ;;  %v13905_v14 = vpack.c.bf16 %v7971_v59, %v7970_v13  ;;  %v13990_v13 = vld [vmem:[#allocation2 + $0x34] sm:$0xff] }
 0x743   : > { %13901 = vmatprep.subr.bf16.mxu1 %v18746_v18  ;;  %v5990_v6 = vpop.f32.mrb[80].mxu1 }
 0x744   : > { %v6358_v35 = vpop.f32.mrb[82].mxu0  ;;  %v6074_v51 = vadd.f32 %v5990_v6, %v17363_v0  ;;  %v12326_v19 = vpop.f32.mrb[81].mxu1  ;;  %12858 = vmatmul.mubr.f32.gmra.mrb[186].mxu1 %v13989_v36  ;;  %v7972_v0 = vld [vmem:[%s18665_s8 + $0x430] sm:$0xff]  ;;  %v7973_v6 = vld [vmem:[%s18665_s8 + $0x438] sm:$0xff] }
 0x745   : > { %v12481_v1 = vpop.f32.mrb[83].mxu0  ;;  %13013 = vmatmul.mubr.f32.gmra.mrb[188].mxu0 %v7558_v12  ;;  %12860 = vmatprep.mubr.msk.f32.mxu1 %vm14006_vm0, %v17514_v17  ;;  %v7560_v36 = vld [vmem:[#allocation2 + $0x3d] sm:$0xff] }
 0x746   : > { %13015 = vmatprep.mubr.msk.f32.mxu0 %vm14006_vm0, %v17514_v17  ;;  %13903 = vmatpush3.bf16.msra.mxu1 %v13902_v29  ;;  %v17776_v56 = vadd.f32 %v6358_v35, %v6074_v51  ;;  %v13908_v35 = vpack.c.bf16 %v7973_v6, %v7972_v0  ;;  %v13991_v0 = vld [vmem:[#allocation2 + $0x3c] sm:$0xff] }
 0x747   : > { %v5995_v7 = vpop.f32.mrb[82].mxu1  ;;  %13904 = vmatprep.subr.bf16.mxu1 %v18746_v18 }
 0x748   : > { %v6363_v47 = vpop.f32.mrb[84].mxu0  ;;  %v6075_v12 = vadd.f32 %v5995_v7, %v17382_v21  ;;  %v12329_v19 = vpop.f32.mrb[83].mxu1  ;;  %12861 = vmatmul.mubr.f32.gmra.mrb[188].mxu1 %v13990_v13  ;;  %v7974_v21 = vld [vmem:[%s18665_s8 + $0x440] sm:$0xff]  ;;  %v7975_v7 = vld [vmem:[%s18665_s8 + $0x448] sm:$0xff] }
 0x749   : > { %v12484_v29 = vpop.f32.mrb[85].mxu0  ;;  %13016 = vmatmul.mubr.f32.gmra.mrb[190].mxu0 %v7559_v2  ;;  %12863 = vmatprep.mubr.msk.f32.mxu1 %vm14006_vm0, %v17514_v17  ;;  %v7561_v13 = vld [vmem:[#allocation2 + $0x45] sm:$0xff] }
 0x74a   : > { %13018 = vmatprep.mubr.msk.f32.mxu0 %vm14006_vm0, %v17514_v17  ;;  %13906 = vmatpush3.bf16.msra.mxu1 %v13905_v14  ;;  %v17790_v59 = vadd.f32 %v6363_v47, %v6075_v12  ;;  %v13911_v47 = vpack.c.bf16 %v7975_v7, %v7974_v21  ;;  %v13992_v21 = vld [vmem:[#allocation2 + $0x44] sm:$0xff] }
 0x74b   : > { %v6000_v51 = vpop.f32.mrb[84].mxu1  ;;  %13907 = vmatprep.subr.bf16.mxu1 %v18746_v18 }
 0x74c   : > { %v6368_v1 = vpop.f32.mrb[86].mxu0  ;;  %v6076_v2 = vadd.f32 %v6000_v51, %v17402_v23  ;;  %v12332_v19 = vpop.f32.mrb[85].mxu1  ;;  %12864 = vmatmul.mubr.f32.gmra.mrb[190].mxu1 %v13991_v0  ;;  %v7976_v23 = vld [vmem:[%s18665_s8 + $0x450] sm:$0xff]  ;;  %v7977_v51 = vld [vmem:[%s18665_s8 + $0x458] sm:$0xff] }
 0x74d   : > { %v12487_v14 = vpop.f32.mrb[87].mxu0  ;;  %13019 = vmatmul.mubr.f32.gmra.mrb[192].mxu0 %v7560_v36  ;;  %12866 = vmatprep.mubr.msk.f32.mxu1 %vm14006_vm0, %v17514_v17  ;;  %v7562_v0 = vld [vmem:[#allocation2 + $0x4d] sm:$0xff] }
 0x74e   : > { %13021 = vmatprep.mubr.msk.f32.mxu0 %vm14006_vm0, %v17514_v17  ;;  %13909 = vmatpush3.bf16.msra.mxu1 %v13908_v35  ;;  %v17804_v6 = vadd.f32 %v6368_v1, %v6076_v2  ;;  %v13914_v1 = vpack.c.bf16 %v7977_v51, %v7976_v23 }
 0x74f   : > { %v6005_v12 = vpop.f32.mrb[86].mxu1  ;;  %13910 = vmatprep.subr.bf16.mxu1 %v18746_v18 }
 0x750   : > { %v6373_v29 = vpop.f32.mrb[88].mxu0  ;;  %v6077_v36 = vadd.f32 %v6005_v12, %v17422_v22  ;;  %v12335_v19 = vpop.f32.mrb[87].mxu1  ;;  %12867 = vmatmul.mubr.f32.gmra.mrb[192].mxu1 %v13992_v21  ;;  %v7978_v22 = vld [vmem:[%s18665_s8 + $0x460] sm:$0xff]  ;;  %v7979_v12 = vld [vmem:[%s18665_s8 + $0x468] sm:$0xff] }
 0x751   : > { %v12490_v35 = vpop.f32.mrb[89].mxu0  ;;  %13022 = vmatmul.mubr.f32.gmra.mrb[194].mxu0 %v7561_v13  ;;  %12869 = vmatprep.mubr.msk.f32.mxu1 %vm14006_vm0, %v17514_v17 }
 0x752   : > { %13024 = vmatprep.mubr.msk.f32.mxu0 %vm14006_vm0, %v17514_v17  ;;  %13912 = vmatpush3.bf16.msra.mxu1 %v13911_v47  ;;  %v17818_v7 = vadd.f32 %v6373_v29, %v6077_v36  ;;  %v13917_v29 = vpack.c.bf16 %v7979_v12, %v7978_v22  ;;  %v7563_v35 = vld [vmem:[#allocation2 + $0x55] sm:$0xff] }
 0x753   : > { %v6010_v2 = vpop.f32.mrb[88].mxu1  ;;  %13913 = vmatprep.subr.bf16.mxu1 %v18746_v18 }
 0x754   : > { %v6378_v14 = vpop.f32.mrb[90].mxu0  ;;  %v6078_v13 = vadd.f32 %v6010_v2, %v17442_v28  ;;  %v12338_v19 = vpop.f32.mrb[89].mxu1  ;;  %12870 = vmatmul.mubr.f32.gmra.mrb[194].mxu1 %v17474_v8  ;;  %v7980_v28 = vld [vmem:[%s18665_s8 + $0x470] sm:$0xff]  ;;  %v7981_v8 = vld [vmem:[%s18665_s8 + $0x478] sm:$0xff] }
 0x755   : > { %v12493_v47 = vpop.f32.mrb[91].mxu0  ;;  %13025 = vmatmul.mubr.f32.gmra.mrb[196].mxu0 %v7562_v0  ;;  %12872 = vmatprep.mubr.msk.f32.mxu1 %vm14006_vm0, %v17514_v17 }
 0x756   : > { %13027 = vmatprep.mubr.msk.f32.mxu0 %vm14006_vm0, %v17514_v17  ;;  %13915 = vmatpush3.bf16.msra.mxu1 %v13914_v1  ;;  %v17833_v23 = vadd.f32 %v6378_v14, %v6078_v13  ;;  %v13920_v14 = vpack.c.bf16 %v7981_v8, %v7980_v28  ;;  %v7564_v13 = vld [vmem:[#allocation2 + $0x5d] sm:$0xff] }
 0x757   : > { %v6015_v51 = vpop.f32.mrb[90].mxu1  ;;  %13916 = vmatprep.subr.bf16.mxu1 %v18746_v18 }
 0x758   : > { %v6383_v36 = vpop.f32.mrb[92].mxu0  ;;  %v6079_v21 = vadd.f32 %v6015_v51, %v17462_v33  ;;  %v12341_v2 = vpop.f32.mrb[91].mxu1  ;;  %12873 = vmatmul.mubr.f32.gmra.mrb[196].mxu1 %v17491_v61 }
 0x759   : > { %v12496_v1 = vpop.f32.mrb[93].mxu0  ;;  %13028 = vmatmul.mubr.f32.gmra.mrb[198].mxu0 %v7563_v35  ;;  %12875 = vmatprep.mubr.msk.f32.mxu1 %vm14006_vm0, %v17514_v17  ;;  %v7566_v2 = vld [vmem:[#allocation2 + $0x6d] sm:$0xff] }
 0x75a   : > { %13030 = vmatprep.mubr.msk.f32.mxu0 %vm14006_vm0, %v17514_v17  ;;  %13918 = vmatpush3.bf16.msra.mxu1 %v13917_v29  ;;  %v17848_v0 = vadd.f32 %v6383_v36, %v6079_v21  ;;  %v7565_v36 = vld [vmem:[#allocation2 + $0x65] sm:$0xff] }
 0x75b   : > { %v6020_v22 = vpop.f32.mrb[92].mxu1  ;;  %13919 = vmatprep.subr.bf16.mxu1 %v18746_v18 }
 0x75c   : > { %v6388_v12 = vpop.f32.mrb[94].mxu0  ;;  %v6080_v33 = vadd.f32 %v6020_v22, %v17485_v24  ;;  %v12344_v19 = vpop.f32.mrb[93].mxu1  ;;  %12876 = vmatmul.mubr.f32.gmra.mrb[198].mxu1 %v17508_v5 }
 0x75d   : > { %v12499_v61 = vpop.f32.mrb[95].mxu0  ;;  %13031 = vmatmul.mubr.f32.gmra.mrb[200].mxu0 %v7564_v13  ;;  %12878 = vmatprep.mubr.msk.f32.mxu1 %vm14006_vm0, %v17514_v17  ;;  %v7567_v13 = vld [vmem:[#allocation2 + $0x75] sm:$0xff] }
 0x75e   : > { %13033 = vmatprep.mubr.msk.f32.mxu0 %vm14006_vm0, %v17514_v17  ;;  %v17857_v47 = vadd.f32 %v6388_v12, %v6080_v33  ;;  %13921 = vmatpush3.bf16.msra.mxu1 %v13920_v14 }
 0x75f   : > { %v6025_v29 = vpop.f32.mrb[94].mxu1 }
 0x760   : > { %v6393_v51 = vpop.f32.mrb[96].mxu0  ;;  %v6081_v35 = vadd.f32 %v6025_v29, %v17502_v9  ;;  %v12347_v24 = vpop.f32.mrb[95].mxu1  ;;  %12879 = vmatmul.mubr.f32.gmra.mrb[200].mxu1 %v17520_v53  ;;  %v17869_v53 = vld [vmem:[#allocation2] sm:$0xff] }
 0x761   : > { %v12502_v28 = vpop.f32.mrb[97].mxu0  ;;  %13034 = vmatmul.mubr.f32.gmra.mrb[202].mxu0 %v7565_v36  ;;  %12881 = vmatprep.mubr.msk.f32.mxu1 %vm14006_vm0, %v17514_v17  ;;  %v7568_v36 = vld [vmem:[#allocation2 + $0x7d] sm:$0xff] }
 0x762   : > { %13036 = vmatprep.mubr.msk.f32.mxu0 %vm14006_vm0, %v17514_v17  ;;  %v17865_v5 = vadd.f32 %v6393_v51, %v6081_v35  ;;  %v7200_v51 = vld [vmem:[#allocation2 + $0x7c] sm:$0xff] }
 0x763   : > { %v6030_v8 = vpop.f32.mrb[96].mxu1 }
 0x764   : > { %v6398_v21 = vpop.f32.mrb[98].mxu0  ;;  %v6082_v1 = vadd.f32 %v6030_v8, %v17512_v54  ;;  %v12350_v14 = vpop.f32.mrb[97].mxu1  ;;  %12882 = vmatmul.mubr.f32.gmra.mrb[202].mxu1 %v17530_v63 }
 0x765   : > { %v12505_v9 = vpop.f32.mrb[99].mxu0  ;;  %13037 = vmatmul.mubr.f32.gmra.mrb[204].mxu0 %v7566_v2  ;;  %12884 = vmatprep.mubr.msk.f32.mxu1 %vm14006_vm0, %v17869_v53  ;;  %v7569_v2 = vld [vmem:[#allocation2 + $0x85] sm:$0xff] }
 0x766   : > { %13039 = vmatprep.mubr.msk.f32.mxu0 %vm14006_vm0, %v17869_v53  ;;  %v17875_v17 = vadd.f32 %v6398_v21, %v6082_v1  ;;  %v7201_v21 = vld [vmem:[#allocation2 + $0x84] sm:$0xff] }
 0x767   : > { %v6035_v22 = vpop.f32.mrb[98].mxu1 }
 0x768   : > { %v6403_v12 = vpop.f32.mrb[100].mxu0  ;;  %v6083_v54 = vadd.f32 %v6035_v22, %v17524_v55  ;;  %v12353_v33 = vpop.f32.mrb[99].mxu1  ;;  %12885 = vmatmul.mubr.f32.gmra.mrb[204].mxu1 %v17539_v30 }
 0x769   : > { %v12508_v19 = vpop.f32.mrb[101].mxu0  ;;  %13040 = vmatmul.mubr.f32.gmra.mrb[206].mxu0 %v7567_v13  ;;  %12887 = vmatprep.mubr.msk.f32.mxu1 %vm14006_vm0, %v17869_v53  ;;  %v7202_v13 = vld [vmem:[#allocation2 + $0x8c] sm:$0xff] }
 0x76a   : > { %13042 = vmatprep.mubr.msk.f32.mxu0 %vm14006_vm0, %v17869_v53  ;;  %v17883_v63 = vadd.f32 %v6403_v12, %v6083_v54  ;;  %v7570_v54 = vld [vmem:[#allocation2 + $0x8d] sm:$0xff] }
 0x76b   : > { %v6040_v61 = vpop.f32.mrb[100].mxu1 }
 0x76c   : > { %v6408_v29 = vpop.f32.mrb[102].mxu0  ;;  %v6084_v35 = vadd.f32 %v6040_v61, %v17533_v20  ;;  %v12356_v55 = vpop.f32.mrb[101].mxu1  ;;  %12888 = vmatmul.mubr.f32.gmra.mrb[206].mxu1 %v7200_v51 }
 0x76d   : > { %v12511_v24 = vpop.f32.mrb[103].mxu0  ;;  %13043 = vmatmul.mubr.f32.gmra.mrb[208].mxu0 %v7568_v36  ;;  %12890 = vmatprep.mubr.msk.f32.mxu1 %vm14006_vm0, %v17869_v53  ;;  %v7203_v36 = vld [vmem:[#allocation2 + $0x94] sm:$0xff] }
 0x76e   : > { %13045 = vmatprep.mubr.msk.f32.mxu0 %vm14006_vm0, %v17869_v53  ;;  %v17890_v30 = vadd.f32 %v6408_v29, %v6084_v35  ;;  %v7571_v35 = vld [vmem:[#allocation2 + $0x95] sm:$0xff] }
 0x76f   : > { %v6576_v28 = vpop.f32.mrb[102].mxu1 }
 0x770   : > { %v6944_v8 = vpop.f32.mrb[104].mxu0  ;;  %v6780_v1 = vadd.f32 %v6576_v28, %v17547_v57  ;;  %v12546_v14 = vpop.f32.mrb[103].mxu1  ;;  %12891 = vmatmul.mubr.f32.gmra.mrb[208].mxu1 %v7201_v21 }
 0x771   : > { %v12701_v20 = vpop.f32.mrb[105].mxu0  ;;  %13046 = vmatmul.mubr.f32.gmra.mrb[210].mxu0 %v7569_v2  ;;  %12893 = vmatprep.mubr.msk.f32.mxu1 %vm14006_vm0, %v17869_v53  ;;  %v7204_v2 = vld [vmem:[#allocation2 + $0x9c] sm:$0xff] }
 0x772   : > { %13048 = vmatprep.mubr.msk.f32.mxu0 %vm14006_vm0, %v17869_v53  ;;  %v17897_v9 = vadd.f32 %v6944_v8, %v6780_v1  ;;  %v7572_v1 = vld [vmem:[#allocation2 + $0x9d] sm:$0xff] }
 0x773   : > { %v6581_v22 = vpop.f32.mrb[104].mxu1 }
 0x774   : > { %v6949_v12 = vpop.f32.mrb[106].mxu0  ;;  %v6781_v33 = vadd.f32 %v6581_v22, %v17554_v45  ;;  %v12549_v19 = vpop.f32.mrb[105].mxu1  ;;  %12894 = vmatmul.mubr.f32.gmra.mrb[210].mxu1 %v7202_v13 }
 0x775   : > { %v12704_v57 = vpop.f32.mrb[107].mxu0  ;;  %13049 = vmatmul.mubr.f32.gmra.mrb[212].mxu0 %v7570_v54  ;;  %12896 = vmatprep.mubr.msk.f32.mxu1 %vm14006_vm0, %v17869_v53  ;;  %v7205_v54 = vld [vmem:[#allocation2 + $0xa4] sm:$0xff] }
 0x776   : > { %13051 = vmatprep.mubr.msk.f32.mxu0 %vm14006_vm0, %v17869_v53  ;;  %v17904_v61 = vadd.f32 %v6949_v12, %v6781_v33  ;;  %v7573_v33 = vld [vmem:[#allocation2 + $0xa5] sm:$0xff] }
 0x777   : > { %v6586_v29 = vpop.f32.mrb[106].mxu1 }
 0x778   : > { %v6954_v51 = vpop.f32.mrb[108].mxu0  ;;  %v6782_v55 = vadd.f32 %v6586_v29, %v17561_v46  ;;  %v12552_v24 = vpop.f32.mrb[107].mxu1  ;;  %12897 = vmatmul.mubr.f32.gmra.mrb[212].mxu1 %v7203_v36 }
 0x779   : > { %v12707_v45 = vpop.f32.mrb[109].mxu0  ;;  %13052 = vmatmul.mubr.f32.gmra.mrb[214].mxu0 %v7571_v35  ;;  %12899 = vmatprep.mubr.msk.f32.mxu1 %vm14006_vm0, %v17869_v53  ;;  %v7206_v35 = vld [vmem:[#allocation2 + $0xac] sm:$0xff] }
 0x77a   : > { %13054 = vmatprep.mubr.msk.f32.mxu0 %vm14006_vm0, %v17869_v53  ;;  %v17911_v28 = vadd.f32 %v6954_v51, %v6782_v55  ;;  %v7574_v55 = vld [vmem:[#allocation2 + $0xad] sm:$0xff] }
 0x77b   : > { %v6591_v8 = vpop.f32.mrb[108].mxu1 }
 0x77c   : > { %v6959_v21 = vpop.f32.mrb[110].mxu0  ;;  %v6783_v14 = vadd.f32 %v6591_v8, %v17568_v10  ;;  %v12555_v20 = vpop.f32.mrb[109].mxu1  ;;  %12900 = vmatmul.mubr.f32.gmra.mrb[214].mxu1 %v7204_v2 }
 0x77d   : > { %v12710_v46 = vpop.f32.mrb[111].mxu0  ;;  %13055 = vmatmul.mubr.f32.gmra.mrb[216].mxu0 %v7572_v1  ;;  %12902 = vmatprep.mubr.msk.f32.mxu1 %vm14006_vm0, %v17869_v53  ;;  %v7207_v1 = vld [vmem:[#allocation2 + $0xb4] sm:$0xff] }
 0x77e   : > { %13057 = vmatprep.mubr.msk.f32.mxu0 %vm14006_vm0, %v17869_v53  ;;  %v17918_v22 = vadd.f32 %v6959_v21, %v6783_v14  ;;  %v7575_v14 = vld [vmem:[#allocation2 + $0xb5] sm:$0xff] }
 0x77f   : > { %v6596_v12 = vpop.f32.mrb[110].mxu1 }
 0x780   : > { %v6964_v13 = vpop.f32.mrb[112].mxu0  ;;  %v6784_v19 = vadd.f32 %v6596_v12, %v17575_v26  ;;  %v12558_v57 = vpop.f32.mrb[111].mxu1  ;;  %12903 = vmatmul.mubr.f32.gmra.mrb[216].mxu1 %v7205_v54 }
 0x781   : > { %v12713_v10 = vpop.f32.mrb[113].mxu0  ;;  %13058 = vmatmul.mubr.f32.gmra.mrb[218].mxu0 %v7573_v33  ;;  %12905 = vmatprep.mubr.msk.f32.mxu1 %vm14006_vm0, %v17869_v53  ;;  %v7208_v33 = vld [vmem:[#allocation2 + $0xbc] sm:$0xff] }
 0x782   : > { %13060 = vmatprep.mubr.msk.f32.mxu0 %vm14006_vm0, %v17869_v53  ;;  %v17925_v29 = vadd.f32 %v6964_v13, %v6784_v19  ;;  %v7576_v19 = vld [vmem:[#allocation2 + $0xbd] sm:$0xff] }
 0x783   : > { %v6601_v51 = vpop.f32.mrb[112].mxu1 }
 0x784   : > { %v6969_v36 = vpop.f32.mrb[114].mxu0  ;;  %v6785_v24 = vadd.f32 %v6601_v51, %v17582_v60  ;;  %v12561_v45 = vpop.f32.mrb[113].mxu1  ;;  %12906 = vmatmul.mubr.f32.gmra.mrb[218].mxu1 %v7206_v35 }
 0x785   : > { %v12716_v26 = vpop.f32.mrb[115].mxu0  ;;  %13061 = vmatmul.mubr.f32.gmra.mrb[220].mxu0 %v7574_v55  ;;  %12908 = vmatprep.mubr.msk.f32.mxu1 %vm14006_vm0, %v17869_v53  ;;  %v7209_v55 = vld [vmem:[#allocation2 + $0xc4] sm:$0xff] }
 0x786   : > { %13063 = vmatprep.mubr.msk.f32.mxu0 %vm14006_vm0, %v17869_v53  ;;  %v17932_v8 = vadd.f32 %v6969_v36, %v6785_v24  ;;  %v7577_v24 = vld [vmem:[#allocation2 + $0xc5] sm:$0xff] }
 0x787   : > { %v6606_v21 = vpop.f32.mrb[114].mxu1 }
 0x788   : > { %v6974_v2 = vpop.f32.mrb[116].mxu0  ;;  %v6786_v20 = vadd.f32 %v6606_v21, %v17589_v27  ;;  %v12564_v46 = vpop.f32.mrb[115].mxu1  ;;  %12909 = vmatmul.mubr.f32.gmra.mrb[220].mxu1 %v7207_v1 }
 0x789   : > { %v12719_v60 = vpop.f32.mrb[117].mxu0  ;;  %13064 = vmatmul.mubr.f32.gmra.mrb[222].mxu0 %v7575_v14  ;;  %12911 = vmatprep.mubr.msk.f32.mxu1 %vm14006_vm0, %v17869_v53  ;;  %v7210_v14 = vld [vmem:[#allocation2 + $0xcc] sm:$0xff] }
 0x78a   : > { %13066 = vmatprep.mubr.msk.f32.mxu0 %vm14006_vm0, %v17869_v53  ;;  %v17939_v12 = vadd.f32 %v6974_v2, %v6786_v20  ;;  %v7578_v20 = vld [vmem:[#allocation2 + $0xcd] sm:$0xff] }
 0x78b   : > { %v6611_v13 = vpop.f32.mrb[116].mxu1 }
 0x78c   : > { %v6979_v54 = vpop.f32.mrb[118].mxu0  ;;  %v6787_v57 = vadd.f32 %v6611_v13, %v17596_v41  ;;  %v12567_v10 = vpop.f32.mrb[117].mxu1  ;;  %12912 = vmatmul.mubr.f32.gmra.mrb[222].mxu1 %v7208_v33 }
 0x78d   : > { %v12722_v27 = vpop.f32.mrb[119].mxu0  ;;  %13067 = vmatmul.mubr.f32.gmra.mrb[224].mxu0 %v7576_v19  ;;  %12914 = vmatprep.mubr.msk.f32.mxu1 %vm14006_vm0, %v17869_v53  ;;  %v7211_v19 = vld [vmem:[#allocation2 + $0xd4] sm:$0xff] }
 0x78e   : > { %13069 = vmatprep.mubr.msk.f32.mxu0 %vm14006_vm0, %v17869_v53  ;;  %v17946_v51 = vadd.f32 %v6979_v54, %v6787_v57  ;;  %v7579_v57 = vld [vmem:[#allocation2 + $0xd5] sm:$0xff] }
 0x78f   : > { %v6616_v36 = vpop.f32.mrb[118].mxu1 }
 0x790   : > { %v6984_v35 = vpop.f32.mrb[120].mxu0  ;;  %v6788_v45 = vadd.f32 %v6616_v36, %v17603_v38  ;;  %v12570_v26 = vpop.f32.mrb[119].mxu1  ;;  %12915 = vmatmul.mubr.f32.gmra.mrb[224].mxu1 %v7209_v55 }
 0x791   : > { %v12725_v41 = vpop.f32.mrb[121].mxu0  ;;  %13070 = vmatmul.mubr.f32.gmra.mrb[226].mxu0 %v7577_v24  ;;  %12917 = vmatprep.mubr.msk.f32.mxu1 %vm14006_vm0, %v17869_v53  ;;  %v7212_v24 = vld [vmem:[#allocation2 + $0xdc] sm:$0xff] }
 0x792   : > { %13072 = vmatprep.mubr.msk.f32.mxu0 %vm14006_vm0, %v17869_v53  ;;  %v17953_v21 = vadd.f32 %v6984_v35, %v6788_v45  ;;  %v7580_v45 = vld [vmem:[#allocation2 + $0xdd] sm:$0xff] }
 0x793   : > { %v6621_v2 = vpop.f32.mrb[120].mxu1 }
 0x794   : > { %v6989_v1 = vpop.f32.mrb[122].mxu0  ;;  %v6789_v46 = vadd.f32 %v6621_v2, %v17610_v25  ;;  %v12573_v60 = vpop.f32.mrb[121].mxu1  ;;  %12918 = vmatmul.mubr.f32.gmra.mrb[226].mxu1 %v7210_v14 }
 0x795   : > { %v12728_v38 = vpop.f32.mrb[123].mxu0  ;;  %13073 = vmatmul.mubr.f32.gmra.mrb[228].mxu0 %v7578_v20  ;;  %12920 = vmatprep.mubr.msk.f32.mxu1 %vm14006_vm0, %v17869_v53  ;;  %v7581_v60 = vld [vmem:[#allocation2 + $0xe5] sm:$0xff] }
 0x796   : > { %13075 = vmatprep.mubr.msk.f32.mxu0 %vm14006_vm0, %v17869_v53  ;;  %v17960_v13 = vadd.f32 %v6989_v1, %v6789_v46  ;;  %v8505_v1 = vld [vmem:[%s18667_s10] sm:$0xff] }
 0x797   : > { %v6626_v54 = vpop.f32.mrb[122].mxu1  ;;  %v7213_v46 = vld [vmem:[#allocation2 + $0xe4] sm:$0xff] }
 0x798   : > { %v6994_v33 = vpop.f32.mrb[124].mxu0  ;;  %v6790_v10 = vadd.f32 %v6626_v54, %v17617_v37  ;;  %v12576_v27 = vpop.f32.mrb[123].mxu1  ;;  %12921 = vmatmul.mubr.f32.gmra.mrb[228].mxu1 %v7211_v19 }
 0x799   : > { %v12731_v25 = vpop.f32.mrb[125].mxu0  ;;  %13076 = vmatmul.mubr.f32.gmra.mrb[230].mxu0 %v7579_v57  ;;  %12923 = vmatprep.mubr.msk.f32.mxu1 %vm14006_vm0, %v17869_v53 }
 0x79a   : > { %13078 = vmatprep.mubr.msk.f32.mxu0 %vm14006_vm0, %v17869_v53  ;;  %v17967_v36 = vadd.f32 %v6994_v33, %v6790_v10  ;;  %v7214_v25 = vld [vmem:[#allocation2 + $0xec] sm:$0xff] }
 0x79b   : > { %v6631_v35 = vpop.f32.mrb[124].mxu1 }
 0x79c   : > { %v6999_v55 = vpop.f32.mrb[126].mxu0  ;;  %v6791_v26 = vadd.f32 %v6631_v35, %v17624_v44  ;;  %v12579_v41 = vpop.f32.mrb[125].mxu1  ;;  %12924 = vmatmul.mubr.f32.gmra.mrb[230].mxu1 %v7212_v24  ;;  %v8506_v44 = vld [vmem:[%s18667_s10 + $0x8] sm:$0xff] }
 0x79d   : > { %v12734_v37 = vpop.f32.mrb[127].mxu0  ;;  %13079 = vmatmul.mubr.f32.gmra.mrb[232].mxu0 %v7580_v45  ;;  %12926 = vmatprep.mubr.msk.f32.mxu1 %vm14006_vm0, %v17869_v53  ;;  %v13923_v38 = vpack.c.bf16 %v8506_v44, %v8505_v1  ;;  %v7582_v35 = vld [vmem:[#allocation2 + $0xed] sm:$0xff]  ;;  %v7583_v1 = vld [vmem:[#allocation2 + $0xf5] sm:$0xff] }
 0x79e   : > { %13081 = vmatprep.mubr.msk.f32.mxu0 %vm14006_vm0, %v17869_v53  ;;  %v17974_v2 = vadd.f32 %v6999_v55, %v6791_v26  ;;  %v7215_v37 = vld [vmem:[#allocation2 + $0xf4] sm:$0xff] }
 0x79f   : > { %v6636_v14 = vpop.f32.mrb[126].mxu1  ;;  %13924 = vmatpush3.bf16.msra.mxu0 %v13923_v38  ;;  %v7216_v38 = vld [vmem:[#allocation2 + $0xfc] sm:$0xff] }
 0x7a0   : > { %v7004_v20 = vpop.f32.mrb[128].mxu0  ;;  %v6792_v54 = vadd.f32 %v6636_v14, %v17631_v11  ;;  %v12582_v33 = vpop.f32.mrb[127].mxu1  ;;  %12927 = vmatmul.mubr.f32.gmra.mrb[232].mxu1 %v7213_v46  ;;  %13925 = vmatprep.subr.bf16.mxu0 %v18746_v18 }
 0x7a1   : > { %v12737_v19 = vpop.f32.mrb[129].mxu0  ;;  %13082 = vmatmul.mubr.f32.gmra.mrb[234].mxu0 %v7581_v60  ;;  %12929 = vmatprep.mubr.msk.f32.mxu1 %vm14006_vm0, %v17869_v53 }
 0x7a2   : > { %13084 = vmatprep.mubr.msk.f32.mxu0 %vm14006_vm0, %v17869_v53  ;;  %v17987_v57 = vadd.f32 %v7004_v20, %v6792_v54  ;;  %v7584_v54 = vld [vmem:[#allocation2 + $0xfd] sm:$0xff] }
 0x7a3   : > { %v6641_v10 = vpop.f32.mrb[128].mxu1 }
 0x7a4   : > { %v7009_v27 = vpop.f32.mrb[130].mxu0  ;;  %v6793_v11 = vadd.f32 %v6641_v10, %v17638_v58  ;;  %v12585_v55 = vpop.f32.mrb[129].mxu1  ;;  %12930 = vmatmul.mubr.f32.gmra.mrb[234].mxu1 %v7214_v25 }
 0x7a5   : > { %v12740_v24 = vpop.f32.mrb[131].mxu0  ;;  %13085 = vmatmul.mubr.f32.gmra.mrb[236].mxu0 %v7582_v35  ;;  %12932 = vmatprep.mubr.msk.f32.mxu1 %vm14006_vm0, %v17869_v53  ;;  %v7217_v35 = vld [vmem:[#allocation2 + $0x104] sm:$0xff] }
 0x7a6   : > { %13087 = vmatprep.mubr.msk.f32.mxu0 %vm14006_vm0, %v17869_v53  ;;  %v17995_v45 = vadd.f32 %v7009_v27, %v6793_v11  ;;  %v7585_v11 = vld [vmem:[#allocation2 + $0x105] sm:$0xff] }
 0x7a7   : > { %v6646_v26 = vpop.f32.mrb[130].mxu1 }
 0x7a8   : > { %v7014_v41 = vpop.f32.mrb[132].mxu0  ;;  %v6794_v44 = vadd.f32 %v6646_v26, %v17645_v32  ;;  %v12588_v14 = vpop.f32.mrb[131].mxu1  ;;  %12933 = vmatmul.mubr.f32.gmra.mrb[236].mxu1 %v7215_v37 }
 0x7a9   : > { %v12743_v58 = vpop.f32.mrb[133].mxu0  ;;  %13088 = vmatmul.mubr.f32.gmra.mrb[238].mxu0 %v7583_v1  ;;  %12935 = vmatprep.mubr.msk.f32.mxu1 %vm14006_vm0, %v17869_v53  ;;  %v7586_v14 = vld [vmem:[#allocation2 + $0x10d] sm:$0xff] }
 0x7aa   : > { %13090 = vmatprep.mubr.msk.f32.mxu0 %vm14006_vm0, %v17869_v53  ;;  %v18002_v20 = vadd.f32 %v7014_v41, %v6794_v44  ;;  %v8507_v41 = vld [vmem:[%s18667_s10 + $0x10] sm:$0xff] }
 0x7ab   : > { %v6651_v46 = vpop.f32.mrb[132].mxu1  ;;  %v7218_v44 = vld [vmem:[#allocation2 + $0x10c] sm:$0xff] }
 0x7ac   : > { %v7019_v60 = vpop.f32.mrb[134].mxu0  ;;  %v6795_v33 = vadd.f32 %v6651_v46, %v17652_v48  ;;  %v12591_v19 = vpop.f32.mrb[133].mxu1  ;;  %12936 = vmatmul.mubr.f32.gmra.mrb[238].mxu1 %v7216_v38 }
 0x7ad   : > { %v12746_v32 = vpop.f32.mrb[135].mxu0  ;;  %13091 = vmatmul.mubr.f32.gmra.mrb[240].mxu0 %v7584_v54  ;;  %12938 = vmatprep.mubr.msk.f32.mxu1 %vm14006_vm0, %v17869_v53 }
 0x7ae   : > { %13093 = vmatprep.mubr.msk.f32.mxu0 %vm14006_vm0, %v17869_v53  ;;  %v18009_v10 = vadd.f32 %v7019_v60, %v6795_v33  ;;  %v7219_v32 = vld [vmem:[#allocation2 + $0x114] sm:$0xff] }
 0x7af   : > { %v6656_v27 = vpop.f32.mrb[134].mxu1 }
 0x7b0   : > { %v7024_v25 = vpop.f32.mrb[136].mxu0  ;;  %v6796_v55 = vadd.f32 %v6656_v27, %v17659_v16  ;;  %v12594_v24 = vpop.f32.mrb[135].mxu1  ;;  %12939 = vmatmul.mubr.f32.gmra.mrb[240].mxu1 %v7217_v35  ;;  %v8508_v16 = vld [vmem:[%s18667_s10 + $0x18] sm:$0xff] }
 0x7b1   : > { %v12749_v48 = vpop.f32.mrb[137].mxu0  ;;  %13094 = vmatmul.mubr.f32.gmra.mrb[242].mxu0 %v7585_v11  ;;  %12941 = vmatprep.mubr.msk.f32.mxu1 %vm14006_vm0, %v17869_v53  ;;  %v13926_v58 = vpack.c.bf16 %v8508_v16, %v8507_v41  ;;  %v7587_v27 = vld [vmem:[#allocation2 + $0x115] sm:$0xff]  ;;  %v7588_v41 = vld [vmem:[#allocation2 + $0x11d] sm:$0xff] }
 0x7b2   : > { %13096 = vmatprep.mubr.msk.f32.mxu0 %vm14006_vm0, %v17869_v53  ;;  %v18016_v26 = vadd.f32 %v7024_v25, %v6796_v55  ;;  %v7220_v48 = vld [vmem:[#allocation2 + $0x11c] sm:$0xff] }
 0x7b3   : > { %v6661_v37 = vpop.f32.mrb[136].mxu1  ;;  %13927 = vmatpush3.bf16.msra.mxu0 %v13926_v58  ;;  %v7221_v58 = vld [vmem:[#allocation2 + $0x124] sm:$0xff] }
 0x7b4   : > { %v7029_v1 = vpop.f32.mrb[138].mxu0  ;;  %v6797_v46 = vadd.f32 %v6661_v37, %v17666_v52  ;;  %v12597_v60 = vpop.f32.mrb[137].mxu1  ;;  %12942 = vmatmul.mubr.f32.gmra.mrb[242].mxu1 %v7218_v44  ;;  %13928 = vmatprep.subr.bf16.mxu0 %v18746_v18 }
 0x7b5   : > { %v12752_v38 = vpop.f32.mrb[139].mxu0  ;;  %13097 = vmatmul.mubr.f32.gmra.mrb[244].mxu0 %v7586_v14  ;;  %12944 = vmatprep.mubr.msk.f32.mxu1 %vm14006_vm0, %v17869_v53 }
 0x7b6   : > { %13099 = vmatprep.mubr.msk.f32.mxu0 %vm14006_vm0, %v17869_v53  ;;  %v18029_v54 = vadd.f32 %v7029_v1, %v6797_v46  ;;  %v7589_v46 = vld [vmem:[#allocation2 + $0x125] sm:$0xff] }
 0x7b7   : > { %v6666_v33 = vpop.f32.mrb[138].mxu1 }
 0x7b8   : > { %v7034_v19 = vpop.f32.mrb[140].mxu0  ;;  %v6798_v52 = vadd.f32 %v6666_v33, %v17673_v42  ;;  %v12600_v25 = vpop.f32.mrb[139].mxu1  ;;  %12945 = vmatmul.mubr.f32.gmra.mrb[244].mxu1 %v7219_v32 }
 0x7b9   : > { %v12755_v35 = vpop.f32.mrb[141].mxu0  ;;  %13100 = vmatmul.mubr.f32.gmra.mrb[246].mxu0 %v7587_v27  ;;  %12947 = vmatprep.mubr.msk.f32.mxu1 %vm14006_vm0, %v17869_v53  ;;  %v7222_v27 = vld [vmem:[#allocation2 + $0x12c] sm:$0xff] }
 0x7ba   : > { %13102 = vmatprep.mubr.msk.f32.mxu0 %vm14006_vm0, %v17869_v53  ;;  %v18037_v11 = vadd.f32 %v7034_v19, %v6798_v52  ;;  %v7590_v52 = vld [vmem:[#allocation2 + $0x12d] sm:$0xff] }
 0x7bb   : > { %v6671_v55 = vpop.f32.mrb[140].mxu1 }
 0x7bc   : > { %v7039_v24 = vpop.f32.mrb[142].mxu0  ;;  %v6799_v16 = vadd.f32 %v6671_v55, %v17680_v43  ;;  %v12603_v37 = vpop.f32.mrb[141].mxu1  ;;  %12948 = vmatmul.mubr.f32.gmra.mrb[246].mxu1 %v7220_v48 }
 0x7bd   : > { %v12758_v42 = vpop.f32.mrb[143].mxu0  ;;  %13103 = vmatmul.mubr.f32.gmra.mrb[248].mxu0 %v7588_v41  ;;  %12950 = vmatprep.mubr.msk.f32.mxu1 %vm14006_vm0, %v17869_v53  ;;  %v7591_v37 = vld [vmem:[#allocation2 + $0x135] sm:$0xff] }
 0x7be   : > { %13105 = vmatprep.mubr.msk.f32.mxu0 %vm14006_vm0, %v17869_v53  ;;  %v18044_v1 = vadd.f32 %v7039_v24, %v6799_v16  ;;  %v8509_v24 = vld [vmem:[%s18667_s10 + $0x20] sm:$0xff]  ;;  %v7223_v16 = vld [vmem:[#allocation2 + $0x134] sm:$0xff] }
 0x7bf   : > { %v6676_v44 = vpop.f32.mrb[142].mxu1 }
 0x7c0   : > { %v7044_v14 = vpop.f32.mrb[144].mxu0  ;;  %v6800_v60 = vadd.f32 %v6676_v44, %v17687_v62  ;;  %v12606_v38 = vpop.f32.mrb[143].mxu1  ;;  %12951 = vmatmul.mubr.f32.gmra.mrb[248].mxu1 %v7221_v58 }
 0x7c1   : > { %v12761_v43 = vpop.f32.mrb[145].mxu0  ;;  %13106 = vmatmul.mubr.f32.gmra.mrb[250].mxu0 %v7589_v46  ;;  %12953 = vmatprep.mubr.msk.f32.mxu1 %vm14006_vm0, %v17869_v53 }
 0x7c2   : > { %13108 = vmatprep.mubr.msk.f32.mxu0 %vm14006_vm0, %v17869_v53  ;;  %v18051_v33 = vadd.f32 %v7044_v14, %v6800_v60  ;;  %v7224_v43 = vld [vmem:[#allocation2 + $0x13c] sm:$0xff] }
 0x7c3   : > { %v6681_v19 = vpop.f32.mrb[144].mxu1 }
 0x7c4   : > { %v7049_v32 = vpop.f32.mrb[146].mxu0  ;;  %v6801_v25 = vadd.f32 %v6681_v19, %v17694_v49  ;;  %v12609_v35 = vpop.f32.mrb[145].mxu1  ;;  %12954 = vmatmul.mubr.f32.gmra.mrb[250].mxu1 %v7222_v27  ;;  %v8510_v49 = vld [vmem:[%s18667_s10 + $0x28] sm:$0xff]  ;;  %v7592_v19 = vld [vmem:[#allocation2 + $0x13d] sm:$0xff] }
 0x7c5   : > { %v12764_v62 = vpop.f32.mrb[147].mxu0  ;;  %13109 = vmatmul.mubr.f32.gmra.mrb[252].mxu0 %v7590_v52  ;;  %12956 = vmatprep.mubr.msk.f32.mxu1 %vm14006_vm0, %v17869_v53  ;;  %v13929_v42 = vpack.c.bf16 %v8510_v49, %v8509_v24  ;;  %v7593_v24 = vld [vmem:[#allocation2 + $0x145] sm:$0xff] }
 0x7c6   : > { %13111 = vmatprep.mubr.msk.f32.mxu0 %vm14006_vm0, %v17869_v53  ;;  %v18058_v55 = vadd.f32 %v7049_v32, %v6801_v25  ;;  %v7225_v62 = vld [vmem:[#allocation2 + $0x144] sm:$0xff] }
 0x7c7   : > { %v6686_v48 = vpop.f32.mrb[146].mxu1  ;;  %13930 = vmatpush3.bf16.msra.mxu0 %v13929_v42  ;;  %v7226_v42 = vld [vmem:[#allocation2 + $0x14c] sm:$0xff] }
 0x7c8   : > { %v7054_v41 = vpop.f32.mrb[148].mxu0  ;;  %v6802_v44 = vadd.f32 %v6686_v48, %v17701_v31  ;;  %v12612_v14 = vpop.f32.mrb[147].mxu1  ;;  %12957 = vmatmul.mubr.f32.gmra.mrb[252].mxu1 %v7223_v16  ;;  %13931 = vmatprep.subr.bf16.mxu0 %v18746_v18 }
 0x7c9   : > { %v12767_v58 = vpop.f32.mrb[149].mxu0  ;;  %13112 = vmatmul.mubr.f32.gmra.mrb[254].mxu0 %v7591_v37  ;;  %12959 = vmatprep.mubr.msk.f32.mxu1 %vm14006_vm0, %v17869_v53 }
 0x7ca   : > { %13114 = vmatprep.mubr.msk.f32.mxu0 %vm14006_vm0, %v17869_v53  ;;  %v18071_v46 = vadd.f32 %v7054_v41, %v6802_v44  ;;  %v7594_v44 = vld [vmem:[#allocation2 + $0x14d] sm:$0xff] }
 0x7cb   : > { %v6691_v60 = vpop.f32.mrb[148].mxu1 }
 0x7cc   : > { %v7059_v38 = vpop.f32.mrb[150].mxu0  ;;  %v6803_v31 = vadd.f32 %v6691_v60, %v17708_v3  ;;  %v12615_v32 = vpop.f32.mrb[149].mxu1  ;;  %12960 = vmatmul.mubr.f32.gmra.mrb[254].mxu1 %v7224_v43 }
 0x7cd   : > { %v12770_v27 = vpop.f32.mrb[151].mxu0  ;;  %13115 = vmatmul.mubr.f32.gmra.mrb[0].mxu0 %v7592_v19  ;;  %12962 = vmatprep.mubr.msk.f32.mxu1 %vm14006_vm0, %v17869_v53  ;;  %v7227_v19 = vld [vmem:[#allocation2 + $0x154] sm:$0xff] }
 0x7ce   : > { %13117 = vmatprep.mubr.msk.f32.mxu0 %vm14006_vm0, %v17869_v53  ;;  %v18079_v52 = vadd.f32 %v7059_v38, %v6803_v31  ;;  %v7595_v31 = vld [vmem:[#allocation2 + $0x155] sm:$0xff] }
 0x7cf   : > { %v6696_v25 = vpop.f32.mrb[150].mxu1 }
 0x7d0   : > { %v7064_v35 = vpop.f32.mrb[152].mxu0  ;;  %v6804_v49 = vadd.f32 %v6696_v25, %v17715_v39  ;;  %v12618_v48 = vpop.f32.mrb[151].mxu1  ;;  %12963 = vmatmul.mubr.f32.gmra.mrb[0].mxu1 %v7225_v62  ;;  %v7228_v25 = vld [vmem:[#allocation2 + $0x15c] sm:$0xff] }
 0x7d1   : > { %v12773_v3 = vpop.f32.mrb[153].mxu0  ;;  %13118 = vmatmul.mubr.f32.gmra.mrb[2].mxu0 %v7593_v24  ;;  %12965 = vmatprep.mubr.msk.f32.mxu1 %vm14006_vm0, %v17869_v53  ;;  %v8511_v24 = vld [vmem:[%s18667_s10 + $0x30] sm:$0xff] }
 0x7d2   : > { %13120 = vmatprep.mubr.msk.f32.mxu0 %vm14006_vm0, %v17869_v53  ;;  %v18086_v41 = vadd.f32 %v7064_v35, %v6804_v49  ;;  %v7596_v35 = vld [vmem:[#allocation2 + $0x15d] sm:$0xff] }
 0x7d3   : > { %v6701_v16 = vpop.f32.mrb[152].mxu1 }
 0x7d4   : > { %v7069_v37 = vpop.f32.mrb[154].mxu0  ;;  %v6805_v14 = vadd.f32 %v6701_v16, %v17722_v15  ;;  %v12621_v58 = vpop.f32.mrb[153].mxu1  ;;  %12966 = vmatmul.mubr.f32.gmra.mrb[2].mxu1 %v7226_v42 }
 0x7d5   : > { %v12776_v39 = vpop.f32.mrb[155].mxu0  ;;  %13121 = vmatmul.mubr.f32.gmra.mrb[4].mxu0 %v7594_v44  ;;  %12968 = vmatprep.mubr.msk.f32.mxu1 %vm14006_vm0, %v17869_v53  ;;  %v7229_v44 = vld [vmem:[#allocation2 + $0x164] sm:$0xff] }
 0x7d6   : > { %13123 = vmatprep.mubr.msk.f32.mxu0 %vm14006_vm0, %v17869_v53  ;;  %v18093_v60 = vadd.f32 %v7069_v37, %v6805_v14  ;;  %v7597_v14 = vld [vmem:[#allocation2 + $0x165] sm:$0xff] }
 0x7d7   : > { %v6706_v38 = vpop.f32.mrb[154].mxu1 }
 0x7d8   : > { %v7074_v43 = vpop.f32.mrb[156].mxu0  ;;  %v6806_v32 = vadd.f32 %v6706_v38, %v17729_v40  ;;  %v12624_v27 = vpop.f32.mrb[155].mxu1  ;;  %12969 = vmatmul.mubr.f32.gmra.mrb[4].mxu1 %v7227_v19  ;;  %v8512_v40 = vld [vmem:[%s18667_s10 + $0x38] sm:$0xff] }
 0x7d9   : > { %v12779_v15 = vpop.f32.mrb[157].mxu0  ;;  %13124 = vmatmul.mubr.f32.gmra.mrb[6].mxu0 %v7595_v31  ;;  %12971 = vmatprep.mubr.msk.f32.mxu1 %vm14006_vm0, %v17869_v53  ;;  %v13932_v3 = vpack.c.bf16 %v8512_v40, %v8511_v24 }
 0x7da   : > { %13126 = vmatprep.mubr.msk.f32.mxu0 %vm14006_vm0, %v17869_v53  ;;  %v18100_v62 = vadd.f32 %v7074_v43, %v6806_v32  ;;  %v7925_v15 = vld [vmem:[#allocation2 + $0x26] sm:$0xff] }
 0x7db   : > { %v6711_v49 = vpop.f32.mrb[156].mxu1  ;;  %13933 = vmatpush3.bf16.msra.mxu0 %v13932_v3 }
 0x7dc   : > { %v7079_v48 = vpop.f32.mrb[158].mxu0  ;;  %v6807_v16 = vadd.f32 %v6711_v49, %v17742_v50  ;;  %v12627_v37 = vpop.f32.mrb[157].mxu1  ;;  %12972 = vmatmul.mubr.f32.gmra.mrb[6].mxu1 %v7228_v25  ;;  %13934 = vmatprep.subr.bf16.mxu0 %v18746_v18 }
 0x7dd   : > { %v12782_v42 = vpop.f32.mrb[159].mxu0  ;;  %13127 = vmatmul.mubr.f32.gmra.mrb[8].mxu0 %v7596_v35  ;;  %12974 = vmatprep.mubr.msk.f32.mxu1 %vm14006_vm0, %v17869_v53 }
 0x7de   : > { %13129 = vmatprep.mubr.msk.f32.mxu0 %vm14006_vm0, %v17869_v53  ;;  %v18113_v58 = vadd.f32 %v7079_v48, %v6807_v16  ;;  %v7926_v48 = vld [vmem:[#allocation2 + $0x2e] sm:$0xff] }
 0x7df   : > { %v6716_v39 = vpop.f32.mrb[158].mxu1 }
 0x7e0   : > { %v7084_v38 = vpop.f32.mrb[160].mxu0  ;;  %v6808_v50 = vadd.f32 %v6716_v39, %v17749_v4  ;;  %v12630_v43 = vpop.f32.mrb[159].mxu1  ;;  %12975 = vmatmul.mubr.f32.gmra.mrb[8].mxu1 %v7229_v44 }
 0x7e1   : > { %v12785_v19 = vpop.f32.mrb[161].mxu0  ;;  %13130 = vmatmul.mubr.f32.gmra.mrb[10].mxu0 %v7597_v14  ;;  %13164 = vmatprep.mubr.msk.f32.mxu1 %vm14006_vm0, %v17869_v53  ;;  %v7927_v14 = vld [vmem:[#allocation2 + $0x36] sm:$0xff]  ;;  %v8513_v43 = vld [vmem:[%s18667_s10 + $0x40] sm:$0xff] }
 0x7e2   : > { %13319 = vmatprep.mubr.msk.f32.mxu0 %vm14006_vm0, %v17869_v53  ;;  %v18121_v31 = vadd.f32 %v7084_v38, %v6808_v50  ;;  %v8514_v19 = vld [vmem:[%s18667_s10 + $0x48] sm:$0xff] }
 0x7e3   : > { %v6721_v32 = vpop.f32.mrb[160].mxu1 }
 0x7e4   : > { %v7089_v27 = vpop.f32.mrb[162].mxu0  ;;  %v6809_v25 = vadd.f32 %v6721_v32, %v17763_v34  ;;  %v12633_v35 = vpop.f32.mrb[161].mxu1  ;;  %13165 = vmatmul.mubr.f32.vlgmr.msra.gmra.mrb[10].mxu1 %v7925_v15  ;;  %v7928_v15 = vld [vmem:[#allocation2 + $0x3e] sm:$0xff] }
 0x7e5   : > { %v12788_v24 = vpop.f32.mrb[163].mxu0  ;;  %13167 = vmatprep.mubr.msk.f32.mxu1 %vm14006_vm0, %v17869_v53 }
 0x7e6   : > { %v18126_v4 = vadd.f32 %v7089_v27, %v6809_v25 }
 0x7e7   : > { %v6726_v40 = vpop.f32.mrb[162].mxu1 }
 0x7e8   : > { %v7094_v49 = vpop.f32.mrb[164].mxu0  ;;  %v6810_v3 = vadd.f32 %v6726_v40, %v17776_v56  ;;  %v12636_v16 = vpop.f32.mrb[163].mxu1  ;;  %13168 = vmatmul.mubr.f32.gmra.mrb[12].mxu1 %v7926_v48 }
 0x7e9   : > { %v12791_v37 = vpop.f32.mrb[165].mxu0  ;;  %13170 = vmatprep.mubr.msk.f32.mxu1 %vm14006_vm0, %v17869_v53 }
 0x7ea   : > { %v18131_v34 = vadd.f32 %v7094_v49, %v6810_v3  ;;  %v7929_v3 = vld [vmem:[#allocation2 + $0x46] sm:$0xff] }
 0x7eb   : > { %v6731_v42 = vpop.f32.mrb[164].mxu1 }
 0x7ec   : > { %v7099_v44 = vpop.f32.mrb[166].mxu0  ;;  %v6811_v39 = vadd.f32 %v6731_v42, %v17790_v59  ;;  %v12639_v38 = vpop.f32.mrb[165].mxu1  ;;  %13171 = vmatmul.mubr.f32.gmra.mrb[14].mxu1 %v7927_v14  ;;  %v13935_v59 = vpack.c.bf16 %v8514_v19, %v8513_v43 }
 0x7ed   : > { %v12794_v50 = vpop.f32.mrb[167].mxu0  ;;  %13173 = vmatprep.mubr.msk.f32.mxu1 %vm14006_vm0, %v17869_v53 }
 0x7ee   : > { %v18136_v56 = vadd.f32 %v7099_v44, %v6811_v39  ;;  %13936 = vmatpush3.bf16.msra.mxu0 %v13935_v59  ;;  %v7930_v39 = vld [vmem:[#allocation2 + $0x4e] sm:$0xff] }
 0x7ef   : > { %v6736_v32 = vpop.f32.mrb[166].mxu1  ;;  %13937 = vmatprep.subr.bf16.mxu0 %v18746_v18 }
 0x7f0   : > { %v7104_v27 = vpop.f32.mrb[168].mxu0  ;;  %v6812_v25 = vadd.f32 %v6736_v32, %v17804_v6  ;;  %v12642_v35 = vpop.f32.mrb[167].mxu1  ;;  %13174 = vmatmul.mubr.f32.gmra.mrb[16].mxu1 %v7928_v15 }
 0x7f1   : > { %v12797_v24 = vpop.f32.mrb[169].mxu0  ;;  %13176 = vmatprep.mubr.msk.f32.mxu1 %vm14006_vm0, %v17869_v53 }
 0x7f2   : > { %v18147_v40 = vadd.f32 %v7104_v27, %v6812_v25  ;;  %v7931_v27 = vld [vmem:[#allocation2 + $0x56] sm:$0xff] }
 0x7f3   : > { %v6741_v49 = vpop.f32.mrb[168].mxu1 }
 0x7f4   : > { %v7109_v48 = vpop.f32.mrb[170].mxu0  ;;  %v6813_v16 = vadd.f32 %v6741_v49, %v17818_v7  ;;  %v12645_v37 = vpop.f32.mrb[169].mxu1  ;;  %13177 = vmatmul.mubr.f32.gmra.mrb[18].mxu1 %v7929_v3  ;;  %v7932_v49 = vld [vmem:[#allocation2 + $0x5e] sm:$0xff] }
 0x7f5   : > { %v12800_v42 = vpop.f32.mrb[171].mxu0  ;;  %13179 = vmatprep.mubr.msk.f32.mxu1 %vm14006_vm0, %v17869_v53 }
 0x7f6   : > { %v18153_v6 = vadd.f32 %v7109_v48, %v6813_v16 }
 0x7f7   : > { %v6746_v44 = vpop.f32.mrb[170].mxu1 }
 0x7f8   : > { %v7114_v14 = vpop.f32.mrb[172].mxu0  ;;  %v6814_v38 = vadd.f32 %v6746_v44, %v17833_v23  ;;  %v12648_v50 = vpop.f32.mrb[171].mxu1  ;;  %13180 = vmatmul.mubr.f32.gmra.mrb[20].mxu1 %v7930_v39  ;;  %v7933_v44 = vld [vmem:[#allocation2 + $0x66] sm:$0xff] }
 0x7f9   : > { %v12803_v43 = vpop.f32.mrb[173].mxu0  ;;  %13182 = vmatprep.mubr.msk.f32.mxu1 %vm14006_vm0, %v17869_v53  ;;  %v8515_v50 = vld [vmem:[%s18667_s10 + $0x50] sm:$0xff] }
 0x7fa   : > { %v18158_v7 = vadd.f32 %v7114_v14, %v6814_v38  ;;  %v8516_v43 = vld [vmem:[%s18667_s10 + $0x58] sm:$0xff] }
 0x7fb   : > { %v6751_v19 = vpop.f32.mrb[172].mxu1 }
 0x7fc   : > { %v7119_v32 = vpop.f32.mrb[174].mxu0  ;;  %v6815_v15 = vadd.f32 %v6751_v19, %v17848_v0  ;;  %v12651_v59 = vpop.f32.mrb[173].mxu1  ;;  %13183 = vmatmul.mubr.f32.gmra.mrb[22].mxu1 %v7931_v27  ;;  %v7934_v27 = vld [vmem:[#allocation2 + $0x6e] sm:$0xff] }
 0x7fd   : > { %v12806_v25 = vpop.f32.mrb[175].mxu0  ;;  %13185 = vmatprep.mubr.msk.f32.mxu1 %vm14006_vm0, %v17869_v53 }
 0x7fe   : > { %v18163_v23 = vadd.f32 %v7119_v32, %v6815_v15 }
 0x7ff   : > { %v6756_v35 = vpop.f32.mrb[174].mxu1 }
 0x800   : > { %v7124_v24 = vpop.f32.mrb[176].mxu0  ;;  %v6816_v48 = vadd.f32 %v6756_v35, %v17857_v47  ;;  %v12654_v3 = vpop.f32.mrb[175].mxu1  ;;  %13186 = vmatmul.mubr.f32.gmra.mrb[24].mxu1 %v7932_v49 }
 0x801   : > { %v12809_v16 = vpop.f32.mrb[177].mxu0  ;;  %13188 = vmatprep.mubr.msk.f32.mxu1 %vm14006_vm0, %v17869_v53 }
 0x802   : > { %v18168_v0 = vadd.f32 %v7124_v24, %v6816_v48  ;;  %v7935_v48 = vld [vmem:[#allocation2 + $0x76] sm:$0xff] }
 0x803   : > { %v6761_v37 = vpop.f32.mrb[176].mxu1 }
 0x804   : > { %v7129_v42 = vpop.f32.mrb[178].mxu0  ;;  %v6817_v14 = vadd.f32 %v6761_v37, %v17865_v5  ;;  %v12657_v39 = vpop.f32.mrb[177].mxu1  ;;  %13189 = vmatmul.mubr.f32.gmra.mrb[26].mxu1 %v7933_v44  ;;  %v13938_v5 = vpack.c.bf16 %v8516_v43, %v8515_v50 }
 0x805   : > { %v12812_v38 = vpop.f32.mrb[179].mxu0  ;;  %13191 = vmatprep.mubr.msk.f32.mxu1 %vm14006_vm0, %v17869_v53 }
 0x806   : > { %v18173_v47 = vadd.f32 %v7129_v42, %v6817_v14  ;;  %13939 = vmatpush3.bf16.msra.mxu0 %v13938_v5  ;;  %v7936_v14 = vld [vmem:[#allocation2 + $0x7e] sm:$0xff] }
 0x807   : > { %v6766_v19 = vpop.f32.mrb[178].mxu1  ;;  %13940 = vmatprep.subr.bf16.mxu0 %v18746_v18 }
 0x808   : > { %v7134_v32 = vpop.f32.mrb[180].mxu0  ;;  %v6818_v15 = vadd.f32 %v6766_v19, %v17875_v17  ;;  %v12660_v59 = vpop.f32.mrb[179].mxu1  ;;  %13192 = vmatmul.mubr.f32.gmra.mrb[28].mxu1 %v7934_v27 }
 0x809   : > { %v12815_v25 = vpop.f32.mrb[181].mxu0  ;;  %13194 = vmatprep.mubr.msk.f32.mxu1 %vm14006_vm0, %v17869_v53  ;;  %v18198_v59 = vld [vmem:[#allocation2] sm:$0xff] }
 0x80a   : > { %v18184_v35 = vadd.f32 %v7134_v32, %v6818_v15  ;;  %v7937_v32 = vld [vmem:[#allocation2 + $0x86] sm:$0xff] }
 0x80b   : > { %v6771_v24 = vpop.f32.mrb[180].mxu1 }
 0x80c   : > { %v7139_v49 = vpop.f32.mrb[182].mxu0  ;;  %v6819_v3 = vadd.f32 %v6771_v24, %v17883_v63  ;;  %v12663_v16 = vpop.f32.mrb[181].mxu1  ;;  %13195 = vmatmul.mubr.f32.gmra.mrb[30].mxu1 %v7935_v48 }
 0x80d   : > { %v12818_v37 = vpop.f32.mrb[183].mxu0  ;;  %13197 = vmatprep.mubr.msk.f32.mxu1 %vm14006_vm0, %v17869_v53  ;;  %v8517_v16 = vld [vmem:[%s18667_s10 + $0x60] sm:$0xff] }
 0x80e   : > { %v18190_v17 = vadd.f32 %v7139_v49, %v6819_v3  ;;  %v8518_v37 = vld [vmem:[%s18667_s10 + $0x68] sm:$0xff] }
 0x80f   : > { %v6776_v42 = vpop.f32.mrb[182].mxu1 }
 0x810   : > { %v7144_v44 = vpop.f32.mrb[184].mxu0  ;;  %v6820_v39 = vadd.f32 %v6776_v42, %v17890_v30  ;;  %v12666_v38 = vpop.f32.mrb[183].mxu1  ;;  %13198 = vmatmul.mubr.f32.gmra.mrb[32].mxu1 %v7936_v14  ;;  %v7939_v14 = vld [vmem:[#allocation2 + $0x96] sm:$0xff] }
 0x811   : > { %v12821_v50 = vpop.f32.mrb[185].mxu0  ;;  %13200 = vmatprep.mubr.msk.f32.mxu1 %vm14006_vm0, %v17869_v53  ;;  %v7938_v53 = vld [vmem:[#allocation2 + $0x8e] sm:$0xff] }
 0x812   : > { %v18195_v63 = vadd.f32 %v7144_v44, %v6820_v39 }
 0x813   : > { %v7312_v43 = vpop.f32.mrb[184].mxu1 }
 0x814   : > { %v7680_v19 = vpop.f32.mrb[186].mxu0  ;;  %v7516_v27 = vadd.f32 %v7312_v43, %v17897_v9  ;;  %v12856_v5 = vpop.f32.mrb[185].mxu1  ;;  %13201 = vmatmul.mubr.f32.gmra.mrb[34].mxu1 %v7937_v32 }
 0x815   : > { %v13011_v15 = vpop.f32.mrb[187].mxu0  ;;  %13203 = vmatprep.mubr.msk.f32.mxu1 %vm14006_vm0, %v18198_v59 }
 0x816   : > { %v18202_v30 = vadd.f32 %v7680_v19, %v7516_v27  ;;  %v7940_v27 = vld [vmem:[#allocation2 + $0x9e] sm:$0xff] }
 0x817   : > { %v7317_v25 = vpop.f32.mrb[186].mxu1 }
 0x818   : > { %v7685_v24 = vpop.f32.mrb[188].mxu0  ;;  %v7517_v49 = vadd.f32 %v7317_v25, %v17904_v61  ;;  %v12859_v48 = vpop.f32.mrb[187].mxu1  ;;  %13204 = vmatmul.mubr.f32.gmra.mrb[36].mxu1 %v7938_v53  ;;  %v13941_v61 = vpack.c.bf16 %v8518_v37, %v8517_v16 }
 0x819   : > { %v13014_v3 = vpop.f32.mrb[189].mxu0  ;;  %13206 = vmatprep.mubr.msk.f32.mxu1 %vm14006_vm0, %v18198_v59 }
 0x81a   : > { %v18207_v9 = vadd.f32 %v7685_v24, %v7517_v49  ;;  %13942 = vmatpush3.bf16.msra.mxu0 %v13941_v61  ;;  %v7941_v49 = vld [vmem:[#allocation2 + $0xa6] sm:$0xff] }
 0x81b   : > { %v7322_v42 = vpop.f32.mrb[188].mxu1  ;;  %13943 = vmatprep.subr.bf16.mxu0 %v18746_v18 }
 0x81c   : > { %v7690_v44 = vpop.f32.mrb[190].mxu0  ;;  %v7518_v39 = vadd.f32 %v7322_v42, %v17911_v28  ;;  %v12862_v38 = vpop.f32.mrb[189].mxu1  ;;  %13207 = vmatmul.mubr.f32.gmra.mrb[38].mxu1 %v7939_v14  ;;  %v7942_v42 = vld [vmem:[#allocation2 + $0xae] sm:$0xff] }
 0x81d   : > { %v13017_v50 = vpop.f32.mrb[191].mxu0  ;;  %13209 = vmatprep.mubr.msk.f32.mxu1 %vm14006_vm0, %v18198_v59 }
 0x81e   : > { %v18218_v43 = vadd.f32 %v7690_v44, %v7518_v39  ;;  %v7943_v50 = vld [vmem:[#allocation2 + $0xb6] sm:$0xff] }
 0x81f   : > { %v7327_v19 = vpop.f32.mrb[190].mxu1 }
 0x820   : > { %v7695_v32 = vpop.f32.mrb[192].mxu0  ;;  %v7519_v5 = vadd.f32 %v7327_v19, %v17918_v22  ;;  %v12865_v15 = vpop.f32.mrb[191].mxu1  ;;  %13210 = vmatmul.mubr.f32.gmra.mrb[40].mxu1 %v7940_v27 }
 0x821   : > { %v13020_v25 = vpop.f32.mrb[193].mxu0  ;;  %13212 = vmatprep.mubr.msk.f32.mxu1 %vm14006_vm0, %v18198_v59  ;;  %v8520_v15 = vld [vmem:[%s18667_s10 + $0x78] sm:$0xff] }
 0x822   : > { %v18224_v28 = vadd.f32 %v7695_v32, %v7519_v5  ;;  %v8519_v5 = vld [vmem:[%s18667_s10 + $0x70] sm:$0xff] }
 0x823   : > { %v7332_v24 = vpop.f32.mrb[192].mxu1 }
 0x824   : > { %v7700_v53 = vpop.f32.mrb[194].mxu0  ;;  %v7520_v48 = vadd.f32 %v7332_v24, %v17925_v29  ;;  %v12868_v3 = vpop.f32.mrb[193].mxu1  ;;  %13213 = vmatmul.mubr.f32.gmra.mrb[42].mxu1 %v7941_v49 }
 0x825   : > { %v13023_v18 = vpop.f32.mrb[195].mxu0  ;;  %13215 = vmatprep.mubr.msk.f32.mxu1 %vm14006_vm0, %v18198_v59 }
 0x826   : > { %v18229_v22 = vadd.f32 %v7700_v53, %v7520_v48  ;;  %v7944_v53 = vld [vmem:[#allocation2 + $0xbe] sm:$0xff] }
 0x827   : > { %v7337_v16 = vpop.f32.mrb[194].mxu1 }
 0x828   : > { %v7705_v37 = vpop.f32.mrb[196].mxu0  ;;  %v7521_v44 = vadd.f32 %v7337_v16, %v17932_v8  ;;  %v12871_v14 = vpop.f32.mrb[195].mxu1  ;;  %13216 = vmatmul.mubr.f32.gmra.mrb[44].mxu1 %v7942_v42  ;;  %v7945_v42 = vld [vmem:[#allocation2 + $0xc6] sm:$0xff] }
 0x829   : > { %v13026_v61 = vpop.f32.mrb[197].mxu0  ;;  %13218 = vmatprep.mubr.msk.f32.mxu1 %vm14006_vm0, %v18198_v59 }
 0x82a   : > { %v18234_v29 = vadd.f32 %v7705_v37, %v7521_v44 }
 0x82b   : > { %v7342_v39 = vpop.f32.mrb[196].mxu1 }
 0x82c   : > { %v7710_v38 = vpop.f32.mrb[198].mxu0  ;;  %v7522_v19 = vadd.f32 %v7342_v39, %v17939_v12  ;;  %v12874_v32 = vpop.f32.mrb[197].mxu1  ;;  %13219 = vmatmul.mubr.f32.gmra.mrb[46].mxu1 %v7943_v50  ;;  %v13944_v12 = vpack.c.bf16 %v8520_v15, %v8519_v5  ;;  %v7946_v50 = vld [vmem:[#allocation2 + $0xce] sm:$0xff] }
 0x82d   : > { %v13029_v27 = vpop.f32.mrb[199].mxu0  ;;  %13221 = vmatprep.mubr.msk.f32.mxu1 %vm14006_vm0, %v18198_v59 }
 0x82e   : > { %v18239_v8 = vadd.f32 %v7710_v38, %v7522_v19  ;;  %13945 = vmatpush3.bf16.msra.mxu0 %v13944_v12 }
 0x82f   : > { %v7347_v25 = vpop.f32.mrb[198].mxu1 }
 0x830   : > { %v7715_v24 = vpop.f32.mrb[200].mxu0  ;;  %v7523_v49 = vadd.f32 %v7347_v25, %v17946_v51  ;;  %v12877_v48 = vpop.f32.mrb[199].mxu1  ;;  %13222 = vmatmul.mubr.f32.gmra.mrb[48].mxu1 %v7944_v53  ;;  %v7947_v25 = vld [vmem:[#allocation2 + $0xd6] sm:$0xff] }
 0x831   : > { %v13032_v3 = vpop.f32.mrb[201].mxu0  ;;  %13224 = vmatprep.mubr.msk.f32.mxu1 %vm14006_vm0, %v18198_v59 }
 0x832   : > { %v18250_v18 = vadd.f32 %v7715_v24, %v7523_v49  ;;  %v7948_v3 = vld [vmem:[#allocation2 + $0xde] sm:$0xff] }
 0x833   : > { %v7352_v16 = vpop.f32.mrb[200].mxu1 }
 0x834   : > { %v7720_v37 = vpop.f32.mrb[202].mxu0  ;;  %v7524_v44 = vadd.f32 %v7352_v16, %v17953_v21  ;;  %v12880_v14 = vpop.f32.mrb[201].mxu1  ;;  %13225 = vmatmul.mubr.f32.gmra.mrb[50].mxu1 %v7945_v42 }
 0x835   : > { %v13035_v61 = vpop.f32.mrb[203].mxu0  ;;  %13227 = vmatprep.mubr.msk.f32.mxu1 %vm14006_vm0, %v18198_v59 }
 0x836   : > { %v18255_v51 = vadd.f32 %v7720_v37, %v7524_v44  ;;  %v7949_v61 = vld [vmem:[#allocation2 + $0xe6] sm:$0xff] }
 0x837   : > { %v7357_v39 = vpop.f32.mrb[202].mxu1 }
 0x838   : > { %v7725_v38 = vpop.f32.mrb[204].mxu0  ;;  %v7525_v19 = vadd.f32 %v7357_v39, %v17960_v13  ;;  %v12883_v32 = vpop.f32.mrb[203].mxu1  ;;  %13228 = vmatmul.mubr.f32.gmra.mrb[52].mxu1 %v7946_v50 }
 0x839   : > { %v13038_v27 = vpop.f32.mrb[205].mxu0  ;;  %13230 = vmatprep.mubr.msk.f32.mxu1 %vm14006_vm0, %v18198_v59 }
 0x83a   : > { %v18260_v21 = vadd.f32 %v7725_v38, %v7525_v19  ;;  %v7950_v27 = vld [vmem:[#allocation2 + $0xee] sm:$0xff] }
 0x83b   : > { %v7362_v5 = vpop.f32.mrb[204].mxu1 }
 0x83c   : > { %v7730_v15 = vpop.f32.mrb[206].mxu0  ;;  %v7526_v24 = vadd.f32 %v7362_v5, %v17967_v36  ;;  %v12886_v53 = vpop.f32.mrb[205].mxu1  ;;  %13231 = vmatmul.mubr.f32.gmra.mrb[54].mxu1 %v7947_v25 }
 0x83d   : > { %v13041_v12 = vpop.f32.mrb[207].mxu0  ;;  %13233 = vmatprep.mubr.msk.f32.mxu1 %vm14006_vm0, %v18198_v59 }
 0x83e   : > { %v18265_v13 = vadd.f32 %v7730_v15, %v7526_v24  ;;  %v7951_v12 = vld [vmem:[#allocation2 + $0xf6] sm:$0xff] }
 0x83f   : > { %v7367_v49 = vpop.f32.mrb[206].mxu1 }
 0x840   : > { %v7735_v48 = vpop.f32.mrb[208].mxu0  ;;  %v7527_v16 = vadd.f32 %v7367_v49, %v17974_v2  ;;  %v12889_v37 = vpop.f32.mrb[207].mxu1  ;;  %13234 = vmatmul.mubr.f32.gmra.mrb[56].mxu1 %v7948_v3 }
 0x841   : > { %v13044_v42 = vpop.f32.mrb[209].mxu0  ;;  %13236 = vmatprep.mubr.msk.f32.mxu1 %vm14006_vm0, %v18198_v59 }
 0x842   : > { %v18270_v36 = vadd.f32 %v7735_v48, %v7527_v16  ;;  %v7952_v42 = vld [vmem:[#allocation2 + $0xfe] sm:$0xff] }
 0x843   : > { %v7372_v44 = vpop.f32.mrb[208].mxu1 }
 0x844   : > { %v7740_v14 = vpop.f32.mrb[210].mxu0  ;;  %v7528_v39 = vadd.f32 %v7372_v44, %v17987_v57  ;;  %v12892_v38 = vpop.f32.mrb[209].mxu1  ;;  %13237 = vmatmul.mubr.f32.gmra.mrb[58].mxu1 %v7949_v61 }
 0x845   : > { %v13047_v50 = vpop.f32.mrb[211].mxu0  ;;  %13239 = vmatprep.mubr.msk.f32.mxu1 %vm14006_vm0, %v18198_v59 }
 0x846   : > { %v18275_v2 = vadd.f32 %v7740_v14, %v7528_v39  ;;  %v7953_v50 = vld [vmem:[#allocation2 + $0x106] sm:$0xff] }
 0x847   : > { %v7377_v19 = vpop.f32.mrb[210].mxu1 }
 0x848   : > { %v7745_v32 = vpop.f32.mrb[212].mxu0  ;;  %v7529_v5 = vadd.f32 %v7377_v19, %v17995_v45  ;;  %v12895_v15 = vpop.f32.mrb[211].mxu1  ;;  %13240 = vmatmul.mubr.f32.gmra.mrb[60].mxu1 %v7950_v27 }
 0x849   : > { %v13050_v25 = vpop.f32.mrb[213].mxu0  ;;  %13242 = vmatprep.mubr.msk.f32.mxu1 %vm14006_vm0, %v18198_v59 }
 0x84a   : > { %v18280_v57 = vadd.f32 %v7745_v32, %v7529_v5  ;;  %v7954_v25 = vld [vmem:[#allocation2 + $0x10e] sm:$0xff] }
 0x84b   : > { %v7382_v24 = vpop.f32.mrb[212].mxu1 }
 0x84c   : > { %v7750_v53 = vpop.f32.mrb[214].mxu0  ;;  %v7530_v49 = vadd.f32 %v7382_v24, %v18002_v20  ;;  %v12898_v48 = vpop.f32.mrb[213].mxu1  ;;  %13243 = vmatmul.mubr.f32.gmra.mrb[62].mxu1 %v7951_v12 }
 0x84d   : > { %v13053_v3 = vpop.f32.mrb[215].mxu0  ;;  %13245 = vmatprep.mubr.msk.f32.mxu1 %vm14006_vm0, %v18198_v59 }
 0x84e   : > { %v18285_v45 = vadd.f32 %v7750_v53, %v7530_v49  ;;  %v7955_v3 = vld [vmem:[#allocation2 + $0x116] sm:$0xff] }
 0x84f   : > { %v7387_v16 = vpop.f32.mrb[214].mxu1 }
 0x850   : > { %v7755_v37 = vpop.f32.mrb[216].mxu0  ;;  %v7531_v44 = vadd.f32 %v7387_v16, %v18009_v10  ;;  %v12901_v14 = vpop.f32.mrb[215].mxu1  ;;  %13246 = vmatmul.mubr.f32.gmra.mrb[64].mxu1 %v7952_v42 }
 0x851   : > { %v13056_v61 = vpop.f32.mrb[217].mxu0  ;;  %13248 = vmatprep.mubr.msk.f32.mxu1 %vm14006_vm0, %v18198_v59 }
 0x852   : > { %v18290_v20 = vadd.f32 %v7755_v37, %v7531_v44  ;;  %v7956_v61 = vld [vmem:[#allocation2 + $0x11e] sm:$0xff] }
 0x853   : > { %v7392_v39 = vpop.f32.mrb[216].mxu1 }
 0x854   : > { %v7760_v38 = vpop.f32.mrb[218].mxu0  ;;  %v7532_v19 = vadd.f32 %v7392_v39, %v18016_v26  ;;  %v12904_v32 = vpop.f32.mrb[217].mxu1  ;;  %13249 = vmatmul.mubr.f32.gmra.mrb[66].mxu1 %v7953_v50 }
 0x855   : > { %v13059_v27 = vpop.f32.mrb[219].mxu0  ;;  %13251 = vmatprep.mubr.msk.f32.mxu1 %vm14006_vm0, %v18198_v59 }
 0x856   : > { %v18295_v10 = vadd.f32 %v7760_v38, %v7532_v19  ;;  %v7957_v27 = vld [vmem:[#allocation2 + $0x126] sm:$0xff] }
 0x857   : > { %v7397_v5 = vpop.f32.mrb[218].mxu1 }
 0x858   : > { %v7765_v15 = vpop.f32.mrb[220].mxu0  ;;  %v7533_v24 = vadd.f32 %v7397_v5, %v18029_v54  ;;  %v12907_v53 = vpop.f32.mrb[219].mxu1  ;;  %13252 = vmatmul.mubr.f32.gmra.mrb[68].mxu1 %v7954_v25 }
 0x859   : > { %v13062_v12 = vpop.f32.mrb[221].mxu0  ;;  %13254 = vmatprep.mubr.msk.f32.mxu1 %vm14006_vm0, %v18198_v59 }
 0x85a   : > { %v18300_v26 = vadd.f32 %v7765_v15, %v7533_v24  ;;  %v7958_v12 = vld [vmem:[#allocation2 + $0x12e] sm:$0xff] }
 0x85b   : > { %v7402_v49 = vpop.f32.mrb[220].mxu1 }
 0x85c   : > { %v7770_v48 = vpop.f32.mrb[222].mxu0  ;;  %v7534_v16 = vadd.f32 %v7402_v49, %v18037_v11  ;;  %v12910_v37 = vpop.f32.mrb[221].mxu1  ;;  %13255 = vmatmul.mubr.f32.gmra.mrb[70].mxu1 %v7955_v3 }
 0x85d   : > { %v13065_v42 = vpop.f32.mrb[223].mxu0  ;;  %13257 = vmatprep.mubr.msk.f32.mxu1 %vm14006_vm0, %v18198_v59 }
 0x85e   : > { %v18305_v54 = vadd.f32 %v7770_v48, %v7534_v16  ;;  %v7959_v42 = vld [vmem:[#allocation2 + $0x136] sm:$0xff] }
 0x85f   : > { %v7407_v44 = vpop.f32.mrb[222].mxu1 }
 0x860   : > { %v7775_v14 = vpop.f32.mrb[224].mxu0  ;;  %v7535_v39 = vadd.f32 %v7407_v44, %v18044_v1  ;;  %v12913_v38 = vpop.f32.mrb[223].mxu1  ;;  %13258 = vmatmul.mubr.f32.gmra.mrb[72].mxu1 %v7956_v61 }
 0x861   : > { %v13068_v50 = vpop.f32.mrb[225].mxu0  ;;  %13260 = vmatprep.mubr.msk.f32.mxu1 %vm14006_vm0, %v18198_v59 }
 0x862   : > { %v18310_v11 = vadd.f32 %v7775_v14, %v7535_v39  ;;  %v7960_v50 = vld [vmem:[#allocation2 + $0x13e] sm:$0xff] }
 0x863   : > { %v7412_v19 = vpop.f32.mrb[224].mxu1 }
 0x864   : > { %v7780_v32 = vpop.f32.mrb[226].mxu0  ;;  %v7536_v5 = vadd.f32 %v7412_v19, %v18051_v33  ;;  %v12916_v15 = vpop.f32.mrb[225].mxu1  ;;  %13261 = vmatmul.mubr.f32.gmra.mrb[74].mxu1 %v7957_v27 }
 0x865   : > { %v13071_v25 = vpop.f32.mrb[227].mxu0  ;;  %13263 = vmatprep.mubr.msk.f32.mxu1 %vm14006_vm0, %v18198_v59 }
 0x866   : > { %v18315_v1 = vadd.f32 %v7780_v32, %v7536_v5  ;;  %v7961_v25 = vld [vmem:[#allocation2 + $0x146] sm:$0xff] }
 0x867   : > { %v7417_v24 = vpop.f32.mrb[226].mxu1 }
 0x868   : > { %v7785_v53 = vpop.f32.mrb[228].mxu0  ;;  %v7537_v49 = vadd.f32 %v7417_v24, %v18058_v55  ;;  %v12919_v48 = vpop.f32.mrb[227].mxu1  ;;  %13264 = vmatmul.mubr.f32.gmra.mrb[76].mxu1 %v7958_v12 }
 0x869   : > { %v13074_v3 = vpop.f32.mrb[229].mxu0  ;;  %13266 = vmatprep.mubr.msk.f32.mxu1 %vm14006_vm0, %v18198_v59 }
 0x86a   : > { %v18320_v33 = vadd.f32 %v7785_v53, %v7537_v49  ;;  %v7962_v3 = vld [vmem:[#allocation2 + $0x14e] sm:$0xff] }
 0x86b   : > { %v7422_v16 = vpop.f32.mrb[228].mxu1 }
 0x86c   : > { %v7790_v37 = vpop.f32.mrb[230].mxu0  ;;  %v7538_v44 = vadd.f32 %v7422_v16, %v18071_v46  ;;  %v12922_v14 = vpop.f32.mrb[229].mxu1  ;;  %13267 = vmatmul.mubr.f32.gmra.mrb[78].mxu1 %v7959_v42 }
 0x86d   : > { %v13077_v61 = vpop.f32.mrb[231].mxu0  ;;  %13269 = vmatprep.mubr.msk.f32.mxu1 %vm14006_vm0, %v18198_v59 }
 0x86e   : > { %v18325_v55 = vadd.f32 %v7790_v37, %v7538_v44  ;;  %v7963_v61 = vld [vmem:[#allocation2 + $0x156] sm:$0xff] }
 0x86f   : > { %v7427_v39 = vpop.f32.mrb[230].mxu1 }
 0x870   : > { %v7795_v38 = vpop.f32.mrb[232].mxu0  ;;  %v7539_v19 = vadd.f32 %v7427_v39, %v18079_v52  ;;  %v12925_v32 = vpop.f32.mrb[231].mxu1  ;;  %13270 = vmatmul.mubr.f32.gmra.mrb[80].mxu1 %v7960_v50 }
 0x871   : > { %v13080_v27 = vpop.f32.mrb[233].mxu0  ;;  %13272 = vmatprep.mubr.msk.f32.mxu1 %vm14006_vm0, %v18198_v59 }
 0x872   : > { %v18330_v46 = vadd.f32 %v7795_v38, %v7539_v19 }
 0x873   : > { %v7432_v5 = vpop.f32.mrb[232].mxu1 }
 0x874   : > { %v7800_v15 = vpop.f32.mrb[234].mxu0  ;;  %v7540_v24 = vadd.f32 %v7432_v5, %v18086_v41  ;;  %v12928_v53 = vpop.f32.mrb[233].mxu1  ;;  %13273 = vmatmul.mubr.f32.gmra.mrb[82].mxu1 %v7961_v25 }
 0x875   : > { %v13083_v12 = vpop.f32.mrb[235].mxu0  ;;  %13275 = vmatprep.mubr.msk.f32.mxu1 %vm14006_vm0, %v18198_v59 }
 0x876   : > { %v18335_v52 = vadd.f32 %v7800_v15, %v7540_v24 }
 0x877   : > { %v7437_v49 = vpop.f32.mrb[234].mxu1 }
 0x878   : > { %v7805_v48 = vpop.f32.mrb[236].mxu0  ;;  %v7541_v16 = vadd.f32 %v7437_v49, %v18093_v60  ;;  %v12931_v37 = vpop.f32.mrb[235].mxu1  ;;  %13276 = vmatmul.mubr.f32.gmra.mrb[84].mxu1 %v7962_v3  ;;  %v7964_v60 = vld [vmem:[#allocation2 + $0x15e] sm:$0xff] }
 0x879   : > { %v13086_v42 = vpop.f32.mrb[237].mxu0  ;;  %13278 = vmatprep.mubr.msk.f32.mxu1 %vm14006_vm0, %v18198_v59 }
 0x87a   : > { %v18340_v41 = vadd.f32 %v7805_v48, %v7541_v16 }
 0x87b   : > { %v7442_v44 = vpop.f32.mrb[236].mxu1 }
 0x87c   : > { %v7810_v14 = vpop.f32.mrb[238].mxu0  ;;  %v7542_v39 = vadd.f32 %v7442_v44, %v18100_v62  ;;  %v12934_v38 = vpop.f32.mrb[237].mxu1  ;;  %13279 = vmatmul.mubr.f32.gmra.mrb[86].mxu1 %v7963_v61  ;;  %v7965_v62 = vld [vmem:[#allocation2 + $0x166] sm:$0xff] }
 0x87d   : > { %v13089_v50 = vpop.f32.mrb[239].mxu0  ;;  %13281 = vmatprep.mubr.msk.f32.mxu1 %vm14006_vm0, %v18198_v59 }
 0x87e   : > { %v18345_v19 = vadd.f32 %v7810_v14, %v7542_v39 }
 0x87f   : > { %v7447_v32 = vpop.f32.mrb[238].mxu1 }
 0x880   : > { %v7815_v27 = vpop.f32.mrb[240].mxu0  ;;  %v7543_v5 = vadd.f32 %v7447_v32, %v18113_v58  ;;  %v12937_v15 = vpop.f32.mrb[239].mxu1  ;;  %13282 = vmatmul.mubr.f32.gmra.mrb[88].mxu1 %v7964_v60 }
 0x881   : > { %v13092_v25 = vpop.f32.mrb[241].mxu0  ;;  %13284 = vmatprep.mubr.msk.f32.mxu1 %vm14006_vm0, %v18198_v59 }
 0x882   : > { %v18350_v24 = vadd.f32 %v7815_v27, %v7543_v5 }
 0x883   : > { %v7452_v53 = vpop.f32.mrb[240].mxu1 }
 0x884   : > { %v7820_v12 = vpop.f32.mrb[242].mxu0  ;;  %v7544_v49 = vadd.f32 %v7452_v53, %v18121_v31  ;;  %v12940_v48 = vpop.f32.mrb[241].mxu1  ;;  %13285 = vmatmul.mubr.f32.gmra.mrb[90].mxu1 %v7965_v62 }
 0x885   : > { %v13095_v3 = vpop.f32.mrb[243].mxu0 }
 0x886   : > { %v18353_v16 = vadd.f32 %v7820_v12, %v7544_v49 }
 0x887   : > { %v7457_v37 = vpop.f32.mrb[242].mxu1 }
 0x888   : > { %v7825_v58 = vpop.f32.mrb[244].mxu0  ;;  %v7545_v42 = vadd.f32 %v7457_v37, %v18126_v4  ;;  %v12943_v44 = vpop.f32.mrb[243].mxu1 }
 0x889   : > { %v13098_v14 = vpop.f32.mrb[245].mxu0 }
 0x88a   : > { %v18356_v61 = vadd.f32 %v7825_v58, %v7545_v42 }
 0x88b   : > { %v7462_v39 = vpop.f32.mrb[244].mxu1 }
 0x88c   : > { %v7830_v38 = vpop.f32.mrb[246].mxu0  ;;  %v7546_v50 = vadd.f32 %v7462_v39, %v18131_v34  ;;  %v12946_v60 = vpop.f32.mrb[245].mxu1 }
 0x88d   : > { %v13101_v32 = vpop.f32.mrb[247].mxu0 }
 0x88e   : > { %v18359_v31 = vadd.f32 %v7830_v38, %v7546_v50 }
 0x88f   : > { %v7467_v27 = vpop.f32.mrb[246].mxu1 }
 0x890   : > { %v7835_v5 = vpop.f32.mrb[248].mxu0  ;;  %v7547_v15 = vadd.f32 %v7467_v27, %v18136_v56  ;;  %v12949_v25 = vpop.f32.mrb[247].mxu1 }
 0x891   : > { %v13104_v62 = vpop.f32.mrb[249].mxu0 }
 0x892   : > { %v18362_v53 = vadd.f32 %v7835_v5, %v7547_v15 }
 0x893   : > { %v7472_v4 = vpop.f32.mrb[248].mxu1 }
 0x894   : > { %v7840_v12 = vpop.f32.mrb[250].mxu0  ;;  %v7548_v49 = vadd.f32 %v7472_v4, %v18147_v40  ;;  %v12952_v48 = vpop.f32.mrb[249].mxu1 }
 0x895   : > { %v13107_v3 = vpop.f32.mrb[251].mxu0 }
 0x896   : > { %v18365_v37 = vadd.f32 %v7840_v12, %v7548_v49 }
 0x897   : > { %v7477_v34 = vpop.f32.mrb[250].mxu1 }
 0x898   : > { %v7845_v58 = vpop.f32.mrb[252].mxu0  ;;  %v7549_v42 = vadd.f32 %v7477_v34, %v18153_v6  ;;  %v12955_v44 = vpop.f32.mrb[251].mxu1 }
 0x899   : > { %v13110_v14 = vpop.f32.mrb[253].mxu0 }
 0x89a   : > { %v18368_v39 = vadd.f32 %v7845_v58, %v7549_v42 }
 0x89b   : > { %v7482_v56 = vpop.f32.mrb[252].mxu1 }
 0x89c   : > { %v7850_v38 = vpop.f32.mrb[254].mxu0  ;;  %v7550_v50 = vadd.f32 %v7482_v56, %v18158_v7  ;;  %v12958_v60 = vpop.f32.mrb[253].mxu1 }
 0x89d   : > { %v13113_v32 = vpop.f32.mrb[255].mxu0 }
 0x89e   : > { %v18371_v27 = vadd.f32 %v7850_v38, %v7550_v50 }
 0x89f   : > { %v7487_v40 = vpop.f32.mrb[254].mxu1 }
 0x8a0   : > { %v7855_v5 = vpop.f32.mrb[0].mxu0  ;;  %v7551_v15 = vadd.f32 %v7487_v40, %v18163_v23  ;;  %v12961_v25 = vpop.f32.mrb[255].mxu1 }
 0x8a1   : > { %v13116_v62 = vpop.f32.mrb[1].mxu0 }
 0x8a2   : > { %v18374_v4 = vadd.f32 %v7855_v5, %v7551_v15 }
 0x8a3   : > { %v7492_v6 = vpop.f32.mrb[0].mxu1 }
 0x8a4   : > { %v7860_v12 = vpop.f32.mrb[2].mxu0  ;;  %v7552_v49 = vadd.f32 %v7492_v6, %v18168_v0  ;;  %v12964_v48 = vpop.f32.mrb[1].mxu1 }
 0x8a5   : > { %v13119_v3 = vpop.f32.mrb[3].mxu0 }
 0x8a6   : > { %v18377_v34 = vadd.f32 %v7860_v12, %v7552_v49 }
 0x8a7   : > { %v7497_v7 = vpop.f32.mrb[2].mxu1 }
 0x8a8   : > { %v7865_v58 = vpop.f32.mrb[4].mxu0  ;;  %v7553_v42 = vadd.f32 %v7497_v7, %v18173_v47  ;;  %v12967_v44 = vpop.f32.mrb[3].mxu1 }
 0x8a9   : > { %v13122_v14 = vpop.f32.mrb[5].mxu0 }
 0x8aa   : > { %v18380_v56 = vadd.f32 %v7865_v58, %v7553_v42  ;;  %v18394_v58 = vld [vmem:[%s18666_s9] ss:$0 sm:$0xff] }
 0x8ab   : > { %v7502_v23 = vpop.f32.mrb[4].mxu1 }
 0x8ac   : > { %v7870_v38 = vpop.f32.mrb[6].mxu0  ;;  %v7554_v50 = vadd.f32 %v7502_v23, %v18184_v35  ;;  %v12970_v60 = vpop.f32.mrb[5].mxu1 }
 0x8ad   : > { %v13125_v32 = vpop.f32.mrb[7].mxu0 }
 0x8ae   : > { %v18383_v40 = vadd.f32 %v7870_v38, %v7554_v50 }
 0x8af   : > { %v7507_v0 = vpop.f32.mrb[6].mxu1 }
 0x8b0   : > { %v7875_v5 = vpop.f32.mrb[8].mxu0  ;;  %v7555_v15 = vadd.f32 %v7507_v0, %v18190_v17  ;;  %v12973_v25 = vpop.f32.mrb[7].mxu1 }
 0x8b1   : > { %v13128_v62 = vpop.f32.mrb[9].mxu0 }
 0x8b2   : > { %v18386_v6 = vadd.f32 %v7875_v5, %v7555_v15 }
 0x8b3   : > { %v7512_v47 = vpop.f32.mrb[8].mxu1 }
 0x8b4   : > { %v7880_v12 = vpop.f32.mrb[10].mxu0  ;;  %v7556_v49 = vadd.f32 %v7512_v47, %v18195_v63  ;;  %v12976_v48 = vpop.f32.mrb[9].mxu1 }
 0x8b5   : > { %v13131_v3 = vpop.f32.mrb[11].mxu0 }
 0x8b6   : > { %v18389_v7 = vadd.f32 %v7880_v12, %v7556_v49 }
 0x8b7   : > { %v8048_v35 = vpop.f32.mrb[10].mxu1 }
 0x8b8   : > { %v8252_v17 = vadd.f32 %v8048_v35, %v18202_v30  ;;  %v13166_v42 = vpop.f32.mrb[11].mxu1 }
 0x8ba   : > { %v8300_v44 = vadd.f32 %v18394_v58, %v8252_v17 }
 0x8bb   : > { %v8053_v14 = vpop.f32.mrb[12].mxu1 }
 0x8bc   : > { %v8341_v23 = vmul.f32 0.1, %v8300_v44  ;;  %v8253_v38 = vadd.f32 %v8053_v14, %v18207_v9  ;;  %v13169_v63 = vpop.f32.mrb[13].mxu1 }
 0x8be   : > { %v8382_v50 = vmax.f32 %v8300_v44, %v8341_v23  ;;  %v8301_v60 = vadd.f32 %v18394_v58, %v8253_v38 }
 0x8bf   : > { %v8058_v32 = vpop.f32.mrb[14].mxu1 }
 0x8c0   : > { %v8342_v0 = vmul.f32 0.1, %v8301_v60  ;;  %v8254_v5 = vadd.f32 %v8058_v32, %v18218_v43  ;;  %v13172_v15 = vpop.f32.mrb[15].mxu1  ;;  %13320 = vmatmul.mubr.f32.vlgmr.msra.gmra.mrb[12].mxu0 %v8382_v50 }
 0x8c1   : > { %13322 = vmatprep.mubr.msk.f32.mxu0 %vm14006_vm0, %v18198_v59 }
 0x8c2   : > { %v8383_v30 = vmax.f32 %v8301_v60, %v8342_v0  ;;  %v8302_v25 = vadd.f32 %v18394_v58, %v8254_v5 }
 0x8c3   : > { %v8063_v62 = vpop.f32.mrb[16].mxu1 }
 0x8c4   : > { %v8343_v47 = vmul.f32 0.1, %v8302_v25  ;;  %v8255_v9 = vadd.f32 %v8063_v62, %v18224_v28  ;;  %v13175_v12 = vpop.f32.mrb[17].mxu1  ;;  %13323 = vmatmul.mubr.f32.gmra.mrb[14].mxu0 %v8383_v30 }
 0x8c5   : > { %13325 = vmatprep.mubr.msk.f32.mxu0 %vm14006_vm0, %v18198_v59 }
 0x8c6   : > { %v8384_v49 = vmax.f32 %v8302_v25, %v8343_v47  ;;  %v8303_v43 = vadd.f32 %v18394_v58, %v8255_v9 }
 0x8c7   : > { %v8068_v48 = vpop.f32.mrb[18].mxu1 }
 0x8c8   : > { %v8344_v3 = vmul.f32 0.1, %v8303_v43  ;;  %v8256_v35 = vadd.f32 %v8068_v48, %v18229_v22  ;;  %v13178_v17 = vpop.f32.mrb[19].mxu1  ;;  %13326 = vmatmul.mubr.f32.gmra.mrb[16].mxu0 %v8384_v49 }
 0x8c9   : > { %13328 = vmatprep.mubr.msk.f32.mxu0 %vm14006_vm0, %v18198_v59 }
 0x8ca   : > { %v8385_v42 = vmax.f32 %v8303_v43, %v8344_v3  ;;  %v8304_v28 = vadd.f32 %v18394_v58, %v8256_v35 }
 0x8cb   : > { %v8073_v44 = vpop.f32.mrb[20].mxu1 }
 0x8cc   : > { %v8345_v14 = vmul.f32 0.1, %v8304_v28  ;;  %v8257_v23 = vadd.f32 %v8073_v44, %v18234_v29  ;;  %v13181_v38 = vpop.f32.mrb[21].mxu1  ;;  %13329 = vmatmul.mubr.f32.gmra.mrb[18].mxu0 %v8385_v42 }
 0x8cd   : > { %13331 = vmatprep.mubr.msk.f32.mxu0 %vm14006_vm0, %v18198_v59 }
 0x8ce   : > { %v8386_v63 = vmax.f32 %v8304_v28, %v8345_v14  ;;  %v8305_v22 = vadd.f32 %v18394_v58, %v8257_v23 }
 0x8cf   : > { %v8078_v50 = vpop.f32.mrb[22].mxu1 }
 0x8d0   : > { %v8346_v60 = vmul.f32 0.1, %v8305_v22  ;;  %v8258_v32 = vadd.f32 %v8078_v50, %v18239_v8  ;;  %v13184_v0 = vpop.f32.mrb[23].mxu1  ;;  %13332 = vmatmul.mubr.f32.gmra.mrb[20].mxu0 %v8386_v63 }
 0x8d1   : > { %13334 = vmatprep.mubr.msk.f32.mxu0 %vm14006_vm0, %v18198_v59 }
 0x8d2   : > { %v8387_v5 = vmax.f32 %v8305_v22, %v8346_v60  ;;  %v8306_v29 = vadd.f32 %v18394_v58, %v8258_v32 }
 0x8d3   : > { %v8083_v15 = vpop.f32.mrb[24].mxu1 }
 0x8d4   : > { %v8347_v30 = vmul.f32 0.1, %v8306_v29  ;;  %v8259_v25 = vadd.f32 %v8083_v15, %v18250_v18  ;;  %v13187_v62 = vpop.f32.mrb[25].mxu1  ;;  %13335 = vmatmul.mubr.f32.gmra.mrb[22].mxu0 %v8387_v5 }
 0x8d5   : > { %13337 = vmatprep.mubr.msk.f32.mxu0 %vm14006_vm0, %v18198_v59 }
 0x8d6   : > { %v8388_v47 = vmax.f32 %v8306_v29, %v8347_v30  ;;  %v8307_v8 = vadd.f32 %v18394_v58, %v8259_v25 }
 0x8d7   : > { %v8088_v9 = vpop.f32.mrb[26].mxu1 }
 0x8d8   : > { %v8348_v12 = vmul.f32 0.1, %v8307_v8  ;;  %v8260_v49 = vadd.f32 %v8088_v9, %v18255_v51  ;;  %v13190_v43 = vpop.f32.mrb[27].mxu1  ;;  %13338 = vmatmul.mubr.f32.gmra.mrb[24].mxu0 %v8388_v47 }
 0x8d9   : > { %13340 = vmatprep.mubr.msk.f32.mxu0 %vm14006_vm0, %v18198_v59 }
 0x8da   : > { %v8389_v48 = vmax.f32 %v8307_v8, %v8348_v12  ;;  %v8308_v18 = vadd.f32 %v18394_v58, %v8260_v49 }
 0x8db   : > { %v8093_v3 = vpop.f32.mrb[28].mxu1 }
 0x8dc   : > { %v8349_v35 = vmul.f32 0.1, %v8308_v18  ;;  %v8261_v17 = vadd.f32 %v8093_v3, %v18260_v21  ;;  %v13193_v42 = vpop.f32.mrb[29].mxu1  ;;  %13341 = vmatmul.mubr.f32.gmra.mrb[26].mxu0 %v8389_v48 }
 0x8dd   : > { %13343 = vmatprep.mubr.msk.f32.mxu0 %vm14006_vm0, %v18198_v59 }
 0x8de   : > { %v8390_v28 = vmax.f32 %v8308_v18, %v8349_v35  ;;  %v8309_v51 = vadd.f32 %v18394_v58, %v8261_v17 }
 0x8df   : > { %v8098_v44 = vpop.f32.mrb[30].mxu1 }
 0x8e0   : > { %v8350_v14 = vmul.f32 0.1, %v8309_v51  ;;  %v8262_v23 = vadd.f32 %v8098_v44, %v18265_v13  ;;  %v13196_v38 = vpop.f32.mrb[31].mxu1  ;;  %13344 = vmatmul.mubr.f32.gmra.mrb[28].mxu0 %v8390_v28 }
 0x8e1   : > { %13346 = vmatprep.mubr.msk.f32.mxu0 %vm14006_vm0, %v18198_v59 }
 0x8e2   : > { %v8391_v63 = vmax.f32 %v8309_v51, %v8350_v14  ;;  %v8310_v21 = vadd.f32 %v18394_v58, %v8262_v23 }
 0x8e3   : > { %v8103_v22 = vpop.f32.mrb[32].mxu1 }
 0x8e4   : > { %v8351_v50 = vmul.f32 0.1, %v8310_v21  ;;  %v8263_v60 = vadd.f32 %v8103_v22, %v18270_v36  ;;  %v13199_v32 = vpop.f32.mrb[33].mxu1  ;;  %13347 = vmatmul.mubr.f32.gmra.mrb[30].mxu0 %v8391_v63 }
 0x8e5   : > { %13349 = vmatprep.mubr.msk.f32.mxu0 %vm14006_vm0, %v18198_v59 }
 0x8e6   : > { %v8392_v0 = vmax.f32 %v8310_v21, %v8351_v50  ;;  %v8311_v13 = vadd.f32 %v18394_v58, %v8263_v60 }
 0x8e7   : > { %v8108_v5 = vpop.f32.mrb[34].mxu1 }
 0x8e8   : > { %v8352_v29 = vmul.f32 0.1, %v8311_v13  ;;  %v8264_v15 = vadd.f32 %v8108_v5, %v18275_v2  ;;  %v13202_v30 = vpop.f32.mrb[35].mxu1  ;;  %13350 = vmatmul.mubr.f32.gmra.mrb[32].mxu0 %v8392_v0 }
 0x8e9   : > { %13352 = vmatprep.mubr.msk.f32.mxu0 %vm14006_vm0, %v18198_v59 }
 0x8ea   : > { %v8393_v25 = vmax.f32 %v8311_v13, %v8352_v29  ;;  %v8312_v36 = vadd.f32 %v18394_v58, %v8264_v15 }
 0x8eb   : > { %v8113_v62 = vpop.f32.mrb[36].mxu1 }
 0x8ec   : > { %v8353_v47 = vmul.f32 0.1, %v8312_v36  ;;  %v8265_v8 = vadd.f32 %v8113_v62, %v18280_v57  ;;  %v13205_v9 = vpop.f32.mrb[37].mxu1  ;;  %13353 = vmatmul.mubr.f32.gmra.mrb[34].mxu0 %v8393_v25 }
 0x8ed   : > { %13355 = vmatprep.mubr.msk.f32.mxu0 %vm14006_vm0, %v18198_v59 }
 0x8ee   : > { %v8394_v12 = vmax.f32 %v8312_v36, %v8353_v47  ;;  %v8313_v2 = vadd.f32 %v18394_v58, %v8265_v8 }
 0x8ef   : > { %v8118_v49 = vpop.f32.mrb[38].mxu1 }
 0x8f0   : > { %v8354_v43 = vmul.f32 0.1, %v8313_v2  ;;  %v8266_v48 = vadd.f32 %v8118_v49, %v18285_v45  ;;  %v13208_v18 = vpop.f32.mrb[39].mxu1  ;;  %13356 = vmatmul.mubr.f32.gmra.mrb[36].mxu0 %v8394_v12 }
 0x8f1   : > { %13358 = vmatprep.mubr.msk.f32.mxu0 %vm14006_vm0, %v18198_v59 }
 0x8f2   : > { %v8395_v3 = vmax.f32 %v8313_v2, %v8354_v43  ;;  %v8314_v57 = vadd.f32 %v18394_v58, %v8266_v48 }
 0x8f3   : > { %v8123_v35 = vpop.f32.mrb[40].mxu1 }
 0x8f4   : > { %v8355_v17 = vmul.f32 0.1, %v8314_v57  ;;  %v8267_v42 = vadd.f32 %v8123_v35, %v18290_v20  ;;  %v13211_v28 = vpop.f32.mrb[41].mxu1  ;;  %13359 = vmatmul.mubr.f32.gmra.mrb[38].mxu0 %v8395_v3 }
 0x8f5   : > { %13361 = vmatprep.mubr.msk.f32.mxu0 %vm14006_vm0, %v18198_v59 }
 0x8f6   : > { %v8396_v51 = vmax.f32 %v8314_v57, %v8355_v17  ;;  %v8315_v45 = vadd.f32 %v18394_v58, %v8267_v42 }
 0x8f7   : > { %v8128_v44 = vpop.f32.mrb[42].mxu1 }
 0x8f8   : > { %v8356_v14 = vmul.f32 0.1, %v8315_v45  ;;  %v8268_v23 = vadd.f32 %v8128_v44, %v18295_v10  ;;  %v13214_v38 = vpop.f32.mrb[43].mxu1  ;;  %13362 = vmatmul.mubr.f32.gmra.mrb[40].mxu0 %v8396_v51 }
 0x8f9   : > { %13364 = vmatprep.mubr.msk.f32.mxu0 %vm14006_vm0, %v18198_v59  ;;  %v18485_v38 = vld [vmem:[#allocation2] sm:$0xff] }
 0x8fa   : > { %v8397_v63 = vmax.f32 %v8315_v45, %v8356_v14  ;;  %v8316_v20 = vadd.f32 %v18394_v58, %v8268_v23 }
 0x8fb   : > { %v8133_v21 = vpop.f32.mrb[44].mxu1 }
 0x8fc   : > { %v8357_v22 = vmul.f32 0.1, %v8316_v20  ;;  %v8269_v50 = vadd.f32 %v8133_v21, %v18300_v26  ;;  %v13217_v60 = vpop.f32.mrb[45].mxu1  ;;  %13365 = vmatmul.mubr.f32.gmra.mrb[42].mxu0 %v8397_v63 }
 0x8fd   : > { %13367 = vmatprep.mubr.msk.f32.mxu0 %vm14006_vm0, %v18198_v59 }
 0x8fe   : > { %v8398_v32 = vmax.f32 %v8316_v20, %v8357_v22  ;;  %v8317_v10 = vadd.f32 %v18394_v58, %v8269_v50 }
 0x8ff   : > { %v8138_v0 = vpop.f32.mrb[46].mxu1 }
 0x900   : > { %v8358_v13 = vmul.f32 0.1, %v8317_v10  ;;  %v8270_v5 = vadd.f32 %v8138_v0, %v18305_v54  ;;  %v13220_v29 = vpop.f32.mrb[47].mxu1  ;;  %13368 = vmatmul.mubr.f32.gmra.mrb[44].mxu0 %v8398_v32 }
 0x901   : > { %13370 = vmatprep.mubr.msk.f32.mxu0 %vm14006_vm0, %v18198_v59 }
 0x902   : > { %v8399_v15 = vmax.f32 %v8317_v10, %v8358_v13  ;;  %v8318_v26 = vadd.f32 %v18394_v58, %v8270_v5 }
 0x903   : > { %v8143_v30 = vpop.f32.mrb[48].mxu1 }
 0x904   : > { %v8359_v25 = vmul.f32 0.1, %v8318_v26  ;;  %v8271_v36 = vadd.f32 %v8143_v30, %v18310_v11  ;;  %v13223_v62 = vpop.f32.mrb[49].mxu1  ;;  %13371 = vmatmul.mubr.f32.gmra.mrb[46].mxu0 %v8399_v15 }
 0x905   : > { %13373 = vmatprep.mubr.msk.f32.mxu0 %vm14006_vm0, %v18198_v59 }
 0x906   : > { %v8400_v47 = vmax.f32 %v8318_v26, %v8359_v25  ;;  %v8319_v54 = vadd.f32 %v18394_v58, %v8271_v36 }
 0x907   : > { %v8148_v8 = vpop.f32.mrb[50].mxu1 }
 0x908   : > { %v8360_v9 = vmul.f32 0.1, %v8319_v54  ;;  %v8272_v12 = vadd.f32 %v8148_v8, %v18315_v1  ;;  %v13226_v2 = vpop.f32.mrb[51].mxu1  ;;  %13374 = vmatmul.mubr.f32.gmra.mrb[48].mxu0 %v8400_v47 }
 0x909   : > { %13376 = vmatprep.mubr.msk.f32.mxu0 %vm14006_vm0, %v18198_v59 }
 0x90a   : > { %v8401_v49 = vmax.f32 %v8319_v54, %v8360_v9  ;;  %v8320_v11 = vadd.f32 %v18394_v58, %v8272_v12 }
 0x90b   : > { %v8153_v43 = vpop.f32.mrb[52].mxu1 }
 0x90c   : > { %v8361_v48 = vmul.f32 0.1, %v8320_v11  ;;  %v8273_v18 = vadd.f32 %v8153_v43, %v18320_v33  ;;  %v13229_v3 = vpop.f32.mrb[53].mxu1  ;;  %13377 = vmatmul.mubr.f32.gmra.mrb[50].mxu0 %v8401_v49 }
 0x90d   : > { %13379 = vmatprep.mubr.msk.f32.mxu0 %vm14006_vm0, %v18198_v59 }
 0x90e   : > { %v8402_v57 = vmax.f32 %v8320_v11, %v8361_v48  ;;  %v8321_v1 = vadd.f32 %v18394_v58, %v8273_v18 }
 0x90f   : > { %v8158_v35 = vpop.f32.mrb[54].mxu1 }
 0x910   : > { %v8362_v17 = vmul.f32 0.1, %v8321_v1  ;;  %v8274_v42 = vadd.f32 %v8158_v35, %v18325_v55  ;;  %v13232_v28 = vpop.f32.mrb[55].mxu1  ;;  %13380 = vmatmul.mubr.f32.gmra.mrb[52].mxu0 %v8402_v57 }
 0x911   : > { %13382 = vmatprep.mubr.msk.f32.mxu0 %vm14006_vm0, %v18198_v59 }
 0x912   : > { %v8403_v51 = vmax.f32 %v8321_v1, %v8362_v17  ;;  %v8322_v33 = vadd.f32 %v18394_v58, %v8274_v42 }
 0x913   : > { %v8163_v45 = vpop.f32.mrb[56].mxu1 }
 0x914   : > { %v8363_v44 = vmul.f32 0.1, %v8322_v33  ;;  %v8275_v14 = vadd.f32 %v8163_v45, %v18330_v46  ;;  %v13235_v23 = vpop.f32.mrb[57].mxu1  ;;  %13383 = vmatmul.mubr.f32.gmra.mrb[54].mxu0 %v8403_v51 }
 0x915   : > { %13385 = vmatprep.mubr.msk.f32.mxu0 %vm14006_vm0, %v18485_v38 }
 0x916   : > { %v8404_v55 = vmax.f32 %v8322_v33, %v8363_v44  ;;  %v8323_v63 = vadd.f32 %v18394_v58, %v8275_v14 }
 0x917   : > { %v8168_v20 = vpop.f32.mrb[58].mxu1 }
 0x918   : > { %v8364_v21 = vmul.f32 0.1, %v8323_v63  ;;  %v8276_v59 = vadd.f32 %v8168_v20, %v18335_v52  ;;  %v13238_v22 = vpop.f32.mrb[59].mxu1  ;;  %13386 = vmatmul.mubr.f32.gmra.mrb[56].mxu0 %v8404_v55 }
 0x919   : > { %13388 = vmatprep.mubr.msk.f32.mxu0 %vm14006_vm0, %v18485_v38 }
 0x91a   : > { %v8405_v46 = vmax.f32 %v8323_v63, %v8364_v21  ;;  %v8324_v50 = vadd.f32 %v18394_v58, %v8276_v59 }
 0x91b   : > { %v8173_v60 = vpop.f32.mrb[60].mxu1 }
 0x91c   : > { %v8365_v32 = vmul.f32 0.1, %v8324_v50  ;;  %v8277_v10 = vadd.f32 %v8173_v60, %v18340_v41  ;;  %v13241_v0 = vpop.f32.mrb[61].mxu1  ;;  %13389 = vmatmul.mubr.f32.gmra.mrb[58].mxu0 %v8405_v46 }
 0x91d   : > { %13391 = vmatprep.mubr.msk.f32.mxu0 %vm14006_vm0, %v18485_v38 }
 0x91e   : > { %v8406_v13 = vmax.f32 %v8324_v50, %v8365_v32  ;;  %v8325_v52 = vadd.f32 %v18394_v58, %v8277_v10 }
 0x91f   : > { %v8178_v5 = vpop.f32.mrb[62].mxu1 }
 0x920   : > { %v8366_v29 = vmul.f32 0.1, %v8325_v52  ;;  %v8278_v15 = vadd.f32 %v8178_v5, %v18345_v19  ;;  %v13244_v26 = vpop.f32.mrb[63].mxu1  ;;  %13392 = vmatmul.mubr.f32.gmra.mrb[60].mxu0 %v8406_v13 }
 0x921   : > { %13394 = vmatprep.mubr.msk.f32.mxu0 %vm14006_vm0, %v18485_v38 }
 0x922   : > { %v8407_v30 = vmax.f32 %v8325_v52, %v8366_v29  ;;  %v8326_v41 = vadd.f32 %v18394_v58, %v8278_v15 }
 0x923   : > { %v8183_v25 = vpop.f32.mrb[64].mxu1 }
 0x924   : > { %v8367_v36 = vmul.f32 0.1, %v8326_v41  ;;  %v8279_v62 = vadd.f32 %v8183_v25, %v18350_v24  ;;  %v13247_v47 = vpop.f32.mrb[65].mxu1  ;;  %13395 = vmatmul.mubr.f32.gmra.mrb[62].mxu0 %v8407_v30 }
 0x925   : > { %13397 = vmatprep.mubr.msk.f32.mxu0 %vm14006_vm0, %v18485_v38 }
 0x926   : > { %v8408_v54 = vmax.f32 %v8326_v41, %v8367_v36  ;;  %v8327_v19 = vadd.f32 %v18394_v58, %v8279_v62 }
 0x927   : > { %v8188_v8 = vpop.f32.mrb[66].mxu1 }
 0x928   : > { %v8368_v9 = vmul.f32 0.1, %v8327_v19  ;;  %v8280_v12 = vadd.f32 %v8188_v8, %v18353_v16  ;;  %v13250_v2 = vpop.f32.mrb[67].mxu1  ;;  %13398 = vmatmul.mubr.f32.gmra.mrb[64].mxu0 %v8408_v54 }
 0x929   : > { %13400 = vmatprep.mubr.msk.f32.mxu0 %vm14006_vm0, %v18485_v38 }
 0x92a   : > { %v8409_v49 = vmax.f32 %v8327_v19, %v8368_v9  ;;  %v8328_v24 = vadd.f32 %v18394_v58, %v8280_v12 }
 0x92b   : > { %v8193_v11 = vpop.f32.mrb[68].mxu1 }
 0x92c   : > { %v8369_v43 = vmul.f32 0.1, %v8328_v24  ;;  %v8281_v48 = vadd.f32 %v8193_v11, %v18356_v61  ;;  %v13253_v18 = vpop.f32.mrb[69].mxu1  ;;  %13401 = vmatmul.mubr.f32.gmra.mrb[66].mxu0 %v8409_v49 }
 0x92d   : > { %13403 = vmatprep.mubr.msk.f32.mxu0 %vm14006_vm0, %v18485_v38 }
 0x92e   : > { %v8410_v3 = vmax.f32 %v8328_v24, %v8369_v43  ;;  %v8329_v16 = vadd.f32 %v18394_v58, %v8281_v48 }
 0x92f   : > { %v8198_v57 = vpop.f32.mrb[70].mxu1 }
 0x930   : > { %v8370_v1 = vmul.f32 0.1, %v8329_v16  ;;  %v8282_v35 = vadd.f32 %v8198_v57, %v18359_v31  ;;  %v13256_v17 = vpop.f32.mrb[71].mxu1  ;;  %13404 = vmatmul.mubr.f32.gmra.mrb[68].mxu0 %v8410_v3 }
 0x931   : > { %13406 = vmatprep.mubr.msk.f32.mxu0 %vm14006_vm0, %v18485_v38 }
 0x932   : > { %v8411_v42 = vmax.f32 %v8329_v16, %v8370_v1  ;;  %v8330_v61 = vadd.f32 %v18394_v58, %v8282_v35 }
 0x933   : > { %v8203_v28 = vpop.f32.mrb[72].mxu1 }
 0x934   : > { %v8371_v51 = vmul.f32 0.1, %v8330_v61  ;;  %v8283_v33 = vadd.f32 %v8203_v28, %v18362_v53  ;;  %v13259_v45 = vpop.f32.mrb[73].mxu1  ;;  %13407 = vmatmul.mubr.f32.gmra.mrb[70].mxu0 %v8411_v42 }
 0x935   : > { %13409 = vmatprep.mubr.msk.f32.mxu0 %vm14006_vm0, %v18485_v38 }
 0x936   : > { %v8412_v44 = vmax.f32 %v8330_v61, %v8371_v51  ;;  %v8331_v31 = vadd.f32 %v18394_v58, %v8283_v33 }
 0x937   : > { %v8208_v14 = vpop.f32.mrb[74].mxu1 }
 0x938   : > { %v8372_v23 = vmul.f32 0.1, %v8331_v31  ;;  %v8284_v55 = vadd.f32 %v8208_v14, %v18365_v37  ;;  %v13262_v63 = vpop.f32.mrb[75].mxu1  ;;  %13410 = vmatmul.mubr.f32.gmra.mrb[72].mxu0 %v8412_v44 }
 0x939   : > { %13412 = vmatprep.mubr.msk.f32.mxu0 %vm14006_vm0, %v18485_v38 }
 0x93a   : > { %v8413_v20 = vmax.f32 %v8331_v31, %v8372_v23  ;;  %v8332_v53 = vadd.f32 %v18394_v58, %v8284_v55 }
 0x93b   : > { %v8213_v21 = vpop.f32.mrb[76].mxu1 }
 0x93c   : > { %v8373_v59 = vmul.f32 0.1, %v8332_v53  ;;  %v8285_v22 = vadd.f32 %v8213_v21, %v18368_v39  ;;  %v13265_v46 = vpop.f32.mrb[77].mxu1  ;;  %13413 = vmatmul.mubr.f32.gmra.mrb[74].mxu0 %v8413_v20 }
 0x93d   : > { %13415 = vmatprep.mubr.msk.f32.mxu0 %vm14006_vm0, %v18485_v38 }
 0x93e   : > { %v8414_v50 = vmax.f32 %v8332_v53, %v8373_v59  ;;  %v8333_v37 = vadd.f32 %v18394_v58, %v8285_v22 }
 0x93f   : > { %v8218_v60 = vpop.f32.mrb[78].mxu1 }
 0x940   : > { %v8374_v32 = vmul.f32 0.1, %v8333_v37  ;;  %v8286_v10 = vadd.f32 %v8218_v60, %v18371_v27  ;;  %v13268_v0 = vpop.f32.mrb[79].mxu1  ;;  %13416 = vmatmul.mubr.f32.gmra.mrb[76].mxu0 %v8414_v50 }
 0x941   : > { %13418 = vmatprep.mubr.msk.f32.mxu0 %vm14006_vm0, %v18485_v38 }
 0x942   : > { %v8415_v13 = vmax.f32 %v8333_v37, %v8374_v32  ;;  %v8334_v39 = vadd.f32 %v18394_v58, %v8286_v10 }
 0x943   : > { %v8223_v52 = vpop.f32.mrb[80].mxu1 }
 0x944   : > { %v8375_v5 = vmul.f32 0.1, %v8334_v39  ;;  %v8287_v29 = vadd.f32 %v8223_v52, %v18374_v4  ;;  %v13271_v15 = vpop.f32.mrb[81].mxu1  ;;  %13419 = vmatmul.mubr.f32.gmra.mrb[78].mxu0 %v8415_v13 }
 0x945   : > { %13421 = vmatprep.mubr.msk.f32.mxu0 %vm14006_vm0, %v18485_v38 }
 0x946   : > { %v8416_v26 = vmax.f32 %v8334_v39, %v8375_v5  ;;  %v8335_v27 = vadd.f32 %v18394_v58, %v8287_v29 }
 0x947   : > { %v8228_v30 = vpop.f32.mrb[82].mxu1 }
 0x948   : > { %v8376_v41 = vmul.f32 0.1, %v8335_v27  ;;  %v8288_v25 = vadd.f32 %v8228_v30, %v18377_v34  ;;  %v13274_v36 = vpop.f32.mrb[83].mxu1  ;;  %13422 = vmatmul.mubr.f32.gmra.mrb[80].mxu0 %v8416_v26 }
 0x949   : > { %13424 = vmatprep.mubr.msk.f32.mxu0 %vm14006_vm0, %v18485_v38 }
 0x94a   : > { %v8417_v62 = vmax.f32 %v8335_v27, %v8376_v41  ;;  %v8336_v4 = vadd.f32 %v18394_v58, %v8288_v25 }
 0x94b   : > { %v8233_v47 = vpop.f32.mrb[84].mxu1 }
 0x94c   : > { %v8377_v54 = vmul.f32 0.1, %v8336_v4  ;;  %v8289_v19 = vadd.f32 %v8233_v47, %v18380_v56  ;;  %v13277_v8 = vpop.f32.mrb[85].mxu1  ;;  %13425 = vmatmul.mubr.f32.gmra.mrb[82].mxu0 %v8417_v62 }
 0x94d   : > { %13427 = vmatprep.mubr.msk.f32.mxu0 %vm14006_vm0, %v18485_v38 }
 0x94e   : > { %v8418_v9 = vmax.f32 %v8336_v4, %v8377_v54  ;;  %v8337_v34 = vadd.f32 %v18394_v58, %v8289_v19 }
 0x94f   : > { %v8238_v12 = vpop.f32.mrb[86].mxu1 }
 0x950   : > { %v8378_v2 = vmul.f32 0.1, %v8337_v34  ;;  %v8290_v49 = vadd.f32 %v8238_v12, %v18383_v40  ;;  %v13280_v24 = vpop.f32.mrb[87].mxu1  ;;  %13428 = vmatmul.mubr.f32.gmra.mrb[84].mxu0 %v8418_v9 }
 0x951   : > { %13430 = vmatprep.mubr.msk.f32.mxu0 %vm14006_vm0, %v18485_v38 }
 0x952   : > { %v8419_v11 = vmax.f32 %v8337_v34, %v8378_v2  ;;  %v8338_v56 = vadd.f32 %v18394_v58, %v8290_v49 }
 0x953   : > { %v8243_v43 = vpop.f32.mrb[88].mxu1 }
 0x954   : > { %v8379_v48 = vmul.f32 0.1, %v8338_v56  ;;  %v8291_v18 = vadd.f32 %v8243_v43, %v18386_v6  ;;  %v13283_v3 = vpop.f32.mrb[89].mxu1  ;;  %13431 = vmatmul.mubr.f32.gmra.mrb[86].mxu0 %v8419_v11 }
 0x955   : > { %13433 = vmatprep.mubr.msk.f32.mxu0 %vm14006_vm0, %v18485_v38 }
 0x956   : > { %v8420_v16 = vmax.f32 %v8338_v56, %v8379_v48  ;;  %v8339_v40 = vadd.f32 %v18394_v58, %v8291_v18 }
 0x957   : > { %v8248_v57 = vpop.f32.mrb[90].mxu1 }
 0x958   : > { %v8380_v1 = vmul.f32 0.1, %v8339_v40  ;;  %v8292_v35 = vadd.f32 %v8248_v57, %v18389_v7  ;;  %v13286_v17 = vpop.f32.mrb[91].mxu1  ;;  %13434 = vmatmul.mubr.f32.gmra.mrb[88].mxu0 %v8420_v16  ;;  %v18563_v7 = vld [vmem:[%s18668_s11] ss:$0 sm:$0xff] }
 0x959   : > { %13436 = vmatprep.mubr.msk.f32.mxu0 %vm14006_vm0, %v18485_v38 }
 0x95a   : > { %v8421_v42 = vmax.f32 %v8339_v40, %v8380_v1  ;;  %v8340_v6 = vadd.f32 %v18394_v58, %v8292_v35 }
 0x95c   : > { %v8381_v61 = vmul.f32 0.1, %v8340_v6  ;;  %13437 = vmatmul.mubr.f32.gmra.mrb[90].mxu0 %v8421_v42 }
 0x95d   : > { %13439 = vmatprep.mubr.msk.f32.mxu0 %vm14006_vm0, %v18485_v38 }
 0x95e   : > { %v8422_v28 = vmax.f32 %v8340_v6, %v8381_v61 }
 0x960   : > { %13440 = vmatmul.mubr.f32.gmra.mrb[92].mxu0 %v8422_v28 }
 0x993   : > { %v8594_v51 = vpop.f32.mrb[12].mxu0 }
 0x994   : > { %v8595_v33 = vadd.f32 %v18563_v7, %v8594_v51  ;;  %v13321_v45 = vpop.f32.mrb[13].mxu0 }
 0x996   : > { %v8798_v44 = vmul.f32 0.1, %v8595_v33 }
 0x997   : > { %v8599_v58 = vpop.f32.mrb[14].mxu0 }
 0x998   : > { %v8839_v38 = vmax.f32 %v8595_v33, %v8798_v44  ;;  %v8600_v31 = vadd.f32 %v18563_v7, %v8599_v58  ;;  %v13324_v14 = vpop.f32.mrb[15].mxu0 }
 0x99a   : > { %8880 = vst [vmem:[%s18571_s16] sm:$0xff] %v8839_v38  ;;  %v8799_v23 = vmul.f32 0.1, %v8600_v31 }
 0x99b   : > { %v8604_v55 = vpop.f32.mrb[16].mxu0 }
 0x99c   : > { %v8840_v63 = vmax.f32 %v8600_v31, %v8799_v23  ;;  %v8605_v20 = vadd.f32 %v18563_v7, %v8604_v55  ;;  %v13327_v53 = vpop.f32.mrb[17].mxu0 }
 0x99e   : > { %8881 = vst [vmem:[%s18571_s16 + $0x8] sm:$0xff] %v8840_v63  ;;  %v8800_v21 = vmul.f32 0.1, %v8605_v20 }
 0x99f   : > { %v8609_v59 = vpop.f32.mrb[18].mxu0 }
 0x9a0   : > { %v8841_v22 = vmax.f32 %v8605_v20, %v8800_v21  ;;  %v8610_v46 = vadd.f32 %v18563_v7, %v8609_v59  ;;  %v13330_v50 = vpop.f32.mrb[19].mxu0 }
 0x9a2   : > { %8882 = vst [vmem:[%s18571_s16 + $0x10] sm:$0xff] %v8841_v22  ;;  %v8801_v37 = vmul.f32 0.1, %v8610_v46 }
 0x9a3   : > { %v8614_v60 = vpop.f32.mrb[20].mxu0 }
 0x9a4   : > { %v8842_v32 = vmax.f32 %v8610_v46, %v8801_v37  ;;  %v8615_v10 = vadd.f32 %v18563_v7, %v8614_v60  ;;  %v13333_v0 = vpop.f32.mrb[21].mxu0 }
 0x9a6   : > { %8883 = vst [vmem:[%s18571_s16 + $0x18] sm:$0xff] %v8842_v32  ;;  %v8802_v13 = vmul.f32 0.1, %v8615_v10 }
 0x9a7   : > { %v8619_v39 = vpop.f32.mrb[22].mxu0 }
 0x9a8   : > { %v8843_v52 = vmax.f32 %v8615_v10, %v8802_v13  ;;  %v8620_v5 = vadd.f32 %v18563_v7, %v8619_v39  ;;  %v13336_v29 = vpop.f32.mrb[23].mxu0 }
 0x9aa   : > { %8884 = vst [vmem:[%s18571_s16 + $0x20] sm:$0xff] %v8843_v52  ;;  %v8803_v15 = vmul.f32 0.1, %v8620_v5 }
 0x9ab   : > { %v8624_v26 = vpop.f32.mrb[24].mxu0 }
 0x9ac   : > { %v8844_v27 = vmax.f32 %v8620_v5, %v8803_v15  ;;  %v8625_v30 = vadd.f32 %v18563_v7, %v8624_v26  ;;  %v13339_v41 = vpop.f32.mrb[25].mxu0 }
 0x9ae   : > { %8885 = vst [vmem:[%s18571_s16 + $0x28] sm:$0xff] %v8844_v27  ;;  %v8804_v25 = vmul.f32 0.1, %v8625_v30 }
 0x9af   : > { %v8629_v36 = vpop.f32.mrb[26].mxu0 }
 0x9b0   : > { %v8845_v62 = vmax.f32 %v8625_v30, %v8804_v25  ;;  %v8630_v4 = vadd.f32 %v18563_v7, %v8629_v36  ;;  %v13342_v47 = vpop.f32.mrb[27].mxu0 }
 0x9b2   : > { %8886 = vst [vmem:[%s18571_s16 + $0x30] sm:$0xff] %v8845_v62  ;;  %v8805_v54 = vmul.f32 0.1, %v8630_v4 }
 0x9b3   : > { %v8634_v19 = vpop.f32.mrb[28].mxu0 }
 0x9b4   : > { %v8846_v8 = vmax.f32 %v8630_v4, %v8805_v54  ;;  %v8635_v9 = vadd.f32 %v18563_v7, %v8634_v19  ;;  %v13345_v34 = vpop.f32.mrb[29].mxu0 }
 0x9b6   : > { %8887 = vst [vmem:[%s18571_s16 + $0x38] sm:$0xff] %v8846_v8  ;;  %v8806_v12 = vmul.f32 0.1, %v8635_v9 }
 0x9b7   : > { %v8639_v2 = vpop.f32.mrb[30].mxu0 }
 0x9b8   : > { %v8847_v49 = vmax.f32 %v8635_v9, %v8806_v12  ;;  %v8640_v24 = vadd.f32 %v18563_v7, %v8639_v2  ;;  %v13348_v11 = vpop.f32.mrb[31].mxu0 }
 0x9ba   : > { %8888 = vst [vmem:[%s18571_s16 + $0x40] sm:$0xff] %v8847_v49  ;;  %v8807_v56 = vmul.f32 0.1, %v8640_v24 }
 0x9bb   : > { %v8644_v43 = vpop.f32.mrb[32].mxu0 }
 0x9bc   : > { %v8848_v48 = vmax.f32 %v8640_v24, %v8807_v56  ;;  %v8645_v18 = vadd.f32 %v18563_v7, %v8644_v43  ;;  %v13351_v3 = vpop.f32.mrb[33].mxu0 }
 0x9be   : > { %8889 = vst [vmem:[%s18571_s16 + $0x48] sm:$0xff] %v8848_v48  ;;  %v8808_v16 = vmul.f32 0.1, %v8645_v18 }
 0x9bf   : > { %v8649_v40 = vpop.f32.mrb[34].mxu0 }
 0x9c0   : > { %v8849_v57 = vmax.f32 %v8645_v18, %v8808_v16  ;;  %v8650_v1 = vadd.f32 %v18563_v7, %v8649_v40  ;;  %v13354_v35 = vpop.f32.mrb[35].mxu0 }
 0x9c2   : > { %8890 = vst [vmem:[%s18571_s16 + $0x50] sm:$0xff] %v8849_v57  ;;  %v8809_v17 = vmul.f32 0.1, %v8650_v1 }
 0x9c3   : > { %v8654_v42 = vpop.f32.mrb[36].mxu0 }
 0x9c4   : > { %v8850_v6 = vmax.f32 %v8650_v1, %v8809_v17  ;;  %v8655_v61 = vadd.f32 %v18563_v7, %v8654_v42  ;;  %v13357_v28 = vpop.f32.mrb[37].mxu0 }
 0x9c6   : > { %8891 = vst [vmem:[%s18571_s16 + $0x58] sm:$0xff] %v8850_v6  ;;  %v8810_v51 = vmul.f32 0.1, %v8655_v61 }
 0x9c7   : > { %v8659_v33 = vpop.f32.mrb[38].mxu0 }
 0x9c8   : > { %v8851_v45 = vmax.f32 %v8655_v61, %v8810_v51  ;;  %v8660_v44 = vadd.f32 %v18563_v7, %v8659_v33  ;;  %v13360_v58 = vpop.f32.mrb[39].mxu0 }
 0x9ca   : > { %8892 = vst [vmem:[%s18571_s16 + $0x60] sm:$0xff] %v8851_v45  ;;  %v8811_v38 = vmul.f32 0.1, %v8660_v44 }
 0x9cb   : > { %v8664_v31 = vpop.f32.mrb[40].mxu0 }
 0x9cc   : > { %v8852_v14 = vmax.f32 %v8660_v44, %v8811_v38  ;;  %v8665_v23 = vadd.f32 %v18563_v7, %v8664_v31  ;;  %v13363_v55 = vpop.f32.mrb[41].mxu0 }
 0x9ce   : > { %8893 = vst [vmem:[%s18571_s16 + $0x68] sm:$0xff] %v8852_v14  ;;  %v8812_v63 = vmul.f32 0.1, %v8665_v23 }
 0x9cf   : > { %v8669_v20 = vpop.f32.mrb[42].mxu0 }
 0x9d0   : > { %v8853_v53 = vmax.f32 %v8665_v23, %v8812_v63  ;;  %v8670_v21 = vadd.f32 %v18563_v7, %v8669_v20  ;;  %v13366_v59 = vpop.f32.mrb[43].mxu0 }
 0x9d2   : > { %8894 = vst [vmem:[%s18571_s16 + $0x70] sm:$0xff] %v8853_v53  ;;  %v8813_v22 = vmul.f32 0.1, %v8670_v21 }
 0x9d3   : > { %v8674_v46 = vpop.f32.mrb[44].mxu0 }
 0x9d4   : > { %v8854_v50 = vmax.f32 %v8670_v21, %v8813_v22  ;;  %v8675_v37 = vadd.f32 %v18563_v7, %v8674_v46  ;;  %v13369_v60 = vpop.f32.mrb[45].mxu0 }
 0x9d6   : > { %8895 = vst [vmem:[%s18571_s16 + $0x78] sm:$0xff] %v8854_v50  ;;  %v8814_v32 = vmul.f32 0.1, %v8675_v37 }
 0x9d7   : > { %v8679_v10 = vpop.f32.mrb[46].mxu0 }
 0x9d8   : > { %v8855_v0 = vmax.f32 %v8675_v37, %v8814_v32  ;;  %v8680_v13 = vadd.f32 %v18563_v7, %v8679_v10  ;;  %v13372_v39 = vpop.f32.mrb[47].mxu0 }
 0x9da   : > { %8896 = vst [vmem:[%s18571_s16 + $0x80] sm:$0xff] %v8855_v0  ;;  %v8815_v52 = vmul.f32 0.1, %v8680_v13 }
 0x9db   : > { %v8684_v5 = vpop.f32.mrb[48].mxu0 }
 0x9dc   : > { %v8856_v29 = vmax.f32 %v8680_v13, %v8815_v52  ;;  %v8685_v15 = vadd.f32 %v18563_v7, %v8684_v5  ;;  %v13375_v26 = vpop.f32.mrb[49].mxu0 }
 0x9de   : > { %8897 = vst [vmem:[%s18571_s16 + $0x88] sm:$0xff] %v8856_v29  ;;  %v8816_v27 = vmul.f32 0.1, %v8685_v15 }
 0x9df   : > { %v8689_v30 = vpop.f32.mrb[50].mxu0 }
 0x9e0   : > { %v8857_v41 = vmax.f32 %v8685_v15, %v8816_v27  ;;  %v8690_v25 = vadd.f32 %v18563_v7, %v8689_v30  ;;  %v13378_v36 = vpop.f32.mrb[51].mxu0 }
 0x9e2   : > { %8898 = vst [vmem:[%s18571_s16 + $0x90] sm:$0xff] %v8857_v41  ;;  %v8817_v62 = vmul.f32 0.1, %v8690_v25 }
 0x9e3   : > { %v8694_v4 = vpop.f32.mrb[52].mxu0 }
 0x9e4   : > { %v8858_v47 = vmax.f32 %v8690_v25, %v8817_v62  ;;  %v8695_v54 = vadd.f32 %v18563_v7, %v8694_v4  ;;  %v13381_v19 = vpop.f32.mrb[53].mxu0 }
 0x9e6   : > { %8899 = vst [vmem:[%s18571_s16 + $0x98] sm:$0xff] %v8858_v47  ;;  %v8818_v8 = vmul.f32 0.1, %v8695_v54 }
 0x9e7   : > { %v8699_v9 = vpop.f32.mrb[54].mxu0 }
 0x9e8   : > { %v8859_v34 = vmax.f32 %v8695_v54, %v8818_v8  ;;  %v8700_v12 = vadd.f32 %v18563_v7, %v8699_v9  ;;  %v13384_v2 = vpop.f32.mrb[55].mxu0 }
 0x9ea   : > { %8900 = vst [vmem:[%s18571_s16 + $0xa0] sm:$0xff] %v8859_v34  ;;  %v8819_v49 = vmul.f32 0.1, %v8700_v12 }
 0x9eb   : > { %v8704_v24 = vpop.f32.mrb[56].mxu0 }
 0x9ec   : > { %v8860_v11 = vmax.f32 %v8700_v12, %v8819_v49  ;;  %v8705_v56 = vadd.f32 %v18563_v7, %v8704_v24  ;;  %v13387_v43 = vpop.f32.mrb[57].mxu0 }
 0x9ee   : > { %8901 = vst [vmem:[%s18571_s16 + $0xa8] sm:$0xff] %v8860_v11  ;;  %v8820_v48 = vmul.f32 0.1, %v8705_v56 }
 0x9ef   : > { %v8709_v18 = vpop.f32.mrb[58].mxu0 }
 0x9f0   : > { %v8861_v3 = vmax.f32 %v8705_v56, %v8820_v48  ;;  %v8710_v16 = vadd.f32 %v18563_v7, %v8709_v18  ;;  %v13390_v40 = vpop.f32.mrb[59].mxu0 }
 0x9f2   : > { %8902 = vst [vmem:[%s18571_s16 + $0xb0] sm:$0xff] %v8861_v3  ;;  %v8821_v57 = vmul.f32 0.1, %v8710_v16 }
 0x9f3   : > { %v8714_v1 = vpop.f32.mrb[60].mxu0 }
 0x9f4   : > { %v8862_v35 = vmax.f32 %v8710_v16, %v8821_v57  ;;  %v8715_v17 = vadd.f32 %v18563_v7, %v8714_v1  ;;  %v13393_v42 = vpop.f32.mrb[61].mxu0 }
 0x9f6   : > { %8903 = vst [vmem:[%s18571_s16 + $0xb8] sm:$0xff] %v8862_v35  ;;  %v8822_v6 = vmul.f32 0.1, %v8715_v17 }
 0x9f7   : > { %v8719_v61 = vpop.f32.mrb[62].mxu0 }
 0x9f8   : > { %v8863_v28 = vmax.f32 %v8715_v17, %v8822_v6  ;;  %v8720_v51 = vadd.f32 %v18563_v7, %v8719_v61  ;;  %v13396_v33 = vpop.f32.mrb[63].mxu0 }
 0x9fa   : > { %8904 = vst [vmem:[%s18571_s16 + $0xc0] sm:$0xff] %v8863_v28  ;;  %v8823_v45 = vmul.f32 0.1, %v8720_v51 }
 0x9fb   : > { %v8724_v44 = vpop.f32.mrb[64].mxu0 }
 0x9fc   : > { %v8864_v58 = vmax.f32 %v8720_v51, %v8823_v45  ;;  %v8725_v38 = vadd.f32 %v18563_v7, %v8724_v44  ;;  %v13399_v31 = vpop.f32.mrb[65].mxu0 }
 0x9fe   : > { %8905 = vst [vmem:[%s18571_s16 + $0xc8] sm:$0xff] %v8864_v58  ;;  %v8824_v14 = vmul.f32 0.1, %v8725_v38 }
 0x9ff   : > { %v8729_v23 = vpop.f32.mrb[66].mxu0 }
 0xa00   : > { %v8865_v55 = vmax.f32 %v8725_v38, %v8824_v14  ;;  %v8730_v63 = vadd.f32 %v18563_v7, %v8729_v23  ;;  %v13402_v20 = vpop.f32.mrb[67].mxu0 }
 0xa02   : > { %8906 = vst [vmem:[%s18571_s16 + $0xd0] sm:$0xff] %v8865_v55  ;;  %v8825_v53 = vmul.f32 0.1, %v8730_v63 }
 0xa03   : > { %v8734_v21 = vpop.f32.mrb[68].mxu0 }
 0xa04   : > { %v8866_v59 = vmax.f32 %v8730_v63, %v8825_v53  ;;  %v8735_v22 = vadd.f32 %v18563_v7, %v8734_v21  ;;  %v13405_v46 = vpop.f32.mrb[69].mxu0 }
 0xa06   : > { %8907 = vst [vmem:[%s18571_s16 + $0xd8] sm:$0xff] %v8866_v59  ;;  %v8826_v50 = vmul.f32 0.1, %v8735_v22 }
 0xa07   : > { %v8739_v37 = vpop.f32.mrb[70].mxu0 }
 0xa08   : > { %v8867_v60 = vmax.f32 %v8735_v22, %v8826_v50  ;;  %v8740_v32 = vadd.f32 %v18563_v7, %v8739_v37  ;;  %v13408_v10 = vpop.f32.mrb[71].mxu0 }
 0xa0a   : > { %8908 = vst [vmem:[%s18571_s16 + $0xe0] sm:$0xff] %v8867_v60  ;;  %v8827_v0 = vmul.f32 0.1, %v8740_v32 }
 0xa0b   : > { %v8744_v13 = vpop.f32.mrb[72].mxu0 }
 0xa0c   : > { %v8868_v39 = vmax.f32 %v8740_v32, %v8827_v0  ;;  %v8745_v52 = vadd.f32 %v18563_v7, %v8744_v13  ;;  %v13411_v5 = vpop.f32.mrb[73].mxu0 }
 0xa0e   : > { %8909 = vst [vmem:[%s18571_s16 + $0xe8] sm:$0xff] %v8868_v39  ;;  %v8828_v29 = vmul.f32 0.1, %v8745_v52 }
 0xa0f   : > { %v8749_v15 = vpop.f32.mrb[74].mxu0 }
 0xa10   : > { %v8869_v26 = vmax.f32 %v8745_v52, %v8828_v29  ;;  %v8750_v27 = vadd.f32 %v18563_v7, %v8749_v15  ;;  %v13414_v30 = vpop.f32.mrb[75].mxu0 }
 0xa12   : > { %8910 = vst [vmem:[%s18571_s16 + $0xf0] sm:$0xff] %v8869_v26  ;;  %v8829_v41 = vmul.f32 0.1, %v8750_v27 }
 0xa13   : > { %v8754_v25 = vpop.f32.mrb[76].mxu0 }
 0xa14   : > { %v8870_v36 = vmax.f32 %v8750_v27, %v8829_v41  ;;  %v8755_v62 = vadd.f32 %v18563_v7, %v8754_v25  ;;  %v13417_v4 = vpop.f32.mrb[77].mxu0 }
 0xa16   : > { %8911 = vst [vmem:[%s18571_s16 + $0xf8] sm:$0xff] %v8870_v36  ;;  %v8830_v47 = vmul.f32 0.1, %v8755_v62 }
 0xa17   : > { %v8759_v54 = vpop.f32.mrb[78].mxu0 }
 0xa18   : > { %v8871_v19 = vmax.f32 %v8755_v62, %v8830_v47  ;;  %v8760_v8 = vadd.f32 %v18563_v7, %v8759_v54  ;;  %v13420_v9 = vpop.f32.mrb[79].mxu0 }
 0xa1a   : > { %8912 = vst [vmem:[%s18571_s16 + $0x100] sm:$0xff] %v8871_v19  ;;  %v8831_v34 = vmul.f32 0.1, %v8760_v8 }
 0xa1b   : > { %v8764_v12 = vpop.f32.mrb[80].mxu0 }
 0xa1c   : > { %v8872_v2 = vmax.f32 %v8760_v8, %v8831_v34  ;;  %v8765_v49 = vadd.f32 %v18563_v7, %v8764_v12  ;;  %v13423_v24 = vpop.f32.mrb[81].mxu0 }
 0xa1e   : > { %8913 = vst [vmem:[%s18571_s16 + $0x108] sm:$0xff] %v8872_v2  ;;  %v8832_v11 = vmul.f32 0.1, %v8765_v49 }
 0xa1f   : > { %v8769_v56 = vpop.f32.mrb[82].mxu0 }
 0xa20   : > { %v8873_v43 = vmax.f32 %v8765_v49, %v8832_v11  ;;  %v8770_v48 = vadd.f32 %v18563_v7, %v8769_v56  ;;  %v13426_v18 = vpop.f32.mrb[83].mxu0 }
 0xa22   : > { %8914 = vst [vmem:[%s18571_s16 + $0x110] sm:$0xff] %v8873_v43  ;;  %v8833_v3 = vmul.f32 0.1, %v8770_v48 }
 0xa23   : > { %v8774_v16 = vpop.f32.mrb[84].mxu0 }
 0xa24   : > { %v8874_v40 = vmax.f32 %v8770_v48, %v8833_v3  ;;  %v8775_v57 = vadd.f32 %v18563_v7, %v8774_v16  ;;  %v13429_v1 = vpop.f32.mrb[85].mxu0 }
 0xa26   : > { %8915 = vst [vmem:[%s18571_s16 + $0x118] sm:$0xff] %v8874_v40  ;;  %v8834_v35 = vmul.f32 0.1, %v8775_v57 }
 0xa27   : > { %v8779_v17 = vpop.f32.mrb[86].mxu0 }
 0xa28   : > { %v8875_v42 = vmax.f32 %v8775_v57, %v8834_v35  ;;  %v8780_v6 = vadd.f32 %v18563_v7, %v8779_v17  ;;  %v13432_v61 = vpop.f32.mrb[87].mxu0 }
 0xa2a   : > { %8916 = vst [vmem:[%s18571_s16 + $0x120] sm:$0xff] %v8875_v42  ;;  %v8835_v28 = vmul.f32 0.1, %v8780_v6 }
 0xa2b   : > { %v8784_v51 = vpop.f32.mrb[88].mxu0 }
 0xa2c   : > { %v8876_v33 = vmax.f32 %v8780_v6, %v8835_v28  ;;  %v8785_v45 = vadd.f32 %v18563_v7, %v8784_v51  ;;  %v13435_v44 = vpop.f32.mrb[89].mxu0 }
 0xa2e   : > { %8917 = vst [vmem:[%s18571_s16 + $0x128] sm:$0xff] %v8876_v33  ;;  %v8836_v58 = vmul.f32 0.1, %v8785_v45 }
 0xa2f   : > { %v8789_v38 = vpop.f32.mrb[90].mxu0 }
 0xa30   : > { %v8877_v31 = vmax.f32 %v8785_v45, %v8836_v58  ;;  %v8790_v14 = vadd.f32 %v18563_v7, %v8789_v38  ;;  %v13438_v23 = vpop.f32.mrb[91].mxu0 }
 0xa32   : > { %8918 = vst [vmem:[%s18571_s16 + $0x130] sm:$0xff] %v8877_v31  ;;  %v8837_v55 = vmul.f32 0.1, %v8790_v14 }
 0xa33   : > { %v8794_v63 = vpop.f32.mrb[92].mxu0 }
 0xa34   : > { %v8878_v20 = vmax.f32 %v8790_v14, %v8837_v55  ;;  %v8795_v53 = vadd.f32 %v18563_v7, %v8794_v63  ;;  %v13441_v21 = vpop.f32.mrb[93].mxu0 }
 0xa36   : > { %8919 = vst [vmem:[%s18571_s16 + $0x138] sm:$0xff] %v8878_v20  ;;  %v8838_v59 = vmul.f32 0.1, %v8795_v53 }
 0xa38   : > { %v8879_v22 = vmax.f32 %v8795_v53, %v8838_v59 }
 0xa3a   : > { %8920 = vst [vmem:[%s18571_s16 + $0x140] sm:$0xff] %v8879_v22 }
 0xa3b PF: > { %s22_s21 = sadd.s32 1, %s14002_s21  }
 0xa3c   : > { %p19_p4 = scmp.ge.s32.totalorder %s22_s21, 4  }
 0xa3e   :  { %21 = sbr.rel (!%p19_p4) target bundleno = 1 (0x1), region = 98 }

</bundles_post_ra>
